<compile_context>
chip_gen: v7x
topology: tpu7x:2x2x1
jax: 0.10.0
libtpu: 0.0.40
codegen_flags: <defaults>
</compile_context>

<pallas_src>
import math
import functools

import jax
import jax.numpy as jnp
from jax.experimental import pallas as pl
from jax.experimental.pallas import tpu as pltpu

_VMEM_LIMIT = 48 * 1024 * 1024   # bounded for v7x (64 MiB physical VMEM per TC)
_EPS = 1e-5                      # PyTorch LayerNorm default


# ----------------------------- tile helpers ---------------------------------

def _row_tile(m, cap=256):
    """Row tile (multiple of 8); aims for >= 2 grid steps so both v7x TCs get work."""
    if m <= 8:
        return m
    half = (((m + 1) // 2) + 7) // 8 * 8
    return max(8, min(cap, half, m))


def _col_tile(n, cap=1024):
    """Lane-dense column tile (multiple of 128 where possible)."""
    if n <= cap:
        return n
    for t in (1024, 768, 512, 384, 256, 128):
        if t <= cap and n % t == 0:
            return t
    return min(cap, 512)


# --------------------------- in-kernel helpers -------------------------------

def _layernorm(y, g, b, eps):
    mean = jnp.mean(y, axis=-1, keepdims=True)
    var = jnp.mean((y - mean) ** 2, axis=-1, keepdims=True)
    return (y - mean) * jax.lax.rsqrt(var + eps) * g + b


def _attention(xq_bf, xkv_bf, mask, wqkv_ref, bqkv_ref, wo_ref, bo_ref, nhead):
    """Head-batched attention for one sequence.

    xq_bf: (Tq, D) bf16, xkv_bf: (Tk, D) bf16, mask: (Tq, Tk) additive f32.
    wqkv_ref: (3, H, D, Dh) bf16  (1/sqrt(Dh) folded into the Q slot),
    bqkv_ref: (3, H, 1, Dh) f32, wo_ref: (H, Dh, D) bf16, bo_ref: (1, D) f32.
    Returns (Tq, D) f32.
    """
    H = nhead
    Tq, D = xq_bf.shape
    Tk = xkv_bf.shape[0]

    xq_h = jnp.broadcast_to(xq_bf[None], (H, Tq, D))
    # self-attention: reuse the same broadcast operand (activation DMA'd once).
    xkv_h = xq_h if xkv_bf is xq_bf else jnp.broadcast_to(xkv_bf[None], (H, Tk, D))

    proj = (((2,), (1,)), ((0,), (0,)))            # batch over head, contract over D
    q = jax.lax.dot_general(xq_h, wqkv_ref[0], proj,
                            preferred_element_type=jnp.float32) + bqkv_ref[0]
    k = jax.lax.dot_general(xkv_h, wqkv_ref[1], proj,
                            preferred_element_type=jnp.float32) + bqkv_ref[1]
    v = jax.lax.dot_general(xkv_h, wqkv_ref[2], proj,
                            preferred_element_type=jnp.float32) + bqkv_ref[2]

    # scores (H, Tq, Tk): single head-batched contraction (scale already in wq/bq).
    s = jax.lax.dot_general(q.astype(jnp.bfloat16), k.astype(jnp.bfloat16),
                            (((2,), (2,)), ((0,), (0,))),
                            preferred_element_type=jnp.float32)
    s = s + mask[None]
    s = s - jnp.max(s, axis=-1, keepdims=True)
    p = jnp.exp(s)                                 # f32 softmax math (v5e-safe)
    p = p * pl.reciprocal(jnp.sum(p, axis=-1, keepdims=True), approx=True)

    # per-head context (H, Tq, Dh), one batched matmul.
    ctx = jax.lax.dot_general(p.astype(jnp.bfloat16), v.astype(jnp.bfloat16),
                              (((2,), (1,)), ((0,), (0,))),
                              preferred_element_type=jnp.float32)
    # per-head output-projection blocks; summing over heads == concat + single out-proj.
    oh = jax.lax.dot_general(ctx.astype(jnp.bfloat16), wo_ref[...],
                             (((2,), (1,)), ((0,), (0,))),
                             preferred_element_type=jnp.float32)   # (H, Tq, D)
    out = oh[0]
    for h in range(1, H):                          # leading-dim adds: no lane shuffles
        out = out + oh[h]
    return out + bo_ref[...]


def _ffn(y, w1_ref, b1_ref, w2_ref, b2_ref):
    h = jnp.dot(y.astype(jnp.bfloat16), w1_ref[...],
                preferred_element_type=jnp.float32) + b1_ref[...]
    h = jnp.maximum(h, 0.0)
    return jnp.dot(h.astype(jnp.bfloat16), w2_ref[...],
                   preferred_element_type=jnp.float32) + b2_ref[...]


# ----------------------------- Pallas kernels -------------------------------

def _enc_layer_kernel(x_ref, mask_ref,
                      wqkv_ref, bqkv_ref, wo_ref, bo_ref,
                      g1_ref, b1_ref,
                      w1_ref, fb1_ref, w2_ref, fb2_ref,
                      g2_ref, b2_ref,
                      gf_ref, bf_ref,
                      o_ref, *, nhead, eps, final_norm):
    """One full encoder layer (post-LN) for one batch slice (+ optional encoder final LN)."""
    x_bf = x_ref[0]                                # (S, D) bf16 -- used for Q and K/V
    x = x_bf.astype(jnp.float32)
    attn = _attention(x_bf, x_bf, mask_ref[...],
                      wqkv_ref, bqkv_ref, wo_ref, bo_ref, nhead)
    y = _layernorm(x + attn, g1_ref[...], b1_ref[...], eps)
    z = _layernorm(y + _ffn(y, w1_ref, fb1_ref, w2_ref, fb2_ref),
                   g2_ref[...], b2_ref[...], eps)
    if final_norm:                                 # fused encoder-stack final LayerNorm
        z = _layernorm(z, gf_ref[...], bf_ref[...], eps)
    o_ref[0] = z.astype(o_ref.dtype)


def _dec_layer_kernel(y_ref, mem_ref, tmask_ref, mmask_ref,
                      s_wqkv_ref, s_bqkv_ref, s_wo_ref, s_bo_ref,
                      g1_ref, b1_ref,
                      c_wqkv_ref, c_bqkv_ref, c_wo_ref, c_bo_ref,
                      g2_ref, b2_ref,
                      w1_ref, fb1_ref, w2_ref, fb2_ref,
                      g3_ref, b3_ref,
                      gf_ref, bf_ref,
                      o_ref, *, nhead, eps, final_norm):
    """One full decoder layer (post-LN) for one batch slice (+ optional decoder final LN)."""
    y_bf = y_ref[0]                                # (T, D) bf16
    y = y_bf.astype(jnp.float32)
    sa = _attention(y_bf, y_bf, tmask_ref[...],
                    s_wqkv_ref, s_bqkv_ref, s_wo_ref, s_bo_ref, nhead)
    u = _layernorm(y + sa, g1_ref[...], b1_ref[...], eps)
    ca = _attention(u.astype(jnp.bfloat16), mem_ref[0], mmask_ref[...],
                    c_wqkv_ref, c_bqkv_ref, c_wo_ref, c_bo_ref, nhead)
    w = _layernorm(u + ca, g2_ref[...], b2_ref[...], eps)
    z = _layernorm(w + _ffn(w, w1_ref, fb1_ref, w2_ref, fb2_ref),
                   g3_ref[...], b3_ref[...], eps)
    if final_norm:                                 # fused decoder-stack final LayerNorm
        z = _layernorm(z, gf_ref[...], bf_ref[...], eps)
    o_ref[0] = z.astype(o_ref.dtype)


def _linear_kernel(x_ref, w_ref, b_ref, o_ref):
    o_ref[...] = (jnp.dot(x_ref[...], w_ref[...], preferred_element_type=jnp.float32)
                  + b_ref[...]).astype(o_ref.dtype)


# ----------------------------- Pallas wrappers -------------------------------

def _attn_specs(H, Dh, D):
    c2 = lambda i: (0, 0)
    c3 = lambda i: (0, 0, 0)
    c4 = lambda i: (0, 0, 0, 0)
    return [pl.BlockSpec((3, H, D, Dh), c4),       # wqkv (q slot pre-scaled)
            pl.BlockSpec((3, H, 1, Dh), c4),       # bqkv
            pl.BlockSpec((H, Dh, D), c3),          # wo (head-blocked rows)
            pl.BlockSpec((1, D), c2)]              # bo


def encoder_layer_block(x, mask, p, final_g, final_b, *, nhead, final_norm, eps=_EPS):
    B, S, D = x.shape
    F = p["w1"].shape[1]
    H, Dh = nhead, D // nhead
    c2 = lambda i: (0, 0)
    vec = lambda: pl.BlockSpec((1, D), c2)
    return pl.pallas_call(
        functools.partial(_enc_layer_kernel, nhead=nhead, eps=eps, final_norm=final_norm),
        grid=(B,),
        in_specs=[
            pl.BlockSpec((1, S, D), lambda i: (i, 0, 0)),      # x (shared Q / K / V input)
            pl.BlockSpec((S, S), c2),                          # additive mask
            *_attn_specs(H, Dh, D),                            # self-attention params
            vec(), vec(),                                      # ln1 gamma/beta
            pl.BlockSpec((D, F), c2), pl.BlockSpec((1, F), c2),  # w1, b1
            pl.BlockSpec((F, D), c2), vec(),                   # w2, b2
            vec(), vec(),                                      # ln2 gamma/beta
            vec(), vec(),                                      # encoder final LN gamma/beta
        ],
        out_specs=pl.BlockSpec((1, S, D), lambda i: (i, 0, 0)),
        out_shape=jax.ShapeDtypeStruct((B, S, D), jnp.bfloat16),   # bf16 activations
        compiler_params=pltpu.CompilerParams(
            dimension_semantics=("parallel",),
            vmem_limit_bytes=_VMEM_LIMIT),
    )(x, mask,
      p["attn"]["wqkv"], p["attn"]["bqkv"], p["attn"]["wo"], p["attn"]["bo"],
      p["ln1_g"], p["ln1_b"],
      p["w1"], p["b1"], p["w2"], p["b2"],
      p["ln2_g"], p["ln2_b"],
      final_g, final_b)


def decoder_layer_block(y, memory, tgt_mask, memory_mask, p, final_g, final_b,
                        *, nhead, final_norm, eps=_EPS):
    B, T, D = y.shape
    S = memory.shape[1]
    F = p["w1"].shape[1]
    H, Dh = nhead, D // nhead
    c2 = lambda i: (0, 0)
    vec = lambda: pl.BlockSpec((1, D), c2)
    return pl.pallas_call(
        functools.partial(_dec_layer_kernel, nhead=nhead, eps=eps, final_norm=final_norm),
        grid=(B,),
        in_specs=[
            pl.BlockSpec((1, T, D), lambda i: (i, 0, 0)),      # y
            pl.BlockSpec((1, S, D), lambda i: (i, 0, 0)),      # encoder memory
            pl.BlockSpec((T, T), c2),                          # causal tgt mask
            pl.BlockSpec((T, S), c2),                          # memory mask
            *_attn_specs(H, Dh, D),                            # self-attention params
            vec(), vec(),                                      # ln1
            *_attn_specs(H, Dh, D),                            # cross-attention params
            vec(), vec(),                                      # ln2
            pl.BlockSpec((D, F), c2), pl.BlockSpec((1, F), c2),  # w1, b1
            pl.BlockSpec((F, D), c2), vec(),                   # w2, b2
            vec(), vec(),                                      # ln3
            vec(), vec(),                                      # decoder final LN gamma/beta
        ],
        out_specs=pl.BlockSpec((1, T, D), lambda i: (i, 0, 0)),
        out_shape=jax.ShapeDtypeStruct((B, T, D), jnp.bfloat16),
        compiler_params=pltpu.CompilerParams(
            dimension_semantics=("parallel",),
            vmem_limit_bytes=_VMEM_LIMIT),
    )(y, memory, tgt_mask, memory_mask,
      p["self_attn"]["wqkv"], p["self_attn"]["bqkv"], p["self_attn"]["wo"], p["self_attn"]["bo"],
      p["ln1_g"], p["ln1_b"],
      p["cross_attn"]["wqkv"], p["cross_attn"]["bqkv"], p["cross_attn"]["wo"], p["cross_attn"]["bo"],
      p["ln2_g"], p["ln2_b"],
      p["w1"], p["b1"], p["w2"], p["b2"],
      p["ln3_g"], p["ln3_b"],
      final_g, final_b)


def linear(x, w, b):
    """x: (M, K) bf16 @ w: (K, N) bf16 + b: (1, N) f32, tiled over (M, N); N lane-dense."""
    M, K = x.shape
    N = w.shape[1]
    tm = _row_tile(M)
    tn = _col_tile(N)
    return pl.pallas_call(
        _linear_kernel,
        grid=(pl.cdiv(M, tm), pl.cdiv(N, tn)),
        in_specs=[
            pl.BlockSpec((tm, K), lambda i, j: (i, 0)),
            pl.BlockSpec((K, tn), lambda i, j: (0, j)),
            pl.BlockSpec((1, tn), lambda i, j: (0, j)),
        ],
        out_specs=pl.BlockSpec((tm, tn), lambda i, j: (i, j)),
        out_shape=jax.ShapeDtypeStruct((M, N), jnp.float32),
        compiler_params=pltpu.CompilerParams(
            dimension_semantics=("parallel", "parallel"),
            vmem_limit_bytes=_VMEM_LIMIT),
    )(x, w, b)


# ----------------------------- model forward ---------------------------------

def transformer_model_forward(params, src, tgt, src_mask, tgt_mask, memory_mask, cfg):
    nhead = cfg["nhead"]
    S, T = src.shape[1], tgt.shape[1]

    # embedding tables pre-scaled by sqrt(d_model); the PE add fuses with the XLA gather.
    # Dropout = identity (eval).  Inter-layer activations stored in bf16.
    x = (jnp.take(params["src_emb"], src, axis=0) + params["pe"][:S]).astype(jnp.bfloat16)
    y = (jnp.take(params["tgt_emb"], tgt, axis=0) + params["pe"][:T]).astype(jnp.bfloat16)

    enc_layers = params["enc_layers"]
    for li, lp in enumerate(enc_layers):
        x = encoder_layer_block(x, src_mask, lp,
                                params["enc_norm_g"], params["enc_norm_b"],
                                nhead=nhead, final_norm=(li == len(enc_layers) - 1))
    memory = x

    dec_layers = params["dec_layers"]
    for li, lp in enumerate(dec_layers):
        y = decoder_layer_block(y, memory, tgt_mask, memory_mask, lp,
                                params["dec_norm_g"], params["dec_norm_b"],
                                nhead=nhead, final_norm=(li == len(dec_layers) - 1))

    B, T2, D = y.shape
    V = cfg["tgt_vocab_size"]
    logits = linear(y.reshape(B * T2, D), params["fc_w"], params["fc_b"])
    return logits[:, :V].reshape(B, T2, V)         # drop the 128-lane padding columns


# ----------------------------- parameter init -------------------------------

def make_positional_encoding(max_len, d_model):
    position = jnp.arange(max_len, dtype=jnp.float32)[:, None]
    div_term = jnp.exp(jnp.arange(0, d_model, 2, dtype=jnp.float32)
                       * (-math.log(10000.0) / d_model))
    pe = jnp.zeros((max_len, d_model), dtype=jnp.float32)
    pe = pe.at[:, 0::2].set(jnp.sin(position * div_term))
    pe = pe.at[:, 1::2].set(jnp.cos(position * div_term))
    return pe


def _attn_params(key, d_model, nhead):
    Dh = d_model // nhead
    ks = jax.random.split(key, 4)
    s = 0.02
    wq, wk, wv, wo = [jax.random.normal(k, (d_model, d_model), jnp.float32) * s for k in ks]

    def split_cols(w):           # (D, D) -> (H, D, Dh): column block per head
        return jnp.transpose(w.reshape(d_model, nhead, Dh), (1, 0, 2))

    scale = 1.0 / math.sqrt(Dh)                    # folded into wq / bq (free at init)
    wqkv = jnp.stack([split_cols(wq * scale), split_cols(wk), split_cols(wv)],
                     axis=0).astype(jnp.bfloat16)              # (3, H, D, Dh)
    bqkv = jnp.zeros((3, nhead, 1, Dh), jnp.float32)           # bq slot pre-scaled (zeros)
    wo3 = wo.reshape(nhead, Dh, d_model).astype(jnp.bfloat16)  # (H, Dh, D): per-head rows
    return {"wqkv": wqkv, "bqkv": bqkv, "wo": wo3,
            "bo": jnp.zeros((1, d_model), jnp.float32)}


def _ffn_params(key, d_model, dff):
    ks = jax.random.split(key, 2)
    s = 0.02
    return {
        "w1": (jax.random.normal(ks[0], (d_model, dff), jnp.float32) * s).astype(jnp.bfloat16),
        "b1": jnp.zeros((1, dff), jnp.float32),
        "w2": (jax.random.normal(ks[1], (dff, d_model), jnp.float32) * s).astype(jnp.bfloat16),
        "b2": jnp.zeros((1, d_model), jnp.float32),
    }


def _ln_pair(d_model):
    return jnp.ones((1, d_model), jnp.float32), jnp.zeros((1, d_model), jnp.float32)


def _enc_layer_params(key, d_model, nhead, dff):
    ks = jax.random.split(key, 2)
    p = {"attn": _attn_params(ks[0], d_model, nhead)}
    p.update(_ffn_params(ks[1], d_model, dff))
    p["ln1_g"], p["ln1_b"] = _ln_pair(d_model)
    p["ln2_g"], p["ln2_b"] = _ln_pair(d_model)
    return p


def _dec_layer_params(key, d_model, nhead, dff):
    ks = jax.random.split(key, 3)
    p = {"self_attn": _attn_params(ks[0], d_model, nhead),
         "cross_attn": _attn_params(ks[1], d_model, nhead)}
    p.update(_ffn_params(ks[2], d_model, dff))
    p["ln1_g"], p["ln1_b"] = _ln_pair(d_model)
    p["ln2_g"], p["ln2_b"] = _ln_pair(d_model)
    p["ln3_g"], p["ln3_b"] = _ln_pair(d_model)
    return p


def init_params(key, cfg):
    d_model, dff, nhead = cfg["d_model"], cfg["dim_feedforward"], cfg["nhead"]
    V = cfg["tgt_vocab_size"]
    v_pad = ((V + 127) // 128) * 128               # lane-dense vocab projection
    ks = jax.random.split(key, 3 + cfg["num_encoder_layers"] + cfg["num_decoder_layers"])
    s = 0.02
    emb_scale = math.sqrt(d_model)                 # pre-fold sqrt(d_model) into the tables
    fc_w = jax.random.normal(ks[2], (d_model, V), jnp.float32) * s
    fc_w = jnp.pad(fc_w, ((0, 0), (0, v_pad - V)))
    params = {
        "src_emb": jax.random.normal(ks[0], (cfg["src_vocab_size"], d_model), jnp.float32)
        * s * emb_scale,
        "tgt_emb": jax.random.normal(ks[1], (cfg["tgt_vocab_size"], d_model), jnp.float32)
        * s * emb_scale,
        "pe": make_positional_encoding(cfg["max_len"], d_model),
        "fc_w": fc_w.astype(jnp.bfloat16),
        "fc_b": jnp.zeros((1, v_pad), jnp.float32),
    }
    params["enc_norm_g"], params["enc_norm_b"] = _ln_pair(d_model)
    params["dec_norm_g"], params["dec_norm_b"] = _ln_pair(d_model)
    off = 3
    params["enc_layers"] = [_enc_layer_params(ks[off + i], d_model, nhead, dff)
                            for i in range(cfg["num_encoder_layers"])]
    off += cfg["num_encoder_layers"]
    params["dec_layers"] = [_dec_layer_params(ks[off + i], d_model, nhead, dff)
                            for i in range(cfg["num_decoder_layers"])]
    return params


# --------------------------------- main --------------------------------------

if __name__ == "__main__":
    cfg = dict(
        src_vocab_size=120,     # stand-in for bert-base-chinese vocab
        tgt_vocab_size=96,      # stand-in for bert-base-uncased vocab
        d_model=64,
        nhead=4,
        num_encoder_layers=2,
        num_decoder_layers=2,
        dim_feedforward=128,
        max_len=64,
    )
    B, S, T = 2, 8, 8

    key = jax.random.PRNGKey(0)
    kp, ksrc, ktgt = jax.random.split(key, 3)
    params = init_params(kp, cfg)

    src = jax.random.randint(ksrc, (B, S), 0, cfg["src_vocab_size"], dtype=jnp.int32)
    tgt = jax.random.randint(ktgt, (B, T), 0, cfg["tgt_vocab_size"], dtype=jnp.int32)

    # additive float attention masks (PyTorch convention): 0 = keep, -1e9 = masked
    src_mask = jnp.zeros((S, S), jnp.float32)
    tgt_mask = jnp.where(jnp.arange(T)[:, None] >= jnp.arange(T)[None, :],
                         0.0, -1e9).astype(jnp.float32)        # decoder causal mask
    memory_mask = jnp.zeros((T, S), jnp.float32)

    fwd = jax.jit(functools.partial(transformer_model_forward, cfg=cfg))
    logits = fwd(params, src, tgt, src_mask, tgt_mask, memory_mask)
    jax.block_until_ready(logits)

    assert logits.shape == (B, T, cfg["tgt_vocab_size"])
    assert bool(jnp.all(jnp.isfinite(logits)))
    print("KERNEL_OK")
</pallas_src>

<mosaic_0001>
module attributes {stable_mosaic.version = 11 : i64} {
  func.func @_enc_layer_kernel(%arg0: i32, %arg1: memref<1x8x64xbf16, #tpu.memory_space<vmem>>, %arg2: memref<8x8xf32, #tpu.memory_space<vmem>>, %arg3: memref<3x4x64x16xbf16, #tpu.memory_space<vmem>>, %arg4: memref<3x4x1x16xf32, #tpu.memory_space<vmem>>, %arg5: memref<4x16x64xbf16, #tpu.memory_space<vmem>>, %arg6: memref<1x64xf32, #tpu.memory_space<vmem>>, %arg7: memref<1x64xf32, #tpu.memory_space<vmem>>, %arg8: memref<1x64xf32, #tpu.memory_space<vmem>>, %arg9: memref<64x128xbf16, #tpu.memory_space<vmem>>, %arg10: memref<1x128xf32, #tpu.memory_space<vmem>>, %arg11: memref<128x64xbf16, #tpu.memory_space<vmem>>, %arg12: memref<1x64xf32, #tpu.memory_space<vmem>>, %arg13: memref<1x64xf32, #tpu.memory_space<vmem>>, %arg14: memref<1x64xf32, #tpu.memory_space<vmem>>, %arg15: memref<1x64xf32, #tpu.memory_space<vmem>>, %arg16: memref<1x64xf32, #tpu.memory_space<vmem>>, %arg17: memref<1x8x64xbf16, #tpu.memory_space<vmem>>) attributes {dimension_semantics = [#tpu.dimension_semantics<parallel>], iteration_bounds = array<i64: 2>, scalar_prefetch = 0 : i64, scratch_operands = 0 : i64, tpu.core_type = #tpu.core_type<tc>, window_params = [{transform_indices = @transform_0, window_bounds = array<i64: 1, 8, 64>}, {pipeline_mode = #tpu.pipeline_mode<synchronous>, transform_indices = @transform_1, window_bounds = array<i64: 8, 8>}, {pipeline_mode = #tpu.pipeline_mode<synchronous>, transform_indices = @transform_2, window_bounds = array<i64: 3, 4, 64, 16>}, {pipeline_mode = #tpu.pipeline_mode<synchronous>, transform_indices = @transform_3, window_bounds = array<i64: 3, 4, 1, 16>}, {pipeline_mode = #tpu.pipeline_mode<synchronous>, transform_indices = @transform_4, window_bounds = array<i64: 4, 16, 64>}, {pipeline_mode = #tpu.pipeline_mode<synchronous>, transform_indices = @transform_5, window_bounds = array<i64: 1, 64>}, {pipeline_mode = #tpu.pipeline_mode<synchronous>, transform_indices = @transform_6, window_bounds = array<i64: 1, 64>}, {pipeline_mode = #tpu.pipeline_mode<synchronous>, transform_indices = @transform_7, window_bounds = array<i64: 1, 64>}, {pipeline_mode = #tpu.pipeline_mode<synchronous>, transform_indices = @transform_8, window_bounds = array<i64: 64, 128>}, {pipeline_mode = #tpu.pipeline_mode<synchronous>, transform_indices = @transform_9, window_bounds = array<i64: 1, 128>}, {pipeline_mode = #tpu.pipeline_mode<synchronous>, transform_indices = @transform_10, window_bounds = array<i64: 128, 64>}, {pipeline_mode = #tpu.pipeline_mode<synchronous>, transform_indices = @transform_11, window_bounds = array<i64: 1, 64>}, {pipeline_mode = #tpu.pipeline_mode<synchronous>, transform_indices = @transform_12, window_bounds = array<i64: 1, 64>}, {pipeline_mode = #tpu.pipeline_mode<synchronous>, transform_indices = @transform_13, window_bounds = array<i64: 1, 64>}, {pipeline_mode = #tpu.pipeline_mode<synchronous>, transform_indices = @transform_14, window_bounds = array<i64: 1, 64>}, {pipeline_mode = #tpu.pipeline_mode<synchronous>, transform_indices = @transform_15, window_bounds = array<i64: 1, 64>}, {transform_indices = @transform_16, window_bounds = array<i64: 1, 8, 64>}]} {
    %c0 = arith.constant 0 : index
    %c0_0 = arith.constant 0 : index
    %c0_1 = arith.constant 0 : index
    %0 = vector.load %arg1[%c0, %c0_0, %c0_1] : memref<1x8x64xbf16, #tpu.memory_space<vmem>>, vector<1x8x64xbf16>
    %1 = vector.shape_cast %0 : vector<1x8x64xbf16> to vector<8x64xbf16>
    %2 = arith.extf %1 : vector<8x64xbf16> to vector<8x64xf32>
    %c0_2 = arith.constant 0 : index
    %c0_3 = arith.constant 0 : index
    %3 = vector.load %arg2[%c0_2, %c0_3] : memref<8x8xf32, #tpu.memory_space<vmem>>, vector<8x8xf32>
    %4 = vector.shape_cast %1 : vector<8x64xbf16> to vector<1x8x64xbf16>
    %5 = vector.shape_cast %4 : vector<1x8x64xbf16> to vector<1x8x64xbf16>
    %6 = vector.broadcast %5 : vector<1x8x64xbf16> to vector<4x8x64xbf16>
    %c0_4 = arith.constant 0 : index
    %c0_5 = arith.constant 0 : index
    %c0_6 = arith.constant 0 : index
    %c0_7 = arith.constant 0 : index
    %7 = vector.load %arg3[%c0_4, %c0_5, %c0_6, %c0_7] : memref<3x4x64x16xbf16, #tpu.memory_space<vmem>>, vector<1x4x64x16xbf16>
    %8 = vector.shape_cast %7 : vector<1x4x64x16xbf16> to vector<4x64x16xbf16>
    %cst = arith.constant dense<0.000000e+00> : vector<4x8x16xf32>
    %9 = tpu.matmul %6, %8, %cst {dimension_numbers = #tpu.dot_dimension_numbers<[2], [1], [1], [2], [0, 0, 0, 1, 1, 2], [0], [0]>} : vector<4x8x64xbf16>, vector<4x64x16xbf16>, vector<4x8x16xf32> -> vector<4x8x16xf32>
    %c0_8 = arith.constant 0 : index
    %c0_9 = arith.constant 0 : index
    %c0_10 = arith.constant 0 : index
    %c0_11 = arith.constant 0 : index
    %10 = vector.load %arg4[%c0_8, %c0_9, %c0_10, %c0_11] : memref<3x4x1x16xf32, #tpu.memory_space<vmem>>, vector<1x4x1x16xf32>
    %11 = vector.shape_cast %10 : vector<1x4x1x16xf32> to vector<4x1x16xf32>
    %12 = vector.broadcast %11 : vector<4x1x16xf32> to vector<4x8x16xf32>
    %13 = arith.addf %9, %12 : vector<4x8x16xf32>
    %c1 = arith.constant 1 : index
    %c0_12 = arith.constant 0 : index
    %c0_13 = arith.constant 0 : index
    %c0_14 = arith.constant 0 : index
    %14 = vector.load %arg3[%c1, %c0_12, %c0_13, %c0_14] : memref<3x4x64x16xbf16, #tpu.memory_space<vmem>>, vector<1x4x64x16xbf16>
    %15 = vector.shape_cast %14 : vector<1x4x64x16xbf16> to vector<4x64x16xbf16>
    %cst_15 = arith.constant dense<0.000000e+00> : vector<4x8x16xf32>
    %16 = tpu.matmul %6, %15, %cst_15 {dimension_numbers = #tpu.dot_dimension_numbers<[2], [1], [1], [2], [0, 0, 0, 1, 1, 2], [0], [0]>} : vector<4x8x64xbf16>, vector<4x64x16xbf16>, vector<4x8x16xf32> -> vector<4x8x16xf32>
    %c1_16 = arith.constant 1 : index
    %c0_17 = arith.constant 0 : index
    %c0_18 = arith.constant 0 : index
    %c0_19 = arith.constant 0 : index
    %17 = vector.load %arg4[%c1_16, %c0_17, %c0_18, %c0_19] : memref<3x4x1x16xf32, #tpu.memory_space<vmem>>, vector<1x4x1x16xf32>
    %18 = vector.shape_cast %17 : vector<1x4x1x16xf32> to vector<4x1x16xf32>
    %19 = vector.broadcast %18 : vector<4x1x16xf32> to vector<4x8x16xf32>
    %20 = arith.addf %16, %19 : vector<4x8x16xf32>
    %c2 = arith.constant 2 : index
    %c0_20 = arith.constant 0 : index
    %c0_21 = arith.constant 0 : index
    %c0_22 = arith.constant 0 : index
    %21 = vector.load %arg3[%c2, %c0_20, %c0_21, %c0_22] : memref<3x4x64x16xbf16, #tpu.memory_space<vmem>>, vector<1x4x64x16xbf16>
    %22 = vector.shape_cast %21 : vector<1x4x64x16xbf16> to vector<4x64x16xbf16>
    %cst_23 = arith.constant dense<0.000000e+00> : vector<4x8x16xf32>
    %23 = tpu.matmul %6, %22, %cst_23 {dimension_numbers = #tpu.dot_dimension_numbers<[2], [1], [1], [2], [0, 0, 0, 1, 1, 2], [0], [0]>} : vector<4x8x64xbf16>, vector<4x64x16xbf16>, vector<4x8x16xf32> -> vector<4x8x16xf32>
    %c2_24 = arith.constant 2 : index
    %c0_25 = arith.constant 0 : index
    %c0_26 = arith.constant 0 : index
    %c0_27 = arith.constant 0 : index
    %24 = vector.load %arg4[%c2_24, %c0_25, %c0_26, %c0_27] : memref<3x4x1x16xf32, #tpu.memory_space<vmem>>, vector<1x4x1x16xf32>
    %25 = vector.shape_cast %24 : vector<1x4x1x16xf32> to vector<4x1x16xf32>
    %26 = vector.broadcast %25 : vector<4x1x16xf32> to vector<4x8x16xf32>
    %27 = arith.addf %23, %26 : vector<4x8x16xf32>
    %28 = arith.truncf %13 : vector<4x8x16xf32> to vector<4x8x16xbf16>
    %29 = arith.truncf %20 : vector<4x8x16xf32> to vector<4x8x16xbf16>
    %cst_28 = arith.constant dense<0.000000e+00> : vector<4x8x8xf32>
    %30 = tpu.matmul %28, %29, %cst_28 {dimension_numbers = #tpu.dot_dimension_numbers<[2], [2], [1], [1], [0, 0, 0, 1, 1, 1], [0], [0]>} : vector<4x8x16xbf16>, vector<4x8x16xbf16>, vector<4x8x8xf32> -> vector<4x8x8xf32>
    %31 = vector.shape_cast %3 : vector<8x8xf32> to vector<1x8x8xf32>
    %32 = vector.broadcast %31 : vector<1x8x8xf32> to vector<4x8x8xf32>
    %33 = arith.addf %30, %32 : vector<4x8x8xf32>
    %cst_29 = arith.constant dense<0xFF800000> : vector<4x8xf32>
    %34 = vector.multi_reduction <maximumf>, %33, %cst_29 [2] : vector<4x8x8xf32> to vector<4x8xf32>
    %35 = vector.shape_cast %34 : vector<4x8xf32> to vector<4x8x1xf32>
    %36 = vector.broadcast %35 : vector<4x8x1xf32> to vector<4x8x8xf32>
    %37 = arith.subf %33, %36 : vector<4x8x8xf32>
    %38 = math.exp %37 : vector<4x8x8xf32>
    %cst_30 = arith.constant dense<0.000000e+00> : vector<4x8xf32>
    %39 = vector.multi_reduction <add>, %38, %cst_30 [2] : vector<4x8x8xf32> to vector<4x8xf32>
    %40 = vector.shape_cast %39 : vector<4x8xf32> to vector<4x8x1xf32>
    %41 = tpu.reciprocal %40 {approx = true} : vector<4x8x1xf32> -> vector<4x8x1xf32>
    %42 = vector.broadcast %41 : vector<4x8x1xf32> to vector<4x8x8xf32>
    %43 = arith.mulf %38, %42 : vector<4x8x8xf32>
    %44 = arith.truncf %43 : vector<4x8x8xf32> to vector<4x8x8xbf16>
    %45 = arith.truncf %27 : vector<4x8x16xf32> to vector<4x8x16xbf16>
    %cst_31 = arith.constant dense<0.000000e+00> : vector<4x8x16xf32>
    %46 = tpu.matmul %44, %45, %cst_31 {dimension_numbers = #tpu.dot_dimension_numbers<[2], [1], [1], [2], [0, 0, 0, 1, 1, 2], [0], [0]>} : vector<4x8x8xbf16>, vector<4x8x16xbf16>, vector<4x8x16xf32> -> vector<4x8x16xf32>
    %47 = arith.truncf %46 : vector<4x8x16xf32> to vector<4x8x16xbf16>
    %c0_32 = arith.constant 0 : index
    %c0_33 = arith.constant 0 : index
    %c0_34 = arith.constant 0 : index
    %48 = vector.load %arg5[%c0_32, %c0_33, %c0_34] : memref<4x16x64xbf16, #tpu.memory_space<vmem>>, vector<4x16x64xbf16>
    %cst_35 = arith.constant dense<0.000000e+00> : vector<4x8x64xf32>
    %49 = tpu.matmul %47, %48, %cst_35 {dimension_numbers = #tpu.dot_dimension_numbers<[2], [1], [1], [2], [0, 0, 0, 1, 1, 2], [0], [0]>} : vector<4x8x16xbf16>, vector<4x16x64xbf16>, vector<4x8x64xf32> -> vector<4x8x64xf32>
    %50 = vector.extract_strided_slice %49 {offsets = [0, 0, 0], sizes = [1, 8, 64], strides = [1, 1, 1]} : vector<4x8x64xf32> to vector<1x8x64xf32>
    %51 = vector.shape_cast %50 : vector<1x8x64xf32> to vector<8x64xf32>
    %52 = vector.extract_strided_slice %49 {offsets = [1, 0, 0], sizes = [1, 8, 64], strides = [1, 1, 1]} : vector<4x8x64xf32> to vector<1x8x64xf32>
    %53 = vector.shape_cast %52 : vector<1x8x64xf32> to vector<8x64xf32>
    %54 = arith.addf %51, %53 : vector<8x64xf32>
    %55 = vector.extract_strided_slice %49 {offsets = [2, 0, 0], sizes = [1, 8, 64], strides = [1, 1, 1]} : vector<4x8x64xf32> to vector<1x8x64xf32>
    %56 = vector.shape_cast %55 : vector<1x8x64xf32> to vector<8x64xf32>
    %57 = arith.addf %54, %56 : vector<8x64xf32>
    %58 = vector.extract_strided_slice %49 {offsets = [3, 0, 0], sizes = [1, 8, 64], strides = [1, 1, 1]} : vector<4x8x64xf32> to vector<1x8x64xf32>
    %59 = vector.shape_cast %58 : vector<1x8x64xf32> to vector<8x64xf32>
    %60 = arith.addf %57, %59 : vector<8x64xf32>
    %c0_36 = arith.constant 0 : index
    %c0_37 = arith.constant 0 : index
    %61 = vector.load %arg6[%c0_36, %c0_37] : memref<1x64xf32, #tpu.memory_space<vmem>>, vector<1x64xf32>
    %62 = vector.broadcast %61 : vector<1x64xf32> to vector<8x64xf32>
    %63 = arith.addf %60, %62 : vector<8x64xf32>
    %64 = arith.addf %2, %63 : vector<8x64xf32>
    %c0_38 = arith.constant 0 : index
    %c0_39 = arith.constant 0 : index
    %65 = vector.load %arg7[%c0_38, %c0_39] : memref<1x64xf32, #tpu.memory_space<vmem>>, vector<1x64xf32>
    %c0_40 = arith.constant 0 : index
    %c0_41 = arith.constant 0 : index
    %66 = vector.load %arg8[%c0_40, %c0_41] : memref<1x64xf32, #tpu.memory_space<vmem>>, vector<1x64xf32>
    %cst_42 = arith.constant dense<0.000000e+00> : vector<8xf32>
    %67 = vector.multi_reduction <add>, %64, %cst_42 [1] : vector<8x64xf32> to vector<8xf32>
    %68 = vector.shape_cast %67 : vector<8xf32> to vector<8x1xf32>
    %cst_43 = arith.constant 6.400000e+01 : f32
    %69 = vector.broadcast %cst_43 : f32 to vector<8x1xf32>
    %70 = arith.divf %68, %69 : vector<8x1xf32>
    %71 = vector.broadcast %70 : vector<8x1xf32> to vector<8x64xf32>
    %72 = arith.subf %64, %71 : vector<8x64xf32>
    %73 = arith.mulf %72, %72 : vector<8x64xf32>
    %cst_44 = arith.constant dense<0.000000e+00> : vector<8xf32>
    %74 = vector.multi_reduction <add>, %73, %cst_44 [1] : vector<8x64xf32> to vector<8xf32>
    %75 = vector.shape_cast %74 : vector<8xf32> to vector<8x1xf32>
    %cst_45 = arith.constant 6.400000e+01 : f32
    %76 = vector.broadcast %cst_45 : f32 to vector<8x1xf32>
    %77 = arith.divf %75, %76 : vector<8x1xf32>
    %78 = vector.broadcast %70 : vector<8x1xf32> to vector<8x64xf32>
    %79 = arith.subf %64, %78 : vector<8x64xf32>
    %cst_46 = arith.constant 9.99999974E-6 : f32
    %80 = vector.broadcast %cst_46 : f32 to vector<8x1xf32>
    %81 = arith.addf %77, %80 : vector<8x1xf32>
    %82 = math.rsqrt %81 : vector<8x1xf32>
    %83 = vector.broadcast %82 : vector<8x1xf32> to vector<8x64xf32>
    %84 = arith.mulf %79, %83 : vector<8x64xf32>
    %85 = vector.broadcast %65 : vector<1x64xf32> to vector<8x64xf32>
    %86 = arith.mulf %84, %85 : vector<8x64xf32>
    %87 = vector.broadcast %66 : vector<1x64xf32> to vector<8x64xf32>
    %88 = arith.addf %86, %87 : vector<8x64xf32>
    %89 = arith.truncf %88 : vector<8x64xf32> to vector<8x64xbf16>
    %c0_47 = arith.constant 0 : index
    %c0_48 = arith.constant 0 : index
    %90 = vector.load %arg9[%c0_47, %c0_48] : memref<64x128xbf16, #tpu.memory_space<vmem>>, vector<64x128xbf16>
    %cst_49 = arith.constant dense<0.000000e+00> : vector<8x128xf32>
    %91 = tpu.matmul %89, %90, %cst_49 {dimension_numbers = #tpu.dot_dimension_numbers<[1], [0], [0], [1], [0, 0, 1, 1], [], []>} : vector<8x64xbf16>, vector<64x128xbf16>, vector<8x128xf32> -> vector<8x128xf32>
    %c0_50 = arith.constant 0 : index
    %c0_51 = arith.constant 0 : index
    %92 = vector.load %arg10[%c0_50, %c0_51] : memref<1x128xf32, #tpu.memory_space<vmem>>, vector<1x128xf32>
    %93 = vector.broadcast %92 : vector<1x128xf32> to vector<8x128xf32>
    %94 = arith.addf %91, %93 : vector<8x128xf32>
    %cst_52 = arith.constant 0.000000e+00 : f32
    %95 = vector.broadcast %cst_52 : f32 to vector<8x128xf32>
    %96 = arith.maximumf %94, %95 : vector<8x128xf32>
    %97 = arith.truncf %96 : vector<8x128xf32> to vector<8x128xbf16>
    %c0_53 = arith.constant 0 : index
    %c0_54 = arith.constant 0 : index
    %98 = vector.load %arg11[%c0_53, %c0_54] : memref<128x64xbf16, #tpu.memory_space<vmem>>, vector<128x64xbf16>
    %cst_55 = arith.constant dense<0.000000e+00> : vector<8x64xf32>
    %99 = tpu.matmul %97, %98, %cst_55 {dimension_numbers = #tpu.dot_dimension_numbers<[1], [0], [0], [1], [0, 0, 1, 1], [], []>} : vector<8x128xbf16>, vector<128x64xbf16>, vector<8x64xf32> -> vector<8x64xf32>
    %c0_56 = arith.constant 0 : index
    %c0_57 = arith.constant 0 : index
    %100 = vector.load %arg12[%c0_56, %c0_57] : memref<1x64xf32, #tpu.memory_space<vmem>>, vector<1x64xf32>
    %101 = vector.broadcast %100 : vector<1x64xf32> to vector<8x64xf32>
    %102 = arith.addf %99, %101 : vector<8x64xf32>
    %103 = arith.addf %88, %102 : vector<8x64xf32>
    %c0_58 = arith.constant 0 : index
    %c0_59 = arith.constant 0 : index
    %104 = vector.load %arg13[%c0_58, %c0_59] : memref<1x64xf32, #tpu.memory_space<vmem>>, vector<1x64xf32>
    %c0_60 = arith.constant 0 : index
    %c0_61 = arith.constant 0 : index
    %105 = vector.load %arg14[%c0_60, %c0_61] : memref<1x64xf32, #tpu.memory_space<vmem>>, vector<1x64xf32>
    %cst_62 = arith.constant dense<0.000000e+00> : vector<8xf32>
    %106 = vector.multi_reduction <add>, %103, %cst_62 [1] : vector<8x64xf32> to vector<8xf32>
    %107 = vector.shape_cast %106 : vector<8xf32> to vector<8x1xf32>
    %cst_63 = arith.constant 6.400000e+01 : f32
    %108 = vector.broadcast %cst_63 : f32 to vector<8x1xf32>
    %109 = arith.divf %107, %108 : vector<8x1xf32>
    %110 = vector.broadcast %109 : vector<8x1xf32> to vector<8x64xf32>
    %111 = arith.subf %103, %110 : vector<8x64xf32>
    %112 = arith.mulf %111, %111 : vector<8x64xf32>
    %cst_64 = arith.constant dense<0.000000e+00> : vector<8xf32>
    %113 = vector.multi_reduction <add>, %112, %cst_64 [1] : vector<8x64xf32> to vector<8xf32>
    %114 = vector.shape_cast %113 : vector<8xf32> to vector<8x1xf32>
    %cst_65 = arith.constant 6.400000e+01 : f32
    %115 = vector.broadcast %cst_65 : f32 to vector<8x1xf32>
    %116 = arith.divf %114, %115 : vector<8x1xf32>
    %117 = vector.broadcast %109 : vector<8x1xf32> to vector<8x64xf32>
    %118 = arith.subf %103, %117 : vector<8x64xf32>
    %cst_66 = arith.constant 9.99999974E-6 : f32
    %119 = vector.broadcast %cst_66 : f32 to vector<8x1xf32>
    %120 = arith.addf %116, %119 : vector<8x1xf32>
    %121 = math.rsqrt %120 : vector<8x1xf32>
    %122 = vector.broadcast %121 : vector<8x1xf32> to vector<8x64xf32>
    %123 = arith.mulf %118, %122 : vector<8x64xf32>
    %124 = vector.broadcast %104 : vector<1x64xf32> to vector<8x64xf32>
    %125 = arith.mulf %123, %124 : vector<8x64xf32>
    %126 = vector.broadcast %105 : vector<1x64xf32> to vector<8x64xf32>
    %127 = arith.addf %125, %126 : vector<8x64xf32>
    %128 = arith.truncf %127 : vector<8x64xf32> to vector<8x64xbf16>
    %c0_67 = arith.constant 0 : index
    %c0_68 = arith.constant 0 : index
    %c0_69 = arith.constant 0 : index
    %129 = vector.load %arg17[%c0_67, %c0_68, %c0_69] : memref<1x8x64xbf16, #tpu.memory_space<vmem>>, vector<1x8x64xbf16>
    %130 = vector.shape_cast %129 : vector<1x8x64xbf16> to vector<8x64xbf16>
    %131 = vector.shape_cast %128 : vector<8x64xbf16> to vector<1x8x64xbf16>
    tpu.vector_store %arg17[%c0_67, %c0_68, %c0_69], %131 {strides = array<i32>} : memref<1x8x64xbf16, #tpu.memory_space<vmem>>, vector<1x8x64xbf16>,
    return
  }
  func.func @transform_0(%arg0: i32) -> (i32, i32, i32) {
    %c0_i32 = arith.constant 0 : i32
    %c0_i32_0 = arith.constant 0 : i32
    %c0_i32_1 = arith.constant 0 : i32
    return %arg0, %c0_i32, %c0_i32_0 : i32, i32, i32
  }
  func.func @transform_1(%arg0: i32) -> (i32, i32) {
    %c0_i32 = arith.constant 0 : i32
    %c0_i32_0 = arith.constant 0 : i32
    %c0_i32_1 = arith.constant 0 : i32
    return %c0_i32, %c0_i32_0 : i32, i32
  }
  func.func @transform_2(%arg0: i32) -> (i32, i32, i32, i32) {
    %c0_i32 = arith.constant 0 : i32
    %c0_i32_0 = arith.constant 0 : i32
    %c0_i32_1 = arith.constant 0 : i32
    %c0_i32_2 = arith.constant 0 : i32
    %c0_i32_3 = arith.constant 0 : i32
    return %c0_i32, %c0_i32_0, %c0_i32_1, %c0_i32_2 : i32, i32, i32, i32
  }
  func.func @transform_3(%arg0: i32) -> (i32, i32, i32, i32) {
    %c0_i32 = arith.constant 0 : i32
    %c0_i32_0 = arith.constant 0 : i32
    %c0_i32_1 = arith.constant 0 : i32
    %c0_i32_2 = arith.constant 0 : i32
    %c0_i32_3 = arith.constant 0 : i32
    return %c0_i32, %c0_i32_0, %c0_i32_1, %c0_i32_2 : i32, i32, i32, i32
  }
  func.func @transform_4(%arg0: i32) -> (i32, i32, i32) {
    %c0_i32 = arith.constant 0 : i32
    %c0_i32_0 = arith.constant 0 : i32
    %c0_i32_1 = arith.constant 0 : i32
    %c0_i32_2 = arith.constant 0 : i32
    return %c0_i32, %c0_i32_0, %c0_i32_1 : i32, i32, i32
  }
  func.func @transform_5(%arg0: i32) -> (i32, i32) {
    %c0_i32 = arith.constant 0 : i32
    %c0_i32_0 = arith.constant 0 : i32
    %c0_i32_1 = arith.constant 0 : i32
    return %c0_i32, %c0_i32_0 : i32, i32
  }
  func.func @transform_6(%arg0: i32) -> (i32, i32) {
    %c0_i32 = arith.constant 0 : i32
    %c0_i32_0 = arith.constant 0 : i32
    %c0_i32_1 = arith.constant 0 : i32
    return %c0_i32, %c0_i32_0 : i32, i32
  }
  func.func @transform_7(%arg0: i32) -> (i32, i32) {
    %c0_i32 = arith.constant 0 : i32
    %c0_i32_0 = arith.constant 0 : i32
    %c0_i32_1 = arith.constant 0 : i32
    return %c0_i32, %c0_i32_0 : i32, i32
  }
  func.func @transform_8(%arg0: i32) -> (i32, i32) {
    %c0_i32 = arith.constant 0 : i32
    %c0_i32_0 = arith.constant 0 : i32
    %c0_i32_1 = arith.constant 0 : i32
    return %c0_i32, %c0_i32_0 : i32, i32
  }
  func.func @transform_9(%arg0: i32) -> (i32, i32) {
    %c0_i32 = arith.constant 0 : i32
    %c0_i32_0 = arith.constant 0 : i32
    %c0_i32_1 = arith.constant 0 : i32
    return %c0_i32, %c0_i32_0 : i32, i32
  }
  func.func @transform_10(%arg0: i32) -> (i32, i32) {
    %c0_i32 = arith.constant 0 : i32
    %c0_i32_0 = arith.constant 0 : i32
    %c0_i32_1 = arith.constant 0 : i32
    return %c0_i32, %c0_i32_0 : i32, i32
  }
  func.func @transform_11(%arg0: i32) -> (i32, i32) {
    %c0_i32 = arith.constant 0 : i32
    %c0_i32_0 = arith.constant 0 : i32
    %c0_i32_1 = arith.constant 0 : i32
    return %c0_i32, %c0_i32_0 : i32, i32
  }
  func.func @transform_12(%arg0: i32) -> (i32, i32) {
    %c0_i32 = arith.constant 0 : i32
    %c0_i32_0 = arith.constant 0 : i32
    %c0_i32_1 = arith.constant 0 : i32
    return %c0_i32, %c0_i32_0 : i32, i32
  }
  func.func @transform_13(%arg0: i32) -> (i32, i32) {
    %c0_i32 = arith.constant 0 : i32
    %c0_i32_0 = arith.constant 0 : i32
    %c0_i32_1 = arith.constant 0 : i32
    return %c0_i32, %c0_i32_0 : i32, i32
  }
  func.func @transform_14(%arg0: i32) -> (i32, i32) {
    %c0_i32 = arith.constant 0 : i32
    %c0_i32_0 = arith.constant 0 : i32
    %c0_i32_1 = arith.constant 0 : i32
    return %c0_i32, %c0_i32_0 : i32, i32
  }
  func.func @transform_15(%arg0: i32) -> (i32, i32) {
    %c0_i32 = arith.constant 0 : i32
    %c0_i32_0 = arith.constant 0 : i32
    %c0_i32_1 = arith.constant 0 : i32
    return %c0_i32, %c0_i32_0 : i32, i32
  }
  func.func @transform_16(%arg0: i32) -> (i32, i32, i32) {
    %c0_i32 = arith.constant 0 : i32
    %c0_i32_0 = arith.constant 0 : i32
    %c0_i32_1 = arith.constant 0 : i32
    return %arg0, %c0_i32, %c0_i32_0 : i32, i32, i32
  }
}

module attributes {stable_mosaic.version = 11 : i64} {
  func.func @_enc_layer_kernel(%arg0: i32, %arg1: memref<1x8x64xbf16, #tpu.memory_space<vmem>>, %arg2: memref<8x8xf32, #tpu.memory_space<vmem>>, %arg3: memref<3x4x64x16xbf16, #tpu.memory_space<vmem>>, %arg4: memref<3x4x1x16xf32, #tpu.memory_space<vmem>>, %arg5: memref<4x16x64xbf16, #tpu.memory_space<vmem>>, %arg6: memref<1x64xf32, #tpu.memory_space<vmem>>, %arg7: memref<1x64xf32, #tpu.memory_space<vmem>>, %arg8: memref<1x64xf32, #tpu.memory_space<vmem>>, %arg9: memref<64x128xbf16, #tpu.memory_space<vmem>>, %arg10: memref<1x128xf32, #tpu.memory_space<vmem>>, %arg11: memref<128x64xbf16, #tpu.memory_space<vmem>>, %arg12: memref<1x64xf32, #tpu.memory_space<vmem>>, %arg13: memref<1x64xf32, #tpu.memory_space<vmem>>, %arg14: memref<1x64xf32, #tpu.memory_space<vmem>>, %arg15: memref<1x64xf32, #tpu.memory_space<vmem>>, %arg16: memref<1x64xf32, #tpu.memory_space<vmem>>, %arg17: memref<1x8x64xbf16, #tpu.memory_space<vmem>>) attributes {dimension_semantics = [#tpu.dimension_semantics<parallel>], iteration_bounds = array<i64: 2>, scalar_prefetch = 0 : i64, scratch_operands = 0 : i64, tpu.core_type = #tpu.core_type<tc>, window_params = [{transform_indices = @transform_0, window_bounds = array<i64: 1, 8, 64>}, {pipeline_mode = #tpu.pipeline_mode<synchronous>, transform_indices = @transform_1, window_bounds = array<i64: 8, 8>}, {pipeline_mode = #tpu.pipeline_mode<synchronous>, transform_indices = @transform_2, window_bounds = array<i64: 3, 4, 64, 16>}, {pipeline_mode = #tpu.pipeline_mode<synchronous>, transform_indices = @transform_3, window_bounds = array<i64: 3, 4, 1, 16>}, {pipeline_mode = #tpu.pipeline_mode<synchronous>, transform_indices = @transform_4, window_bounds = array<i64: 4, 16, 64>}, {pipeline_mode = #tpu.pipeline_mode<synchronous>, transform_indices = @transform_5, window_bounds = array<i64: 1, 64>}, {pipeline_mode = #tpu.pipeline_mode<synchronous>, transform_indices = @transform_6, window_bounds = array<i64: 1, 64>}, {pipeline_mode = #tpu.pipeline_mode<synchronous>, transform_indices = @transform_7, window_bounds = array<i64: 1, 64>}, {pipeline_mode = #tpu.pipeline_mode<synchronous>, transform_indices = @transform_8, window_bounds = array<i64: 64, 128>}, {pipeline_mode = #tpu.pipeline_mode<synchronous>, transform_indices = @transform_9, window_bounds = array<i64: 1, 128>}, {pipeline_mode = #tpu.pipeline_mode<synchronous>, transform_indices = @transform_10, window_bounds = array<i64: 128, 64>}, {pipeline_mode = #tpu.pipeline_mode<synchronous>, transform_indices = @transform_11, window_bounds = array<i64: 1, 64>}, {pipeline_mode = #tpu.pipeline_mode<synchronous>, transform_indices = @transform_12, window_bounds = array<i64: 1, 64>}, {pipeline_mode = #tpu.pipeline_mode<synchronous>, transform_indices = @transform_13, window_bounds = array<i64: 1, 64>}, {pipeline_mode = #tpu.pipeline_mode<synchronous>, transform_indices = @transform_14, window_bounds = array<i64: 1, 64>}, {pipeline_mode = #tpu.pipeline_mode<synchronous>, transform_indices = @transform_15, window_bounds = array<i64: 1, 64>}, {transform_indices = @transform_16, window_bounds = array<i64: 1, 8, 64>}]} {
    %c0 = arith.constant 0 : index
    %c0_0 = arith.constant 0 : index
    %c0_1 = arith.constant 0 : index
    %0 = vector.load %arg1[%c0, %c0_0, %c0_1] : memref<1x8x64xbf16, #tpu.memory_space<vmem>>, vector<1x8x64xbf16>
    %1 = vector.shape_cast %0 : vector<1x8x64xbf16> to vector<8x64xbf16>
    %2 = arith.extf %1 : vector<8x64xbf16> to vector<8x64xf32>
    %c0_2 = arith.constant 0 : index
    %c0_3 = arith.constant 0 : index
    %3 = vector.load %arg2[%c0_2, %c0_3] : memref<8x8xf32, #tpu.memory_space<vmem>>, vector<8x8xf32>
    %4 = vector.shape_cast %1 : vector<8x64xbf16> to vector<1x8x64xbf16>
    %5 = vector.shape_cast %4 : vector<1x8x64xbf16> to vector<1x8x64xbf16>
    %6 = vector.broadcast %5 : vector<1x8x64xbf16> to vector<4x8x64xbf16>
    %c0_4 = arith.constant 0 : index
    %c0_5 = arith.constant 0 : index
    %c0_6 = arith.constant 0 : index
    %c0_7 = arith.constant 0 : index
    %7 = vector.load %arg3[%c0_4, %c0_5, %c0_6, %c0_7] : memref<3x4x64x16xbf16, #tpu.memory_space<vmem>>, vector<1x4x64x16xbf16>
    %8 = vector.shape_cast %7 : vector<1x4x64x16xbf16> to vector<4x64x16xbf16>
    %cst = arith.constant dense<0.000000e+00> : vector<4x8x16xf32>
    %9 = tpu.matmul %6, %8, %cst {dimension_numbers = #tpu.dot_dimension_numbers<[2], [1], [1], [2], [0, 0, 0, 1, 1, 2], [0], [0]>} : vector<4x8x64xbf16>, vector<4x64x16xbf16>, vector<4x8x16xf32> -> vector<4x8x16xf32>
    %c0_8 = arith.constant 0 : index
    %c0_9 = arith.constant 0 : index
    %c0_10 = arith.constant 0 : index
    %c0_11 = arith.constant 0 : index
    %10 = vector.load %arg4[%c0_8, %c0_9, %c0_10, %c0_11] : memref<3x4x1x16xf32, #tpu.memory_space<vmem>>, vector<1x4x1x16xf32>
    %11 = vector.shape_cast %10 : vector<1x4x1x16xf32> to vector<4x1x16xf32>
    %12 = vector.broadcast %11 : vector<4x1x16xf32> to vector<4x8x16xf32>
    %13 = arith.addf %9, %12 : vector<4x8x16xf32>
    %c1 = arith.constant 1 : index
    %c0_12 = arith.constant 0 : index
    %c0_13 = arith.constant 0 : index
    %c0_14 = arith.constant 0 : index
    %14 = vector.load %arg3[%c1, %c0_12, %c0_13, %c0_14] : memref<3x4x64x16xbf16, #tpu.memory_space<vmem>>, vector<1x4x64x16xbf16>
    %15 = vector.shape_cast %14 : vector<1x4x64x16xbf16> to vector<4x64x16xbf16>
    %cst_15 = arith.constant dense<0.000000e+00> : vector<4x8x16xf32>
    %16 = tpu.matmul %6, %15, %cst_15 {dimension_numbers = #tpu.dot_dimension_numbers<[2], [1], [1], [2], [0, 0, 0, 1, 1, 2], [0], [0]>} : vector<4x8x64xbf16>, vector<4x64x16xbf16>, vector<4x8x16xf32> -> vector<4x8x16xf32>
    %c1_16 = arith.constant 1 : index
    %c0_17 = arith.constant 0 : index
    %c0_18 = arith.constant 0 : index
    %c0_19 = arith.constant 0 : index
    %17 = vector.load %arg4[%c1_16, %c0_17, %c0_18, %c0_19] : memref<3x4x1x16xf32, #tpu.memory_space<vmem>>, vector<1x4x1x16xf32>
    %18 = vector.shape_cast %17 : vector<1x4x1x16xf32> to vector<4x1x16xf32>
    %19 = vector.broadcast %18 : vector<4x1x16xf32> to vector<4x8x16xf32>
    %20 = arith.addf %16, %19 : vector<4x8x16xf32>
    %c2 = arith.constant 2 : index
    %c0_20 = arith.constant 0 : index
    %c0_21 = arith.constant 0 : index
    %c0_22 = arith.constant 0 : index
    %21 = vector.load %arg3[%c2, %c0_20, %c0_21, %c0_22] : memref<3x4x64x16xbf16, #tpu.memory_space<vmem>>, vector<1x4x64x16xbf16>
    %22 = vector.shape_cast %21 : vector<1x4x64x16xbf16> to vector<4x64x16xbf16>
    %cst_23 = arith.constant dense<0.000000e+00> : vector<4x8x16xf32>
    %23 = tpu.matmul %6, %22, %cst_23 {dimension_numbers = #tpu.dot_dimension_numbers<[2], [1], [1], [2], [0, 0, 0, 1, 1, 2], [0], [0]>} : vector<4x8x64xbf16>, vector<4x64x16xbf16>, vector<4x8x16xf32> -> vector<4x8x16xf32>
    %c2_24 = arith.constant 2 : index
    %c0_25 = arith.constant 0 : index
    %c0_26 = arith.constant 0 : index
    %c0_27 = arith.constant 0 : index
    %24 = vector.load %arg4[%c2_24, %c0_25, %c0_26, %c0_27] : memref<3x4x1x16xf32, #tpu.memory_space<vmem>>, vector<1x4x1x16xf32>
    %25 = vector.shape_cast %24 : vector<1x4x1x16xf32> to vector<4x1x16xf32>
    %26 = vector.broadcast %25 : vector<4x1x16xf32> to vector<4x8x16xf32>
    %27 = arith.addf %23, %26 : vector<4x8x16xf32>
    %28 = arith.truncf %13 : vector<4x8x16xf32> to vector<4x8x16xbf16>
    %29 = arith.truncf %20 : vector<4x8x16xf32> to vector<4x8x16xbf16>
    %cst_28 = arith.constant dense<0.000000e+00> : vector<4x8x8xf32>
    %30 = tpu.matmul %28, %29, %cst_28 {dimension_numbers = #tpu.dot_dimension_numbers<[2], [2], [1], [1], [0, 0, 0, 1, 1, 1], [0], [0]>} : vector<4x8x16xbf16>, vector<4x8x16xbf16>, vector<4x8x8xf32> -> vector<4x8x8xf32>
    %31 = vector.shape_cast %3 : vector<8x8xf32> to vector<1x8x8xf32>
    %32 = vector.broadcast %31 : vector<1x8x8xf32> to vector<4x8x8xf32>
    %33 = arith.addf %30, %32 : vector<4x8x8xf32>
    %cst_29 = arith.constant dense<0xFF800000> : vector<4x8xf32>
    %34 = vector.multi_reduction <maximumf>, %33, %cst_29 [2] : vector<4x8x8xf32> to vector<4x8xf32>
    %35 = vector.shape_cast %34 : vector<4x8xf32> to vector<4x8x1xf32>
    %36 = vector.broadcast %35 : vector<4x8x1xf32> to vector<4x8x8xf32>
    %37 = arith.subf %33, %36 : vector<4x8x8xf32>
    %38 = math.exp %37 : vector<4x8x8xf32>
    %cst_30 = arith.constant dense<0.000000e+00> : vector<4x8xf32>
    %39 = vector.multi_reduction <add>, %38, %cst_30 [2] : vector<4x8x8xf32> to vector<4x8xf32>
    %40 = vector.shape_cast %39 : vector<4x8xf32> to vector<4x8x1xf32>
    %41 = tpu.reciprocal %40 {approx = true} : vector<4x8x1xf32> -> vector<4x8x1xf32>
    %42 = vector.broadcast %41 : vector<4x8x1xf32> to vector<4x8x8xf32>
    %43 = arith.mulf %38, %42 : vector<4x8x8xf32>
    %44 = arith.truncf %43 : vector<4x8x8xf32> to vector<4x8x8xbf16>
    %45 = arith.truncf %27 : vector<4x8x16xf32> to vector<4x8x16xbf16>
    %cst_31 = arith.constant dense<0.000000e+00> : vector<4x8x16xf32>
    %46 = tpu.matmul %44, %45, %cst_31 {dimension_numbers = #tpu.dot_dimension_numbers<[2], [1], [1], [2], [0, 0, 0, 1, 1, 2], [0], [0]>} : vector<4x8x8xbf16>, vector<4x8x16xbf16>, vector<4x8x16xf32> -> vector<4x8x16xf32>
    %47 = arith.truncf %46 : vector<4x8x16xf32> to vector<4x8x16xbf16>
    %c0_32 = arith.constant 0 : index
    %c0_33 = arith.constant 0 : index
    %c0_34 = arith.constant 0 : index
    %48 = vector.load %arg5[%c0_32, %c0_33, %c0_34] : memref<4x16x64xbf16, #tpu.memory_space<vmem>>, vector<4x16x64xbf16>
    %cst_35 = arith.constant dense<0.000000e+00> : vector<4x8x64xf32>
    %49 = tpu.matmul %47, %48, %cst_35 {dimension_numbers = #tpu.dot_dimension_numbers<[2], [1], [1], [2], [0, 0, 0, 1, 1, 2], [0], [0]>} : vector<4x8x16xbf16>, vector<4x16x64xbf16>, vector<4x8x64xf32> -> vector<4x8x64xf32>
    %50 = vector.extract_strided_slice %49 {offsets = [0, 0, 0], sizes = [1, 8, 64], strides = [1, 1, 1]} : vector<4x8x64xf32> to vector<1x8x64xf32>
    %51 = vector.shape_cast %50 : vector<1x8x64xf32> to vector<8x64xf32>
    %52 = vector.extract_strided_slice %49 {offsets = [1, 0, 0], sizes = [1, 8, 64], strides = [1, 1, 1]} : vector<4x8x64xf32> to vector<1x8x64xf32>
    %53 = vector.shape_cast %52 : vector<1x8x64xf32> to vector<8x64xf32>
    %54 = arith.addf %51, %53 : vector<8x64xf32>
    %55 = vector.extract_strided_slice %49 {offsets = [2, 0, 0], sizes = [1, 8, 64], strides = [1, 1, 1]} : vector<4x8x64xf32> to vector<1x8x64xf32>
    %56 = vector.shape_cast %55 : vector<1x8x64xf32> to vector<8x64xf32>
    %57 = arith.addf %54, %56 : vector<8x64xf32>
    %58 = vector.extract_strided_slice %49 {offsets = [3, 0, 0], sizes = [1, 8, 64], strides = [1, 1, 1]} : vector<4x8x64xf32> to vector<1x8x64xf32>
    %59 = vector.shape_cast %58 : vector<1x8x64xf32> to vector<8x64xf32>
    %60 = arith.addf %57, %59 : vector<8x64xf32>
    %c0_36 = arith.constant 0 : index
    %c0_37 = arith.constant 0 : index
    %61 = vector.load %arg6[%c0_36, %c0_37] : memref<1x64xf32, #tpu.memory_space<vmem>>, vector<1x64xf32>
    %62 = vector.broadcast %61 : vector<1x64xf32> to vector<8x64xf32>
    %63 = arith.addf %60, %62 : vector<8x64xf32>
    %64 = arith.addf %2, %63 : vector<8x64xf32>
    %c0_38 = arith.constant 0 : index
    %c0_39 = arith.constant 0 : index
    %65 = vector.load %arg7[%c0_38, %c0_39] : memref<1x64xf32, #tpu.memory_space<vmem>>, vector<1x64xf32>
    %c0_40 = arith.constant 0 : index
    %c0_41 = arith.constant 0 : index
    %66 = vector.load %arg8[%c0_40, %c0_41] : memref<1x64xf32, #tpu.memory_space<vmem>>, vector<1x64xf32>
    %cst_42 = arith.constant dense<0.000000e+00> : vector<8xf32>
    %67 = vector.multi_reduction <add>, %64, %cst_42 [1] : vector<8x64xf32> to vector<8xf32>
    %68 = vector.shape_cast %67 : vector<8xf32> to vector<8x1xf32>
    %cst_43 = arith.constant 6.400000e+01 : f32
    %69 = vector.broadcast %cst_43 : f32 to vector<8x1xf32>
    %70 = arith.divf %68, %69 : vector<8x1xf32>
    %71 = vector.broadcast %70 : vector<8x1xf32> to vector<8x64xf32>
    %72 = arith.subf %64, %71 : vector<8x64xf32>
    %73 = arith.mulf %72, %72 : vector<8x64xf32>
    %cst_44 = arith.constant dense<0.000000e+00> : vector<8xf32>
    %74 = vector.multi_reduction <add>, %73, %cst_44 [1] : vector<8x64xf32> to vector<8xf32>
    %75 = vector.shape_cast %74 : vector<8xf32> to vector<8x1xf32>
    %cst_45 = arith.constant 6.400000e+01 : f32
    %76 = vector.broadcast %cst_45 : f32 to vector<8x1xf32>
    %77 = arith.divf %75, %76 : vector<8x1xf32>
    %78 = vector.broadcast %70 : vector<8x1xf32> to vector<8x64xf32>
    %79 = arith.subf %64, %78 : vector<8x64xf32>
    %cst_46 = arith.constant 9.99999974E-6 : f32
    %80 = vector.broadcast %cst_46 : f32 to vector<8x1xf32>
    %81 = arith.addf %77, %80 : vector<8x1xf32>
    %82 = math.rsqrt %81 : vector<8x1xf32>
    %83 = vector.broadcast %82 : vector<8x1xf32> to vector<8x64xf32>
    %84 = arith.mulf %79, %83 : vector<8x64xf32>
    %85 = vector.broadcast %65 : vector<1x64xf32> to vector<8x64xf32>
    %86 = arith.mulf %84, %85 : vector<8x64xf32>
    %87 = vector.broadcast %66 : vector<1x64xf32> to vector<8x64xf32>
    %88 = arith.addf %86, %87 : vector<8x64xf32>
    %89 = arith.truncf %88 : vector<8x64xf32> to vector<8x64xbf16>
    %c0_47 = arith.constant 0 : index
    %c0_48 = arith.constant 0 : index
    %90 = vector.load %arg9[%c0_47, %c0_48] : memref<64x128xbf16, #tpu.memory_space<vmem>>, vector<64x128xbf16>
    %cst_49 = arith.constant dense<0.000000e+00> : vector<8x128xf32>
    %91 = tpu.matmul %89, %90, %cst_49 {dimension_numbers = #tpu.dot_dimension_numbers<[1], [0], [0], [1], [0, 0, 1, 1], [], []>} : vector<8x64xbf16>, vector<64x128xbf16>, vector<8x128xf32> -> vector<8x128xf32>
    %c0_50 = arith.constant 0 : index
    %c0_51 = arith.constant 0 : index
    %92 = vector.load %arg10[%c0_50, %c0_51] : memref<1x128xf32, #tpu.memory_space<vmem>>, vector<1x128xf32>
    %93 = vector.broadcast %92 : vector<1x128xf32> to vector<8x128xf32>
    %94 = arith.addf %91, %93 : vector<8x128xf32>
    %cst_52 = arith.constant 0.000000e+00 : f32
    %95 = vector.broadcast %cst_52 : f32 to vector<8x128xf32>
    %96 = arith.maximumf %94, %95 : vector<8x128xf32>
    %97 = arith.truncf %96 : vector<8x128xf32> to vector<8x128xbf16>
    %c0_53 = arith.constant 0 : index
    %c0_54 = arith.constant 0 : index
    %98 = vector.load %arg11[%c0_53, %c0_54] : memref<128x64xbf16, #tpu.memory_space<vmem>>, vector<128x64xbf16>
    %cst_55 = arith.constant dense<0.000000e+00> : vector<8x64xf32>
    %99 = tpu.matmul %97, %98, %cst_55 {dimension_numbers = #tpu.dot_dimension_numbers<[1], [0], [0], [1], [0, 0, 1, 1], [], []>} : vector<8x128xbf16>, vector<128x64xbf16>, vector<8x64xf32> -> vector<8x64xf32>
    %c0_56 = arith.constant 0 : index
    %c0_57 = arith.constant 0 : index
    %100 = vector.load %arg12[%c0_56, %c0_57] : memref<1x64xf32, #tpu.memory_space<vmem>>, vector<1x64xf32>
    %101 = vector.broadcast %100 : vector<1x64xf32> to vector<8x64xf32>
    %102 = arith.addf %99, %101 : vector<8x64xf32>
    %103 = arith.addf %88, %102 : vector<8x64xf32>
    %c0_58 = arith.constant 0 : index
    %c0_59 = arith.constant 0 : index
    %104 = vector.load %arg13[%c0_58, %c0_59] : memref<1x64xf32, #tpu.memory_space<vmem>>, vector<1x64xf32>
    %c0_60 = arith.constant 0 : index
    %c0_61 = arith.constant 0 : index
    %105 = vector.load %arg14[%c0_60, %c0_61] : memref<1x64xf32, #tpu.memory_space<vmem>>, vector<1x64xf32>
    %cst_62 = arith.constant dense<0.000000e+00> : vector<8xf32>
    %106 = vector.multi_reduction <add>, %103, %cst_62 [1] : vector<8x64xf32> to vector<8xf32>
    %107 = vector.shape_cast %106 : vector<8xf32> to vector<8x1xf32>
    %cst_63 = arith.constant 6.400000e+01 : f32
    %108 = vector.broadcast %cst_63 : f32 to vector<8x1xf32>
    %109 = arith.divf %107, %108 : vector<8x1xf32>
    %110 = vector.broadcast %109 : vector<8x1xf32> to vector<8x64xf32>
    %111 = arith.subf %103, %110 : vector<8x64xf32>
    %112 = arith.mulf %111, %111 : vector<8x64xf32>
    %cst_64 = arith.constant dense<0.000000e+00> : vector<8xf32>
    %113 = vector.multi_reduction <add>, %112, %cst_64 [1] : vector<8x64xf32> to vector<8xf32>
    %114 = vector.shape_cast %113 : vector<8xf32> to vector<8x1xf32>
    %cst_65 = arith.constant 6.400000e+01 : f32
    %115 = vector.broadcast %cst_65 : f32 to vector<8x1xf32>
    %116 = arith.divf %114, %115 : vector<8x1xf32>
    %117 = vector.broadcast %109 : vector<8x1xf32> to vector<8x64xf32>
    %118 = arith.subf %103, %117 : vector<8x64xf32>
    %cst_66 = arith.constant 9.99999974E-6 : f32
    %119 = vector.broadcast %cst_66 : f32 to vector<8x1xf32>
    %120 = arith.addf %116, %119 : vector<8x1xf32>
    %121 = math.rsqrt %120 : vector<8x1xf32>
    %122 = vector.broadcast %121 : vector<8x1xf32> to vector<8x64xf32>
    %123 = arith.mulf %118, %122 : vector<8x64xf32>
    %124 = vector.broadcast %104 : vector<1x64xf32> to vector<8x64xf32>
    %125 = arith.mulf %123, %124 : vector<8x64xf32>
    %126 = vector.broadcast %105 : vector<1x64xf32> to vector<8x64xf32>
    %127 = arith.addf %125, %126 : vector<8x64xf32>
    %c0_67 = arith.constant 0 : index
    %c0_68 = arith.constant 0 : index
    %128 = vector.load %arg15[%c0_67, %c0_68] : memref<1x64xf32, #tpu.memory_space<vmem>>, vector<1x64xf32>
    %c0_69 = arith.constant 0 : index
    %c0_70 = arith.constant 0 : index
    %129 = vector.load %arg16[%c0_69, %c0_70] : memref<1x64xf32, #tpu.memory_space<vmem>>, vector<1x64xf32>
    %cst_71 = arith.constant dense<0.000000e+00> : vector<8xf32>
    %130 = vector.multi_reduction <add>, %127, %cst_71 [1] : vector<8x64xf32> to vector<8xf32>
    %131 = vector.shape_cast %130 : vector<8xf32> to vector<8x1xf32>
    %cst_72 = arith.constant 6.400000e+01 : f32
    %132 = vector.broadcast %cst_72 : f32 to vector<8x1xf32>
    %133 = arith.divf %131, %132 : vector<8x1xf32>
    %134 = vector.broadcast %133 : vector<8x1xf32> to vector<8x64xf32>
    %135 = arith.subf %127, %134 : vector<8x64xf32>
    %136 = arith.mulf %135, %135 : vector<8x64xf32>
    %cst_73 = arith.constant dense<0.000000e+00> : vector<8xf32>
    %137 = vector.multi_reduction <add>, %136, %cst_73 [1] : vector<8x64xf32> to vector<8xf32>
    %138 = vector.shape_cast %137 : vector<8xf32> to vector<8x1xf32>
    %cst_74 = arith.constant 6.400000e+01 : f32
    %139 = vector.broadcast %cst_74 : f32 to vector<8x1xf32>
    %140 = arith.divf %138, %139 : vector<8x1xf32>
    %141 = vector.broadcast %133 : vector<8x1xf32> to vector<8x64xf32>
    %142 = arith.subf %127, %141 : vector<8x64xf32>
    %cst_75 = arith.constant 9.99999974E-6 : f32
    %143 = vector.broadcast %cst_75 : f32 to vector<8x1xf32>
    %144 = arith.addf %140, %143 : vector<8x1xf32>
    %145 = math.rsqrt %144 : vector<8x1xf32>
    %146 = vector.broadcast %145 : vector<8x1xf32> to vector<8x64xf32>
    %147 = arith.mulf %142, %146 : vector<8x64xf32>
    %148 = vector.broadcast %128 : vector<1x64xf32> to vector<8x64xf32>
    %149 = arith.mulf %147, %148 : vector<8x64xf32>
    %150 = vector.broadcast %129 : vector<1x64xf32> to vector<8x64xf32>
    %151 = arith.addf %149, %150 : vector<8x64xf32>
    %152 = arith.truncf %151 : vector<8x64xf32> to vector<8x64xbf16>
    %c0_76 = arith.constant 0 : index
    %c0_77 = arith.constant 0 : index
    %c0_78 = arith.constant 0 : index
    %153 = vector.load %arg17[%c0_76, %c0_77, %c0_78] : memref<1x8x64xbf16, #tpu.memory_space<vmem>>, vector<1x8x64xbf16>
    %154 = vector.shape_cast %153 : vector<1x8x64xbf16> to vector<8x64xbf16>
    %155 = vector.shape_cast %152 : vector<8x64xbf16> to vector<1x8x64xbf16>
    tpu.vector_store %arg17[%c0_76, %c0_77, %c0_78], %155 {strides = array<i32>} : memref<1x8x64xbf16, #tpu.memory_space<vmem>>, vector<1x8x64xbf16>,
    return
  }
  func.func @transform_0(%arg0: i32) -> (i32, i32, i32) {
    %c0_i32 = arith.constant 0 : i32
    %c0_i32_0 = arith.constant 0 : i32
    %c0_i32_1 = arith.constant 0 : i32
    return %arg0, %c0_i32, %c0_i32_0 : i32, i32, i32
  }
  func.func @transform_1(%arg0: i32) -> (i32, i32) {
    %c0_i32 = arith.constant 0 : i32
    %c0_i32_0 = arith.constant 0 : i32
    %c0_i32_1 = arith.constant 0 : i32
    return %c0_i32, %c0_i32_0 : i32, i32
  }
  func.func @transform_2(%arg0: i32) -> (i32, i32, i32, i32) {
    %c0_i32 = arith.constant 0 : i32
    %c0_i32_0 = arith.constant 0 : i32
    %c0_i32_1 = arith.constant 0 : i32
    %c0_i32_2 = arith.constant 0 : i32
    %c0_i32_3 = arith.constant 0 : i32
    return %c0_i32, %c0_i32_0, %c0_i32_1, %c0_i32_2 : i32, i32, i32, i32
  }
  func.func @transform_3(%arg0: i32) -> (i32, i32, i32, i32) {
    %c0_i32 = arith.constant 0 : i32
    %c0_i32_0 = arith.constant 0 : i32
    %c0_i32_1 = arith.constant 0 : i32
    %c0_i32_2 = arith.constant 0 : i32
    %c0_i32_3 = arith.constant 0 : i32
    return %c0_i32, %c0_i32_0, %c0_i32_1, %c0_i32_2 : i32, i32, i32, i32
  }
  func.func @transform_4(%arg0: i32) -> (i32, i32, i32) {
    %c0_i32 = arith.constant 0 : i32
    %c0_i32_0 = arith.constant 0 : i32
    %c0_i32_1 = arith.constant 0 : i32
    %c0_i32_2 = arith.constant 0 : i32
    return %c0_i32, %c0_i32_0, %c0_i32_1 : i32, i32, i32
  }
  func.func @transform_5(%arg0: i32) -> (i32, i32) {
    %c0_i32 = arith.constant 0 : i32
    %c0_i32_0 = arith.constant 0 : i32
    %c0_i32_1 = arith.constant 0 : i32
    return %c0_i32, %c0_i32_0 : i32, i32
  }
  func.func @transform_6(%arg0: i32) -> (i32, i32) {
    %c0_i32 = arith.constant 0 : i32
    %c0_i32_0 = arith.constant 0 : i32
    %c0_i32_1 = arith.constant 0 : i32
    return %c0_i32, %c0_i32_0 : i32, i32
  }
  func.func @transform_7(%arg0: i32) -> (i32, i32) {
    %c0_i32 = arith.constant 0 : i32
    %c0_i32_0 = arith.constant 0 : i32
    %c0_i32_1 = arith.constant 0 : i32
    return %c0_i32, %c0_i32_0 : i32, i32
  }
  func.func @transform_8(%arg0: i32) -> (i32, i32) {
    %c0_i32 = arith.constant 0 : i32
    %c0_i32_0 = arith.constant 0 : i32
    %c0_i32_1 = arith.constant 0 : i32
    return %c0_i32, %c0_i32_0 : i32, i32
  }
  func.func @transform_9(%arg0: i32) -> (i32, i32) {
    %c0_i32 = arith.constant 0 : i32
    %c0_i32_0 = arith.constant 0 : i32
    %c0_i32_1 = arith.constant 0 : i32
    return %c0_i32, %c0_i32_0 : i32, i32
  }
  func.func @transform_10(%arg0: i32) -> (i32, i32) {
    %c0_i32 = arith.constant 0 : i32
    %c0_i32_0 = arith.constant 0 : i32
    %c0_i32_1 = arith.constant 0 : i32
    return %c0_i32, %c0_i32_0 : i32, i32
  }
  func.func @transform_11(%arg0: i32) -> (i32, i32) {
    %c0_i32 = arith.constant 0 : i32
    %c0_i32_0 = arith.constant 0 : i32
    %c0_i32_1 = arith.constant 0 : i32
    return %c0_i32, %c0_i32_0 : i32, i32
  }
  func.func @transform_12(%arg0: i32) -> (i32, i32) {
    %c0_i32 = arith.constant 0 : i32
    %c0_i32_0 = arith.constant 0 : i32
    %c0_i32_1 = arith.constant 0 : i32
    return %c0_i32, %c0_i32_0 : i32, i32
  }
  func.func @transform_13(%arg0: i32) -> (i32, i32) {
    %c0_i32 = arith.constant 0 : i32
    %c0_i32_0 = arith.constant 0 : i32
    %c0_i32_1 = arith.constant 0 : i32
    return %c0_i32, %c0_i32_0 : i32, i32
  }
  func.func @transform_14(%arg0: i32) -> (i32, i32) {
    %c0_i32 = arith.constant 0 : i32
    %c0_i32_0 = arith.constant 0 : i32
    %c0_i32_1 = arith.constant 0 : i32
    return %c0_i32, %c0_i32_0 : i32, i32
  }
  func.func @transform_15(%arg0: i32) -> (i32, i32) {
    %c0_i32 = arith.constant 0 : i32
    %c0_i32_0 = arith.constant 0 : i32
    %c0_i32_1 = arith.constant 0 : i32
    return %c0_i32, %c0_i32_0 : i32, i32
  }
  func.func @transform_16(%arg0: i32) -> (i32, i32, i32) {
    %c0_i32 = arith.constant 0 : i32
    %c0_i32_0 = arith.constant 0 : i32
    %c0_i32_1 = arith.constant 0 : i32
    return %arg0, %c0_i32, %c0_i32_0 : i32, i32, i32
  }
}

module attributes {stable_mosaic.version = 11 : i64} {
  func.func @_dec_layer_kernel(%arg0: i32, %arg1: memref<1x8x64xbf16, #tpu.memory_space<vmem>>, %arg2: memref<1x8x64xbf16, #tpu.memory_space<vmem>>, %arg3: memref<8x8xf32, #tpu.memory_space<vmem>>, %arg4: memref<8x8xf32, #tpu.memory_space<vmem>>, %arg5: memref<3x4x64x16xbf16, #tpu.memory_space<vmem>>, %arg6: memref<3x4x1x16xf32, #tpu.memory_space<vmem>>, %arg7: memref<4x16x64xbf16, #tpu.memory_space<vmem>>, %arg8: memref<1x64xf32, #tpu.memory_space<vmem>>, %arg9: memref<1x64xf32, #tpu.memory_space<vmem>>, %arg10: memref<1x64xf32, #tpu.memory_space<vmem>>, %arg11: memref<3x4x64x16xbf16, #tpu.memory_space<vmem>>, %arg12: memref<3x4x1x16xf32, #tpu.memory_space<vmem>>, %arg13: memref<4x16x64xbf16, #tpu.memory_space<vmem>>, %arg14: memref<1x64xf32, #tpu.memory_space<vmem>>, %arg15: memref<1x64xf32, #tpu.memory_space<vmem>>, %arg16: memref<1x64xf32, #tpu.memory_space<vmem>>, %arg17: memref<64x128xbf16, #tpu.memory_space<vmem>>, %arg18: memref<1x128xf32, #tpu.memory_space<vmem>>, %arg19: memref<128x64xbf16, #tpu.memory_space<vmem>>, %arg20: memref<1x64xf32, #tpu.memory_space<vmem>>, %arg21: memref<1x64xf32, #tpu.memory_space<vmem>>, %arg22: memref<1x64xf32, #tpu.memory_space<vmem>>, %arg23: memref<1x64xf32, #tpu.memory_space<vmem>>, %arg24: memref<1x64xf32, #tpu.memory_space<vmem>>, %arg25: memref<1x8x64xbf16, #tpu.memory_space<vmem>>) attributes {dimension_semantics = [#tpu.dimension_semantics<parallel>], iteration_bounds = array<i64: 2>, scalar_prefetch = 0 : i64, scratch_operands = 0 : i64, tpu.core_type = #tpu.core_type<tc>, window_params = [{transform_indices = @transform_0, window_bounds = array<i64: 1, 8, 64>}, {transform_indices = @transform_1, window_bounds = array<i64: 1, 8, 64>}, {pipeline_mode = #tpu.pipeline_mode<synchronous>, transform_indices = @transform_2, window_bounds = array<i64: 8, 8>}, {pipeline_mode = #tpu.pipeline_mode<synchronous>, transform_indices = @transform_3, window_bounds = array<i64: 8, 8>}, {pipeline_mode = #tpu.pipeline_mode<synchronous>, transform_indices = @transform_4, window_bounds = array<i64: 3, 4, 64, 16>}, {pipeline_mode = #tpu.pipeline_mode<synchronous>, transform_indices = @transform_5, window_bounds = array<i64: 3, 4, 1, 16>}, {pipeline_mode = #tpu.pipeline_mode<synchronous>, transform_indices = @transform_6, window_bounds = array<i64: 4, 16, 64>}, {pipeline_mode = #tpu.pipeline_mode<synchronous>, transform_indices = @transform_7, window_bounds = array<i64: 1, 64>}, {pipeline_mode = #tpu.pipeline_mode<synchronous>, transform_indices = @transform_8, window_bounds = array<i64: 1, 64>}, {pipeline_mode = #tpu.pipeline_mode<synchronous>, transform_indices = @transform_9, window_bounds = array<i64: 1, 64>}, {pipeline_mode = #tpu.pipeline_mode<synchronous>, transform_indices = @transform_10, window_bounds = array<i64: 3, 4, 64, 16>}, {pipeline_mode = #tpu.pipeline_mode<synchronous>, transform_indices = @transform_11, window_bounds = array<i64: 3, 4, 1, 16>}, {pipeline_mode = #tpu.pipeline_mode<synchronous>, transform_indices = @transform_12, window_bounds = array<i64: 4, 16, 64>}, {pipeline_mode = #tpu.pipeline_mode<synchronous>, transform_indices = @transform_13, window_bounds = array<i64: 1, 64>}, {pipeline_mode = #tpu.pipeline_mode<synchronous>, transform_indices = @transform_14, window_bounds = array<i64: 1, 64>}, {pipeline_mode = #tpu.pipeline_mode<synchronous>, transform_indices = @transform_15, window_bounds = array<i64: 1, 64>}, {pipeline_mode = #tpu.pipeline_mode<synchronous>, transform_indices = @transform_16, window_bounds = array<i64: 64, 128>}, {pipeline_mode = #tpu.pipeline_mode<synchronous>, transform_indices = @transform_17, window_bounds = array<i64: 1, 128>}, {pipeline_mode = #tpu.pipeline_mode<synchronous>, transform_indices = @transform_18, window_bounds = array<i64: 128, 64>}, {pipeline_mode = #tpu.pipeline_mode<synchronous>, transform_indices = @transform_19, window_bounds = array<i64: 1, 64>}, {pipeline_mode = #tpu.pipeline_mode<synchronous>, transform_indices = @transform_20, window_bounds = array<i64: 1, 64>}, {pipeline_mode = #tpu.pipeline_mode<synchronous>, transform_indices = @transform_21, window_bounds = array<i64: 1, 64>}, {pipeline_mode = #tpu.pipeline_mode<synchronous>, transform_indices = @transform_22, window_bounds = array<i64: 1, 64>}, {pipeline_mode = #tpu.pipeline_mode<synchronous>, transform_indices = @transform_23, window_bounds = array<i64: 1, 64>}, {transform_indices = @transform_24, window_bounds = array<i64: 1, 8, 64>}]} {
    %c0 = arith.constant 0 : index
    %c0_0 = arith.constant 0 : index
    %c0_1 = arith.constant 0 : index
    %0 = vector.load %arg1[%c0, %c0_0, %c0_1] : memref<1x8x64xbf16, #tpu.memory_space<vmem>>, vector<1x8x64xbf16>
    %1 = vector.shape_cast %0 : vector<1x8x64xbf16> to vector<8x64xbf16>
    %2 = arith.extf %1 : vector<8x64xbf16> to vector<8x64xf32>
    %c0_2 = arith.constant 0 : index
    %c0_3 = arith.constant 0 : index
    %3 = vector.load %arg3[%c0_2, %c0_3] : memref<8x8xf32, #tpu.memory_space<vmem>>, vector<8x8xf32>
    %4 = vector.shape_cast %1 : vector<8x64xbf16> to vector<1x8x64xbf16>
    %5 = vector.shape_cast %4 : vector<1x8x64xbf16> to vector<1x8x64xbf16>
    %6 = vector.broadcast %5 : vector<1x8x64xbf16> to vector<4x8x64xbf16>
    %c0_4 = arith.constant 0 : index
    %c0_5 = arith.constant 0 : index
    %c0_6 = arith.constant 0 : index
    %c0_7 = arith.constant 0 : index
    %7 = vector.load %arg5[%c0_4, %c0_5, %c0_6, %c0_7] : memref<3x4x64x16xbf16, #tpu.memory_space<vmem>>, vector<1x4x64x16xbf16>
    %8 = vector.shape_cast %7 : vector<1x4x64x16xbf16> to vector<4x64x16xbf16>
    %cst = arith.constant dense<0.000000e+00> : vector<4x8x16xf32>
    %9 = tpu.matmul %6, %8, %cst {dimension_numbers = #tpu.dot_dimension_numbers<[2], [1], [1], [2], [0, 0, 0, 1, 1, 2], [0], [0]>} : vector<4x8x64xbf16>, vector<4x64x16xbf16>, vector<4x8x16xf32> -> vector<4x8x16xf32>
    %c0_8 = arith.constant 0 : index
    %c0_9 = arith.constant 0 : index
    %c0_10 = arith.constant 0 : index
    %c0_11 = arith.constant 0 : index
    %10 = vector.load %arg6[%c0_8, %c0_9, %c0_10, %c0_11] : memref<3x4x1x16xf32, #tpu.memory_space<vmem>>, vector<1x4x1x16xf32>
    %11 = vector.shape_cast %10 : vector<1x4x1x16xf32> to vector<4x1x16xf32>
    %12 = vector.broadcast %11 : vector<4x1x16xf32> to vector<4x8x16xf32>
    %13 = arith.addf %9, %12 : vector<4x8x16xf32>
    %c1 = arith.constant 1 : index
    %c0_12 = arith.constant 0 : index
    %c0_13 = arith.constant 0 : index
    %c0_14 = arith.constant 0 : index
    %14 = vector.load %arg5[%c1, %c0_12, %c0_13, %c0_14] : memref<3x4x64x16xbf16, #tpu.memory_space<vmem>>, vector<1x4x64x16xbf16>
    %15 = vector.shape_cast %14 : vector<1x4x64x16xbf16> to vector<4x64x16xbf16>
    %cst_15 = arith.constant dense<0.000000e+00> : vector<4x8x16xf32>
    %16 = tpu.matmul %6, %15, %cst_15 {dimension_numbers = #tpu.dot_dimension_numbers<[2], [1], [1], [2], [0, 0, 0, 1, 1, 2], [0], [0]>} : vector<4x8x64xbf16>, vector<4x64x16xbf16>, vector<4x8x16xf32> -> vector<4x8x16xf32>
    %c1_16 = arith.constant 1 : index
    %c0_17 = arith.constant 0 : index
    %c0_18 = arith.constant 0 : index
    %c0_19 = arith.constant 0 : index
    %17 = vector.load %arg6[%c1_16, %c0_17, %c0_18, %c0_19] : memref<3x4x1x16xf32, #tpu.memory_space<vmem>>, vector<1x4x1x16xf32>
    %18 = vector.shape_cast %17 : vector<1x4x1x16xf32> to vector<4x1x16xf32>
    %19 = vector.broadcast %18 : vector<4x1x16xf32> to vector<4x8x16xf32>
    %20 = arith.addf %16, %19 : vector<4x8x16xf32>
    %c2 = arith.constant 2 : index
    %c0_20 = arith.constant 0 : index
    %c0_21 = arith.constant 0 : index
    %c0_22 = arith.constant 0 : index
    %21 = vector.load %arg5[%c2, %c0_20, %c0_21, %c0_22] : memref<3x4x64x16xbf16, #tpu.memory_space<vmem>>, vector<1x4x64x16xbf16>
    %22 = vector.shape_cast %21 : vector<1x4x64x16xbf16> to vector<4x64x16xbf16>
    %cst_23 = arith.constant dense<0.000000e+00> : vector<4x8x16xf32>
    %23 = tpu.matmul %6, %22, %cst_23 {dimension_numbers = #tpu.dot_dimension_numbers<[2], [1], [1], [2], [0, 0, 0, 1, 1, 2], [0], [0]>} : vector<4x8x64xbf16>, vector<4x64x16xbf16>, vector<4x8x16xf32> -> vector<4x8x16xf32>
    %c2_24 = arith.constant 2 : index
    %c0_25 = arith.constant 0 : index
    %c0_26 = arith.constant 0 : index
    %c0_27 = arith.constant 0 : index
    %24 = vector.load %arg6[%c2_24, %c0_25, %c0_26, %c0_27] : memref<3x4x1x16xf32, #tpu.memory_space<vmem>>, vector<1x4x1x16xf32>
    %25 = vector.shape_cast %24 : vector<1x4x1x16xf32> to vector<4x1x16xf32>
    %26 = vector.broadcast %25 : vector<4x1x16xf32> to vector<4x8x16xf32>
    %27 = arith.addf %23, %26 : vector<4x8x16xf32>
    %28 = arith.truncf %13 : vector<4x8x16xf32> to vector<4x8x16xbf16>
    %29 = arith.truncf %20 : vector<4x8x16xf32> to vector<4x8x16xbf16>
    %cst_28 = arith.constant dense<0.000000e+00> : vector<4x8x8xf32>
    %30 = tpu.matmul %28, %29, %cst_28 {dimension_numbers = #tpu.dot_dimension_numbers<[2], [2], [1], [1], [0, 0, 0, 1, 1, 1], [0], [0]>} : vector<4x8x16xbf16>, vector<4x8x16xbf16>, vector<4x8x8xf32> -> vector<4x8x8xf32>
    %31 = vector.shape_cast %3 : vector<8x8xf32> to vector<1x8x8xf32>
    %32 = vector.broadcast %31 : vector<1x8x8xf32> to vector<4x8x8xf32>
    %33 = arith.addf %30, %32 : vector<4x8x8xf32>
    %cst_29 = arith.constant dense<0xFF800000> : vector<4x8xf32>
    %34 = vector.multi_reduction <maximumf>, %33, %cst_29 [2] : vector<4x8x8xf32> to vector<4x8xf32>
    %35 = vector.shape_cast %34 : vector<4x8xf32> to vector<4x8x1xf32>
    %36 = vector.broadcast %35 : vector<4x8x1xf32> to vector<4x8x8xf32>
    %37 = arith.subf %33, %36 : vector<4x8x8xf32>
    %38 = math.exp %37 : vector<4x8x8xf32>
    %cst_30 = arith.constant dense<0.000000e+00> : vector<4x8xf32>
    %39 = vector.multi_reduction <add>, %38, %cst_30 [2] : vector<4x8x8xf32> to vector<4x8xf32>
    %40 = vector.shape_cast %39 : vector<4x8xf32> to vector<4x8x1xf32>
    %41 = tpu.reciprocal %40 {approx = true} : vector<4x8x1xf32> -> vector<4x8x1xf32>
    %42 = vector.broadcast %41 : vector<4x8x1xf32> to vector<4x8x8xf32>
    %43 = arith.mulf %38, %42 : vector<4x8x8xf32>
    %44 = arith.truncf %43 : vector<4x8x8xf32> to vector<4x8x8xbf16>
    %45 = arith.truncf %27 : vector<4x8x16xf32> to vector<4x8x16xbf16>
    %cst_31 = arith.constant dense<0.000000e+00> : vector<4x8x16xf32>
    %46 = tpu.matmul %44, %45, %cst_31 {dimension_numbers = #tpu.dot_dimension_numbers<[2], [1], [1], [2], [0, 0, 0, 1, 1, 2], [0], [0]>} : vector<4x8x8xbf16>, vector<4x8x16xbf16>, vector<4x8x16xf32> -> vector<4x8x16xf32>
    %47 = arith.truncf %46 : vector<4x8x16xf32> to vector<4x8x16xbf16>
    %c0_32 = arith.constant 0 : index
    %c0_33 = arith.constant 0 : index
    %c0_34 = arith.constant 0 : index
    %48 = vector.load %arg7[%c0_32, %c0_33, %c0_34] : memref<4x16x64xbf16, #tpu.memory_space<vmem>>, vector<4x16x64xbf16>
    %cst_35 = arith.constant dense<0.000000e+00> : vector<4x8x64xf32>
    %49 = tpu.matmul %47, %48, %cst_35 {dimension_numbers = #tpu.dot_dimension_numbers<[2], [1], [1], [2], [0, 0, 0, 1, 1, 2], [0], [0]>} : vector<4x8x16xbf16>, vector<4x16x64xbf16>, vector<4x8x64xf32> -> vector<4x8x64xf32>
    %50 = vector.extract_strided_slice %49 {offsets = [0, 0, 0], sizes = [1, 8, 64], strides = [1, 1, 1]} : vector<4x8x64xf32> to vector<1x8x64xf32>
    %51 = vector.shape_cast %50 : vector<1x8x64xf32> to vector<8x64xf32>
    %52 = vector.extract_strided_slice %49 {offsets = [1, 0, 0], sizes = [1, 8, 64], strides = [1, 1, 1]} : vector<4x8x64xf32> to vector<1x8x64xf32>
    %53 = vector.shape_cast %52 : vector<1x8x64xf32> to vector<8x64xf32>
    %54 = arith.addf %51, %53 : vector<8x64xf32>
    %55 = vector.extract_strided_slice %49 {offsets = [2, 0, 0], sizes = [1, 8, 64], strides = [1, 1, 1]} : vector<4x8x64xf32> to vector<1x8x64xf32>
    %56 = vector.shape_cast %55 : vector<1x8x64xf32> to vector<8x64xf32>
    %57 = arith.addf %54, %56 : vector<8x64xf32>
    %58 = vector.extract_strided_slice %49 {offsets = [3, 0, 0], sizes = [1, 8, 64], strides = [1, 1, 1]} : vector<4x8x64xf32> to vector<1x8x64xf32>
    %59 = vector.shape_cast %58 : vector<1x8x64xf32> to vector<8x64xf32>
    %60 = arith.addf %57, %59 : vector<8x64xf32>
    %c0_36 = arith.constant 0 : index
    %c0_37 = arith.constant 0 : index
    %61 = vector.load %arg8[%c0_36, %c0_37] : memref<1x64xf32, #tpu.memory_space<vmem>>, vector<1x64xf32>
    %62 = vector.broadcast %61 : vector<1x64xf32> to vector<8x64xf32>
    %63 = arith.addf %60, %62 : vector<8x64xf32>
    %64 = arith.addf %2, %63 : vector<8x64xf32>
    %c0_38 = arith.constant 0 : index
    %c0_39 = arith.constant 0 : index
    %65 = vector.load %arg9[%c0_38, %c0_39] : memref<1x64xf32, #tpu.memory_space<vmem>>, vector<1x64xf32>
    %c0_40 = arith.constant 0 : index
    %c0_41 = arith.constant 0 : index
    %66 = vector.load %arg10[%c0_40, %c0_41] : memref<1x64xf32, #tpu.memory_space<vmem>>, vector<1x64xf32>
    %cst_42 = arith.constant dense<0.000000e+00> : vector<8xf32>
    %67 = vector.multi_reduction <add>, %64, %cst_42 [1] : vector<8x64xf32> to vector<8xf32>
    %68 = vector.shape_cast %67 : vector<8xf32> to vector<8x1xf32>
    %cst_43 = arith.constant 6.400000e+01 : f32
    %69 = vector.broadcast %cst_43 : f32 to vector<8x1xf32>
    %70 = arith.divf %68, %69 : vector<8x1xf32>
    %71 = vector.broadcast %70 : vector<8x1xf32> to vector<8x64xf32>
    %72 = arith.subf %64, %71 : vector<8x64xf32>
    %73 = arith.mulf %72, %72 : vector<8x64xf32>
    %cst_44 = arith.constant dense<0.000000e+00> : vector<8xf32>
    %74 = vector.multi_reduction <add>, %73, %cst_44 [1] : vector<8x64xf32> to vector<8xf32>
    %75 = vector.shape_cast %74 : vector<8xf32> to vector<8x1xf32>
    %cst_45 = arith.constant 6.400000e+01 : f32
    %76 = vector.broadcast %cst_45 : f32 to vector<8x1xf32>
    %77 = arith.divf %75, %76 : vector<8x1xf32>
    %78 = vector.broadcast %70 : vector<8x1xf32> to vector<8x64xf32>
    %79 = arith.subf %64, %78 : vector<8x64xf32>
    %cst_46 = arith.constant 9.99999974E-6 : f32
    %80 = vector.broadcast %cst_46 : f32 to vector<8x1xf32>
    %81 = arith.addf %77, %80 : vector<8x1xf32>
    %82 = math.rsqrt %81 : vector<8x1xf32>
    %83 = vector.broadcast %82 : vector<8x1xf32> to vector<8x64xf32>
    %84 = arith.mulf %79, %83 : vector<8x64xf32>
    %85 = vector.broadcast %65 : vector<1x64xf32> to vector<8x64xf32>
    %86 = arith.mulf %84, %85 : vector<8x64xf32>
    %87 = vector.broadcast %66 : vector<1x64xf32> to vector<8x64xf32>
    %88 = arith.addf %86, %87 : vector<8x64xf32>
    %89 = arith.truncf %88 : vector<8x64xf32> to vector<8x64xbf16>
    %c0_47 = arith.constant 0 : index
    %c0_48 = arith.constant 0 : index
    %c0_49 = arith.constant 0 : index
    %90 = vector.load %arg2[%c0_47, %c0_48, %c0_49] : memref<1x8x64xbf16, #tpu.memory_space<vmem>>, vector<1x8x64xbf16>
    %91 = vector.shape_cast %90 : vector<1x8x64xbf16> to vector<8x64xbf16>
    %c0_50 = arith.constant 0 : index
    %c0_51 = arith.constant 0 : index
    %92 = vector.load %arg4[%c0_50, %c0_51] : memref<8x8xf32, #tpu.memory_space<vmem>>, vector<8x8xf32>
    %93 = vector.shape_cast %89 : vector<8x64xbf16> to vector<1x8x64xbf16>
    %94 = vector.shape_cast %93 : vector<1x8x64xbf16> to vector<1x8x64xbf16>
    %95 = vector.broadcast %94 : vector<1x8x64xbf16> to vector<4x8x64xbf16>
    %96 = vector.shape_cast %91 : vector<8x64xbf16> to vector<1x8x64xbf16>
    %97 = vector.shape_cast %96 : vector<1x8x64xbf16> to vector<1x8x64xbf16>
    %98 = vector.broadcast %97 : vector<1x8x64xbf16> to vector<4x8x64xbf16>
    %c0_52 = arith.constant 0 : index
    %c0_53 = arith.constant 0 : index
    %c0_54 = arith.constant 0 : index
    %c0_55 = arith.constant 0 : index
    %99 = vector.load %arg11[%c0_52, %c0_53, %c0_54, %c0_55] : memref<3x4x64x16xbf16, #tpu.memory_space<vmem>>, vector<1x4x64x16xbf16>
    %100 = vector.shape_cast %99 : vector<1x4x64x16xbf16> to vector<4x64x16xbf16>
    %cst_56 = arith.constant dense<0.000000e+00> : vector<4x8x16xf32>
    %101 = tpu.matmul %95, %100, %cst_56 {dimension_numbers = #tpu.dot_dimension_numbers<[2], [1], [1], [2], [0, 0, 0, 1, 1, 2], [0], [0]>} : vector<4x8x64xbf16>, vector<4x64x16xbf16>, vector<4x8x16xf32> -> vector<4x8x16xf32>
    %c0_57 = arith.constant 0 : index
    %c0_58 = arith.constant 0 : index
    %c0_59 = arith.constant 0 : index
    %c0_60 = arith.constant 0 : index
    %102 = vector.load %arg12[%c0_57, %c0_58, %c0_59, %c0_60] : memref<3x4x1x16xf32, #tpu.memory_space<vmem>>, vector<1x4x1x16xf32>
    %103 = vector.shape_cast %102 : vector<1x4x1x16xf32> to vector<4x1x16xf32>
    %104 = vector.broadcast %103 : vector<4x1x16xf32> to vector<4x8x16xf32>
    %105 = arith.addf %101, %104 : vector<4x8x16xf32>
    %c1_61 = arith.constant 1 : index
    %c0_62 = arith.constant 0 : index
    %c0_63 = arith.constant 0 : index
    %c0_64 = arith.constant 0 : index
    %106 = vector.load %arg11[%c1_61, %c0_62, %c0_63, %c0_64] : memref<3x4x64x16xbf16, #tpu.memory_space<vmem>>, vector<1x4x64x16xbf16>
    %107 = vector.shape_cast %106 : vector<1x4x64x16xbf16> to vector<4x64x16xbf16>
    %cst_65 = arith.constant dense<0.000000e+00> : vector<4x8x16xf32>
    %108 = tpu.matmul %98, %107, %cst_65 {dimension_numbers = #tpu.dot_dimension_numbers<[2], [1], [1], [2], [0, 0, 0, 1, 1, 2], [0], [0]>} : vector<4x8x64xbf16>, vector<4x64x16xbf16>, vector<4x8x16xf32> -> vector<4x8x16xf32>
    %c1_66 = arith.constant 1 : index
    %c0_67 = arith.constant 0 : index
    %c0_68 = arith.constant 0 : index
    %c0_69 = arith.constant 0 : index
    %109 = vector.load %arg12[%c1_66, %c0_67, %c0_68, %c0_69] : memref<3x4x1x16xf32, #tpu.memory_space<vmem>>, vector<1x4x1x16xf32>
    %110 = vector.shape_cast %109 : vector<1x4x1x16xf32> to vector<4x1x16xf32>
    %111 = vector.broadcast %110 : vector<4x1x16xf32> to vector<4x8x16xf32>
    %112 = arith.addf %108, %111 : vector<4x8x16xf32>
    %c2_70 = arith.constant 2 : index
    %c0_71 = arith.constant 0 : index
    %c0_72 = arith.constant 0 : index
    %c0_73 = arith.constant 0 : index
    %113 = vector.load %arg11[%c2_70, %c0_71, %c0_72, %c0_73] : memref<3x4x64x16xbf16, #tpu.memory_space<vmem>>, vector<1x4x64x16xbf16>
    %114 = vector.shape_cast %113 : vector<1x4x64x16xbf16> to vector<4x64x16xbf16>
    %cst_74 = arith.constant dense<0.000000e+00> : vector<4x8x16xf32>
    %115 = tpu.matmul %98, %114, %cst_74 {dimension_numbers = #tpu.dot_dimension_numbers<[2], [1], [1], [2], [0, 0, 0, 1, 1, 2], [0], [0]>} : vector<4x8x64xbf16>, vector<4x64x16xbf16>, vector<4x8x16xf32> -> vector<4x8x16xf32>
    %c2_75 = arith.constant 2 : index
    %c0_76 = arith.constant 0 : index
    %c0_77 = arith.constant 0 : index
    %c0_78 = arith.constant 0 : index
    %116 = vector.load %arg12[%c2_75, %c0_76, %c0_77, %c0_78] : memref<3x4x1x16xf32, #tpu.memory_space<vmem>>, vector<1x4x1x16xf32>
    %117 = vector.shape_cast %116 : vector<1x4x1x16xf32> to vector<4x1x16xf32>
    %118 = vector.broadcast %117 : vector<4x1x16xf32> to vector<4x8x16xf32>
    %119 = arith.addf %115, %118 : vector<4x8x16xf32>
    %120 = arith.truncf %105 : vector<4x8x16xf32> to vector<4x8x16xbf16>
    %121 = arith.truncf %112 : vector<4x8x16xf32> to vector<4x8x16xbf16>
    %cst_79 = arith.constant dense<0.000000e+00> : vector<4x8x8xf32>
    %122 = tpu.matmul %120, %121, %cst_79 {dimension_numbers = #tpu.dot_dimension_numbers<[2], [2], [1], [1], [0, 0, 0, 1, 1, 1], [0], [0]>} : vector<4x8x16xbf16>, vector<4x8x16xbf16>, vector<4x8x8xf32> -> vector<4x8x8xf32>
    %123 = vector.shape_cast %92 : vector<8x8xf32> to vector<1x8x8xf32>
    %124 = vector.broadcast %123 : vector<1x8x8xf32> to vector<4x8x8xf32>
    %125 = arith.addf %122, %124 : vector<4x8x8xf32>
    %cst_80 = arith.constant dense<0xFF800000> : vector<4x8xf32>
    %126 = vector.multi_reduction <maximumf>, %125, %cst_80 [2] : vector<4x8x8xf32> to vector<4x8xf32>
    %127 = vector.shape_cast %126 : vector<4x8xf32> to vector<4x8x1xf32>
    %128 = vector.broadcast %127 : vector<4x8x1xf32> to vector<4x8x8xf32>
    %129 = arith.subf %125, %128 : vector<4x8x8xf32>
    %130 = math.exp %129 : vector<4x8x8xf32>
    %cst_81 = arith.constant dense<0.000000e+00> : vector<4x8xf32>
    %131 = vector.multi_reduction <add>, %130, %cst_81 [2] : vector<4x8x8xf32> to vector<4x8xf32>
    %132 = vector.shape_cast %131 : vector<4x8xf32> to vector<4x8x1xf32>
    %133 = tpu.reciprocal %132 {approx = true} : vector<4x8x1xf32> -> vector<4x8x1xf32>
    %134 = vector.broadcast %133 : vector<4x8x1xf32> to vector<4x8x8xf32>
    %135 = arith.mulf %130, %134 : vector<4x8x8xf32>
    %136 = arith.truncf %135 : vector<4x8x8xf32> to vector<4x8x8xbf16>
    %137 = arith.truncf %119 : vector<4x8x16xf32> to vector<4x8x16xbf16>
    %cst_82 = arith.constant dense<0.000000e+00> : vector<4x8x16xf32>
    %138 = tpu.matmul %136, %137, %cst_82 {dimension_numbers = #tpu.dot_dimension_numbers<[2], [1], [1], [2], [0, 0, 0, 1, 1, 2], [0], [0]>} : vector<4x8x8xbf16>, vector<4x8x16xbf16>, vector<4x8x16xf32> -> vector<4x8x16xf32>
    %139 = arith.truncf %138 : vector<4x8x16xf32> to vector<4x8x16xbf16>
    %c0_83 = arith.constant 0 : index
    %c0_84 = arith.constant 0 : index
    %c0_85 = arith.constant 0 : index
    %140 = vector.load %arg13[%c0_83, %c0_84, %c0_85] : memref<4x16x64xbf16, #tpu.memory_space<vmem>>, vector<4x16x64xbf16>
    %cst_86 = arith.constant dense<0.000000e+00> : vector<4x8x64xf32>
    %141 = tpu.matmul %139, %140, %cst_86 {dimension_numbers = #tpu.dot_dimension_numbers<[2], [1], [1], [2], [0, 0, 0, 1, 1, 2], [0], [0]>} : vector<4x8x16xbf16>, vector<4x16x64xbf16>, vector<4x8x64xf32> -> vector<4x8x64xf32>
    %142 = vector.extract_strided_slice %141 {offsets = [0, 0, 0], sizes = [1, 8, 64], strides = [1, 1, 1]} : vector<4x8x64xf32> to vector<1x8x64xf32>
    %143 = vector.shape_cast %142 : vector<1x8x64xf32> to vector<8x64xf32>
    %144 = vector.extract_strided_slice %141 {offsets = [1, 0, 0], sizes = [1, 8, 64], strides = [1, 1, 1]} : vector<4x8x64xf32> to vector<1x8x64xf32>
    %145 = vector.shape_cast %144 : vector<1x8x64xf32> to vector<8x64xf32>
    %146 = arith.addf %143, %145 : vector<8x64xf32>
    %147 = vector.extract_strided_slice %141 {offsets = [2, 0, 0], sizes = [1, 8, 64], strides = [1, 1, 1]} : vector<4x8x64xf32> to vector<1x8x64xf32>
    %148 = vector.shape_cast %147 : vector<1x8x64xf32> to vector<8x64xf32>
    %149 = arith.addf %146, %148 : vector<8x64xf32>
    %150 = vector.extract_strided_slice %141 {offsets = [3, 0, 0], sizes = [1, 8, 64], strides = [1, 1, 1]} : vector<4x8x64xf32> to vector<1x8x64xf32>
    %151 = vector.shape_cast %150 : vector<1x8x64xf32> to vector<8x64xf32>
    %152 = arith.addf %149, %151 : vector<8x64xf32>
    %c0_87 = arith.constant 0 : index
    %c0_88 = arith.constant 0 : index
    %153 = vector.load %arg14[%c0_87, %c0_88] : memref<1x64xf32, #tpu.memory_space<vmem>>, vector<1x64xf32>
    %154 = vector.broadcast %153 : vector<1x64xf32> to vector<8x64xf32>
    %155 = arith.addf %152, %154 : vector<8x64xf32>
    %156 = arith.addf %88, %155 : vector<8x64xf32>
    %c0_89 = arith.constant 0 : index
    %c0_90 = arith.constant 0 : index
    %157 = vector.load %arg15[%c0_89, %c0_90] : memref<1x64xf32, #tpu.memory_space<vmem>>, vector<1x64xf32>
    %c0_91 = arith.constant 0 : index
    %c0_92 = arith.constant 0 : index
    %158 = vector.load %arg16[%c0_91, %c0_92] : memref<1x64xf32, #tpu.memory_space<vmem>>, vector<1x64xf32>
    %cst_93 = arith.constant dense<0.000000e+00> : vector<8xf32>
    %159 = vector.multi_reduction <add>, %156, %cst_93 [1] : vector<8x64xf32> to vector<8xf32>
    %160 = vector.shape_cast %159 : vector<8xf32> to vector<8x1xf32>
    %cst_94 = arith.constant 6.400000e+01 : f32
    %161 = vector.broadcast %cst_94 : f32 to vector<8x1xf32>
    %162 = arith.divf %160, %161 : vector<8x1xf32>
    %163 = vector.broadcast %162 : vector<8x1xf32> to vector<8x64xf32>
    %164 = arith.subf %156, %163 : vector<8x64xf32>
    %165 = arith.mulf %164, %164 : vector<8x64xf32>
    %cst_95 = arith.constant dense<0.000000e+00> : vector<8xf32>
    %166 = vector.multi_reduction <add>, %165, %cst_95 [1] : vector<8x64xf32> to vector<8xf32>
    %167 = vector.shape_cast %166 : vector<8xf32> to vector<8x1xf32>
    %cst_96 = arith.constant 6.400000e+01 : f32
    %168 = vector.broadcast %cst_96 : f32 to vector<8x1xf32>
    %169 = arith.divf %167, %168 : vector<8x1xf32>
    %170 = vector.broadcast %162 : vector<8x1xf32> to vector<8x64xf32>
    %171 = arith.subf %156, %170 : vector<8x64xf32>
    %cst_97 = arith.constant 9.99999974E-6 : f32
    %172 = vector.broadcast %cst_97 : f32 to vector<8x1xf32>
    %173 = arith.addf %169, %172 : vector<8x1xf32>
    %174 = math.rsqrt %173 : vector<8x1xf32>
    %175 = vector.broadcast %174 : vector<8x1xf32> to vector<8x64xf32>
    %176 = arith.mulf %171, %175 : vector<8x64xf32>
    %177 = vector.broadcast %157 : vector<1x64xf32> to vector<8x64xf32>
    %178 = arith.mulf %176, %177 : vector<8x64xf32>
    %179 = vector.broadcast %158 : vector<1x64xf32> to vector<8x64xf32>
    %180 = arith.addf %178, %179 : vector<8x64xf32>
    %181 = arith.truncf %180 : vector<8x64xf32> to vector<8x64xbf16>
    %c0_98 = arith.constant 0 : index
    %c0_99 = arith.constant 0 : index
    %182 = vector.load %arg17[%c0_98, %c0_99] : memref<64x128xbf16, #tpu.memory_space<vmem>>, vector<64x128xbf16>
    %cst_100 = arith.constant dense<0.000000e+00> : vector<8x128xf32>
    %183 = tpu.matmul %181, %182, %cst_100 {dimension_numbers = #tpu.dot_dimension_numbers<[1], [0], [0], [1], [0, 0, 1, 1], [], []>} : vector<8x64xbf16>, vector<64x128xbf16>, vector<8x128xf32> -> vector<8x128xf32>
    %c0_101 = arith.constant 0 : index
    %c0_102 = arith.constant 0 : index
    %184 = vector.load %arg18[%c0_101, %c0_102] : memref<1x128xf32, #tpu.memory_space<vmem>>, vector<1x128xf32>
    %185 = vector.broadcast %184 : vector<1x128xf32> to vector<8x128xf32>
    %186 = arith.addf %183, %185 : vector<8x128xf32>
    %cst_103 = arith.constant 0.000000e+00 : f32
    %187 = vector.broadcast %cst_103 : f32 to vector<8x128xf32>
    %188 = arith.maximumf %186, %187 : vector<8x128xf32>
    %189 = arith.truncf %188 : vector<8x128xf32> to vector<8x128xbf16>
    %c0_104 = arith.constant 0 : index
    %c0_105 = arith.constant 0 : index
    %190 = vector.load %arg19[%c0_104, %c0_105] : memref<128x64xbf16, #tpu.memory_space<vmem>>, vector<128x64xbf16>
    %cst_106 = arith.constant dense<0.000000e+00> : vector<8x64xf32>
    %191 = tpu.matmul %189, %190, %cst_106 {dimension_numbers = #tpu.dot_dimension_numbers<[1], [0], [0], [1], [0, 0, 1, 1], [], []>} : vector<8x128xbf16>, vector<128x64xbf16>, vector<8x64xf32> -> vector<8x64xf32>
    %c0_107 = arith.constant 0 : index
    %c0_108 = arith.constant 0 : index
    %192 = vector.load %arg20[%c0_107, %c0_108] : memref<1x64xf32, #tpu.memory_space<vmem>>, vector<1x64xf32>
    %193 = vector.broadcast %192 : vector<1x64xf32> to vector<8x64xf32>
    %194 = arith.addf %191, %193 : vector<8x64xf32>
    %195 = arith.addf %180, %194 : vector<8x64xf32>
    %c0_109 = arith.constant 0 : index
    %c0_110 = arith.constant 0 : index
    %196 = vector.load %arg21[%c0_109, %c0_110] : memref<1x64xf32, #tpu.memory_space<vmem>>, vector<1x64xf32>
    %c0_111 = arith.constant 0 : index
    %c0_112 = arith.constant 0 : index
    %197 = vector.load %arg22[%c0_111, %c0_112] : memref<1x64xf32, #tpu.memory_space<vmem>>, vector<1x64xf32>
    %cst_113 = arith.constant dense<0.000000e+00> : vector<8xf32>
    %198 = vector.multi_reduction <add>, %195, %cst_113 [1] : vector<8x64xf32> to vector<8xf32>
    %199 = vector.shape_cast %198 : vector<8xf32> to vector<8x1xf32>
    %cst_114 = arith.constant 6.400000e+01 : f32
    %200 = vector.broadcast %cst_114 : f32 to vector<8x1xf32>
    %201 = arith.divf %199, %200 : vector<8x1xf32>
    %202 = vector.broadcast %201 : vector<8x1xf32> to vector<8x64xf32>
    %203 = arith.subf %195, %202 : vector<8x64xf32>
    %204 = arith.mulf %203, %203 : vector<8x64xf32>
    %cst_115 = arith.constant dense<0.000000e+00> : vector<8xf32>
    %205 = vector.multi_reduction <add>, %204, %cst_115 [1] : vector<8x64xf32> to vector<8xf32>
    %206 = vector.shape_cast %205 : vector<8xf32> to vector<8x1xf32>
    %cst_116 = arith.constant 6.400000e+01 : f32
    %207 = vector.broadcast %cst_116 : f32 to vector<8x1xf32>
    %208 = arith.divf %206, %207 : vector<8x1xf32>
    %209 = vector.broadcast %201 : vector<8x1xf32> to vector<8x64xf32>
    %210 = arith.subf %195, %209 : vector<8x64xf32>
    %cst_117 = arith.constant 9.99999974E-6 : f32
    %211 = vector.broadcast %cst_117 : f32 to vector<8x1xf32>
    %212 = arith.addf %208, %211 : vector<8x1xf32>
    %213 = math.rsqrt %212 : vector<8x1xf32>
    %214 = vector.broadcast %213 : vector<8x1xf32> to vector<8x64xf32>
    %215 = arith.mulf %210, %214 : vector<8x64xf32>
    %216 = vector.broadcast %196 : vector<1x64xf32> to vector<8x64xf32>
    %217 = arith.mulf %215, %216 : vector<8x64xf32>
    %218 = vector.broadcast %197 : vector<1x64xf32> to vector<8x64xf32>
    %219 = arith.addf %217, %218 : vector<8x64xf32>
    %220 = arith.truncf %219 : vector<8x64xf32> to vector<8x64xbf16>
    %c0_118 = arith.constant 0 : index
    %c0_119 = arith.constant 0 : index
    %c0_120 = arith.constant 0 : index
    %221 = vector.load %arg25[%c0_118, %c0_119, %c0_120] : memref<1x8x64xbf16, #tpu.memory_space<vmem>>, vector<1x8x64xbf16>
    %222 = vector.shape_cast %221 : vector<1x8x64xbf16> to vector<8x64xbf16>
    %223 = vector.shape_cast %220 : vector<8x64xbf16> to vector<1x8x64xbf16>
    tpu.vector_store %arg25[%c0_118, %c0_119, %c0_120], %223 {strides = array<i32>} : memref<1x8x64xbf16, #tpu.memory_space<vmem>>, vector<1x8x64xbf16>,
    return
  }
  func.func @transform_0(%arg0: i32) -> (i32, i32, i32) {
    %c0_i32 = arith.constant 0 : i32
    %c0_i32_0 = arith.constant 0 : i32
    %c0_i32_1 = arith.constant 0 : i32
    return %arg0, %c0_i32, %c0_i32_0 : i32, i32, i32
  }
  func.func @transform_1(%arg0: i32) -> (i32, i32, i32) {
    %c0_i32 = arith.constant 0 : i32
    %c0_i32_0 = arith.constant 0 : i32
    %c0_i32_1 = arith.constant 0 : i32
    return %arg0, %c0_i32, %c0_i32_0 : i32, i32, i32
  }
  func.func @transform_2(%arg0: i32) -> (i32, i32) {
    %c0_i32 = arith.constant 0 : i32
    %c0_i32_0 = arith.constant 0 : i32
    %c0_i32_1 = arith.constant 0 : i32
    return %c0_i32, %c0_i32_0 : i32, i32
  }
  func.func @transform_3(%arg0: i32) -> (i32, i32) {
    %c0_i32 = arith.constant 0 : i32
    %c0_i32_0 = arith.constant 0 : i32
    %c0_i32_1 = arith.constant 0 : i32
    return %c0_i32, %c0_i32_0 : i32, i32
  }
  func.func @transform_4(%arg0: i32) -> (i32, i32, i32, i32) {
    %c0_i32 = arith.constant 0 : i32
    %c0_i32_0 = arith.constant 0 : i32
    %c0_i32_1 = arith.constant 0 : i32
    %c0_i32_2 = arith.constant 0 : i32
    %c0_i32_3 = arith.constant 0 : i32
    return %c0_i32, %c0_i32_0, %c0_i32_1, %c0_i32_2 : i32, i32, i32, i32
  }
  func.func @transform_5(%arg0: i32) -> (i32, i32, i32, i32) {
    %c0_i32 = arith.constant 0 : i32
    %c0_i32_0 = arith.constant 0 : i32
    %c0_i32_1 = arith.constant 0 : i32
    %c0_i32_2 = arith.constant 0 : i32
    %c0_i32_3 = arith.constant 0 : i32
    return %c0_i32, %c0_i32_0, %c0_i32_1, %c0_i32_2 : i32, i32, i32, i32
  }
  func.func @transform_6(%arg0: i32) -> (i32, i32, i32) {
    %c0_i32 = arith.constant 0 : i32
    %c0_i32_0 = arith.constant 0 : i32
    %c0_i32_1 = arith.constant 0 : i32
    %c0_i32_2 = arith.constant 0 : i32
    return %c0_i32, %c0_i32_0, %c0_i32_1 : i32, i32, i32
  }
  func.func @transform_7(%arg0: i32) -> (i32, i32) {
    %c0_i32 = arith.constant 0 : i32
    %c0_i32_0 = arith.constant 0 : i32
    %c0_i32_1 = arith.constant 0 : i32
    return %c0_i32, %c0_i32_0 : i32, i32
  }
  func.func @transform_8(%arg0: i32) -> (i32, i32) {
    %c0_i32 = arith.constant 0 : i32
    %c0_i32_0 = arith.constant 0 : i32
    %c0_i32_1 = arith.constant 0 : i32
    return %c0_i32, %c0_i32_0 : i32, i32
  }
  func.func @transform_9(%arg0: i32) -> (i32, i32) {
    %c0_i32 = arith.constant 0 : i32
    %c0_i32_0 = arith.constant 0 : i32
    %c0_i32_1 = arith.constant 0 : i32
    return %c0_i32, %c0_i32_0 : i32, i32
  }
  func.func @transform_10(%arg0: i32) -> (i32, i32, i32, i32) {
    %c0_i32 = arith.constant 0 : i32
    %c0_i32_0 = arith.constant 0 : i32
    %c0_i32_1 = arith.constant 0 : i32
    %c0_i32_2 = arith.constant 0 : i32
    %c0_i32_3 = arith.constant 0 : i32
    return %c0_i32, %c0_i32_0, %c0_i32_1, %c0_i32_2 : i32, i32, i32, i32
  }
  func.func @transform_11(%arg0: i32) -> (i32, i32, i32, i32) {
    %c0_i32 = arith.constant 0 : i32
    %c0_i32_0 = arith.constant 0 : i32
    %c0_i32_1 = arith.constant 0 : i32
    %c0_i32_2 = arith.constant 0 : i32
    %c0_i32_3 = arith.constant 0 : i32
    return %c0_i32, %c0_i32_0, %c0_i32_1, %c0_i32_2 : i32, i32, i32, i32
  }
  func.func @transform_12(%arg0: i32) -> (i32, i32, i32) {
    %c0_i32 = arith.constant 0 : i32
    %c0_i32_0 = arith.constant 0 : i32
    %c0_i32_1 = arith.constant 0 : i32
    %c0_i32_2 = arith.constant 0 : i32
    return %c0_i32, %c0_i32_0, %c0_i32_1 : i32, i32, i32
  }
  func.func @transform_13(%arg0: i32) -> (i32, i32) {
    %c0_i32 = arith.constant 0 : i32
    %c0_i32_0 = arith.constant 0 : i32
    %c0_i32_1 = arith.constant 0 : i32
    return %c0_i32, %c0_i32_0 : i32, i32
  }
  func.func @transform_14(%arg0: i32) -> (i32, i32) {
    %c0_i32 = arith.constant 0 : i32
    %c0_i32_0 = arith.constant 0 : i32
    %c0_i32_1 = arith.constant 0 : i32
    return %c0_i32, %c0_i32_0 : i32, i32
  }
  func.func @transform_15(%arg0: i32) -> (i32, i32) {
    %c0_i32 = arith.constant 0 : i32
    %c0_i32_0 = arith.constant 0 : i32
    %c0_i32_1 = arith.constant 0 : i32
    return %c0_i32, %c0_i32_0 : i32, i32
  }
  func.func @transform_16(%arg0: i32) -> (i32, i32) {
    %c0_i32 = arith.constant 0 : i32
    %c0_i32_0 = arith.constant 0 : i32
    %c0_i32_1 = arith.constant 0 : i32
    return %c0_i32, %c0_i32_0 : i32, i32
  }
  func.func @transform_17(%arg0: i32) -> (i32, i32) {
    %c0_i32 = arith.constant 0 : i32
    %c0_i32_0 = arith.constant 0 : i32
    %c0_i32_1 = arith.constant 0 : i32
    return %c0_i32, %c0_i32_0 : i32, i32
  }
  func.func @transform_18(%arg0: i32) -> (i32, i32) {
    %c0_i32 = arith.constant 0 : i32
    %c0_i32_0 = arith.constant 0 : i32
    %c0_i32_1 = arith.constant 0 : i32
    return %c0_i32, %c0_i32_0 : i32, i32
  }
  func.func @transform_19(%arg0: i32) -> (i32, i32) {
    %c0_i32 = arith.constant 0 : i32
    %c0_i32_0 = arith.constant 0 : i32
    %c0_i32_1 = arith.constant 0 : i32
    return %c0_i32, %c0_i32_0 : i32, i32
  }
  func.func @transform_20(%arg0: i32) -> (i32, i32) {
    %c0_i32 = arith.constant 0 : i32
    %c0_i32_0 = arith.constant 0 : i32
    %c0_i32_1 = arith.constant 0 : i32
    return %c0_i32, %c0_i32_0 : i32, i32
  }
  func.func @transform_21(%arg0: i32) -> (i32, i32) {
    %c0_i32 = arith.constant 0 : i32
    %c0_i32_0 = arith.constant 0 : i32
    %c0_i32_1 = arith.constant 0 : i32
    return %c0_i32, %c0_i32_0 : i32, i32
  }
  func.func @transform_22(%arg0: i32) -> (i32, i32) {
    %c0_i32 = arith.constant 0 : i32
    %c0_i32_0 = arith.constant 0 : i32
    %c0_i32_1 = arith.constant 0 : i32
    return %c0_i32, %c0_i32_0 : i32, i32
  }
  func.func @transform_23(%arg0: i32) -> (i32, i32) {
    %c0_i32 = arith.constant 0 : i32
    %c0_i32_0 = arith.constant 0 : i32
    %c0_i32_1 = arith.constant 0 : i32
    return %c0_i32, %c0_i32_0 : i32, i32
  }
  func.func @transform_24(%arg0: i32) -> (i32, i32, i32) {
    %c0_i32 = arith.constant 0 : i32
    %c0_i32_0 = arith.constant 0 : i32
    %c0_i32_1 = arith.constant 0 : i32
    return %arg0, %c0_i32, %c0_i32_0 : i32, i32, i32
  }
}

module attributes {stable_mosaic.version = 11 : i64} {
  func.func @_dec_layer_kernel(%arg0: i32, %arg1: memref<1x8x64xbf16, #tpu.memory_space<vmem>>, %arg2: memref<1x8x64xbf16, #tpu.memory_space<vmem>>, %arg3: memref<8x8xf32, #tpu.memory_space<vmem>>, %arg4: memref<8x8xf32, #tpu.memory_space<vmem>>, %arg5: memref<3x4x64x16xbf16, #tpu.memory_space<vmem>>, %arg6: memref<3x4x1x16xf32, #tpu.memory_space<vmem>>, %arg7: memref<4x16x64xbf16, #tpu.memory_space<vmem>>, %arg8: memref<1x64xf32, #tpu.memory_space<vmem>>, %arg9: memref<1x64xf32, #tpu.memory_space<vmem>>, %arg10: memref<1x64xf32, #tpu.memory_space<vmem>>, %arg11: memref<3x4x64x16xbf16, #tpu.memory_space<vmem>>, %arg12: memref<3x4x1x16xf32, #tpu.memory_space<vmem>>, %arg13: memref<4x16x64xbf16, #tpu.memory_space<vmem>>, %arg14: memref<1x64xf32, #tpu.memory_space<vmem>>, %arg15: memref<1x64xf32, #tpu.memory_space<vmem>>, %arg16: memref<1x64xf32, #tpu.memory_space<vmem>>, %arg17: memref<64x128xbf16, #tpu.memory_space<vmem>>, %arg18: memref<1x128xf32, #tpu.memory_space<vmem>>, %arg19: memref<128x64xbf16, #tpu.memory_space<vmem>>, %arg20: memref<1x64xf32, #tpu.memory_space<vmem>>, %arg21: memref<1x64xf32, #tpu.memory_space<vmem>>, %arg22: memref<1x64xf32, #tpu.memory_space<vmem>>, %arg23: memref<1x64xf32, #tpu.memory_space<vmem>>, %arg24: memref<1x64xf32, #tpu.memory_space<vmem>>, %arg25: memref<1x8x64xbf16, #tpu.memory_space<vmem>>) attributes {dimension_semantics = [#tpu.dimension_semantics<parallel>], iteration_bounds = array<i64: 2>, scalar_prefetch = 0 : i64, scratch_operands = 0 : i64, tpu.core_type = #tpu.core_type<tc>, window_params = [{transform_indices = @transform_0, window_bounds = array<i64: 1, 8, 64>}, {transform_indices = @transform_1, window_bounds = array<i64: 1, 8, 64>}, {pipeline_mode = #tpu.pipeline_mode<synchronous>, transform_indices = @transform_2, window_bounds = array<i64: 8, 8>}, {pipeline_mode = #tpu.pipeline_mode<synchronous>, transform_indices = @transform_3, window_bounds = array<i64: 8, 8>}, {pipeline_mode = #tpu.pipeline_mode<synchronous>, transform_indices = @transform_4, window_bounds = array<i64: 3, 4, 64, 16>}, {pipeline_mode = #tpu.pipeline_mode<synchronous>, transform_indices = @transform_5, window_bounds = array<i64: 3, 4, 1, 16>}, {pipeline_mode = #tpu.pipeline_mode<synchronous>, transform_indices = @transform_6, window_bounds = array<i64: 4, 16, 64>}, {pipeline_mode = #tpu.pipeline_mode<synchronous>, transform_indices = @transform_7, window_bounds = array<i64: 1, 64>}, {pipeline_mode = #tpu.pipeline_mode<synchronous>, transform_indices = @transform_8, window_bounds = array<i64: 1, 64>}, {pipeline_mode = #tpu.pipeline_mode<synchronous>, transform_indices = @transform_9, window_bounds = array<i64: 1, 64>}, {pipeline_mode = #tpu.pipeline_mode<synchronous>, transform_indices = @transform_10, window_bounds = array<i64: 3, 4, 64, 16>}, {pipeline_mode = #tpu.pipeline_mode<synchronous>, transform_indices = @transform_11, window_bounds = array<i64: 3, 4, 1, 16>}, {pipeline_mode = #tpu.pipeline_mode<synchronous>, transform_indices = @transform_12, window_bounds = array<i64: 4, 16, 64>}, {pipeline_mode = #tpu.pipeline_mode<synchronous>, transform_indices = @transform_13, window_bounds = array<i64: 1, 64>}, {pipeline_mode = #tpu.pipeline_mode<synchronous>, transform_indices = @transform_14, window_bounds = array<i64: 1, 64>}, {pipeline_mode = #tpu.pipeline_mode<synchronous>, transform_indices = @transform_15, window_bounds = array<i64: 1, 64>}, {pipeline_mode = #tpu.pipeline_mode<synchronous>, transform_indices = @transform_16, window_bounds = array<i64: 64, 128>}, {pipeline_mode = #tpu.pipeline_mode<synchronous>, transform_indices = @transform_17, window_bounds = array<i64: 1, 128>}, {pipeline_mode = #tpu.pipeline_mode<synchronous>, transform_indices = @transform_18, window_bounds = array<i64: 128, 64>}, {pipeline_mode = #tpu.pipeline_mode<synchronous>, transform_indices = @transform_19, window_bounds = array<i64: 1, 64>}, {pipeline_mode = #tpu.pipeline_mode<synchronous>, transform_indices = @transform_20, window_bounds = array<i64: 1, 64>}, {pipeline_mode = #tpu.pipeline_mode<synchronous>, transform_indices = @transform_21, window_bounds = array<i64: 1, 64>}, {pipeline_mode = #tpu.pipeline_mode<synchronous>, transform_indices = @transform_22, window_bounds = array<i64: 1, 64>}, {pipeline_mode = #tpu.pipeline_mode<synchronous>, transform_indices = @transform_23, window_bounds = array<i64: 1, 64>}, {transform_indices = @transform_24, window_bounds = array<i64: 1, 8, 64>}]} {
    %c0 = arith.constant 0 : index
    %c0_0 = arith.constant 0 : index
    %c0_1 = arith.constant 0 : index
    %0 = vector.load %arg1[%c0, %c0_0, %c0_1] : memref<1x8x64xbf16, #tpu.memory_space<vmem>>, vector<1x8x64xbf16>
    %1 = vector.shape_cast %0 : vector<1x8x64xbf16> to vector<8x64xbf16>
    %2 = arith.extf %1 : vector<8x64xbf16> to vector<8x64xf32>
    %c0_2 = arith.constant 0 : index
    %c0_3 = arith.constant 0 : index
    %3 = vector.load %arg3[%c0_2, %c0_3] : memref<8x8xf32, #tpu.memory_space<vmem>>, vector<8x8xf32>
    %4 = vector.shape_cast %1 : vector<8x64xbf16> to vector<1x8x64xbf16>
    %5 = vector.shape_cast %4 : vector<1x8x64xbf16> to vector<1x8x64xbf16>
    %6 = vector.broadcast %5 : vector<1x8x64xbf16> to vector<4x8x64xbf16>
    %c0_4 = arith.constant 0 : index
    %c0_5 = arith.constant 0 : index
    %c0_6 = arith.constant 0 : index
    %c0_7 = arith.constant 0 : index
    %7 = vector.load %arg5[%c0_4, %c0_5, %c0_6, %c0_7] : memref<3x4x64x16xbf16, #tpu.memory_space<vmem>>, vector<1x4x64x16xbf16>
    %8 = vector.shape_cast %7 : vector<1x4x64x16xbf16> to vector<4x64x16xbf16>
    %cst = arith.constant dense<0.000000e+00> : vector<4x8x16xf32>
    %9 = tpu.matmul %6, %8, %cst {dimension_numbers = #tpu.dot_dimension_numbers<[2], [1], [1], [2], [0, 0, 0, 1, 1, 2], [0], [0]>} : vector<4x8x64xbf16>, vector<4x64x16xbf16>, vector<4x8x16xf32> -> vector<4x8x16xf32>
    %c0_8 = arith.constant 0 : index
    %c0_9 = arith.constant 0 : index
    %c0_10 = arith.constant 0 : index
    %c0_11 = arith.constant 0 : index
    %10 = vector.load %arg6[%c0_8, %c0_9, %c0_10, %c0_11] : memref<3x4x1x16xf32, #tpu.memory_space<vmem>>, vector<1x4x1x16xf32>
    %11 = vector.shape_cast %10 : vector<1x4x1x16xf32> to vector<4x1x16xf32>
    %12 = vector.broadcast %11 : vector<4x1x16xf32> to vector<4x8x16xf32>
    %13 = arith.addf %9, %12 : vector<4x8x16xf32>
    %c1 = arith.constant 1 : index
    %c0_12 = arith.constant 0 : index
    %c0_13 = arith.constant 0 : index
    %c0_14 = arith.constant 0 : index
    %14 = vector.load %arg5[%c1, %c0_12, %c0_13, %c0_14] : memref<3x4x64x16xbf16, #tpu.memory_space<vmem>>, vector<1x4x64x16xbf16>
    %15 = vector.shape_cast %14 : vector<1x4x64x16xbf16> to vector<4x64x16xbf16>
    %cst_15 = arith.constant dense<0.000000e+00> : vector<4x8x16xf32>
    %16 = tpu.matmul %6, %15, %cst_15 {dimension_numbers = #tpu.dot_dimension_numbers<[2], [1], [1], [2], [0, 0, 0, 1, 1, 2], [0], [0]>} : vector<4x8x64xbf16>, vector<4x64x16xbf16>, vector<4x8x16xf32> -> vector<4x8x16xf32>
    %c1_16 = arith.constant 1 : index
    %c0_17 = arith.constant 0 : index
    %c0_18 = arith.constant 0 : index
    %c0_19 = arith.constant 0 : index
    %17 = vector.load %arg6[%c1_16, %c0_17, %c0_18, %c0_19] : memref<3x4x1x16xf32, #tpu.memory_space<vmem>>, vector<1x4x1x16xf32>
    %18 = vector.shape_cast %17 : vector<1x4x1x16xf32> to vector<4x1x16xf32>
    %19 = vector.broadcast %18 : vector<4x1x16xf32> to vector<4x8x16xf32>
    %20 = arith.addf %16, %19 : vector<4x8x16xf32>
    %c2 = arith.constant 2 : index
    %c0_20 = arith.constant 0 : index
    %c0_21 = arith.constant 0 : index
    %c0_22 = arith.constant 0 : index
    %21 = vector.load %arg5[%c2, %c0_20, %c0_21, %c0_22] : memref<3x4x64x16xbf16, #tpu.memory_space<vmem>>, vector<1x4x64x16xbf16>
    %22 = vector.shape_cast %21 : vector<1x4x64x16xbf16> to vector<4x64x16xbf16>
    %cst_23 = arith.constant dense<0.000000e+00> : vector<4x8x16xf32>
    %23 = tpu.matmul %6, %22, %cst_23 {dimension_numbers = #tpu.dot_dimension_numbers<[2], [1], [1], [2], [0, 0, 0, 1, 1, 2], [0], [0]>} : vector<4x8x64xbf16>, vector<4x64x16xbf16>, vector<4x8x16xf32> -> vector<4x8x16xf32>
    %c2_24 = arith.constant 2 : index
    %c0_25 = arith.constant 0 : index
    %c0_26 = arith.constant 0 : index
    %c0_27 = arith.constant 0 : index
    %24 = vector.load %arg6[%c2_24, %c0_25, %c0_26, %c0_27] : memref<3x4x1x16xf32, #tpu.memory_space<vmem>>, vector<1x4x1x16xf32>
    %25 = vector.shape_cast %24 : vector<1x4x1x16xf32> to vector<4x1x16xf32>
    %26 = vector.broadcast %25 : vector<4x1x16xf32> to vector<4x8x16xf32>
    %27 = arith.addf %23, %26 : vector<4x8x16xf32>
    %28 = arith.truncf %13 : vector<4x8x16xf32> to vector<4x8x16xbf16>
    %29 = arith.truncf %20 : vector<4x8x16xf32> to vector<4x8x16xbf16>
    %cst_28 = arith.constant dense<0.000000e+00> : vector<4x8x8xf32>
    %30 = tpu.matmul %28, %29, %cst_28 {dimension_numbers = #tpu.dot_dimension_numbers<[2], [2], [1], [1], [0, 0, 0, 1, 1, 1], [0], [0]>} : vector<4x8x16xbf16>, vector<4x8x16xbf16>, vector<4x8x8xf32> -> vector<4x8x8xf32>
    %31 = vector.shape_cast %3 : vector<8x8xf32> to vector<1x8x8xf32>
    %32 = vector.broadcast %31 : vector<1x8x8xf32> to vector<4x8x8xf32>
    %33 = arith.addf %30, %32 : vector<4x8x8xf32>
    %cst_29 = arith.constant dense<0xFF800000> : vector<4x8xf32>
    %34 = vector.multi_reduction <maximumf>, %33, %cst_29 [2] : vector<4x8x8xf32> to vector<4x8xf32>
    %35 = vector.shape_cast %34 : vector<4x8xf32> to vector<4x8x1xf32>
    %36 = vector.broadcast %35 : vector<4x8x1xf32> to vector<4x8x8xf32>
    %37 = arith.subf %33, %36 : vector<4x8x8xf32>
    %38 = math.exp %37 : vector<4x8x8xf32>
    %cst_30 = arith.constant dense<0.000000e+00> : vector<4x8xf32>
    %39 = vector.multi_reduction <add>, %38, %cst_30 [2] : vector<4x8x8xf32> to vector<4x8xf32>
    %40 = vector.shape_cast %39 : vector<4x8xf32> to vector<4x8x1xf32>
    %41 = tpu.reciprocal %40 {approx = true} : vector<4x8x1xf32> -> vector<4x8x1xf32>
    %42 = vector.broadcast %41 : vector<4x8x1xf32> to vector<4x8x8xf32>
    %43 = arith.mulf %38, %42 : vector<4x8x8xf32>
    %44 = arith.truncf %43 : vector<4x8x8xf32> to vector<4x8x8xbf16>
    %45 = arith.truncf %27 : vector<4x8x16xf32> to vector<4x8x16xbf16>
    %cst_31 = arith.constant dense<0.000000e+00> : vector<4x8x16xf32>
    %46 = tpu.matmul %44, %45, %cst_31 {dimension_numbers = #tpu.dot_dimension_numbers<[2], [1], [1], [2], [0, 0, 0, 1, 1, 2], [0], [0]>} : vector<4x8x8xbf16>, vector<4x8x16xbf16>, vector<4x8x16xf32> -> vector<4x8x16xf32>
    %47 = arith.truncf %46 : vector<4x8x16xf32> to vector<4x8x16xbf16>
    %c0_32 = arith.constant 0 : index
    %c0_33 = arith.constant 0 : index
    %c0_34 = arith.constant 0 : index
    %48 = vector.load %arg7[%c0_32, %c0_33, %c0_34] : memref<4x16x64xbf16, #tpu.memory_space<vmem>>, vector<4x16x64xbf16>
    %cst_35 = arith.constant dense<0.000000e+00> : vector<4x8x64xf32>
    %49 = tpu.matmul %47, %48, %cst_35 {dimension_numbers = #tpu.dot_dimension_numbers<[2], [1], [1], [2], [0, 0, 0, 1, 1, 2], [0], [0]>} : vector<4x8x16xbf16>, vector<4x16x64xbf16>, vector<4x8x64xf32> -> vector<4x8x64xf32>
    %50 = vector.extract_strided_slice %49 {offsets = [0, 0, 0], sizes = [1, 8, 64], strides = [1, 1, 1]} : vector<4x8x64xf32> to vector<1x8x64xf32>
    %51 = vector.shape_cast %50 : vector<1x8x64xf32> to vector<8x64xf32>
    %52 = vector.extract_strided_slice %49 {offsets = [1, 0, 0], sizes = [1, 8, 64], strides = [1, 1, 1]} : vector<4x8x64xf32> to vector<1x8x64xf32>
    %53 = vector.shape_cast %52 : vector<1x8x64xf32> to vector<8x64xf32>
    %54 = arith.addf %51, %53 : vector<8x64xf32>
    %55 = vector.extract_strided_slice %49 {offsets = [2, 0, 0], sizes = [1, 8, 64], strides = [1, 1, 1]} : vector<4x8x64xf32> to vector<1x8x64xf32>
    %56 = vector.shape_cast %55 : vector<1x8x64xf32> to vector<8x64xf32>
    %57 = arith.addf %54, %56 : vector<8x64xf32>
    %58 = vector.extract_strided_slice %49 {offsets = [3, 0, 0], sizes = [1, 8, 64], strides = [1, 1, 1]} : vector<4x8x64xf32> to vector<1x8x64xf32>
    %59 = vector.shape_cast %58 : vector<1x8x64xf32> to vector<8x64xf32>
    %60 = arith.addf %57, %59 : vector<8x64xf32>
    %c0_36 = arith.constant 0 : index
    %c0_37 = arith.constant 0 : index
    %61 = vector.load %arg8[%c0_36, %c0_37] : memref<1x64xf32, #tpu.memory_space<vmem>>, vector<1x64xf32>
    %62 = vector.broadcast %61 : vector<1x64xf32> to vector<8x64xf32>
    %63 = arith.addf %60, %62 : vector<8x64xf32>
    %64 = arith.addf %2, %63 : vector<8x64xf32>
    %c0_38 = arith.constant 0 : index
    %c0_39 = arith.constant 0 : index
    %65 = vector.load %arg9[%c0_38, %c0_39] : memref<1x64xf32, #tpu.memory_space<vmem>>, vector<1x64xf32>
    %c0_40 = arith.constant 0 : index
    %c0_41 = arith.constant 0 : index
    %66 = vector.load %arg10[%c0_40, %c0_41] : memref<1x64xf32, #tpu.memory_space<vmem>>, vector<1x64xf32>
    %cst_42 = arith.constant dense<0.000000e+00> : vector<8xf32>
    %67 = vector.multi_reduction <add>, %64, %cst_42 [1] : vector<8x64xf32> to vector<8xf32>
    %68 = vector.shape_cast %67 : vector<8xf32> to vector<8x1xf32>
    %cst_43 = arith.constant 6.400000e+01 : f32
    %69 = vector.broadcast %cst_43 : f32 to vector<8x1xf32>
    %70 = arith.divf %68, %69 : vector<8x1xf32>
    %71 = vector.broadcast %70 : vector<8x1xf32> to vector<8x64xf32>
    %72 = arith.subf %64, %71 : vector<8x64xf32>
    %73 = arith.mulf %72, %72 : vector<8x64xf32>
    %cst_44 = arith.constant dense<0.000000e+00> : vector<8xf32>
    %74 = vector.multi_reduction <add>, %73, %cst_44 [1] : vector<8x64xf32> to vector<8xf32>
    %75 = vector.shape_cast %74 : vector<8xf32> to vector<8x1xf32>
    %cst_45 = arith.constant 6.400000e+01 : f32
    %76 = vector.broadcast %cst_45 : f32 to vector<8x1xf32>
    %77 = arith.divf %75, %76 : vector<8x1xf32>
    %78 = vector.broadcast %70 : vector<8x1xf32> to vector<8x64xf32>
    %79 = arith.subf %64, %78 : vector<8x64xf32>
    %cst_46 = arith.constant 9.99999974E-6 : f32
    %80 = vector.broadcast %cst_46 : f32 to vector<8x1xf32>
    %81 = arith.addf %77, %80 : vector<8x1xf32>
    %82 = math.rsqrt %81 : vector<8x1xf32>
    %83 = vector.broadcast %82 : vector<8x1xf32> to vector<8x64xf32>
    %84 = arith.mulf %79, %83 : vector<8x64xf32>
    %85 = vector.broadcast %65 : vector<1x64xf32> to vector<8x64xf32>
    %86 = arith.mulf %84, %85 : vector<8x64xf32>
    %87 = vector.broadcast %66 : vector<1x64xf32> to vector<8x64xf32>
    %88 = arith.addf %86, %87 : vector<8x64xf32>
    %89 = arith.truncf %88 : vector<8x64xf32> to vector<8x64xbf16>
    %c0_47 = arith.constant 0 : index
    %c0_48 = arith.constant 0 : index
    %c0_49 = arith.constant 0 : index
    %90 = vector.load %arg2[%c0_47, %c0_48, %c0_49] : memref<1x8x64xbf16, #tpu.memory_space<vmem>>, vector<1x8x64xbf16>
    %91 = vector.shape_cast %90 : vector<1x8x64xbf16> to vector<8x64xbf16>
    %c0_50 = arith.constant 0 : index
    %c0_51 = arith.constant 0 : index
    %92 = vector.load %arg4[%c0_50, %c0_51] : memref<8x8xf32, #tpu.memory_space<vmem>>, vector<8x8xf32>
    %93 = vector.shape_cast %89 : vector<8x64xbf16> to vector<1x8x64xbf16>
    %94 = vector.shape_cast %93 : vector<1x8x64xbf16> to vector<1x8x64xbf16>
    %95 = vector.broadcast %94 : vector<1x8x64xbf16> to vector<4x8x64xbf16>
    %96 = vector.shape_cast %91 : vector<8x64xbf16> to vector<1x8x64xbf16>
    %97 = vector.shape_cast %96 : vector<1x8x64xbf16> to vector<1x8x64xbf16>
    %98 = vector.broadcast %97 : vector<1x8x64xbf16> to vector<4x8x64xbf16>
    %c0_52 = arith.constant 0 : index
    %c0_53 = arith.constant 0 : index
    %c0_54 = arith.constant 0 : index
    %c0_55 = arith.constant 0 : index
    %99 = vector.load %arg11[%c0_52, %c0_53, %c0_54, %c0_55] : memref<3x4x64x16xbf16, #tpu.memory_space<vmem>>, vector<1x4x64x16xbf16>
    %100 = vector.shape_cast %99 : vector<1x4x64x16xbf16> to vector<4x64x16xbf16>
    %cst_56 = arith.constant dense<0.000000e+00> : vector<4x8x16xf32>
    %101 = tpu.matmul %95, %100, %cst_56 {dimension_numbers = #tpu.dot_dimension_numbers<[2], [1], [1], [2], [0, 0, 0, 1, 1, 2], [0], [0]>} : vector<4x8x64xbf16>, vector<4x64x16xbf16>, vector<4x8x16xf32> -> vector<4x8x16xf32>
    %c0_57 = arith.constant 0 : index
    %c0_58 = arith.constant 0 : index
    %c0_59 = arith.constant 0 : index
    %c0_60 = arith.constant 0 : index
    %102 = vector.load %arg12[%c0_57, %c0_58, %c0_59, %c0_60] : memref<3x4x1x16xf32, #tpu.memory_space<vmem>>, vector<1x4x1x16xf32>
    %103 = vector.shape_cast %102 : vector<1x4x1x16xf32> to vector<4x1x16xf32>
    %104 = vector.broadcast %103 : vector<4x1x16xf32> to vector<4x8x16xf32>
    %105 = arith.addf %101, %104 : vector<4x8x16xf32>
    %c1_61 = arith.constant 1 : index
    %c0_62 = arith.constant 0 : index
    %c0_63 = arith.constant 0 : index
    %c0_64 = arith.constant 0 : index
    %106 = vector.load %arg11[%c1_61, %c0_62, %c0_63, %c0_64] : memref<3x4x64x16xbf16, #tpu.memory_space<vmem>>, vector<1x4x64x16xbf16>
    %107 = vector.shape_cast %106 : vector<1x4x64x16xbf16> to vector<4x64x16xbf16>
    %cst_65 = arith.constant dense<0.000000e+00> : vector<4x8x16xf32>
    %108 = tpu.matmul %98, %107, %cst_65 {dimension_numbers = #tpu.dot_dimension_numbers<[2], [1], [1], [2], [0, 0, 0, 1, 1, 2], [0], [0]>} : vector<4x8x64xbf16>, vector<4x64x16xbf16>, vector<4x8x16xf32> -> vector<4x8x16xf32>
    %c1_66 = arith.constant 1 : index
    %c0_67 = arith.constant 0 : index
    %c0_68 = arith.constant 0 : index
    %c0_69 = arith.constant 0 : index
    %109 = vector.load %arg12[%c1_66, %c0_67, %c0_68, %c0_69] : memref<3x4x1x16xf32, #tpu.memory_space<vmem>>, vector<1x4x1x16xf32>
    %110 = vector.shape_cast %109 : vector<1x4x1x16xf32> to vector<4x1x16xf32>
    %111 = vector.broadcast %110 : vector<4x1x16xf32> to vector<4x8x16xf32>
    %112 = arith.addf %108, %111 : vector<4x8x16xf32>
    %c2_70 = arith.constant 2 : index
    %c0_71 = arith.constant 0 : index
    %c0_72 = arith.constant 0 : index
    %c0_73 = arith.constant 0 : index
    %113 = vector.load %arg11[%c2_70, %c0_71, %c0_72, %c0_73] : memref<3x4x64x16xbf16, #tpu.memory_space<vmem>>, vector<1x4x64x16xbf16>
    %114 = vector.shape_cast %113 : vector<1x4x64x16xbf16> to vector<4x64x16xbf16>
    %cst_74 = arith.constant dense<0.000000e+00> : vector<4x8x16xf32>
    %115 = tpu.matmul %98, %114, %cst_74 {dimension_numbers = #tpu.dot_dimension_numbers<[2], [1], [1], [2], [0, 0, 0, 1, 1, 2], [0], [0]>} : vector<4x8x64xbf16>, vector<4x64x16xbf16>, vector<4x8x16xf32> -> vector<4x8x16xf32>
    %c2_75 = arith.constant 2 : index
    %c0_76 = arith.constant 0 : index
    %c0_77 = arith.constant 0 : index
    %c0_78 = arith.constant 0 : index
    %116 = vector.load %arg12[%c2_75, %c0_76, %c0_77, %c0_78] : memref<3x4x1x16xf32, #tpu.memory_space<vmem>>, vector<1x4x1x16xf32>
    %117 = vector.shape_cast %116 : vector<1x4x1x16xf32> to vector<4x1x16xf32>
    %118 = vector.broadcast %117 : vector<4x1x16xf32> to vector<4x8x16xf32>
    %119 = arith.addf %115, %118 : vector<4x8x16xf32>
    %120 = arith.truncf %105 : vector<4x8x16xf32> to vector<4x8x16xbf16>
    %121 = arith.truncf %112 : vector<4x8x16xf32> to vector<4x8x16xbf16>
    %cst_79 = arith.constant dense<0.000000e+00> : vector<4x8x8xf32>
    %122 = tpu.matmul %120, %121, %cst_79 {dimension_numbers = #tpu.dot_dimension_numbers<[2], [2], [1], [1], [0, 0, 0, 1, 1, 1], [0], [0]>} : vector<4x8x16xbf16>, vector<4x8x16xbf16>, vector<4x8x8xf32> -> vector<4x8x8xf32>
    %123 = vector.shape_cast %92 : vector<8x8xf32> to vector<1x8x8xf32>
    %124 = vector.broadcast %123 : vector<1x8x8xf32> to vector<4x8x8xf32>
    %125 = arith.addf %122, %124 : vector<4x8x8xf32>
    %cst_80 = arith.constant dense<0xFF800000> : vector<4x8xf32>
    %126 = vector.multi_reduction <maximumf>, %125, %cst_80 [2] : vector<4x8x8xf32> to vector<4x8xf32>
    %127 = vector.shape_cast %126 : vector<4x8xf32> to vector<4x8x1xf32>
    %128 = vector.broadcast %127 : vector<4x8x1xf32> to vector<4x8x8xf32>
    %129 = arith.subf %125, %128 : vector<4x8x8xf32>
    %130 = math.exp %129 : vector<4x8x8xf32>
    %cst_81 = arith.constant dense<0.000000e+00> : vector<4x8xf32>
    %131 = vector.multi_reduction <add>, %130, %cst_81 [2] : vector<4x8x8xf32> to vector<4x8xf32>
    %132 = vector.shape_cast %131 : vector<4x8xf32> to vector<4x8x1xf32>
    %133 = tpu.reciprocal %132 {approx = true} : vector<4x8x1xf32> -> vector<4x8x1xf32>
    %134 = vector.broadcast %133 : vector<4x8x1xf32> to vector<4x8x8xf32>
    %135 = arith.mulf %130, %134 : vector<4x8x8xf32>
    %136 = arith.truncf %135 : vector<4x8x8xf32> to vector<4x8x8xbf16>
    %137 = arith.truncf %119 : vector<4x8x16xf32> to vector<4x8x16xbf16>
    %cst_82 = arith.constant dense<0.000000e+00> : vector<4x8x16xf32>
    %138 = tpu.matmul %136, %137, %cst_82 {dimension_numbers = #tpu.dot_dimension_numbers<[2], [1], [1], [2], [0, 0, 0, 1, 1, 2], [0], [0]>} : vector<4x8x8xbf16>, vector<4x8x16xbf16>, vector<4x8x16xf32> -> vector<4x8x16xf32>
    %139 = arith.truncf %138 : vector<4x8x16xf32> to vector<4x8x16xbf16>
    %c0_83 = arith.constant 0 : index
    %c0_84 = arith.constant 0 : index
    %c0_85 = arith.constant 0 : index
    %140 = vector.load %arg13[%c0_83, %c0_84, %c0_85] : memref<4x16x64xbf16, #tpu.memory_space<vmem>>, vector<4x16x64xbf16>
    %cst_86 = arith.constant dense<0.000000e+00> : vector<4x8x64xf32>
    %141 = tpu.matmul %139, %140, %cst_86 {dimension_numbers = #tpu.dot_dimension_numbers<[2], [1], [1], [2], [0, 0, 0, 1, 1, 2], [0], [0]>} : vector<4x8x16xbf16>, vector<4x16x64xbf16>, vector<4x8x64xf32> -> vector<4x8x64xf32>
    %142 = vector.extract_strided_slice %141 {offsets = [0, 0, 0], sizes = [1, 8, 64], strides = [1, 1, 1]} : vector<4x8x64xf32> to vector<1x8x64xf32>
    %143 = vector.shape_cast %142 : vector<1x8x64xf32> to vector<8x64xf32>
    %144 = vector.extract_strided_slice %141 {offsets = [1, 0, 0], sizes = [1, 8, 64], strides = [1, 1, 1]} : vector<4x8x64xf32> to vector<1x8x64xf32>
    %145 = vector.shape_cast %144 : vector<1x8x64xf32> to vector<8x64xf32>
    %146 = arith.addf %143, %145 : vector<8x64xf32>
    %147 = vector.extract_strided_slice %141 {offsets = [2, 0, 0], sizes = [1, 8, 64], strides = [1, 1, 1]} : vector<4x8x64xf32> to vector<1x8x64xf32>
    %148 = vector.shape_cast %147 : vector<1x8x64xf32> to vector<8x64xf32>
    %149 = arith.addf %146, %148 : vector<8x64xf32>
    %150 = vector.extract_strided_slice %141 {offsets = [3, 0, 0], sizes = [1, 8, 64], strides = [1, 1, 1]} : vector<4x8x64xf32> to vector<1x8x64xf32>
    %151 = vector.shape_cast %150 : vector<1x8x64xf32> to vector<8x64xf32>
    %152 = arith.addf %149, %151 : vector<8x64xf32>
    %c0_87 = arith.constant 0 : index
    %c0_88 = arith.constant 0 : index
    %153 = vector.load %arg14[%c0_87, %c0_88] : memref<1x64xf32, #tpu.memory_space<vmem>>, vector<1x64xf32>
    %154 = vector.broadcast %153 : vector<1x64xf32> to vector<8x64xf32>
    %155 = arith.addf %152, %154 : vector<8x64xf32>
    %156 = arith.addf %88, %155 : vector<8x64xf32>
    %c0_89 = arith.constant 0 : index
    %c0_90 = arith.constant 0 : index
    %157 = vector.load %arg15[%c0_89, %c0_90] : memref<1x64xf32, #tpu.memory_space<vmem>>, vector<1x64xf32>
    %c0_91 = arith.constant 0 : index
    %c0_92 = arith.constant 0 : index
    %158 = vector.load %arg16[%c0_91, %c0_92] : memref<1x64xf32, #tpu.memory_space<vmem>>, vector<1x64xf32>
    %cst_93 = arith.constant dense<0.000000e+00> : vector<8xf32>
    %159 = vector.multi_reduction <add>, %156, %cst_93 [1] : vector<8x64xf32> to vector<8xf32>
    %160 = vector.shape_cast %159 : vector<8xf32> to vector<8x1xf32>
    %cst_94 = arith.constant 6.400000e+01 : f32
    %161 = vector.broadcast %cst_94 : f32 to vector<8x1xf32>
    %162 = arith.divf %160, %161 : vector<8x1xf32>
    %163 = vector.broadcast %162 : vector<8x1xf32> to vector<8x64xf32>
    %164 = arith.subf %156, %163 : vector<8x64xf32>
    %165 = arith.mulf %164, %164 : vector<8x64xf32>
    %cst_95 = arith.constant dense<0.000000e+00> : vector<8xf32>
    %166 = vector.multi_reduction <add>, %165, %cst_95 [1] : vector<8x64xf32> to vector<8xf32>
    %167 = vector.shape_cast %166 : vector<8xf32> to vector<8x1xf32>
    %cst_96 = arith.constant 6.400000e+01 : f32
    %168 = vector.broadcast %cst_96 : f32 to vector<8x1xf32>
    %169 = arith.divf %167, %168 : vector<8x1xf32>
    %170 = vector.broadcast %162 : vector<8x1xf32> to vector<8x64xf32>
    %171 = arith.subf %156, %170 : vector<8x64xf32>
    %cst_97 = arith.constant 9.99999974E-6 : f32
    %172 = vector.broadcast %cst_97 : f32 to vector<8x1xf32>
    %173 = arith.addf %169, %172 : vector<8x1xf32>
    %174 = math.rsqrt %173 : vector<8x1xf32>
    %175 = vector.broadcast %174 : vector<8x1xf32> to vector<8x64xf32>
    %176 = arith.mulf %171, %175 : vector<8x64xf32>
    %177 = vector.broadcast %157 : vector<1x64xf32> to vector<8x64xf32>
    %178 = arith.mulf %176, %177 : vector<8x64xf32>
    %179 = vector.broadcast %158 : vector<1x64xf32> to vector<8x64xf32>
    %180 = arith.addf %178, %179 : vector<8x64xf32>
    %181 = arith.truncf %180 : vector<8x64xf32> to vector<8x64xbf16>
    %c0_98 = arith.constant 0 : index
    %c0_99 = arith.constant 0 : index
    %182 = vector.load %arg17[%c0_98, %c0_99] : memref<64x128xbf16, #tpu.memory_space<vmem>>, vector<64x128xbf16>
    %cst_100 = arith.constant dense<0.000000e+00> : vector<8x128xf32>
    %183 = tpu.matmul %181, %182, %cst_100 {dimension_numbers = #tpu.dot_dimension_numbers<[1], [0], [0], [1], [0, 0, 1, 1], [], []>} : vector<8x64xbf16>, vector<64x128xbf16>, vector<8x128xf32> -> vector<8x128xf32>
    %c0_101 = arith.constant 0 : index
    %c0_102 = arith.constant 0 : index
    %184 = vector.load %arg18[%c0_101, %c0_102] : memref<1x128xf32, #tpu.memory_space<vmem>>, vector<1x128xf32>
    %185 = vector.broadcast %184 : vector<1x128xf32> to vector<8x128xf32>
    %186 = arith.addf %183, %185 : vector<8x128xf32>
    %cst_103 = arith.constant 0.000000e+00 : f32
    %187 = vector.broadcast %cst_103 : f32 to vector<8x128xf32>
    %188 = arith.maximumf %186, %187 : vector<8x128xf32>
    %189 = arith.truncf %188 : vector<8x128xf32> to vector<8x128xbf16>
    %c0_104 = arith.constant 0 : index
    %c0_105 = arith.constant 0 : index
    %190 = vector.load %arg19[%c0_104, %c0_105] : memref<128x64xbf16, #tpu.memory_space<vmem>>, vector<128x64xbf16>
    %cst_106 = arith.constant dense<0.000000e+00> : vector<8x64xf32>
    %191 = tpu.matmul %189, %190, %cst_106 {dimension_numbers = #tpu.dot_dimension_numbers<[1], [0], [0], [1], [0, 0, 1, 1], [], []>} : vector<8x128xbf16>, vector<128x64xbf16>, vector<8x64xf32> -> vector<8x64xf32>
    %c0_107 = arith.constant 0 : index
    %c0_108 = arith.constant 0 : index
    %192 = vector.load %arg20[%c0_107, %c0_108] : memref<1x64xf32, #tpu.memory_space<vmem>>, vector<1x64xf32>
    %193 = vector.broadcast %192 : vector<1x64xf32> to vector<8x64xf32>
    %194 = arith.addf %191, %193 : vector<8x64xf32>
    %195 = arith.addf %180, %194 : vector<8x64xf32>
    %c0_109 = arith.constant 0 : index
    %c0_110 = arith.constant 0 : index
    %196 = vector.load %arg21[%c0_109, %c0_110] : memref<1x64xf32, #tpu.memory_space<vmem>>, vector<1x64xf32>
    %c0_111 = arith.constant 0 : index
    %c0_112 = arith.constant 0 : index
    %197 = vector.load %arg22[%c0_111, %c0_112] : memref<1x64xf32, #tpu.memory_space<vmem>>, vector<1x64xf32>
    %cst_113 = arith.constant dense<0.000000e+00> : vector<8xf32>
    %198 = vector.multi_reduction <add>, %195, %cst_113 [1] : vector<8x64xf32> to vector<8xf32>
    %199 = vector.shape_cast %198 : vector<8xf32> to vector<8x1xf32>
    %cst_114 = arith.constant 6.400000e+01 : f32
    %200 = vector.broadcast %cst_114 : f32 to vector<8x1xf32>
    %201 = arith.divf %199, %200 : vector<8x1xf32>
    %202 = vector.broadcast %201 : vector<8x1xf32> to vector<8x64xf32>
    %203 = arith.subf %195, %202 : vector<8x64xf32>
    %204 = arith.mulf %203, %203 : vector<8x64xf32>
    %cst_115 = arith.constant dense<0.000000e+00> : vector<8xf32>
    %205 = vector.multi_reduction <add>, %204, %cst_115 [1] : vector<8x64xf32> to vector<8xf32>
    %206 = vector.shape_cast %205 : vector<8xf32> to vector<8x1xf32>
    %cst_116 = arith.constant 6.400000e+01 : f32
    %207 = vector.broadcast %cst_116 : f32 to vector<8x1xf32>
    %208 = arith.divf %206, %207 : vector<8x1xf32>
    %209 = vector.broadcast %201 : vector<8x1xf32> to vector<8x64xf32>
    %210 = arith.subf %195, %209 : vector<8x64xf32>
    %cst_117 = arith.constant 9.99999974E-6 : f32
    %211 = vector.broadcast %cst_117 : f32 to vector<8x1xf32>
    %212 = arith.addf %208, %211 : vector<8x1xf32>
    %213 = math.rsqrt %212 : vector<8x1xf32>
    %214 = vector.broadcast %213 : vector<8x1xf32> to vector<8x64xf32>
    %215 = arith.mulf %210, %214 : vector<8x64xf32>
    %216 = vector.broadcast %196 : vector<1x64xf32> to vector<8x64xf32>
    %217 = arith.mulf %215, %216 : vector<8x64xf32>
    %218 = vector.broadcast %197 : vector<1x64xf32> to vector<8x64xf32>
    %219 = arith.addf %217, %218 : vector<8x64xf32>
    %c0_118 = arith.constant 0 : index
    %c0_119 = arith.constant 0 : index
    %220 = vector.load %arg23[%c0_118, %c0_119] : memref<1x64xf32, #tpu.memory_space<vmem>>, vector<1x64xf32>
    %c0_120 = arith.constant 0 : index
    %c0_121 = arith.constant 0 : index
    %221 = vector.load %arg24[%c0_120, %c0_121] : memref<1x64xf32, #tpu.memory_space<vmem>>, vector<1x64xf32>
    %cst_122 = arith.constant dense<0.000000e+00> : vector<8xf32>
    %222 = vector.multi_reduction <add>, %219, %cst_122 [1] : vector<8x64xf32> to vector<8xf32>
    %223 = vector.shape_cast %222 : vector<8xf32> to vector<8x1xf32>
    %cst_123 = arith.constant 6.400000e+01 : f32
    %224 = vector.broadcast %cst_123 : f32 to vector<8x1xf32>
    %225 = arith.divf %223, %224 : vector<8x1xf32>
    %226 = vector.broadcast %225 : vector<8x1xf32> to vector<8x64xf32>
    %227 = arith.subf %219, %226 : vector<8x64xf32>
    %228 = arith.mulf %227, %227 : vector<8x64xf32>
    %cst_124 = arith.constant dense<0.000000e+00> : vector<8xf32>
    %229 = vector.multi_reduction <add>, %228, %cst_124 [1] : vector<8x64xf32> to vector<8xf32>
    %230 = vector.shape_cast %229 : vector<8xf32> to vector<8x1xf32>
    %cst_125 = arith.constant 6.400000e+01 : f32
    %231 = vector.broadcast %cst_125 : f32 to vector<8x1xf32>
    %232 = arith.divf %230, %231 : vector<8x1xf32>
    %233 = vector.broadcast %225 : vector<8x1xf32> to vector<8x64xf32>
    %234 = arith.subf %219, %233 : vector<8x64xf32>
    %cst_126 = arith.constant 9.99999974E-6 : f32
    %235 = vector.broadcast %cst_126 : f32 to vector<8x1xf32>
    %236 = arith.addf %232, %235 : vector<8x1xf32>
    %237 = math.rsqrt %236 : vector<8x1xf32>
    %238 = vector.broadcast %237 : vector<8x1xf32> to vector<8x64xf32>
    %239 = arith.mulf %234, %238 : vector<8x64xf32>
    %240 = vector.broadcast %220 : vector<1x64xf32> to vector<8x64xf32>
    %241 = arith.mulf %239, %240 : vector<8x64xf32>
    %242 = vector.broadcast %221 : vector<1x64xf32> to vector<8x64xf32>
    %243 = arith.addf %241, %242 : vector<8x64xf32>
    %244 = arith.truncf %243 : vector<8x64xf32> to vector<8x64xbf16>
    %c0_127 = arith.constant 0 : index
    %c0_128 = arith.constant 0 : index
    %c0_129 = arith.constant 0 : index
    %245 = vector.load %arg25[%c0_127, %c0_128, %c0_129] : memref<1x8x64xbf16, #tpu.memory_space<vmem>>, vector<1x8x64xbf16>
    %246 = vector.shape_cast %245 : vector<1x8x64xbf16> to vector<8x64xbf16>
    %247 = vector.shape_cast %244 : vector<8x64xbf16> to vector<1x8x64xbf16>
    tpu.vector_store %arg25[%c0_127, %c0_128, %c0_129], %247 {strides = array<i32>} : memref<1x8x64xbf16, #tpu.memory_space<vmem>>, vector<1x8x64xbf16>,
    return
  }
  func.func @transform_0(%arg0: i32) -> (i32, i32, i32) {
    %c0_i32 = arith.constant 0 : i32
    %c0_i32_0 = arith.constant 0 : i32
    %c0_i32_1 = arith.constant 0 : i32
    return %arg0, %c0_i32, %c0_i32_0 : i32, i32, i32
  }
  func.func @transform_1(%arg0: i32) -> (i32, i32, i32) {
    %c0_i32 = arith.constant 0 : i32
    %c0_i32_0 = arith.constant 0 : i32
    %c0_i32_1 = arith.constant 0 : i32
    return %arg0, %c0_i32, %c0_i32_0 : i32, i32, i32
  }
  func.func @transform_2(%arg0: i32) -> (i32, i32) {
    %c0_i32 = arith.constant 0 : i32
    %c0_i32_0 = arith.constant 0 : i32
    %c0_i32_1 = arith.constant 0 : i32
    return %c0_i32, %c0_i32_0 : i32, i32
  }
  func.func @transform_3(%arg0: i32) -> (i32, i32) {
    %c0_i32 = arith.constant 0 : i32
    %c0_i32_0 = arith.constant 0 : i32
    %c0_i32_1 = arith.constant 0 : i32
    return %c0_i32, %c0_i32_0 : i32, i32
  }
  func.func @transform_4(%arg0: i32) -> (i32, i32, i32, i32) {
    %c0_i32 = arith.constant 0 : i32
    %c0_i32_0 = arith.constant 0 : i32
    %c0_i32_1 = arith.constant 0 : i32
    %c0_i32_2 = arith.constant 0 : i32
    %c0_i32_3 = arith.constant 0 : i32
    return %c0_i32, %c0_i32_0, %c0_i32_1, %c0_i32_2 : i32, i32, i32, i32
  }
  func.func @transform_5(%arg0: i32) -> (i32, i32, i32, i32) {
    %c0_i32 = arith.constant 0 : i32
    %c0_i32_0 = arith.constant 0 : i32
    %c0_i32_1 = arith.constant 0 : i32
    %c0_i32_2 = arith.constant 0 : i32
    %c0_i32_3 = arith.constant 0 : i32
    return %c0_i32, %c0_i32_0, %c0_i32_1, %c0_i32_2 : i32, i32, i32, i32
  }
  func.func @transform_6(%arg0: i32) -> (i32, i32, i32) {
    %c0_i32 = arith.constant 0 : i32
    %c0_i32_0 = arith.constant 0 : i32
    %c0_i32_1 = arith.constant 0 : i32
    %c0_i32_2 = arith.constant 0 : i32
    return %c0_i32, %c0_i32_0, %c0_i32_1 : i32, i32, i32
  }
  func.func @transform_7(%arg0: i32) -> (i32, i32) {
    %c0_i32 = arith.constant 0 : i32
    %c0_i32_0 = arith.constant 0 : i32
    %c0_i32_1 = arith.constant 0 : i32
    return %c0_i32, %c0_i32_0 : i32, i32
  }
  func.func @transform_8(%arg0: i32) -> (i32, i32) {
    %c0_i32 = arith.constant 0 : i32
    %c0_i32_0 = arith.constant 0 : i32
    %c0_i32_1 = arith.constant 0 : i32
    return %c0_i32, %c0_i32_0 : i32, i32
  }
  func.func @transform_9(%arg0: i32) -> (i32, i32) {
    %c0_i32 = arith.constant 0 : i32
    %c0_i32_0 = arith.constant 0 : i32
    %c0_i32_1 = arith.constant 0 : i32
    return %c0_i32, %c0_i32_0 : i32, i32
  }
  func.func @transform_10(%arg0: i32) -> (i32, i32, i32, i32) {
    %c0_i32 = arith.constant 0 : i32
    %c0_i32_0 = arith.constant 0 : i32
    %c0_i32_1 = arith.constant 0 : i32
    %c0_i32_2 = arith.constant 0 : i32
    %c0_i32_3 = arith.constant 0 : i32
    return %c0_i32, %c0_i32_0, %c0_i32_1, %c0_i32_2 : i32, i32, i32, i32
  }
  func.func @transform_11(%arg0: i32) -> (i32, i32, i32, i32) {
    %c0_i32 = arith.constant 0 : i32
    %c0_i32_0 = arith.constant 0 : i32
    %c0_i32_1 = arith.constant 0 : i32
    %c0_i32_2 = arith.constant 0 : i32
    %c0_i32_3 = arith.constant 0 : i32
    return %c0_i32, %c0_i32_0, %c0_i32_1, %c0_i32_2 : i32, i32, i32, i32
  }
  func.func @transform_12(%arg0: i32) -> (i32, i32, i32) {
    %c0_i32 = arith.constant 0 : i32
    %c0_i32_0 = arith.constant 0 : i32
    %c0_i32_1 = arith.constant 0 : i32
    %c0_i32_2 = arith.constant 0 : i32
    return %c0_i32, %c0_i32_0, %c0_i32_1 : i32, i32, i32
  }
  func.func @transform_13(%arg0: i32) -> (i32, i32) {
    %c0_i32 = arith.constant 0 : i32
    %c0_i32_0 = arith.constant 0 : i32
    %c0_i32_1 = arith.constant 0 : i32
    return %c0_i32, %c0_i32_0 : i32, i32
  }
  func.func @transform_14(%arg0: i32) -> (i32, i32) {
    %c0_i32 = arith.constant 0 : i32
    %c0_i32_0 = arith.constant 0 : i32
    %c0_i32_1 = arith.constant 0 : i32
    return %c0_i32, %c0_i32_0 : i32, i32
  }
  func.func @transform_15(%arg0: i32) -> (i32, i32) {
    %c0_i32 = arith.constant 0 : i32
    %c0_i32_0 = arith.constant 0 : i32
    %c0_i32_1 = arith.constant 0 : i32
    return %c0_i32, %c0_i32_0 : i32, i32
  }
  func.func @transform_16(%arg0: i32) -> (i32, i32) {
    %c0_i32 = arith.constant 0 : i32
    %c0_i32_0 = arith.constant 0 : i32
    %c0_i32_1 = arith.constant 0 : i32
    return %c0_i32, %c0_i32_0 : i32, i32
  }
  func.func @transform_17(%arg0: i32) -> (i32, i32) {
    %c0_i32 = arith.constant 0 : i32
    %c0_i32_0 = arith.constant 0 : i32
    %c0_i32_1 = arith.constant 0 : i32
    return %c0_i32, %c0_i32_0 : i32, i32
  }
  func.func @transform_18(%arg0: i32) -> (i32, i32) {
    %c0_i32 = arith.constant 0 : i32
    %c0_i32_0 = arith.constant 0 : i32
    %c0_i32_1 = arith.constant 0 : i32
    return %c0_i32, %c0_i32_0 : i32, i32
  }
  func.func @transform_19(%arg0: i32) -> (i32, i32) {
    %c0_i32 = arith.constant 0 : i32
    %c0_i32_0 = arith.constant 0 : i32
    %c0_i32_1 = arith.constant 0 : i32
    return %c0_i32, %c0_i32_0 : i32, i32
  }
  func.func @transform_20(%arg0: i32) -> (i32, i32) {
    %c0_i32 = arith.constant 0 : i32
    %c0_i32_0 = arith.constant 0 : i32
    %c0_i32_1 = arith.constant 0 : i32
    return %c0_i32, %c0_i32_0 : i32, i32
  }
  func.func @transform_21(%arg0: i32) -> (i32, i32) {
    %c0_i32 = arith.constant 0 : i32
    %c0_i32_0 = arith.constant 0 : i32
    %c0_i32_1 = arith.constant 0 : i32
    return %c0_i32, %c0_i32_0 : i32, i32
  }
  func.func @transform_22(%arg0: i32) -> (i32, i32) {
    %c0_i32 = arith.constant 0 : i32
    %c0_i32_0 = arith.constant 0 : i32
    %c0_i32_1 = arith.constant 0 : i32
    return %c0_i32, %c0_i32_0 : i32, i32
  }
  func.func @transform_23(%arg0: i32) -> (i32, i32) {
    %c0_i32 = arith.constant 0 : i32
    %c0_i32_0 = arith.constant 0 : i32
    %c0_i32_1 = arith.constant 0 : i32
    return %c0_i32, %c0_i32_0 : i32, i32
  }
  func.func @transform_24(%arg0: i32) -> (i32, i32, i32) {
    %c0_i32 = arith.constant 0 : i32
    %c0_i32_0 = arith.constant 0 : i32
    %c0_i32_1 = arith.constant 0 : i32
    return %arg0, %c0_i32, %c0_i32_0 : i32, i32, i32
  }
}

module attributes {stable_mosaic.version = 11 : i64} {
  func.func @_linear_kernel(%arg0: i32, %arg1: i32, %arg2: memref<8x64xbf16, #tpu.memory_space<vmem>>, %arg3: memref<64x128xbf16, #tpu.memory_space<vmem>>, %arg4: memref<1x128xf32, #tpu.memory_space<vmem>>, %arg5: memref<8x128xf32, #tpu.memory_space<vmem>>) attributes {dimension_semantics = [#tpu.dimension_semantics<parallel>, #tpu.dimension_semantics<parallel>], iteration_bounds = array<i64: 2, 1>, scalar_prefetch = 0 : i64, scratch_operands = 0 : i64, tpu.core_type = #tpu.core_type<tc>, window_params = [{transform_indices = @transform_0, window_bounds = array<i64: 8, 64>}, {transform_indices = @transform_1, window_bounds = array<i64: 64, 128>}, {transform_indices = @transform_2, window_bounds = array<i64: 1, 128>}, {transform_indices = @transform_3, window_bounds = array<i64: 8, 128>}]} {
    %c0 = arith.constant 0 : index
    %c0_0 = arith.constant 0 : index
    %0 = vector.load %arg2[%c0, %c0_0] : memref<8x64xbf16, #tpu.memory_space<vmem>>, vector<8x64xbf16>
    %c0_1 = arith.constant 0 : index
    %c0_2 = arith.constant 0 : index
    %1 = vector.load %arg3[%c0_1, %c0_2] : memref<64x128xbf16, #tpu.memory_space<vmem>>, vector<64x128xbf16>
    %cst = arith.constant dense<0.000000e+00> : vector<8x128xf32>
    %2 = tpu.matmul %0, %1, %cst {dimension_numbers = #tpu.dot_dimension_numbers<[1], [0], [0], [1], [0, 0, 1, 1], [], []>} : vector<8x64xbf16>, vector<64x128xbf16>, vector<8x128xf32> -> vector<8x128xf32>
    %c0_3 = arith.constant 0 : index
    %c0_4 = arith.constant 0 : index
    %3 = vector.load %arg4[%c0_3, %c0_4] : memref<1x128xf32, #tpu.memory_space<vmem>>, vector<1x128xf32>
    %4 = vector.broadcast %3 : vector<1x128xf32> to vector<8x128xf32>
    %5 = arith.addf %2, %4 : vector<8x128xf32>
    %c0_5 = arith.constant 0 : index
    %c0_6 = arith.constant 0 : index
    %6 = vector.load %arg5[%c0_5, %c0_6] : memref<8x128xf32, #tpu.memory_space<vmem>>, vector<8x128xf32>
    tpu.vector_store %arg5[%c0_5, %c0_6], %5 {strides = array<i32>} : memref<8x128xf32, #tpu.memory_space<vmem>>, vector<8x128xf32>,
    return
  }
  func.func @transform_0(%arg0: i32, %arg1: i32) -> (i32, i32) {
    %c0_i32 = arith.constant 0 : i32
    %c0_i32_0 = arith.constant 0 : i32
    return %arg0, %c0_i32 : i32, i32
  }
  func.func @transform_1(%arg0: i32, %arg1: i32) -> (i32, i32) {
    %c0_i32 = arith.constant 0 : i32
    %c0_i32_0 = arith.constant 0 : i32
    return %c0_i32, %arg1 : i32, i32
  }
  func.func @transform_2(%arg0: i32, %arg1: i32) -> (i32, i32) {
    %c0_i32 = arith.constant 0 : i32
    %c0_i32_0 = arith.constant 0 : i32
    return %c0_i32, %arg1 : i32, i32
  }
  func.func @transform_3(%arg0: i32, %arg1: i32) -> (i32, i32) {
    %c0_i32 = arith.constant 0 : i32
    return %arg0, %arg1 : i32, i32
  }
}

</mosaic_0001>

<bundles_post_ra>
// kernel: transformer_model_forward.6
= control target key start
LH: loop header
LB: loop body
LE: loop exit
PB: predicated region body
PF: predicated region fallthrough
CT: control target
= control target key end

     0   :  { %s3198_s21 = smov 0   ;;  %s3675_s0 = inlined_call_operand.vmem [shape: bf16[2,8,64], index: 0, kind: input, shape index: {}]   ;;  %s3676_s1 = inlined_call_operand.vmem [shape: f32[8,8], index: 1, kind: input, shape index: {}]   ;;  %s3677_s2 = inlined_call_operand.vmem [shape: bf16[3,4,64,16], index: 2, kind: input, shape index: {}]   ;;  %s3678_s3 = inlined_call_operand.vmem [shape: f32[3,4,1,16], index: 3, kind: input, shape index: {}]   ;;  %s3679_s4 = inlined_call_operand.vmem [shape: bf16[4,16,64], index: 4, kind: input, shape index: {}]   ;;  %s3680_s5 = inlined_call_operand.vmem [shape: f32[1,64], index: 5, kind: input, shape index: {}]   ;;  %s3681_s6 = inlined_call_operand.vmem [shape: f32[1,64], index: 6, kind: input, shape index: {}]   ;;  %s3682_s7 = inlined_call_operand.vmem [shape: f32[1,64], index: 7, kind: input, shape index: {}]   ;;  %s3683_s8 = inlined_call_operand.vmem [shape: bf16[64,128], index: 8, kind: input, shape index: {}]   ;;  %s3684_s9 = inlined_call_operand.vmem [shape: f32[1,128], index: 9, kind: input, shape index: {}]   ;;  %s3685_s10 = inlined_call_operand.vmem [shape: bf16[128,64], index: 10, kind: input, shape index: {}]   ;;  %s3686_s11 = inlined_call_operand.vmem [shape: f32[1,64], index: 11, kind: input, shape index: {}]   ;;  %s3687_s12 = inlined_call_operand.vmem [shape: f32[1,64], index: 12, kind: input, shape index: {}]   ;;  %s3688_s13 = inlined_call_operand.vmem [shape: f32[1,64], index: 13, kind: input, shape index: {}]   ;;  %s3689_s14 = inlined_call_operand.vmem [shape: f32[1,64], index: 14, kind: input, shape index: {}]   ;;  %s3690_s15 = inlined_call_operand.vmem [shape: f32[1,64], index: 15, kind: input, shape index: {}]   ;;  %s3691_s16 = inlined_call_operand.vmem [shape: bf16[2,8,64], index: 16, kind: output, shape index: {}]  }
   0x1   :  { %3692 = sst [smem:[#allocation2_spill]] %s3675_s0 }
   0x2 LB: > { %s2469_s22 = sadd.s32 4294967295, %s3109_s21   ;;  %p2473_p0 = scmp.ge.s32.totalorder %s3109_s21, 1  ;;  %s3109_s21 = sphi %s3198_s21, %s26_s21  }
   0x3   : > { %p461_p1 = scmp.lt.s32.totalorder %s3109_s21, 3 }
   0x5   : > { %p462_p2 = pnand %p2473_p0, %p461_p1 }
   0x6   : > { %v3016_v0 = vld [vmem:[%s3677_s2] sm:$0xff] (!%p462_p2)   ;;  %v3111_v1 = vmov (!%p462_p2), 0.0   ;;  %v3018_v3 = vld [vmem:[%s3677_s2 + $0x8] sm:$0xff] (!%p462_p2)   ;;  %vm3112_vm0 = vmmov (!%p462_p2), 0   ;;  %p509_p3 = scmp.lt.s32.totalorder (!%p462_p2), %s2469_s22, 1  ;;  %v3020_v5 = vld [vmem:[%s3677_s2 + $0x10] sm:$0xff] (!%p462_p2)  }
   0x7   : > { %465 = sbr.rel (%p462_p2) target bundleno = 2639 (0xa4f), region = 84  ;;  %2758 = vmatprep.subr.bf16.mxu0 (!%p462_p2), %v3111_v1  ;;  %2770 = vmatprep.subr.bf16.mxu1 (!%p462_p2), %v3111_v1  ;;  %v3017_v2 = vld [vmem:[%s3677_s2 + $0x20] sm:$0xff] (!%p462_p2)   ;;  %v3019_v4 = vld [vmem:[%s3677_s2 + $0x28] sm:$0xff] (!%p462_p2)   ;;  %v3021_v6 = vld [vmem:[%s3677_s2 + $0x30] sm:$0xff] (!%p462_p2)   ;;  %s3693_s27 = sld [smem:[#allocation2_spill]] (!%p462_p2)  ;;  %vm605_vm1 = vcmask (!%p462_p2), 523264  }
   0x8   : > { %2759 = vmatpush3.bf16.msra.mxu0 (!%p462_p2), %v3016_v0  ;;  %2766 = vmatprep.mubr.msk.bf16.mxu0 (!%p462_p2), %vm3112_vm0, %v3111_v1  ;;  %v3022_v7 = vld [vmem:[%s3677_s2 + $0x18] sm:$0xff] (!%p462_p2)   ;;  %v3024_v10 = vld [vmem:[%s3677_s2 + $0x40] sm:$0xff] (!%p462_p2)   ;;  %v3026_v12 = vld [vmem:[%s3677_s2 + $0x48] sm:$0xff] (!%p462_p2)   ;;  %vm1485_vm2 = vcmask (!%p462_p2), 130048   ;;  %vm1726_vm3 = vcmask (!%p462_p2), 1043456   ;;  %vm1670_vm4 = vcmask (!%p462_p2), 64512  }
   0x9   : > { %2771 = vmatpush3.bf16.msra.mxu1 (!%p462_p2), %v3017_v2  ;;  %2760 = vmatprep.subr.bf16.mxu0 (!%p462_p2), %v3111_v1  ;;  %v3023_v8 = vld [vmem:[%s3677_s2 + $0x38] sm:$0xff] (!%p462_p2)   ;;  %v3025_v11 = vld [vmem:[%s3677_s2 + $0x60] sm:$0xff] (!%p462_p2)   ;;  %v3027_v13 = vld [vmem:[%s3677_s2 + $0x68] sm:$0xff] (!%p462_p2)   ;;  %vm2414_vm5 = vcmask (!%p462_p2), 519168  }
   0xa   : > { %2772 = vmatprep.subr.bf16.mxu1 (!%p462_p2), %v3111_v1  ;;  %2778 = vmatprep.mubr.msk.bf16.mxu1 (!%p462_p2), %vm3112_vm0, %v3111_v1  ;;  %v3028_v14 = vld [vmem:[%s3677_s2 + $0x50] sm:$0xff] (!%p462_p2)   ;;  %v3030_v16 = vld [vmem:[%s3677_s2 + $0x58] sm:$0xff] (!%p462_p2)   ;;  %v3032_v18 = vld [vmem:[%s3677_s2 + $0x80] sm:$0xff] (!%p462_p2)  }
   0xb   : > { %v3029_v15 = vld [vmem:[%s3677_s2 + $0x70] sm:$0xff] (!%p462_p2)   ;;  %v3031_v17 = vld [vmem:[%s3677_s2 + $0x78] sm:$0xff] (!%p462_p2)   ;;  %v3033_v19 = vld [vmem:[%s3677_s2 + $0xa0] sm:$0xff] (!%p462_p2)  }
   0xc   : > { %2761 = vmatpush3.bf16.msra.mxu0 (!%p462_p2), %v3018_v3  ;;  %v3034_v20 = vld [vmem:[%s3677_s2 + $0x88] sm:$0xff] (!%p462_p2)   ;;  %v3036_v22 = vld [vmem:[%s3677_s2 + $0x90] sm:$0xff] (!%p462_p2)   ;;  %v3038_v24 = vld [vmem:[%s3677_s2 + $0x98] sm:$0xff] (!%p462_p2)  }
   0xd   : > { %2773 = vmatpush3.bf16.msra.mxu1 (!%p462_p2), %v3019_v4  ;;  %2762 = vmatprep.subr.bf16.mxu0 (!%p462_p2), %v3111_v1  ;;  %v3035_v21 = vld [vmem:[%s3677_s2 + $0xa8] sm:$0xff] (!%p462_p2)   ;;  %v3037_v23 = vld [vmem:[%s3677_s2 + $0xb0] sm:$0xff] (!%p462_p2)   ;;  %v3039_v25 = vld [vmem:[%s3677_s2 + $0xb8] sm:$0xff] (!%p462_p2)  }
   0xe   : > { %s3695_s22 = smov (!%p509_p3, %s2469_s22), 1  ;;  %2774 = vmatprep.subr.bf16.mxu1 %v3111_v1  ;;  %v3040_v26 = vld [vmem:[%s3677_s2 + $0xc0] sm:$0xff]   ;;  %v3042_v28 = vld [vmem:[%s3677_s2 + $0xc8] sm:$0xff]   ;;  %v3044_v30 = vld [vmem:[%s3677_s2 + $0xd0] sm:$0xff]  }
   0xf   : > { %s2474_s20 = sshll.u32 %s3695_s22, 2  ;;  %v3041_v27 = vld [vmem:[%s3677_s2 + $0xe0] sm:$0xff]   ;;  %v3043_v29 = vld [vmem:[%s3677_s2 + $0xe8] sm:$0xff]   ;;  %v3045_v31 = vld [vmem:[%s3677_s2 + $0xf0] sm:$0xff]  }
  0x10   : > { %2763 = vmatpush3.bf16.msra.mxu0 %v3020_v5  ;;  %s3245_s28 = scalar_lea.vmem %s3693_s27, %s2474_s20  ;;  %v3046_v32 = vld [vmem:[%s3677_s2 + $0xd8] sm:$0xff]   ;;  %v3048_v34 = vld [vmem:[%s3677_s2 + $0x100] sm:$0xff]   ;;  %v3049_v35 = vld [vmem:[%s3677_s2 + $0x108] sm:$0xff]   ;;  %s516_s0 = scalar_lea.vmem %s3691_s16, %s2474_s20 }
  0x11   : > { %2775 = vmatpush3.bf16.msra.mxu1 %v3021_v6  ;;  %2764 = vmatprep.subr.bf16.mxu0 %v3111_v1  ;;  %v3253_v9 = vld [vmem:[%s3245_s28] sm:$0xf]  ;;  %v3047_v33 = vld [vmem:[%s3677_s2 + $0xf8] sm:$0xff]   ;;  %v3050_v36 = vld [vmem:[%s3677_s2 + $0x110] sm:$0xff]  }
  0x12   : > { %2776 = vmatprep.subr.bf16.mxu1 %v3111_v1  ;;  %v3051_v37 = vld [vmem:[%s3677_s2 + $0x118] sm:$0xff]   ;;  %v3052_v38 = vld [vmem:[%s3677_s2 + $0x120] sm:$0xff]   ;;  %v3054_v40 = vld [vmem:[%s3677_s2 + $0x128] sm:$0xff]  }
  0x13   : > { %v3053_v39 = vld [vmem:[%s3677_s2 + $0x140] sm:$0xff]   ;;  %v3055_v41 = vld [vmem:[%s3677_s2 + $0x148] sm:$0xff]   ;;  %v3056_v42 = vld [vmem:[%s3677_s2 + $0x130] sm:$0xff]  }
  0x14   : > { %2765 = vmatpush3.bf16.msra.mxu0 %v3022_v7  ;;  %v3057_v43 = vld [vmem:[%s3677_s2 + $0x150] sm:$0xff]   ;;  %v3058_v44 = vld [vmem:[%s3677_s2 + $0x138] sm:$0xff]   ;;  %v3060_v46 = vld [vmem:[%s3677_s2 + $0x160] sm:$0xff]  }
  0x15   : > { %2777 = vmatpush3.bf16.msra.mxu1 %v3023_v8  ;;  %2782 = vmatprep.subr.bf16.mxu0 %v3111_v1  ;;  %v3059_v45 = vld [vmem:[%s3677_s2 + $0x158] sm:$0xff]   ;;  %v3061_v47 = vld [vmem:[%s3677_s2 + $0x168] sm:$0xff]   ;;  %v3062_v48 = vld [vmem:[%s3677_s2 + $0x170] sm:$0xff]  }
  0x16   : > { %2794 = vmatprep.subr.bf16.mxu1 %v3111_v1  ;;  %v3063_v49 = vld [vmem:[%s3677_s2 + $0x178] sm:$0xff]   ;;  %v2536_v3 = vld [vmem:[%s3678_s3 + $0x4] ss:$0 sm:$0xff] }
  0x17   : > { %2767 = vmatmul.mubr.msk.bf16.vlgmr.msra.gmra.mrb[0].mxu0 %vm605_vm1, %v3253_v9 }
  0x18   : > { %2779 = vmatmul.mubr.msk.bf16.vlgmr.msra.gmra.mrb[0].mxu1 %vm605_vm1, %v3253_v9  ;;  %2783 = vmatpush3.bf16.msra.mxu0 %v3024_v10 }
  0x19   : > { %2795 = vmatpush3.bf16.msra.mxu1 %v3025_v11  ;;  %2784 = vmatprep.subr.bf16.mxu0 %v3111_v1 }
  0x1a   : > { %2796 = vmatprep.subr.bf16.mxu1 %v3111_v1  ;;  %2790 = vmatprep.mubr.msk.bf16.mxu0 %vm3112_vm0, %v3111_v1 }
  0x1b   : > { %2802 = vmatprep.mubr.msk.bf16.mxu1 %vm3112_vm0, %v3111_v1 }
  0x1c   : > { %2785 = vmatpush3.bf16.msra.mxu0 %v3026_v12 }
  0x1d   : > { %2797 = vmatpush3.bf16.msra.mxu1 %v3027_v13  ;;  %2786 = vmatprep.subr.bf16.mxu0 %v3111_v1 }
  0x1e   : > { %2798 = vmatprep.subr.bf16.mxu1 %v3111_v1 }
  0x20   : > { %2787 = vmatpush3.bf16.msra.mxu0 %v3028_v14  ;;  %v2476_v14 = vld [vmem:[%s3678_s3] ss:$0 sm:$0xff] }
  0x21   : > { %2799 = vmatpush3.bf16.msra.mxu1 %v3029_v15  ;;  %2788 = vmatprep.subr.bf16.mxu0 %v3111_v1 }
  0x22   : > { %2800 = vmatprep.subr.bf16.mxu1 %v3111_v1 }
  0x24   : > { %2789 = vmatpush3.bf16.msra.mxu0 %v3030_v16 }
  0x25   : > { %2801 = vmatpush3.bf16.msra.mxu1 %v3031_v17  ;;  %2806 = vmatprep.subr.bf16.mxu0 %v3111_v1 }
  0x26   : > { %2818 = vmatprep.subr.bf16.mxu1 %v3111_v1 }
  0x27   : > { %2791 = vmatmul.mubr.msk.bf16.vlgmr.msra.gmra.mrb[4].mxu0 %vm605_vm1, %v3253_v9 }
  0x28   : > { %2803 = vmatmul.mubr.msk.bf16.vlgmr.msra.gmra.mrb[4].mxu1 %vm605_vm1, %v3253_v9  ;;  %2807 = vmatpush3.bf16.msra.mxu0 %v3032_v18 }
  0x29   : > { %2819 = vmatpush3.bf16.msra.mxu1 %v3033_v19  ;;  %2808 = vmatprep.subr.bf16.mxu0 %v3111_v1 }
  0x2a   : > { %2820 = vmatprep.subr.bf16.mxu1 %v3111_v1  ;;  %2814 = vmatprep.mubr.msk.bf16.mxu0 %vm3112_vm0, %v3111_v1 }
  0x2b   : > { %2826 = vmatprep.mubr.msk.bf16.mxu1 %vm3112_vm0, %v3111_v1 }
  0x2c   : > { %2809 = vmatpush3.bf16.msra.mxu0 %v3034_v20 }
  0x2d   : > { %2821 = vmatpush3.bf16.msra.mxu1 %v3035_v21  ;;  %2810 = vmatprep.subr.bf16.mxu0 %v3111_v1  ;;  %v2477_v21 = vld [vmem:[%s3678_s3 + $0x1] ss:$0 sm:$0xff] }
  0x2e   : > { %2822 = vmatprep.subr.bf16.mxu1 %v3111_v1 }
  0x30   : > { %2811 = vmatpush3.bf16.msra.mxu0 %v3036_v22 }
  0x31   : > { %2823 = vmatpush3.bf16.msra.mxu1 %v3037_v23  ;;  %2812 = vmatprep.subr.bf16.mxu0 %v3111_v1  ;;  %v2538_v23 = vld [vmem:[%s3678_s3 + $0x6] ss:$0 sm:$0xff] }
  0x32   : > { %2824 = vmatprep.subr.bf16.mxu1 %v3111_v1 }
  0x34   : > { %2813 = vmatpush3.bf16.msra.mxu0 %v3038_v24 }
  0x35   : > { %2825 = vmatpush3.bf16.msra.mxu1 %v3039_v25  ;;  %2830 = vmatprep.subr.bf16.mxu0 %v3111_v1  ;;  %v2539_v25 = vld [vmem:[%s3678_s3 + $0x7] ss:$0 sm:$0xff] }
  0x36   : > { %2842 = vmatprep.subr.bf16.mxu1 %v3111_v1 }
  0x37   : > { %2815 = vmatmul.mubr.msk.bf16.vlgmr.msra.gmra.mrb[8].mxu0 %vm605_vm1, %v3253_v9 }
  0x38   : > { %2827 = vmatmul.mubr.msk.bf16.vlgmr.msra.gmra.mrb[8].mxu1 %vm605_vm1, %v3253_v9  ;;  %2831 = vmatpush3.bf16.msra.mxu0 %v3040_v26 }
  0x39   : > { %2843 = vmatpush3.bf16.msra.mxu1 %v3041_v27  ;;  %2832 = vmatprep.subr.bf16.mxu0 %v3111_v1 }
  0x3a   : > { %2844 = vmatprep.subr.bf16.mxu1 %v3111_v1  ;;  %2838 = vmatprep.mubr.msk.bf16.mxu0 %vm3112_vm0, %v3111_v1 }
  0x3b   : > { %2850 = vmatprep.mubr.msk.bf16.mxu1 %vm3112_vm0, %v3111_v1 }
  0x3c   : > { %2833 = vmatpush3.bf16.msra.mxu0 %v3042_v28 }
  0x3d   : > { %2845 = vmatpush3.bf16.msra.mxu1 %v3043_v29  ;;  %2834 = vmatprep.subr.bf16.mxu0 %v3111_v1 }
  0x3e   : > { %2846 = vmatprep.subr.bf16.mxu1 %v3111_v1 }
  0x40   : > { %2835 = vmatpush3.bf16.msra.mxu0 %v3044_v30 }
  0x41   : > { %2847 = vmatpush3.bf16.msra.mxu1 %v3045_v31  ;;  %2836 = vmatprep.subr.bf16.mxu0 %v3111_v1 }
  0x42   : > { %2848 = vmatprep.subr.bf16.mxu1 %v3111_v1 }
  0x44   : > { %2837 = vmatpush3.bf16.msra.mxu0 %v3046_v32 }
  0x45   : > { %2849 = vmatpush3.bf16.msra.mxu1 %v3047_v33  ;;  %2854 = vmatprep.subr.bf16.mxu0 %v3111_v1 }
  0x46   : > { %2866 = vmatprep.subr.bf16.mxu1 %v3111_v1 }
  0x47   : > { %2839 = vmatmul.mubr.msk.bf16.vlgmr.msra.gmra.mrb[12].mxu0 %vm605_vm1, %v3253_v9 }
  0x48   : > { %2851 = vmatmul.mubr.msk.bf16.vlgmr.msra.gmra.mrb[12].mxu1 %vm605_vm1, %v3253_v9  ;;  %2855 = vmatpush3.bf16.msra.mxu0 %v3048_v34 }
  0x49   : > { %2856 = vmatprep.subr.bf16.mxu0 %v3111_v1  ;;  %2862 = vmatprep.mubr.msk.bf16.mxu0 %vm3112_vm0, %v3111_v1 }
  0x4a   : > { %2874 = vmatprep.mubr.msk.bf16.mxu1 %vm3112_vm0, %v3111_v1  ;;  %2867 = vmatpush3.bf16.msra.mxu1 %v3052_v38 }
  0x4b   : > { %2868 = vmatprep.subr.bf16.mxu1 %v3111_v1 }
  0x4c   : > { %2857 = vmatpush3.bf16.msra.mxu0 %v3049_v35 }
  0x4d   : > { %2858 = vmatprep.subr.bf16.mxu0 %v3111_v1 }
  0x4e   : > { %2869 = vmatpush3.bf16.msra.mxu1 %v3054_v40  ;;  %v2479_v40 = vld [vmem:[%s3678_s3 + $0x3] ss:$0 sm:$0xff] }
  0x4f   : > { %2870 = vmatprep.subr.bf16.mxu1 %v3111_v1 }
  0x50   : > { %2859 = vmatpush3.bf16.msra.mxu0 %v3050_v36 }
  0x51   : > { %2860 = vmatprep.subr.bf16.mxu0 %v3111_v1 }
  0x52   : > { %2871 = vmatpush3.bf16.msra.mxu1 %v3056_v42 }
  0x53   : > { %2872 = vmatprep.subr.bf16.mxu1 %v3111_v1 }
  0x54   : > { %2861 = vmatpush3.bf16.msra.mxu0 %v3051_v37  ;;  %v2478_v37 = vld [vmem:[%s3678_s3 + $0x2] ss:$0 sm:$0xff] }
  0x55   : > { %2878 = vmatprep.subr.bf16.mxu0 %v3111_v1 }
  0x56   : > { %2873 = vmatpush3.bf16.msra.mxu1 %v3058_v44 }
  0x57   : > { %2863 = vmatmul.mubr.msk.bf16.vlgmr.msra.gmra.mrb[16].mxu0 %vm605_vm1, %v3253_v9  ;;  %2890 = vmatprep.subr.bf16.mxu1 %v3111_v1 }
  0x58   : > { %2886 = vmatprep.mubr.msk.bf16.mxu0 %vm3112_vm0, %v3111_v1  ;;  %2879 = vmatpush3.bf16.msra.mxu0 %v3053_v39 }
  0x59   : > { %2880 = vmatprep.subr.bf16.mxu0 %v3111_v1  ;;  %2875 = vmatmul.mubr.msk.bf16.vlgmr.msra.gmra.mrb[16].mxu1 %vm605_vm1, %v3253_v9 }
  0x5a   : > { %2891 = vmatpush3.bf16.msra.mxu1 %v3060_v46  ;;  %2898 = vmatprep.mubr.msk.bf16.mxu1 %vm3112_vm0, %v3111_v1 }
  0x5b   : > { %2892 = vmatprep.subr.bf16.mxu1 %v3111_v1 }
  0x5c   : > { %2881 = vmatpush3.bf16.msra.mxu0 %v3055_v41 }
  0x5d   : > { %2882 = vmatprep.subr.bf16.mxu0 %v3111_v1 }
  0x5e   : > { %2893 = vmatpush3.bf16.msra.mxu1 %v3061_v47  ;;  %v2596_v47 = vld [vmem:[%s3678_s3 + $0x8] ss:$0 sm:$0xff] }
  0x5f   : > { %2894 = vmatprep.subr.bf16.mxu1 %v3111_v1 }
  0x60   : > { %2883 = vmatpush3.bf16.msra.mxu0 %v3057_v43 }
  0x61   : > { %2884 = vmatprep.subr.bf16.mxu0 %v3111_v1 }
  0x62   : > { %2895 = vmatpush3.bf16.msra.mxu1 %v3062_v48 }
  0x63   : > { %2896 = vmatprep.subr.bf16.mxu1 %v3111_v1 }
  0x64   : > { %2885 = vmatpush3.bf16.msra.mxu0 %v3059_v45 }
  0x65   : > { %2902 = vmatprep.subr.bf16.mxu0 %v3111_v1 }
  0x66   : > { %2897 = vmatpush3.bf16.msra.mxu1 %v3063_v49 }
  0x67   : > { %2887 = vmatmul.mubr.msk.bf16.vlgmr.msra.gmra.mrb[20].mxu0 %vm605_vm1, %v3253_v9  ;;  %2920 = vmatprep.subr.bf16.mxu1 %v3111_v1 }
  0x68   : > { %2904 = vmatprep.mubr.msk.bf16.mxu0 %vm3112_vm0, %v3111_v1 }
  0x69   : > { %2899 = vmatmul.mubr.msk.bf16.vlgmr.msra.gmra.mrb[20].mxu1 %vm605_vm1, %v3253_v9  ;;  %v2537_v9 = vld [vmem:[%s3678_s3 + $0x5] ss:$0 sm:$0xff] }
  0x6a   : > { %2922 = vmatprep.mubr.msk.bf16.mxu1 %vm3112_vm0, %v3111_v1 }
  0xea   : > { %v643_v50 = vpop.f32.mrb[0].mxu0 }
  0xeb   : > { %v2768_v51 = vpop.f32.mrb[1].mxu0  ;;  %v707_v52 = vpop.f32.mrb[0].mxu1  ;;  %v644_v18 = vadd.f32 %v2476_v14, %v643_v50 }
  0xec   : > { %v646_v53 = vpop.f32.mrb[2].mxu0  ;;  %v2780_v54 = vpop.f32.mrb[1].mxu1  ;;  %v708_v24 = vadd.f32 %v2477_v21, %v707_v52 }
  0xed   : > { %v2769_v55 = vpop.f32.mrb[3].mxu0  ;;  %v710_v56 = vpop.f32.mrb[2].mxu1  ;;  %v1477_v20 = vpack.c.bf16 %v644_v18, %v644_v18 }
  0xee   : > { %v2781_v57 = vpop.f32.mrb[3].mxu1  ;;  %v1478_v33 = vpack.c.bf16 %v708_v24, %v708_v24  ;;  %v2597_v55 = vld [vmem:[%s3678_s3 + $0x9] ss:$0 sm:$0xff]  ;;  %v2598_v56 = vld [vmem:[%s3678_s3 + $0xa] ss:$0 sm:$0xff] }
  0xfa   : > { %v771_v58 = vpop.f32.mrb[4].mxu0 }
  0xfb   : > { %v2792_v59 = vpop.f32.mrb[5].mxu0  ;;  %v835_v60 = vpop.f32.mrb[4].mxu1  ;;  %v772_v43 = vadd.f32 %v2478_v37, %v771_v58 }
  0xfc   : > { %v774_v61 = vpop.f32.mrb[6].mxu0  ;;  %v2804_v62 = vpop.f32.mrb[5].mxu1  ;;  %v836_v44 = vadd.f32 %v2479_v40, %v835_v60 }
  0xfd   : > { %v2793_v63 = vpop.f32.mrb[7].mxu0  ;;  %v838_v0 = vpop.f32.mrb[6].mxu1  ;;  %v1479_v45 = vpack.c.bf16 %v772_v43, %v772_v43 }
  0xfe   : > { %v2805_v2 = vpop.f32.mrb[7].mxu1  ;;  %v1480_v46 = vpack.c.bf16 %v836_v44, %v836_v44 }
 0x10a   : > { %v961_v4 = vpop.f32.mrb[8].mxu0 }
 0x10b   : > { %v962_v5 = vadd.f32 %v2536_v3, %v961_v4  ;;  %v2816_v6 = vpop.f32.mrb[9].mxu0  ;;  %v1025_v7 = vpop.f32.mrb[8].mxu1 }
 0x10c   : > { %v964_v8 = vpop.f32.mrb[10].mxu0  ;;  %v2828_v10 = vpop.f32.mrb[9].mxu1  ;;  %v1026_v17 = vadd.f32 %v2537_v9, %v1025_v7 }
 0x10d   : > { %v1481_v11 = vpack.c.bf16 %v962_v5, %v962_v5  ;;  %v2817_v12 = vpop.f32.mrb[11].mxu0  ;;  %v1028_v13 = vpop.f32.mrb[10].mxu1  ;;  %v2599_v8 = vld [vmem:[%s3678_s3 + $0xb] ss:$0 sm:$0xff] }
 0x10e   : > { %v2829_v15 = vpop.f32.mrb[11].mxu1  ;;  %v1482_v19 = vpack.c.bf16 %v1026_v17, %v1026_v17 }
 0x10f   : > { %v1490_v16 = vsel %vm1485_vm2, %v1481_v11, 0 }
 0x110   : > { %2903 = vmatpush3.bf16.xpose.msra.mxu0 %v1490_v16  ;;  %v1536_v22 = vsel %vm1485_vm2, %v1482_v19, 0  ;;  %v520_v16 = vld [vmem:[%s3676_s1] sm:$0xff] }
 0x111   : > { %2908 = vmatprep.subr.bf16.mxu0 %v3111_v1 }
 0x117   : > { %2905 = vmatmul.mubr.msk.bf16.vlgmr.msra.gmra.mrb[24].mxu0 %vm1485_vm2, %v1477_v20 }
 0x118   : > { %2909 = vmatpush3.bf16.xpose.msra.mxu0 %v1536_v22  ;;  %2910 = vmatprep.mubr.msk.bf16.mxu0 %vm3112_vm0, %v3111_v1 }
 0x119   : > { %2914 = vmatprep.subr.bf16.mxu0 %v3111_v1 }
 0x11a   : > { %v1089_v26 = vpop.f32.mrb[12].mxu0 }
 0x11b   : > { %v1090_v27 = vadd.f32 %v2538_v23, %v1089_v26  ;;  %v1153_v28 = vpop.f32.mrb[12].mxu1  ;;  %v2840_v29 = vpop.f32.mrb[13].mxu0 }
 0x11c   : > { %v1154_v30 = vadd.f32 %v2539_v25, %v1153_v28  ;;  %v1092_v31 = vpop.f32.mrb[14].mxu0  ;;  %v2852_v32 = vpop.f32.mrb[13].mxu1 }
 0x11d   : > { %v1483_v34 = vpack.c.bf16 %v1090_v27, %v1090_v27  ;;  %v2841_v35 = vpop.f32.mrb[15].mxu0  ;;  %v1156_v36 = vpop.f32.mrb[14].mxu1 }
 0x11e   : > { %v1484_v38 = vpack.c.bf16 %v1154_v30, %v1154_v30  ;;  %v2853_v39 = vpop.f32.mrb[15].mxu1 }
 0x11f   : > { %v1582_v41 = vsel %vm1485_vm2, %v1483_v34, 0  ;;  %2911 = vmatmul.mubr.msk.bf16.vlgmr.msra.gmra.mrb[28].mxu0 %vm1485_vm2, %v1478_v33 }
 0x120   : > { %v1628_v42 = vsel %vm1485_vm2, %v1484_v38, 0  ;;  %2915 = vmatpush3.bf16.xpose.msra.mxu0 %v1582_v41  ;;  %2916 = vmatprep.mubr.msk.bf16.mxu0 %vm3112_vm0, %v3111_v1 }
 0x121   : > { %2921 = vmatpush3.bf16.xpose.msra.mxu1 %v1628_v42  ;;  %2926 = vmatprep.subr.bf16.mxu0 %v3111_v1 }
 0x122   : > { %2932 = vmatprep.subr.bf16.mxu1 %v3111_v1 }
 0x127   : > { %2917 = vmatmul.mubr.msk.bf16.vlgmr.msra.gmra.mrb[32].mxu0 %vm1485_vm2, %v1479_v45 }
 0x128   : > { %2923 = vmatmul.mubr.msk.bf16.vlgmr.msra.gmra.mrb[24].mxu1 %vm1485_vm2, %v1480_v46  ;;  %2928 = vmatprep.mubr.msk.bf16.mxu0 %vm3112_vm0, %v3111_v1 }
 0x129   : > { %2934 = vmatprep.mubr.msk.bf16.mxu1 %vm3112_vm0, %v3111_v1 }
 0x12a   : > { %v1279_v48 = vpop.f32.mrb[16].mxu0 }
 0x12b   : > { %v1280_v49 = vadd.f32 %v2596_v47, %v1279_v48  ;;  %v2864_v50 = vpop.f32.mrb[17].mxu0 }
 0x12c   : > { %v1282_v51 = vpop.f32.mrb[18].mxu0  ;;  %v1343_v57 = vpop.f32.mrb[16].mxu1 }
 0x12d   : > { %v1719_v52 = vpack.c.bf16 %v1280_v49, %v1280_v49  ;;  %v2865_v53 = vpop.f32.mrb[19].mxu0  ;;  %v1344_v59 = vadd.f32 %v2597_v55, %v1343_v57  ;;  %v2876_v60 = vpop.f32.mrb[17].mxu1 }
 0x12e   : > { %v1346_v63 = vpop.f32.mrb[18].mxu1 }
 0x12f   : > { %v1728_v54 = vsel %vm1726_vm3, %v1719_v52, 0  ;;  %v1720_v2 = vpack.c.bf16 %v1344_v59, %v1344_v59  ;;  %v2877_v4 = vpop.f32.mrb[19].mxu1 }
 0x130   : > { %2927 = vmatpush3.bf16.msra.mxu0 %v1728_v54 }
 0x131   : > { %2938 = vmatprep.subr.bf16.mxu0 %v3111_v1  ;;  %v1774_v6 = vsel %vm1726_vm3, %v1720_v2, 0 }
 0x132   : > { %2933 = vmatpush3.bf16.msra.mxu1 %v1774_v6 }
 0x133   : > { %2944 = vmatprep.subr.bf16.mxu1 %v3111_v1 }
 0x13a   : > { %v1407_v58 = vpop.f32.mrb[20].mxu0 }
 0x13b   : > { %v1408_v61 = vadd.f32 %v2598_v56, %v1407_v58  ;;  %v2888_v62 = vpop.f32.mrb[21].mxu0 }
 0x13c   : > { %v1410_v0 = vpop.f32.mrb[22].mxu0  ;;  %v1471_v9 = vpop.f32.mrb[20].mxu1 }
 0x13d   : > { %v1721_v3 = vpack.c.bf16 %v1408_v61, %v1408_v61  ;;  %v2889_v5 = vpop.f32.mrb[23].mxu0  ;;  %v1472_v10 = vadd.f32 %v2599_v8, %v1471_v9  ;;  %v2900_v11 = vpop.f32.mrb[21].mxu1 }
 0x13e   : > { %v1474_v12 = vpop.f32.mrb[22].mxu1 }
 0x13f   : > { %v3522_v7 = vsel %vm1726_vm3, %v1721_v3, 0  ;;  %v1722_v13 = vpack.c.bf16 %v1472_v10, %v1472_v10  ;;  %v2901_v14 = vpop.f32.mrb[23].mxu1 }
 0x140   : > { %v3064_v14 = vld [vmem:[%s3679_s4] sm:$0xff]  }
 0x141   : > { %v3529_v15 = vsel %vm1726_vm3, %v1722_v13, 0 }
 0x1ea   : > { %v1526_v17 = vpop.f32.mrb[24].mxu0 }
 0x1eb   : > { %v1527_v18 = vadd.f32 %v1526_v17, %v520_v16  ;;  %v2906_v19 = vpop.f32.mrb[25].mxu0  ;;  %v3066_v17 = vld [vmem:[%s3679_s4 + $0x10] sm:$0xff]  }
 0x1ec   : > { %v1529_v20 = vpop.f32.mrb[26].mxu0 }
 0x1ed   : > { %v2907_v21 = vpop.f32.mrb[27].mxu0  ;;  %v1671_v22 = vsel %vm1670_vm4, %v1527_v18, -inf }
 0x1ee   : > { %1672 = vmax.xlane.f32.xlu0 %v1671_v22 }
 0x1f2   : > { %v1572_v23 = vpop.f32.mrb[28].mxu0 }
 0x1f3   : > { %v1573_v24 = vadd.f32 %v1572_v23, %v520_v16  ;;  %v2912_v25 = vpop.f32.mrb[29].mxu0  ;;  %v3067_v23 = vld [vmem:[%s3679_s4 + $0x18] sm:$0xff]  }
 0x1f4   : > { %v1575_v26 = vpop.f32.mrb[30].mxu0 }
 0x1f5   : > { %v2913_v27 = vpop.f32.mrb[31].mxu0  ;;  %v1674_v28 = vsel %vm1670_vm4, %v1573_v24, -inf }
 0x1f6   : > { %1675 = vmax.xlane.f32.xlu0 %v1674_v28 }
 0x1fa   : > { %v1618_v29 = vpop.f32.mrb[32].mxu0 }
 0x1fb   : > { %v1619_v30 = vadd.f32 %v1618_v29, %v520_v16  ;;  %v1664_v31 = vpop.f32.mrb[24].mxu1  ;;  %v2918_v32 = vpop.f32.mrb[33].mxu0 }
 0x1fc   : > { %v2924_v33 = vpop.f32.mrb[25].mxu1  ;;  %v1621_v34 = vpop.f32.mrb[34].mxu0  ;;  %v1665_v35 = vadd.f32 %v1664_v31, %v520_v16 }
 0x1fd   : > { %v1667_v36 = vpop.f32.mrb[26].mxu1  ;;  %v2919_v37 = vpop.f32.mrb[35].mxu0  ;;  %v1677_v38 = vsel %vm1670_vm4, %v1619_v30, -inf }
 0x1fe   : > { %v2925_v39 = vpop.f32.mrb[27].mxu1  ;;  %1678 = vmax.xlane.f32.xlu1 %v1677_v38  ;;  %v1680_v40 = vsel %vm1670_vm4, %v1665_v35, -inf }
 0x202   : > { %1681 = vmax.xlane.f32.xlu1 %v1680_v40 }
 0x27b   : > { %v1673_v41 = vpop.xlane.xlu0 %1672 }
 0x27c   : > { %v1683_v42 = vsub.f32 %v1527_v18, %v1673_v41 }
 0x27e   : > { %v1687_v43 = vmul.f32 1.442695, %v1683_v42 }
 0x280   : > { %3080 = vpow2.f32 %v1687_v43 }
 0x283   : > { %v1676_v44 = vpop.xlane.xlu0 %1675 }
 0x284   : > { %v1684_v45 = vsub.f32 %v1573_v24, %v1676_v44 }
 0x286   : > { %v1689_v46 = vmul.f32 1.442695, %v1684_v45 }
 0x288   : > { %3082 = vpow2.f32 %v1689_v46 }
 0x28a   : > { %v3081_v47 = vpop.eup %3080 }
 0x28b   : > { %v1679_v48 = vpop.xlane.xlu1 %1678  ;;  %v1695_v49 = vsel %vm1670_vm4, %v3081_v47, 0.0 }
 0x28c   : > { %v1685_v50 = vsub.f32 %v1619_v30, %v1679_v48  ;;  %1696 = vadd.xlane.f32.xlu0 %v1695_v49 }
 0x28e   : > { %v1691_v51 = vmul.f32 1.442695, %v1685_v50 }
 0x28f   : > { %v1682_v52 = vpop.xlane.xlu1 %1681 }
 0x290   : > { %3084 = vpow2.f32 %v1691_v51  ;;  %v1686_v53 = vsub.f32 %v1665_v35, %v1682_v52 }
 0x292   : > { %v3083_v54 = vpop.eup %3082  ;;  %v1693_v55 = vmul.f32 1.442695, %v1686_v53  ;;  %v2636_v53 = vld [vmem:[%s3680_s5] ss:$0 sm:$0xff] }
 0x293   : > { %v1698_v56 = vsel %vm1670_vm4, %v3083_v54, 0.0 }
 0x294   : > { %3086 = vpow2.f32 %v1693_v55  ;;  %1699 = vadd.xlane.f32.xlu1 %v1698_v56  ;;  %v3102_v56 = vld [vmem:[%s3245_s28] sm:$0xf] }
 0x29a   : > { %v3085_v57 = vpop.eup %3084 }
 0x29b   : > { %v1701_v58 = vsel %vm1670_vm4, %v3085_v57, 0.0 }
 0x29c   : > { %1702 = vadd.xlane.f32.xlu0 %v1701_v58 }
 0x29e   : > { %v3087_v59 = vpop.eup %3086 }
 0x29f   : > { %v1704_v60 = vsel %vm1670_vm4, %v3087_v59, 0.0 }
 0x2a0   : > { %1705 = vadd.xlane.f32.xlu1 %v1704_v60 }
 0x319   : > { %v1697_v61 = vpop.xlane.xlu0 %1696 }
 0x31a   : > { %3088 = vrcp.f32 %v1697_v61 }
 0x321   : > { %v1700_v62 = vpop.xlane.xlu1 %1699 }
 0x322   : > { %3090 = vrcp.f32 %v1700_v62 }
 0x324   : > { %v3089_v63 = vpop.eup %3088 }
 0x325   : > { %v1711_v0 = vmul.f32 %v3089_v63, %v3081_v47 }
 0x327   : > { %v1715_v2 = vpack.c.bf16 %v1711_v0, %v1711_v0 }
 0x329   : > { %2929 = vmatmul.mubr.msk.bf16.vlgmr.msra.gmra.mrb[36].mxu0 %vm1670_vm4, %v1715_v2  ;;  %v1703_v3 = vpop.xlane.xlu0 %1702 }
 0x32a   : > { %2939 = vmatpush3.bf16.msra.mxu0 %v3522_v7  ;;  %3092 = vrcp.f32 %v1703_v3  ;;  %2940 = vmatprep.mubr.msk.bf16.mxu0 %vm3112_vm0, %v3111_v1 }
 0x32b   : > { %2950 = vmatprep.subr.bf16.mxu0 %v3111_v1 }
 0x32c   : > { %v3091_v4 = vpop.eup %3090 }
 0x32d   : > { %v1712_v5 = vmul.f32 %v3091_v4, %v3083_v54  ;;  %v1706_v6 = vpop.xlane.xlu1 %1705 }
 0x32e   : > { %3094 = vrcp.f32 %v1706_v6  ;;  %v3069_v6 = vld [vmem:[%s3683_s8 + $0x8] sm:$0xff]  }
 0x32f   : > { %v1716_v8 = vpack.c.bf16 %v1712_v5, %v1712_v5  ;;  %v3068_v5 = vld [vmem:[%s3683_s8] sm:$0xff]  }
 0x331   : > { %2935 = vmatmul.mubr.msk.bf16.vlgmr.msra.gmra.mrb[28].mxu1 %vm1670_vm4, %v1716_v8  ;;  %v3070_v8 = vld [vmem:[%s3683_s8 + $0x10] sm:$0xff]  }
 0x332   : > { %2945 = vmatpush3.bf16.msra.mxu1 %v3529_v15  ;;  %2946 = vmatprep.mubr.msk.bf16.mxu1 %vm3112_vm0, %v3111_v1  ;;  %v3065_v15 = vld [vmem:[%s3679_s4 + $0x8] sm:$0xff]  }
 0x333   : > { %2956 = vmatprep.subr.bf16.mxu1 %v3111_v1 }
 0x334   : > { %v3093_v7 = vpop.eup %3092 }
 0x335   : > { %v1713_v9 = vmul.f32 %v3093_v7, %v3085_v57  ;;  %v519_v57 = vunpack.c.l.bf16 %v3102_v56  ;;  %v3071_v7 = vld [vmem:[%s3683_s8 + $0x18] sm:$0xff]  }
 0x337   : > { %v1717_v10 = vpack.c.bf16 %v1713_v9, %v1713_v9  ;;  %v3072_v9 = vld [vmem:[%s3685_s10] sm:$0xff]  }
 0x338   : > { %v3095_v11 = vpop.eup %3094 }
 0x339   : > { %v1714_v12 = vmul.f32 %v3095_v11, %v3087_v59  ;;  %2941 = vmatmul.mubr.msk.bf16.vlgmr.msra.gmra.mrb[40].mxu0 %vm1670_vm4, %v1717_v10  ;;  %v3073_v10 = vld [vmem:[%s3685_s10 + $0x8] sm:$0xff]   ;;  %v3074_v11 = vld [vmem:[%s3685_s10 + $0x10] sm:$0xff]  }
 0x33a   : > { %2952 = vmatprep.mubr.msk.bf16.mxu0 %vm3112_vm0, %v3111_v1  ;;  %2951 = vmatpush3.bf16.msra.mxu0 %v3064_v14  ;;  %v3077_v14 = vld [vmem:[%s3685_s10 + $0x28] sm:$0xff]  }
 0x33b   : > { %v1718_v13 = vpack.c.bf16 %v1714_v12, %v1714_v12  ;;  %2962 = vmatprep.subr.bf16.mxu0 %v3111_v1  ;;  %v3075_v12 = vld [vmem:[%s3685_s10 + $0x18] sm:$0xff]  }
 0x33d   : > { %2947 = vmatmul.mubr.msk.bf16.vlgmr.msra.gmra.mrb[32].mxu1 %vm1670_vm4, %v1718_v13  ;;  %v3076_v13 = vld [vmem:[%s3685_s10 + $0x20] sm:$0xff]  }
 0x33e   : > { %2958 = vmatprep.mubr.msk.bf16.mxu1 %vm3112_vm0, %v3111_v1  ;;  %2957 = vmatpush3.bf16.msra.mxu1 %v3065_v15 }
 0x33f   : > { %2968 = vmatprep.subr.bf16.mxu1 %v3111_v1 }
 0x3fc   : > { %v1764_v16 = vpop.f32.mrb[36].mxu0 }
 0x3fd   : > { %v1908_v18 = vpack.c.bf16 %v1764_v16, %v1764_v16  ;;  %v2930_v19 = vpop.f32.mrb[37].mxu0 }
 0x3fe   : > { %v1767_v20 = vpop.f32.mrb[38].mxu0  ;;  %v2637_v19 = vld [vmem:[%s3681_s6] ss:$0 sm:$0xff] }
 0x3ff   : > { %v2931_v21 = vpop.f32.mrb[39].mxu0  ;;  %2953 = vmatmul.mubr.msk.bf16.vlgmr.msra.gmra.mrb[44].mxu0 %vm1485_vm2, %v1908_v18 }
 0x400   : > { %2963 = vmatpush3.bf16.msra.mxu0 %v3066_v17  ;;  %2964 = vmatprep.mubr.msk.bf16.mxu0 %vm3112_vm0, %v3111_v1  ;;  %v2638_v21 = vld [vmem:[%s3682_s7] ss:$0 sm:$0xff] }
 0x401   : > { %2974 = vmatprep.subr.bf16.mxu0 %v3111_v1 }
 0x404   : > { %v1810_v22 = vpop.f32.mrb[28].mxu1 }
 0x405   : > { %v1909_v24 = vpack.c.bf16 %v1810_v22, %v1810_v22  ;;  %v2936_v25 = vpop.f32.mrb[29].mxu1 }
 0x406   : > { %v1813_v26 = vpop.f32.mrb[30].mxu1  ;;  %v3078_v25 = vld [vmem:[%s3685_s10 + $0x30] sm:$0xff]  }
 0x407   : > { %v2937_v27 = vpop.f32.mrb[31].mxu1  ;;  %2959 = vmatmul.mubr.msk.bf16.vlgmr.msra.gmra.mrb[36].mxu1 %vm1485_vm2, %v1909_v24  ;;  %v3079_v26 = vld [vmem:[%s3685_s10 + $0x38] sm:$0xff]  }
 0x408   : > { %2969 = vmatpush3.bf16.msra.mxu1 %v3067_v23  ;;  %2970 = vmatprep.mubr.msk.bf16.mxu1 %vm3112_vm0, %v3111_v1  ;;  %v2639_v27 = vld [vmem:[%s3684_s9] ss:$0 sm:$0xff] }
 0x409   : > { %2986 = vmatprep.subr.bf16.mxu1 %v3111_v1 }
 0x40c   : > { %v1856_v28 = vpop.f32.mrb[40].mxu0 }
 0x40d   : > { %v1910_v29 = vpack.c.bf16 %v1856_v28, %v1856_v28  ;;  %v2942_v30 = vpop.f32.mrb[41].mxu0 }
 0x40e   : > { %v1859_v31 = vpop.f32.mrb[42].mxu0 }
 0x40f   : > { %v2943_v32 = vpop.f32.mrb[43].mxu0  ;;  %2965 = vmatmul.mubr.msk.bf16.vlgmr.msra.gmra.mrb[48].mxu0 %vm1485_vm2, %v1910_v29 }
 0x410   : > { %v1902_v33 = vpop.f32.mrb[32].mxu1  ;;  %2982 = vmatprep.mubr.msk.bf16.mxu0 %vm3112_vm0, %v3111_v1  ;;  %2975 = vmatpush3.bf16.msra.mxu0 %v3068_v5  ;;  %v2657_v5 = vld [vmem:[%s3690_s15] ss:$0 sm:$0xff] }
 0x411   : > { %v1911_v34 = vpack.c.bf16 %v1902_v33, %v1902_v33  ;;  %v2948_v35 = vpop.f32.mrb[33].mxu1  ;;  %2976 = vmatprep.subr.bf16.mxu0 %v3111_v1 }
 0x412   : > { %v1905_v36 = vpop.f32.mrb[34].mxu1 }
 0x413   : > { %v2949_v37 = vpop.f32.mrb[35].mxu1  ;;  %2971 = vmatmul.mubr.msk.bf16.vlgmr.msra.gmra.mrb[40].mxu1 %vm1485_vm2, %v1911_v34 }
 0x414   : > { %3002 = vmatprep.mubr.msk.bf16.mxu1 %vm3112_vm0, %v3111_v1  ;;  %2977 = vmatpush3.bf16.msra.mxu0 %v3069_v6 }
 0x415   : > { %2978 = vmatprep.subr.bf16.mxu0 %v3111_v1  ;;  %2987 = vmatpush3.bf16.msra.mxu1 %v3072_v9 }
 0x416   : > { %2988 = vmatprep.subr.bf16.mxu1 %v3111_v1 }
 0x418   : > { %2979 = vmatpush3.bf16.msra.mxu0 %v3070_v8 }
 0x419   : > { %2980 = vmatprep.subr.bf16.mxu0 %v3111_v1  ;;  %2989 = vmatpush3.bf16.msra.mxu1 %v3073_v10 }
 0x41a   : > { %2990 = vmatprep.subr.bf16.mxu1 %v3111_v1 }
 0x41c   : > { %2981 = vmatpush3.bf16.msra.mxu0 %v3071_v7 }
 0x41d   : > { %2991 = vmatpush3.bf16.msra.mxu1 %v3074_v11 }
 0x41e   : > { %2992 = vmatprep.subr.bf16.mxu1 %v3111_v1 }
 0x421   : > { %2993 = vmatpush3.bf16.msra.mxu1 %v3075_v12 }
 0x422   : > { %2994 = vmatprep.subr.bf16.mxu1 %v3111_v1 }
 0x425   : > { %2995 = vmatpush3.bf16.msra.mxu1 %v3076_v13 }
 0x426   : > { %2996 = vmatprep.subr.bf16.mxu1 %v3111_v1 }
 0x429   : > { %2997 = vmatpush3.bf16.msra.mxu1 %v3077_v14 }
 0x42a   : > { %2998 = vmatprep.subr.bf16.mxu1 %v3111_v1 }
 0x42d   : > { %2999 = vmatpush3.bf16.msra.mxu1 %v3078_v25 }
 0x42e   : > { %3000 = vmatprep.subr.bf16.mxu1 %v3111_v1  ;;  %v2645_v1 = vld [vmem:[%s3686_s11] ss:$0 sm:$0xff] }
 0x431   : > { %3001 = vmatpush3.bf16.msra.mxu1 %v3079_v26 }
 0x4d2   : > { %v1963_v38 = vpop.f32.mrb[44].mxu0 }
 0x4d3   : > { %v2954_v39 = vpop.f32.mrb[45].mxu0 }
 0x4d4   : > { %v1966_v40 = vpop.f32.mrb[46].mxu0 }
 0x4d5   : > { %v2955_v41 = vpop.f32.mrb[47].mxu0 }
 0x4da   : > { %v2012_v42 = vpop.f32.mrb[36].mxu1 }
 0x4db   : > { %v2116_v43 = vadd.f32 %v2012_v42, %v1963_v38  ;;  %v2960_v44 = vpop.f32.mrb[37].mxu1 }
 0x4dc   : > { %v2015_v45 = vpop.f32.mrb[38].mxu1 }
 0x4dd   : > { %v2961_v46 = vpop.f32.mrb[39].mxu1 }
 0x4e2   : > { %v2061_v47 = vpop.f32.mrb[48].mxu0 }
 0x4e3   : > { %v2117_v48 = vadd.f32 %v2116_v43, %v2061_v47  ;;  %v2966_v49 = vpop.f32.mrb[49].mxu0 }
 0x4e4   : > { %v2064_v50 = vpop.f32.mrb[50].mxu0 }
 0x4e5   : > { %v2967_v51 = vpop.f32.mrb[51].mxu0 }
 0x4e6   : > { %v2110_v52 = vpop.f32.mrb[40].mxu1  ;;  %v2654_v51 = vld [vmem:[%s3687_s12] ss:$0 sm:$0xff] }
 0x4e7   : > { %v2118_v54 = vadd.f32 %v2117_v48, %v2110_v52  ;;  %v2972_v55 = vpop.f32.mrb[41].mxu1 }
 0x4e8   : > { %v2113_v58 = vpop.f32.mrb[42].mxu1 }
 0x4e9   : > { %v2126_v59 = vadd.f32 %v2636_v53, %v2118_v54  ;;  %v2973_v60 = vpop.f32.mrb[43].mxu1  ;;  %v2655_v53 = vld [vmem:[%s3688_s13] ss:$0 sm:$0xff] }
 0x4eb   : > { %v2127_v61 = vadd.f32 %v2126_v59, %v519_v57 }
 0x4ed   : > { %v2130_v62 = vsel %vm605_vm1, %v2127_v61, 0.0 }
 0x4ee   : > { %2131 = vadd.xlane.f32.xlu0 %v2130_v62 }
 0x57b   : > { %v2132_v63 = vpop.xlane.xlu0 %2131 }
 0x57c   : > { %v2134_v0 = vmul.f32 0.015625, %v2132_v63 }
 0x57e   : > { %v2135_v2 = vsub.f32 %v2127_v61, %v2134_v0 }
 0x580   : > { %v2136_v3 = vmul.f32 %v2135_v2, %v2135_v2 }
 0x582   : > { %v2137_v4 = vsel %vm605_vm1, %v2136_v3, 0.0  ;;  %v2656_v3 = vld [vmem:[%s3689_s14] ss:$0 sm:$0xff] }
 0x583   : > { %2138 = vadd.xlane.f32.xlu1 %v2137_v4 }
 0x610   : > { %v2139_v15 = vpop.xlane.xlu1 %2138 }
 0x611   : > { %v2140_v16 = vmul.f32 0.015625, %v2139_v15 }
 0x613   : > { %v2141_v17 = vadd.f32 1e-05, %v2140_v16 }
 0x615   : > { %3096 = vrsqrt.f32 %v2141_v17 }
 0x61f   : > { %v3097_v18 = vpop.eup %3096 }
 0x620   : > { %v2143_v20 = vmul.f32 %v3097_v18, %v2135_v2 }
 0x622   : > { %v2150_v22 = vmul.f32 %v2637_v19, %v2143_v20 }
 0x624   : > { %v2157_v23 = vadd.f32 %v2638_v21, %v2150_v22 }
 0x626   : > { %v2158_v24 = vpack.c.bf16 %v2157_v23, %v2157_v23 }
 0x628   : > { %2983 = vmatmul.mubr.msk.bf16.vlgmr.msra.gmra.mrb[52].mxu0 %vm605_vm1, %v2158_v24 }
 0x6fb   : > { %v2235_v28 = vpop.f32.mrb[52].mxu0 }
 0x6fc   : > { %v2236_v29 = vadd.f32 %v2639_v27, %v2235_v28  ;;  %v2984_v30 = vpop.f32.mrb[53].mxu0 }
 0x6fd   : > { %v2238_v31 = vpop.f32.mrb[54].mxu0 }
 0x6fe   : > { %v2241_v32 = vmax.f32 %v2236_v29, 0.0  ;;  %v2985_v33 = vpop.f32.mrb[55].mxu0 }
 0x700   : > { %v2242_v34 = vpack.c.bf16 %v2241_v32, %v2241_v32 }
 0x702   : > { %3003 = vmatmul.mubr.bf16.vlgmr.msra.gmra.mrb[44].mxu1 %v2242_v34 }
 0x7d5   : > { %v2348_v35 = vpop.f32.mrb[44].mxu1 }
 0x7d6   : > { %v2349_v36 = vadd.f32 %v2645_v1, %v2348_v35  ;;  %v3004_v37 = vpop.f32.mrb[45].mxu1 }
 0x7d7   : > { %v2351_v38 = vpop.f32.mrb[46].mxu1 }
 0x7d8   : > { %v3005_v39 = vpop.f32.mrb[47].mxu1  ;;  %v2354_v40 = vadd.f32 %v2349_v36, %v2157_v23 }
 0x7da   : > { %v2357_v41 = vsel %vm605_vm1, %v2354_v40, 0.0 }
 0x7db   : > { %2358 = vadd.xlane.f32.xlu0 %v2357_v41 }
 0x868   : > { %v2359_v42 = vpop.xlane.xlu0 %2358 }
 0x869   : > { %v2360_v43 = vmul.f32 0.015625, %v2359_v42 }
 0x86b   : > { %v2361_v44 = vsub.f32 %v2354_v40, %v2360_v43 }
 0x86d   : > { %v2362_v45 = vmul.f32 %v2361_v44, %v2361_v44 }
 0x86f   : > { %v2363_v46 = vsel %vm605_vm1, %v2362_v45, 0.0 }
 0x870   : > { %2364 = vadd.xlane.f32.xlu1 %v2363_v46 }
 0x8fd   : > { %v2365_v47 = vpop.xlane.xlu1 %2364 }
 0x8fe   : > { %v2366_v48 = vmul.f32 0.015625, %v2365_v47 }
 0x900   : > { %v2367_v49 = vadd.f32 1e-05, %v2366_v48 }
 0x902   : > { %3098 = vrsqrt.f32 %v2367_v49 }
 0x90c   : > { %v3099_v50 = vpop.eup %3098 }
 0x90d   : > { %v2369_v52 = vmul.f32 %v3099_v50, %v2361_v44 }
 0x90f   : > { %v2376_v54 = vmul.f32 %v2654_v51, %v2369_v52 }
 0x911   : > { %v2383_v55 = vadd.f32 %v2655_v53, %v2376_v54 }
 0x913   : > { %v2386_v56 = vsel %vm605_vm1, %v2383_v55, 0.0 }
 0x914   : > { %2387 = vadd.xlane.f32.xlu0 %v2386_v56 }
 0x9a1   : > { %v2388_v57 = vpop.xlane.xlu0 %2387 }
 0x9a2   : > { %v2389_v58 = vmul.f32 0.015625, %v2388_v57 }
 0x9a4   : > { %v2390_v59 = vsub.f32 %v2383_v55, %v2389_v58 }
 0x9a6   : > { %v2391_v60 = vmul.f32 %v2390_v59, %v2390_v59 }
 0x9a8   : > { %v2392_v61 = vsel %vm605_vm1, %v2391_v60, 0.0 }
 0x9a9   : > { %2393 = vadd.xlane.f32.xlu1 %v2392_v61 }
 0xa36   : > { %v2394_v62 = vpop.xlane.xlu1 %2393 }
 0xa37   : > { %v2395_v63 = vmul.f32 0.015625, %v2394_v62 }
 0xa39   : > { %v2396_v0 = vadd.f32 1e-05, %v2395_v63 }
 0xa3b   : > { %3100 = vrsqrt.f32 %v2396_v0 }
 0xa45   : > { %v3101_v2 = vpop.eup %3100 }
 0xa46   : > { %v2398_v4 = vmul.f32 %v3101_v2, %v2390_v59 }
 0xa48   : > { %v2405_v6 = vmul.f32 %v2656_v3, %v2398_v4 }
 0xa4a   : > { %v2412_v8 = vadd.f32 %v2657_v5, %v2405_v6 }
 0xa4c   : > { %v2413_v7 = vpack.c.bf16 %v2412_v8, %v2412_v8 }
 0xa4e   : > { %2415 = vst.msk [vmem:[%s516_s0] sm:$0xf] %vm2414_vm5, %v2413_v7 }
 0xa4f PF: > { %s26_s21 = sadd.s32 1, %s3109_s21  }
 0xa50   : > { %p23_p4 = scmp.ge.s32.totalorder %s26_s21, 4  }
 0xa52   :  { %25 = sbr.rel (!%p23_p4) target bundleno = 2 (0x2), region = 118 }

// kernel: transformer_model_forward.5
= control target key start
LH: loop header
LB: loop body
LE: loop exit
PB: predicated region body
PF: predicated region fallthrough
CT: control target
= control target key end

     0   :  { %s3165_s21 = smov 0   ;;  %s3634_s0 = inlined_call_operand.vmem [shape: bf16[2,8,64], index: 0, kind: input, shape index: {}]   ;;  %s3635_s1 = inlined_call_operand.vmem [shape: f32[8,8], index: 1, kind: input, shape index: {}]   ;;  %s3636_s2 = inlined_call_operand.vmem [shape: bf16[3,4,64,16], index: 2, kind: input, shape index: {}]   ;;  %s3637_s3 = inlined_call_operand.vmem [shape: f32[3,4,1,16], index: 3, kind: input, shape index: {}]   ;;  %s3638_s4 = inlined_call_operand.vmem [shape: bf16[4,16,64], index: 4, kind: input, shape index: {}]   ;;  %s3639_s5 = inlined_call_operand.vmem [shape: f32[1,64], index: 5, kind: input, shape index: {}]   ;;  %s3640_s6 = inlined_call_operand.vmem [shape: f32[1,64], index: 6, kind: input, shape index: {}]   ;;  %s3641_s7 = inlined_call_operand.vmem [shape: f32[1,64], index: 7, kind: input, shape index: {}]   ;;  %s3642_s8 = inlined_call_operand.vmem [shape: bf16[64,128], index: 8, kind: input, shape index: {}]   ;;  %s3643_s9 = inlined_call_operand.vmem [shape: f32[1,128], index: 9, kind: input, shape index: {}]   ;;  %s3644_s10 = inlined_call_operand.vmem [shape: bf16[128,64], index: 10, kind: input, shape index: {}]   ;;  %s3645_s11 = inlined_call_operand.vmem [shape: f32[1,64], index: 11, kind: input, shape index: {}]   ;;  %s3646_s12 = inlined_call_operand.vmem [shape: f32[1,64], index: 12, kind: input, shape index: {}]   ;;  %s3647_s13 = inlined_call_operand.vmem [shape: f32[1,64], index: 13, kind: input, shape index: {}]   ;;  %s3648_s14 = inlined_call_operand.vmem [shape: f32[1,64], index: 14, kind: input, shape index: {}]   ;;  %s3649_s15 = inlined_call_operand.vmem [shape: f32[1,64], index: 15, kind: input, shape index: {}]   ;;  %s3650_s16 = inlined_call_operand.vmem [shape: bf16[2,8,64], index: 16, kind: output, shape index: {}]  }
   0x1   :  { %3651 = sst [smem:[#allocation2_spill]] %s3634_s0 }
   0x2 LB: > { %s2440_s22 = sadd.s32 4294967295, %s3076_s21   ;;  %p2444_p0 = scmp.ge.s32.totalorder %s3076_s21, 1  ;;  %s3076_s21 = sphi %s3165_s21, %s26_s21  }
   0x3   : > { %p461_p1 = scmp.lt.s32.totalorder %s3076_s21, 3 }
   0x5   : > { %p462_p2 = pnand %p2444_p0, %p461_p1 }
   0x6   : > { %v2985_v0 = vld [vmem:[%s3636_s2] sm:$0xff] (!%p462_p2)   ;;  %v3078_v1 = vmov (!%p462_p2), 0.0   ;;  %v2987_v3 = vld [vmem:[%s3636_s2 + $0x8] sm:$0xff] (!%p462_p2)   ;;  %vm3079_vm0 = vmmov (!%p462_p2), 0   ;;  %p509_p3 = scmp.lt.s32.totalorder (!%p462_p2), %s2440_s22, 1  ;;  %v2989_v5 = vld [vmem:[%s3636_s2 + $0x10] sm:$0xff] (!%p462_p2)  }
   0x7   : > { %465 = sbr.rel (%p462_p2) target bundleno = 2326 (0x916), region = 84  ;;  %2727 = vmatprep.subr.bf16.mxu0 (!%p462_p2), %v3078_v1  ;;  %2739 = vmatprep.subr.bf16.mxu1 (!%p462_p2), %v3078_v1  ;;  %v2986_v2 = vld [vmem:[%s3636_s2 + $0x20] sm:$0xff] (!%p462_p2)   ;;  %v2988_v4 = vld [vmem:[%s3636_s2 + $0x28] sm:$0xff] (!%p462_p2)   ;;  %v2990_v6 = vld [vmem:[%s3636_s2 + $0x30] sm:$0xff] (!%p462_p2)   ;;  %s3652_s23 = sld [smem:[#allocation2_spill]] (!%p462_p2)  ;;  %vm605_vm1 = vcmask (!%p462_p2), 523264  }
   0x8   : > { %2728 = vmatpush3.bf16.msra.mxu0 (!%p462_p2), %v2985_v0  ;;  %2735 = vmatprep.mubr.msk.bf16.mxu0 (!%p462_p2), %vm3079_vm0, %v3078_v1  ;;  %v2991_v7 = vld [vmem:[%s3636_s2 + $0x18] sm:$0xff] (!%p462_p2)   ;;  %v2993_v10 = vld [vmem:[%s3636_s2 + $0x40] sm:$0xff] (!%p462_p2)   ;;  %v2995_v12 = vld [vmem:[%s3636_s2 + $0x48] sm:$0xff] (!%p462_p2)   ;;  %vm1485_vm2 = vcmask (!%p462_p2), 130048   ;;  %vm1726_vm3 = vcmask (!%p462_p2), 1043456   ;;  %vm1670_vm4 = vcmask (!%p462_p2), 64512  }
   0x9   : > { %2740 = vmatpush3.bf16.msra.mxu1 (!%p462_p2), %v2986_v2  ;;  %2729 = vmatprep.subr.bf16.mxu0 (!%p462_p2), %v3078_v1  ;;  %v2992_v8 = vld [vmem:[%s3636_s2 + $0x38] sm:$0xff] (!%p462_p2)   ;;  %v2994_v11 = vld [vmem:[%s3636_s2 + $0x60] sm:$0xff] (!%p462_p2)   ;;  %v2996_v13 = vld [vmem:[%s3636_s2 + $0x68] sm:$0xff] (!%p462_p2)   ;;  %vm2385_vm5 = vcmask (!%p462_p2), 519168  }
   0xa   : > { %2741 = vmatprep.subr.bf16.mxu1 (!%p462_p2), %v3078_v1  ;;  %2747 = vmatprep.mubr.msk.bf16.mxu1 (!%p462_p2), %vm3079_vm0, %v3078_v1  ;;  %v2997_v14 = vld [vmem:[%s3636_s2 + $0x50] sm:$0xff] (!%p462_p2)   ;;  %v2999_v16 = vld [vmem:[%s3636_s2 + $0x58] sm:$0xff] (!%p462_p2)   ;;  %v3001_v18 = vld [vmem:[%s3636_s2 + $0x80] sm:$0xff] (!%p462_p2)  }
   0xb   : > { %v2998_v15 = vld [vmem:[%s3636_s2 + $0x70] sm:$0xff] (!%p462_p2)   ;;  %v3000_v17 = vld [vmem:[%s3636_s2 + $0x78] sm:$0xff] (!%p462_p2)   ;;  %v3002_v19 = vld [vmem:[%s3636_s2 + $0xa0] sm:$0xff] (!%p462_p2)  }
   0xc   : > { %2730 = vmatpush3.bf16.msra.mxu0 (!%p462_p2), %v2987_v3  ;;  %v3003_v20 = vld [vmem:[%s3636_s2 + $0x88] sm:$0xff] (!%p462_p2)   ;;  %v3005_v22 = vld [vmem:[%s3636_s2 + $0x90] sm:$0xff] (!%p462_p2)   ;;  %v3007_v24 = vld [vmem:[%s3636_s2 + $0x98] sm:$0xff] (!%p462_p2)  }
   0xd   : > { %2742 = vmatpush3.bf16.msra.mxu1 (!%p462_p2), %v2988_v4  ;;  %2731 = vmatprep.subr.bf16.mxu0 (!%p462_p2), %v3078_v1  ;;  %v3004_v21 = vld [vmem:[%s3636_s2 + $0xa8] sm:$0xff] (!%p462_p2)   ;;  %v3006_v23 = vld [vmem:[%s3636_s2 + $0xb0] sm:$0xff] (!%p462_p2)   ;;  %v3008_v25 = vld [vmem:[%s3636_s2 + $0xb8] sm:$0xff] (!%p462_p2)  }
   0xe   : > { %s3654_s22 = smov (!%p509_p3, %s2440_s22), 1  ;;  %2743 = vmatprep.subr.bf16.mxu1 %v3078_v1  ;;  %v3009_v26 = vld [vmem:[%s3636_s2 + $0xc0] sm:$0xff]   ;;  %v3011_v28 = vld [vmem:[%s3636_s2 + $0xc8] sm:$0xff]   ;;  %v3013_v30 = vld [vmem:[%s3636_s2 + $0xd0] sm:$0xff]  }
   0xf   : > { %s2445_s18 = sshll.u32 %s3654_s22, 2  ;;  %v3010_v27 = vld [vmem:[%s3636_s2 + $0xe0] sm:$0xff]   ;;  %v3012_v29 = vld [vmem:[%s3636_s2 + $0xe8] sm:$0xff]   ;;  %v3014_v31 = vld [vmem:[%s3636_s2 + $0xf0] sm:$0xff]  }
  0x10   : > { %2732 = vmatpush3.bf16.msra.mxu0 %v2989_v5  ;;  %s3212_s24 = scalar_lea.vmem %s3652_s23, %s2445_s18  ;;  %v3015_v32 = vld [vmem:[%s3636_s2 + $0xd8] sm:$0xff]   ;;  %v3017_v34 = vld [vmem:[%s3636_s2 + $0x100] sm:$0xff]   ;;  %v3018_v35 = vld [vmem:[%s3636_s2 + $0x108] sm:$0xff]   ;;  %s516_s14 = scalar_lea.vmem %s3650_s16, %s2445_s18 }
  0x11   : > { %2744 = vmatpush3.bf16.msra.mxu1 %v2990_v6  ;;  %2733 = vmatprep.subr.bf16.mxu0 %v3078_v1  ;;  %v3220_v9 = vld [vmem:[%s3212_s24] sm:$0xf]  ;;  %v3016_v33 = vld [vmem:[%s3636_s2 + $0xf8] sm:$0xff]   ;;  %v3019_v36 = vld [vmem:[%s3636_s2 + $0x110] sm:$0xff]  }
  0x12   : > { %2745 = vmatprep.subr.bf16.mxu1 %v3078_v1  ;;  %v3020_v37 = vld [vmem:[%s3636_s2 + $0x118] sm:$0xff]   ;;  %v3021_v38 = vld [vmem:[%s3636_s2 + $0x120] sm:$0xff]   ;;  %v3023_v40 = vld [vmem:[%s3636_s2 + $0x128] sm:$0xff]  }
  0x13   : > { %v3022_v39 = vld [vmem:[%s3636_s2 + $0x140] sm:$0xff]   ;;  %v3024_v41 = vld [vmem:[%s3636_s2 + $0x148] sm:$0xff]   ;;  %v3025_v42 = vld [vmem:[%s3636_s2 + $0x130] sm:$0xff]  }
  0x14   : > { %2734 = vmatpush3.bf16.msra.mxu0 %v2991_v7  ;;  %v3026_v43 = vld [vmem:[%s3636_s2 + $0x150] sm:$0xff]   ;;  %v3027_v44 = vld [vmem:[%s3636_s2 + $0x138] sm:$0xff]   ;;  %v3029_v46 = vld [vmem:[%s3636_s2 + $0x160] sm:$0xff]  }
  0x15   : > { %2746 = vmatpush3.bf16.msra.mxu1 %v2992_v8  ;;  %2751 = vmatprep.subr.bf16.mxu0 %v3078_v1  ;;  %v3028_v45 = vld [vmem:[%s3636_s2 + $0x158] sm:$0xff]   ;;  %v3030_v47 = vld [vmem:[%s3636_s2 + $0x168] sm:$0xff]   ;;  %v3031_v48 = vld [vmem:[%s3636_s2 + $0x170] sm:$0xff]  }
  0x16   : > { %2763 = vmatprep.subr.bf16.mxu1 %v3078_v1  ;;  %v3032_v49 = vld [vmem:[%s3636_s2 + $0x178] sm:$0xff]   ;;  %v2507_v3 = vld [vmem:[%s3637_s3 + $0x4] ss:$0 sm:$0xff] }
  0x17   : > { %2736 = vmatmul.mubr.msk.bf16.vlgmr.msra.gmra.mrb[0].mxu0 %vm605_vm1, %v3220_v9 }
  0x18   : > { %2748 = vmatmul.mubr.msk.bf16.vlgmr.msra.gmra.mrb[0].mxu1 %vm605_vm1, %v3220_v9  ;;  %2752 = vmatpush3.bf16.msra.mxu0 %v2993_v10 }
  0x19   : > { %2764 = vmatpush3.bf16.msra.mxu1 %v2994_v11  ;;  %2753 = vmatprep.subr.bf16.mxu0 %v3078_v1 }
  0x1a   : > { %2765 = vmatprep.subr.bf16.mxu1 %v3078_v1  ;;  %2759 = vmatprep.mubr.msk.bf16.mxu0 %vm3079_vm0, %v3078_v1 }
  0x1b   : > { %2771 = vmatprep.mubr.msk.bf16.mxu1 %vm3079_vm0, %v3078_v1 }
  0x1c   : > { %2754 = vmatpush3.bf16.msra.mxu0 %v2995_v12 }
  0x1d   : > { %2766 = vmatpush3.bf16.msra.mxu1 %v2996_v13  ;;  %2755 = vmatprep.subr.bf16.mxu0 %v3078_v1 }
  0x1e   : > { %2767 = vmatprep.subr.bf16.mxu1 %v3078_v1 }
  0x20   : > { %2756 = vmatpush3.bf16.msra.mxu0 %v2997_v14  ;;  %v2447_v14 = vld [vmem:[%s3637_s3] ss:$0 sm:$0xff] }
  0x21   : > { %2768 = vmatpush3.bf16.msra.mxu1 %v2998_v15  ;;  %2757 = vmatprep.subr.bf16.mxu0 %v3078_v1 }
  0x22   : > { %2769 = vmatprep.subr.bf16.mxu1 %v3078_v1 }
  0x24   : > { %2758 = vmatpush3.bf16.msra.mxu0 %v2999_v16 }
  0x25   : > { %2770 = vmatpush3.bf16.msra.mxu1 %v3000_v17  ;;  %2775 = vmatprep.subr.bf16.mxu0 %v3078_v1 }
  0x26   : > { %2787 = vmatprep.subr.bf16.mxu1 %v3078_v1 }
  0x27   : > { %2760 = vmatmul.mubr.msk.bf16.vlgmr.msra.gmra.mrb[4].mxu0 %vm605_vm1, %v3220_v9 }
  0x28   : > { %2772 = vmatmul.mubr.msk.bf16.vlgmr.msra.gmra.mrb[4].mxu1 %vm605_vm1, %v3220_v9  ;;  %2776 = vmatpush3.bf16.msra.mxu0 %v3001_v18 }
  0x29   : > { %2788 = vmatpush3.bf16.msra.mxu1 %v3002_v19  ;;  %2777 = vmatprep.subr.bf16.mxu0 %v3078_v1 }
  0x2a   : > { %2789 = vmatprep.subr.bf16.mxu1 %v3078_v1  ;;  %2783 = vmatprep.mubr.msk.bf16.mxu0 %vm3079_vm0, %v3078_v1 }
  0x2b   : > { %2795 = vmatprep.mubr.msk.bf16.mxu1 %vm3079_vm0, %v3078_v1 }
  0x2c   : > { %2778 = vmatpush3.bf16.msra.mxu0 %v3003_v20 }
  0x2d   : > { %2790 = vmatpush3.bf16.msra.mxu1 %v3004_v21  ;;  %2779 = vmatprep.subr.bf16.mxu0 %v3078_v1  ;;  %v2448_v21 = vld [vmem:[%s3637_s3 + $0x1] ss:$0 sm:$0xff] }
  0x2e   : > { %2791 = vmatprep.subr.bf16.mxu1 %v3078_v1 }
  0x30   : > { %2780 = vmatpush3.bf16.msra.mxu0 %v3005_v22 }
  0x31   : > { %2792 = vmatpush3.bf16.msra.mxu1 %v3006_v23  ;;  %2781 = vmatprep.subr.bf16.mxu0 %v3078_v1  ;;  %v2509_v23 = vld [vmem:[%s3637_s3 + $0x6] ss:$0 sm:$0xff] }
  0x32   : > { %2793 = vmatprep.subr.bf16.mxu1 %v3078_v1 }
  0x34   : > { %2782 = vmatpush3.bf16.msra.mxu0 %v3007_v24 }
  0x35   : > { %2794 = vmatpush3.bf16.msra.mxu1 %v3008_v25  ;;  %2799 = vmatprep.subr.bf16.mxu0 %v3078_v1  ;;  %v2510_v25 = vld [vmem:[%s3637_s3 + $0x7] ss:$0 sm:$0xff] }
  0x36   : > { %2811 = vmatprep.subr.bf16.mxu1 %v3078_v1 }
  0x37   : > { %2784 = vmatmul.mubr.msk.bf16.vlgmr.msra.gmra.mrb[8].mxu0 %vm605_vm1, %v3220_v9 }
  0x38   : > { %2796 = vmatmul.mubr.msk.bf16.vlgmr.msra.gmra.mrb[8].mxu1 %vm605_vm1, %v3220_v9  ;;  %2800 = vmatpush3.bf16.msra.mxu0 %v3009_v26 }
  0x39   : > { %2812 = vmatpush3.bf16.msra.mxu1 %v3010_v27  ;;  %2801 = vmatprep.subr.bf16.mxu0 %v3078_v1 }
  0x3a   : > { %2813 = vmatprep.subr.bf16.mxu1 %v3078_v1  ;;  %2807 = vmatprep.mubr.msk.bf16.mxu0 %vm3079_vm0, %v3078_v1 }
  0x3b   : > { %2819 = vmatprep.mubr.msk.bf16.mxu1 %vm3079_vm0, %v3078_v1 }
  0x3c   : > { %2802 = vmatpush3.bf16.msra.mxu0 %v3011_v28 }
  0x3d   : > { %2814 = vmatpush3.bf16.msra.mxu1 %v3012_v29  ;;  %2803 = vmatprep.subr.bf16.mxu0 %v3078_v1 }
  0x3e   : > { %2815 = vmatprep.subr.bf16.mxu1 %v3078_v1 }
  0x40   : > { %2804 = vmatpush3.bf16.msra.mxu0 %v3013_v30 }
  0x41   : > { %2816 = vmatpush3.bf16.msra.mxu1 %v3014_v31  ;;  %2805 = vmatprep.subr.bf16.mxu0 %v3078_v1 }
  0x42   : > { %2817 = vmatprep.subr.bf16.mxu1 %v3078_v1 }
  0x44   : > { %2806 = vmatpush3.bf16.msra.mxu0 %v3015_v32 }
  0x45   : > { %2818 = vmatpush3.bf16.msra.mxu1 %v3016_v33  ;;  %2823 = vmatprep.subr.bf16.mxu0 %v3078_v1 }
  0x46   : > { %2835 = vmatprep.subr.bf16.mxu1 %v3078_v1 }
  0x47   : > { %2808 = vmatmul.mubr.msk.bf16.vlgmr.msra.gmra.mrb[12].mxu0 %vm605_vm1, %v3220_v9 }
  0x48   : > { %2820 = vmatmul.mubr.msk.bf16.vlgmr.msra.gmra.mrb[12].mxu1 %vm605_vm1, %v3220_v9  ;;  %2824 = vmatpush3.bf16.msra.mxu0 %v3017_v34 }
  0x49   : > { %2825 = vmatprep.subr.bf16.mxu0 %v3078_v1  ;;  %2831 = vmatprep.mubr.msk.bf16.mxu0 %vm3079_vm0, %v3078_v1 }
  0x4a   : > { %2843 = vmatprep.mubr.msk.bf16.mxu1 %vm3079_vm0, %v3078_v1  ;;  %2836 = vmatpush3.bf16.msra.mxu1 %v3021_v38 }
  0x4b   : > { %2837 = vmatprep.subr.bf16.mxu1 %v3078_v1 }
  0x4c   : > { %2826 = vmatpush3.bf16.msra.mxu0 %v3018_v35 }
  0x4d   : > { %2827 = vmatprep.subr.bf16.mxu0 %v3078_v1 }
  0x4e   : > { %2838 = vmatpush3.bf16.msra.mxu1 %v3023_v40  ;;  %v2450_v40 = vld [vmem:[%s3637_s3 + $0x3] ss:$0 sm:$0xff] }
  0x4f   : > { %2839 = vmatprep.subr.bf16.mxu1 %v3078_v1 }
  0x50   : > { %2828 = vmatpush3.bf16.msra.mxu0 %v3019_v36 }
  0x51   : > { %2829 = vmatprep.subr.bf16.mxu0 %v3078_v1 }
  0x52   : > { %2840 = vmatpush3.bf16.msra.mxu1 %v3025_v42 }
  0x53   : > { %2841 = vmatprep.subr.bf16.mxu1 %v3078_v1 }
  0x54   : > { %2830 = vmatpush3.bf16.msra.mxu0 %v3020_v37  ;;  %v2449_v37 = vld [vmem:[%s3637_s3 + $0x2] ss:$0 sm:$0xff] }
  0x55   : > { %2847 = vmatprep.subr.bf16.mxu0 %v3078_v1 }
  0x56   : > { %2842 = vmatpush3.bf16.msra.mxu1 %v3027_v44 }
  0x57   : > { %2832 = vmatmul.mubr.msk.bf16.vlgmr.msra.gmra.mrb[16].mxu0 %vm605_vm1, %v3220_v9  ;;  %2859 = vmatprep.subr.bf16.mxu1 %v3078_v1 }
  0x58   : > { %2855 = vmatprep.mubr.msk.bf16.mxu0 %vm3079_vm0, %v3078_v1  ;;  %2848 = vmatpush3.bf16.msra.mxu0 %v3022_v39 }
  0x59   : > { %2849 = vmatprep.subr.bf16.mxu0 %v3078_v1  ;;  %2844 = vmatmul.mubr.msk.bf16.vlgmr.msra.gmra.mrb[16].mxu1 %vm605_vm1, %v3220_v9 }
  0x5a   : > { %2860 = vmatpush3.bf16.msra.mxu1 %v3029_v46  ;;  %2867 = vmatprep.mubr.msk.bf16.mxu1 %vm3079_vm0, %v3078_v1 }
  0x5b   : > { %2861 = vmatprep.subr.bf16.mxu1 %v3078_v1 }
  0x5c   : > { %2850 = vmatpush3.bf16.msra.mxu0 %v3024_v41 }
  0x5d   : > { %2851 = vmatprep.subr.bf16.mxu0 %v3078_v1 }
  0x5e   : > { %2862 = vmatpush3.bf16.msra.mxu1 %v3030_v47  ;;  %v2567_v47 = vld [vmem:[%s3637_s3 + $0x8] ss:$0 sm:$0xff] }
  0x5f   : > { %2863 = vmatprep.subr.bf16.mxu1 %v3078_v1 }
  0x60   : > { %2852 = vmatpush3.bf16.msra.mxu0 %v3026_v43 }
  0x61   : > { %2853 = vmatprep.subr.bf16.mxu0 %v3078_v1 }
  0x62   : > { %2864 = vmatpush3.bf16.msra.mxu1 %v3031_v48 }
  0x63   : > { %2865 = vmatprep.subr.bf16.mxu1 %v3078_v1 }
  0x64   : > { %2854 = vmatpush3.bf16.msra.mxu0 %v3028_v45 }
  0x65   : > { %2871 = vmatprep.subr.bf16.mxu0 %v3078_v1 }
  0x66   : > { %2866 = vmatpush3.bf16.msra.mxu1 %v3032_v49 }
  0x67   : > { %2856 = vmatmul.mubr.msk.bf16.vlgmr.msra.gmra.mrb[20].mxu0 %vm605_vm1, %v3220_v9  ;;  %2889 = vmatprep.subr.bf16.mxu1 %v3078_v1 }
  0x68   : > { %2873 = vmatprep.mubr.msk.bf16.mxu0 %vm3079_vm0, %v3078_v1 }
  0x69   : > { %2868 = vmatmul.mubr.msk.bf16.vlgmr.msra.gmra.mrb[20].mxu1 %vm605_vm1, %v3220_v9  ;;  %v2508_v9 = vld [vmem:[%s3637_s3 + $0x5] ss:$0 sm:$0xff] }
  0x6a   : > { %2891 = vmatprep.mubr.msk.bf16.mxu1 %vm3079_vm0, %v3078_v1 }
  0xea   : > { %v643_v50 = vpop.f32.mrb[0].mxu0 }
  0xeb   : > { %v2737_v51 = vpop.f32.mrb[1].mxu0  ;;  %v707_v52 = vpop.f32.mrb[0].mxu1  ;;  %v644_v18 = vadd.f32 %v2447_v14, %v643_v50 }
  0xec   : > { %v646_v53 = vpop.f32.mrb[2].mxu0  ;;  %v2749_v54 = vpop.f32.mrb[1].mxu1  ;;  %v708_v24 = vadd.f32 %v2448_v21, %v707_v52 }
  0xed   : > { %v2738_v55 = vpop.f32.mrb[3].mxu0  ;;  %v710_v56 = vpop.f32.mrb[2].mxu1  ;;  %v1477_v20 = vpack.c.bf16 %v644_v18, %v644_v18 }
  0xee   : > { %v2750_v57 = vpop.f32.mrb[3].mxu1  ;;  %v1478_v33 = vpack.c.bf16 %v708_v24, %v708_v24  ;;  %v2568_v55 = vld [vmem:[%s3637_s3 + $0x9] ss:$0 sm:$0xff]  ;;  %v2569_v56 = vld [vmem:[%s3637_s3 + $0xa] ss:$0 sm:$0xff] }
  0xfa   : > { %v771_v58 = vpop.f32.mrb[4].mxu0 }
  0xfb   : > { %v2761_v59 = vpop.f32.mrb[5].mxu0  ;;  %v835_v60 = vpop.f32.mrb[4].mxu1  ;;  %v772_v43 = vadd.f32 %v2449_v37, %v771_v58 }
  0xfc   : > { %v774_v61 = vpop.f32.mrb[6].mxu0  ;;  %v2773_v62 = vpop.f32.mrb[5].mxu1  ;;  %v836_v44 = vadd.f32 %v2450_v40, %v835_v60 }
  0xfd   : > { %v2762_v63 = vpop.f32.mrb[7].mxu0  ;;  %v838_v0 = vpop.f32.mrb[6].mxu1  ;;  %v1479_v45 = vpack.c.bf16 %v772_v43, %v772_v43 }
  0xfe   : > { %v2774_v2 = vpop.f32.mrb[7].mxu1  ;;  %v1480_v46 = vpack.c.bf16 %v836_v44, %v836_v44 }
 0x10a   : > { %v961_v4 = vpop.f32.mrb[8].mxu0 }
 0x10b   : > { %v962_v5 = vadd.f32 %v2507_v3, %v961_v4  ;;  %v2785_v6 = vpop.f32.mrb[9].mxu0  ;;  %v1025_v7 = vpop.f32.mrb[8].mxu1 }
 0x10c   : > { %v964_v8 = vpop.f32.mrb[10].mxu0  ;;  %v2797_v10 = vpop.f32.mrb[9].mxu1  ;;  %v1026_v17 = vadd.f32 %v2508_v9, %v1025_v7 }
 0x10d   : > { %v1481_v11 = vpack.c.bf16 %v962_v5, %v962_v5  ;;  %v2786_v12 = vpop.f32.mrb[11].mxu0  ;;  %v1028_v13 = vpop.f32.mrb[10].mxu1  ;;  %v2570_v8 = vld [vmem:[%s3637_s3 + $0xb] ss:$0 sm:$0xff] }
 0x10e   : > { %v2798_v15 = vpop.f32.mrb[11].mxu1  ;;  %v1482_v19 = vpack.c.bf16 %v1026_v17, %v1026_v17 }
 0x10f   : > { %v1490_v16 = vsel %vm1485_vm2, %v1481_v11, 0 }
 0x110   : > { %2872 = vmatpush3.bf16.xpose.msra.mxu0 %v1490_v16  ;;  %v1536_v22 = vsel %vm1485_vm2, %v1482_v19, 0  ;;  %v520_v16 = vld [vmem:[%s3635_s1] sm:$0xff] }
 0x111   : > { %2877 = vmatprep.subr.bf16.mxu0 %v3078_v1 }
 0x117   : > { %2874 = vmatmul.mubr.msk.bf16.vlgmr.msra.gmra.mrb[24].mxu0 %vm1485_vm2, %v1477_v20 }
 0x118   : > { %2878 = vmatpush3.bf16.xpose.msra.mxu0 %v1536_v22  ;;  %2879 = vmatprep.mubr.msk.bf16.mxu0 %vm3079_vm0, %v3078_v1 }
 0x119   : > { %2883 = vmatprep.subr.bf16.mxu0 %v3078_v1 }
 0x11a   : > { %v1089_v26 = vpop.f32.mrb[12].mxu0 }
 0x11b   : > { %v1090_v27 = vadd.f32 %v2509_v23, %v1089_v26  ;;  %v1153_v28 = vpop.f32.mrb[12].mxu1  ;;  %v2809_v29 = vpop.f32.mrb[13].mxu0 }
 0x11c   : > { %v1154_v30 = vadd.f32 %v2510_v25, %v1153_v28  ;;  %v1092_v31 = vpop.f32.mrb[14].mxu0  ;;  %v2821_v32 = vpop.f32.mrb[13].mxu1 }
 0x11d   : > { %v1483_v34 = vpack.c.bf16 %v1090_v27, %v1090_v27  ;;  %v2810_v35 = vpop.f32.mrb[15].mxu0  ;;  %v1156_v36 = vpop.f32.mrb[14].mxu1 }
 0x11e   : > { %v1484_v38 = vpack.c.bf16 %v1154_v30, %v1154_v30  ;;  %v2822_v39 = vpop.f32.mrb[15].mxu1 }
 0x11f   : > { %v1582_v41 = vsel %vm1485_vm2, %v1483_v34, 0  ;;  %2880 = vmatmul.mubr.msk.bf16.vlgmr.msra.gmra.mrb[28].mxu0 %vm1485_vm2, %v1478_v33 }
 0x120   : > { %v1628_v42 = vsel %vm1485_vm2, %v1484_v38, 0  ;;  %2884 = vmatpush3.bf16.xpose.msra.mxu0 %v1582_v41  ;;  %2885 = vmatprep.mubr.msk.bf16.mxu0 %vm3079_vm0, %v3078_v1 }
 0x121   : > { %2890 = vmatpush3.bf16.xpose.msra.mxu1 %v1628_v42  ;;  %2895 = vmatprep.subr.bf16.mxu0 %v3078_v1 }
 0x122   : > { %2901 = vmatprep.subr.bf16.mxu1 %v3078_v1 }
 0x127   : > { %2886 = vmatmul.mubr.msk.bf16.vlgmr.msra.gmra.mrb[32].mxu0 %vm1485_vm2, %v1479_v45 }
 0x128   : > { %2892 = vmatmul.mubr.msk.bf16.vlgmr.msra.gmra.mrb[24].mxu1 %vm1485_vm2, %v1480_v46  ;;  %2897 = vmatprep.mubr.msk.bf16.mxu0 %vm3079_vm0, %v3078_v1 }
 0x129   : > { %2903 = vmatprep.mubr.msk.bf16.mxu1 %vm3079_vm0, %v3078_v1 }
 0x12a   : > { %v1279_v48 = vpop.f32.mrb[16].mxu0 }
 0x12b   : > { %v1280_v49 = vadd.f32 %v2567_v47, %v1279_v48  ;;  %v2833_v50 = vpop.f32.mrb[17].mxu0 }
 0x12c   : > { %v1282_v51 = vpop.f32.mrb[18].mxu0  ;;  %v1343_v57 = vpop.f32.mrb[16].mxu1 }
 0x12d   : > { %v1719_v52 = vpack.c.bf16 %v1280_v49, %v1280_v49  ;;  %v2834_v53 = vpop.f32.mrb[19].mxu0  ;;  %v1344_v59 = vadd.f32 %v2568_v55, %v1343_v57  ;;  %v2845_v60 = vpop.f32.mrb[17].mxu1 }
 0x12e   : > { %v1346_v63 = vpop.f32.mrb[18].mxu1 }
 0x12f   : > { %v1728_v54 = vsel %vm1726_vm3, %v1719_v52, 0  ;;  %v1720_v2 = vpack.c.bf16 %v1344_v59, %v1344_v59  ;;  %v2846_v4 = vpop.f32.mrb[19].mxu1 }
 0x130   : > { %2896 = vmatpush3.bf16.msra.mxu0 %v1728_v54 }
 0x131   : > { %2907 = vmatprep.subr.bf16.mxu0 %v3078_v1  ;;  %v1774_v6 = vsel %vm1726_vm3, %v1720_v2, 0 }
 0x132   : > { %2902 = vmatpush3.bf16.msra.mxu1 %v1774_v6 }
 0x133   : > { %2913 = vmatprep.subr.bf16.mxu1 %v3078_v1 }
 0x13a   : > { %v1407_v58 = vpop.f32.mrb[20].mxu0 }
 0x13b   : > { %v1408_v61 = vadd.f32 %v2569_v56, %v1407_v58  ;;  %v2857_v62 = vpop.f32.mrb[21].mxu0 }
 0x13c   : > { %v1410_v0 = vpop.f32.mrb[22].mxu0  ;;  %v1471_v9 = vpop.f32.mrb[20].mxu1 }
 0x13d   : > { %v1721_v3 = vpack.c.bf16 %v1408_v61, %v1408_v61  ;;  %v2858_v5 = vpop.f32.mrb[23].mxu0  ;;  %v1472_v10 = vadd.f32 %v2570_v8, %v1471_v9  ;;  %v2869_v11 = vpop.f32.mrb[21].mxu1 }
 0x13e   : > { %v1474_v12 = vpop.f32.mrb[22].mxu1 }
 0x13f   : > { %v3489_v7 = vsel %vm1726_vm3, %v1721_v3, 0  ;;  %v1722_v13 = vpack.c.bf16 %v1472_v10, %v1472_v10  ;;  %v2870_v14 = vpop.f32.mrb[23].mxu1 }
 0x140   : > { %v3033_v14 = vld [vmem:[%s3638_s4] sm:$0xff]  }
 0x141   : > { %v3496_v15 = vsel %vm1726_vm3, %v1722_v13, 0 }
 0x1ea   : > { %v1526_v17 = vpop.f32.mrb[24].mxu0 }
 0x1eb   : > { %v1527_v18 = vadd.f32 %v1526_v17, %v520_v16  ;;  %v2875_v19 = vpop.f32.mrb[25].mxu0  ;;  %v3035_v17 = vld [vmem:[%s3638_s4 + $0x10] sm:$0xff]  }
 0x1ec   : > { %v1529_v20 = vpop.f32.mrb[26].mxu0 }
 0x1ed   : > { %v2876_v21 = vpop.f32.mrb[27].mxu0  ;;  %v1671_v22 = vsel %vm1670_vm4, %v1527_v18, -inf }
 0x1ee   : > { %1672 = vmax.xlane.f32.xlu0 %v1671_v22 }
 0x1f2   : > { %v1572_v23 = vpop.f32.mrb[28].mxu0 }
 0x1f3   : > { %v1573_v24 = vadd.f32 %v1572_v23, %v520_v16  ;;  %v2881_v25 = vpop.f32.mrb[29].mxu0  ;;  %v3036_v23 = vld [vmem:[%s3638_s4 + $0x18] sm:$0xff]  }
 0x1f4   : > { %v1575_v26 = vpop.f32.mrb[30].mxu0 }
 0x1f5   : > { %v2882_v27 = vpop.f32.mrb[31].mxu0  ;;  %v1674_v28 = vsel %vm1670_vm4, %v1573_v24, -inf }
 0x1f6   : > { %1675 = vmax.xlane.f32.xlu0 %v1674_v28 }
 0x1fa   : > { %v1618_v29 = vpop.f32.mrb[32].mxu0 }
 0x1fb   : > { %v1619_v30 = vadd.f32 %v1618_v29, %v520_v16  ;;  %v1664_v31 = vpop.f32.mrb[24].mxu1  ;;  %v2887_v32 = vpop.f32.mrb[33].mxu0 }
 0x1fc   : > { %v2893_v33 = vpop.f32.mrb[25].mxu1  ;;  %v1621_v34 = vpop.f32.mrb[34].mxu0  ;;  %v1665_v35 = vadd.f32 %v1664_v31, %v520_v16 }
 0x1fd   : > { %v1667_v36 = vpop.f32.mrb[26].mxu1  ;;  %v2888_v37 = vpop.f32.mrb[35].mxu0  ;;  %v1677_v38 = vsel %vm1670_vm4, %v1619_v30, -inf }
 0x1fe   : > { %v2894_v39 = vpop.f32.mrb[27].mxu1  ;;  %1678 = vmax.xlane.f32.xlu1 %v1677_v38  ;;  %v1680_v40 = vsel %vm1670_vm4, %v1665_v35, -inf }
 0x202   : > { %1681 = vmax.xlane.f32.xlu1 %v1680_v40 }
 0x27b   : > { %v1673_v41 = vpop.xlane.xlu0 %1672 }
 0x27c   : > { %v1683_v42 = vsub.f32 %v1527_v18, %v1673_v41 }
 0x27e   : > { %v1687_v43 = vmul.f32 1.442695, %v1683_v42 }
 0x280   : > { %3049 = vpow2.f32 %v1687_v43 }
 0x283   : > { %v1676_v44 = vpop.xlane.xlu0 %1675 }
 0x284   : > { %v1684_v45 = vsub.f32 %v1573_v24, %v1676_v44 }
 0x286   : > { %v1689_v46 = vmul.f32 1.442695, %v1684_v45 }
 0x288   : > { %3051 = vpow2.f32 %v1689_v46 }
 0x28a   : > { %v3050_v47 = vpop.eup %3049 }
 0x28b   : > { %v1679_v48 = vpop.xlane.xlu1 %1678  ;;  %v1695_v49 = vsel %vm1670_vm4, %v3050_v47, 0.0 }
 0x28c   : > { %v1685_v50 = vsub.f32 %v1619_v30, %v1679_v48  ;;  %1696 = vadd.xlane.f32.xlu0 %v1695_v49 }
 0x28e   : > { %v1691_v51 = vmul.f32 1.442695, %v1685_v50 }
 0x28f   : > { %v1682_v52 = vpop.xlane.xlu1 %1681 }
 0x290   : > { %3053 = vpow2.f32 %v1691_v51  ;;  %v1686_v53 = vsub.f32 %v1665_v35, %v1682_v52 }
 0x292   : > { %v3052_v54 = vpop.eup %3051  ;;  %v1693_v55 = vmul.f32 1.442695, %v1686_v53  ;;  %v2607_v53 = vld [vmem:[%s3639_s5] ss:$0 sm:$0xff] }
 0x293   : > { %v1698_v56 = vsel %vm1670_vm4, %v3052_v54, 0.0 }
 0x294   : > { %3055 = vpow2.f32 %v1693_v55  ;;  %1699 = vadd.xlane.f32.xlu1 %v1698_v56  ;;  %v3069_v56 = vld [vmem:[%s3212_s24] sm:$0xf] }
 0x29a   : > { %v3054_v57 = vpop.eup %3053 }
 0x29b   : > { %v1701_v58 = vsel %vm1670_vm4, %v3054_v57, 0.0 }
 0x29c   : > { %1702 = vadd.xlane.f32.xlu0 %v1701_v58 }
 0x29e   : > { %v3056_v59 = vpop.eup %3055 }
 0x29f   : > { %v1704_v60 = vsel %vm1670_vm4, %v3056_v59, 0.0 }
 0x2a0   : > { %1705 = vadd.xlane.f32.xlu1 %v1704_v60 }
 0x319   : > { %v1697_v61 = vpop.xlane.xlu0 %1696 }
 0x31a   : > { %3057 = vrcp.f32 %v1697_v61 }
 0x321   : > { %v1700_v62 = vpop.xlane.xlu1 %1699 }
 0x322   : > { %3059 = vrcp.f32 %v1700_v62 }
 0x324   : > { %v3058_v63 = vpop.eup %3057 }
 0x325   : > { %v1711_v0 = vmul.f32 %v3058_v63, %v3050_v47 }
 0x327   : > { %v1715_v2 = vpack.c.bf16 %v1711_v0, %v1711_v0 }
 0x329   : > { %2898 = vmatmul.mubr.msk.bf16.vlgmr.msra.gmra.mrb[36].mxu0 %vm1670_vm4, %v1715_v2  ;;  %v1703_v3 = vpop.xlane.xlu0 %1702 }
 0x32a   : > { %2908 = vmatpush3.bf16.msra.mxu0 %v3489_v7  ;;  %3061 = vrcp.f32 %v1703_v3  ;;  %2909 = vmatprep.mubr.msk.bf16.mxu0 %vm3079_vm0, %v3078_v1 }
 0x32b   : > { %2919 = vmatprep.subr.bf16.mxu0 %v3078_v1 }
 0x32c   : > { %v3060_v4 = vpop.eup %3059 }
 0x32d   : > { %v1712_v5 = vmul.f32 %v3060_v4, %v3052_v54  ;;  %v1706_v6 = vpop.xlane.xlu1 %1705 }
 0x32e   : > { %3063 = vrcp.f32 %v1706_v6  ;;  %v3038_v6 = vld [vmem:[%s3642_s8 + $0x8] sm:$0xff]  }
 0x32f   : > { %v1716_v8 = vpack.c.bf16 %v1712_v5, %v1712_v5  ;;  %v3037_v5 = vld [vmem:[%s3642_s8] sm:$0xff]  }
 0x331   : > { %2904 = vmatmul.mubr.msk.bf16.vlgmr.msra.gmra.mrb[28].mxu1 %vm1670_vm4, %v1716_v8  ;;  %v3039_v8 = vld [vmem:[%s3642_s8 + $0x10] sm:$0xff]  }
 0x332   : > { %2914 = vmatpush3.bf16.msra.mxu1 %v3496_v15  ;;  %2915 = vmatprep.mubr.msk.bf16.mxu1 %vm3079_vm0, %v3078_v1  ;;  %v3034_v15 = vld [vmem:[%s3638_s4 + $0x8] sm:$0xff]  }
 0x333   : > { %2925 = vmatprep.subr.bf16.mxu1 %v3078_v1 }
 0x334   : > { %v3062_v7 = vpop.eup %3061 }
 0x335   : > { %v1713_v9 = vmul.f32 %v3062_v7, %v3054_v57  ;;  %v519_v57 = vunpack.c.l.bf16 %v3069_v56  ;;  %v3040_v7 = vld [vmem:[%s3642_s8 + $0x18] sm:$0xff]  }
 0x337   : > { %v1717_v10 = vpack.c.bf16 %v1713_v9, %v1713_v9  ;;  %v3041_v9 = vld [vmem:[%s3644_s10] sm:$0xff]  }
 0x338   : > { %v3064_v11 = vpop.eup %3063 }
 0x339   : > { %v1714_v12 = vmul.f32 %v3064_v11, %v3056_v59  ;;  %2910 = vmatmul.mubr.msk.bf16.vlgmr.msra.gmra.mrb[40].mxu0 %vm1670_vm4, %v1717_v10  ;;  %v3042_v10 = vld [vmem:[%s3644_s10 + $0x8] sm:$0xff]   ;;  %v3043_v11 = vld [vmem:[%s3644_s10 + $0x10] sm:$0xff]  }
 0x33a   : > { %2921 = vmatprep.mubr.msk.bf16.mxu0 %vm3079_vm0, %v3078_v1  ;;  %2920 = vmatpush3.bf16.msra.mxu0 %v3033_v14  ;;  %v3046_v14 = vld [vmem:[%s3644_s10 + $0x28] sm:$0xff]  }
 0x33b   : > { %v1718_v13 = vpack.c.bf16 %v1714_v12, %v1714_v12  ;;  %2931 = vmatprep.subr.bf16.mxu0 %v3078_v1  ;;  %v3044_v12 = vld [vmem:[%s3644_s10 + $0x18] sm:$0xff]  }
 0x33d   : > { %2916 = vmatmul.mubr.msk.bf16.vlgmr.msra.gmra.mrb[32].mxu1 %vm1670_vm4, %v1718_v13  ;;  %v3045_v13 = vld [vmem:[%s3644_s10 + $0x20] sm:$0xff]  }
 0x33e   : > { %2927 = vmatprep.mubr.msk.bf16.mxu1 %vm3079_vm0, %v3078_v1  ;;  %2926 = vmatpush3.bf16.msra.mxu1 %v3034_v15 }
 0x33f   : > { %2937 = vmatprep.subr.bf16.mxu1 %v3078_v1 }
 0x3fc   : > { %v1764_v16 = vpop.f32.mrb[36].mxu0 }
 0x3fd   : > { %v1908_v18 = vpack.c.bf16 %v1764_v16, %v1764_v16  ;;  %v2899_v19 = vpop.f32.mrb[37].mxu0 }
 0x3fe   : > { %v1767_v20 = vpop.f32.mrb[38].mxu0  ;;  %v2608_v19 = vld [vmem:[%s3640_s6] ss:$0 sm:$0xff] }
 0x3ff   : > { %v2900_v21 = vpop.f32.mrb[39].mxu0  ;;  %2922 = vmatmul.mubr.msk.bf16.vlgmr.msra.gmra.mrb[44].mxu0 %vm1485_vm2, %v1908_v18 }
 0x400   : > { %2932 = vmatpush3.bf16.msra.mxu0 %v3035_v17  ;;  %2933 = vmatprep.mubr.msk.bf16.mxu0 %vm3079_vm0, %v3078_v1  ;;  %v2609_v21 = vld [vmem:[%s3641_s7] ss:$0 sm:$0xff] }
 0x401   : > { %2943 = vmatprep.subr.bf16.mxu0 %v3078_v1 }
 0x404   : > { %v1810_v22 = vpop.f32.mrb[28].mxu1 }
 0x405   : > { %v1909_v24 = vpack.c.bf16 %v1810_v22, %v1810_v22  ;;  %v2905_v25 = vpop.f32.mrb[29].mxu1 }
 0x406   : > { %v1813_v26 = vpop.f32.mrb[30].mxu1  ;;  %v3047_v25 = vld [vmem:[%s3644_s10 + $0x30] sm:$0xff]  }
 0x407   : > { %v2906_v27 = vpop.f32.mrb[31].mxu1  ;;  %2928 = vmatmul.mubr.msk.bf16.vlgmr.msra.gmra.mrb[36].mxu1 %vm1485_vm2, %v1909_v24  ;;  %v3048_v26 = vld [vmem:[%s3644_s10 + $0x38] sm:$0xff]  }
 0x408   : > { %2938 = vmatpush3.bf16.msra.mxu1 %v3036_v23  ;;  %2939 = vmatprep.mubr.msk.bf16.mxu1 %vm3079_vm0, %v3078_v1  ;;  %v2610_v27 = vld [vmem:[%s3643_s9] ss:$0 sm:$0xff] }
 0x409   : > { %2955 = vmatprep.subr.bf16.mxu1 %v3078_v1 }
 0x40c   : > { %v1856_v28 = vpop.f32.mrb[40].mxu0 }
 0x40d   : > { %v1910_v29 = vpack.c.bf16 %v1856_v28, %v1856_v28  ;;  %v2911_v30 = vpop.f32.mrb[41].mxu0 }
 0x40e   : > { %v1859_v31 = vpop.f32.mrb[42].mxu0 }
 0x40f   : > { %v2912_v32 = vpop.f32.mrb[43].mxu0  ;;  %2934 = vmatmul.mubr.msk.bf16.vlgmr.msra.gmra.mrb[48].mxu0 %vm1485_vm2, %v1910_v29 }
 0x410   : > { %v1902_v33 = vpop.f32.mrb[32].mxu1  ;;  %2951 = vmatprep.mubr.msk.bf16.mxu0 %vm3079_vm0, %v3078_v1  ;;  %2944 = vmatpush3.bf16.msra.mxu0 %v3037_v5 }
 0x411   : > { %v1911_v34 = vpack.c.bf16 %v1902_v33, %v1902_v33  ;;  %v2917_v35 = vpop.f32.mrb[33].mxu1  ;;  %2945 = vmatprep.subr.bf16.mxu0 %v3078_v1 }
 0x412   : > { %v1905_v36 = vpop.f32.mrb[34].mxu1 }
 0x413   : > { %v2918_v37 = vpop.f32.mrb[35].mxu1  ;;  %2940 = vmatmul.mubr.msk.bf16.vlgmr.msra.gmra.mrb[40].mxu1 %vm1485_vm2, %v1911_v34 }
 0x414   : > { %2971 = vmatprep.mubr.msk.bf16.mxu1 %vm3079_vm0, %v3078_v1  ;;  %2946 = vmatpush3.bf16.msra.mxu0 %v3038_v6 }
 0x415   : > { %2947 = vmatprep.subr.bf16.mxu0 %v3078_v1  ;;  %2956 = vmatpush3.bf16.msra.mxu1 %v3041_v9 }
 0x416   : > { %2957 = vmatprep.subr.bf16.mxu1 %v3078_v1 }
 0x418   : > { %2948 = vmatpush3.bf16.msra.mxu0 %v3039_v8 }
 0x419   : > { %2949 = vmatprep.subr.bf16.mxu0 %v3078_v1  ;;  %2958 = vmatpush3.bf16.msra.mxu1 %v3042_v10 }
 0x41a   : > { %2959 = vmatprep.subr.bf16.mxu1 %v3078_v1 }
 0x41c   : > { %2950 = vmatpush3.bf16.msra.mxu0 %v3040_v7 }
 0x41d   : > { %2960 = vmatpush3.bf16.msra.mxu1 %v3043_v11 }
 0x41e   : > { %2961 = vmatprep.subr.bf16.mxu1 %v3078_v1 }
 0x421   : > { %2962 = vmatpush3.bf16.msra.mxu1 %v3044_v12 }
 0x422   : > { %2963 = vmatprep.subr.bf16.mxu1 %v3078_v1 }
 0x425   : > { %2964 = vmatpush3.bf16.msra.mxu1 %v3045_v13 }
 0x426   : > { %2965 = vmatprep.subr.bf16.mxu1 %v3078_v1 }
 0x429   : > { %2966 = vmatpush3.bf16.msra.mxu1 %v3046_v14 }
 0x42a   : > { %2967 = vmatprep.subr.bf16.mxu1 %v3078_v1 }
 0x42d   : > { %2968 = vmatpush3.bf16.msra.mxu1 %v3047_v25 }
 0x42e   : > { %2969 = vmatprep.subr.bf16.mxu1 %v3078_v1  ;;  %v2616_v1 = vld [vmem:[%s3645_s11] ss:$0 sm:$0xff] }
 0x431   : > { %2970 = vmatpush3.bf16.msra.mxu1 %v3048_v26 }
 0x4d2   : > { %v1963_v38 = vpop.f32.mrb[44].mxu0 }
 0x4d3   : > { %v2923_v39 = vpop.f32.mrb[45].mxu0 }
 0x4d4   : > { %v1966_v40 = vpop.f32.mrb[46].mxu0 }
 0x4d5   : > { %v2924_v41 = vpop.f32.mrb[47].mxu0 }
 0x4da   : > { %v2012_v42 = vpop.f32.mrb[36].mxu1 }
 0x4db   : > { %v2116_v43 = vadd.f32 %v2012_v42, %v1963_v38  ;;  %v2929_v44 = vpop.f32.mrb[37].mxu1 }
 0x4dc   : > { %v2015_v45 = vpop.f32.mrb[38].mxu1 }
 0x4dd   : > { %v2930_v46 = vpop.f32.mrb[39].mxu1 }
 0x4e2   : > { %v2061_v47 = vpop.f32.mrb[48].mxu0 }
 0x4e3   : > { %v2117_v48 = vadd.f32 %v2116_v43, %v2061_v47  ;;  %v2935_v49 = vpop.f32.mrb[49].mxu0 }
 0x4e4   : > { %v2064_v50 = vpop.f32.mrb[50].mxu0 }
 0x4e5   : > { %v2936_v51 = vpop.f32.mrb[51].mxu0 }
 0x4e6   : > { %v2110_v52 = vpop.f32.mrb[40].mxu1  ;;  %v2625_v51 = vld [vmem:[%s3646_s12] ss:$0 sm:$0xff] }
 0x4e7   : > { %v2118_v54 = vadd.f32 %v2117_v48, %v2110_v52  ;;  %v2941_v55 = vpop.f32.mrb[41].mxu1 }
 0x4e8   : > { %v2113_v58 = vpop.f32.mrb[42].mxu1 }
 0x4e9   : > { %v2126_v59 = vadd.f32 %v2607_v53, %v2118_v54  ;;  %v2942_v60 = vpop.f32.mrb[43].mxu1  ;;  %v2626_v53 = vld [vmem:[%s3647_s13] ss:$0 sm:$0xff] }
 0x4eb   : > { %v2127_v61 = vadd.f32 %v2126_v59, %v519_v57 }
 0x4ed   : > { %v2130_v62 = vsel %vm605_vm1, %v2127_v61, 0.0 }
 0x4ee   : > { %2131 = vadd.xlane.f32.xlu0 %v2130_v62 }
 0x57b   : > { %v2132_v63 = vpop.xlane.xlu0 %2131 }
 0x57c   : > { %v2134_v0 = vmul.f32 0.015625, %v2132_v63 }
 0x57e   : > { %v2135_v2 = vsub.f32 %v2127_v61, %v2134_v0 }
 0x580   : > { %v2136_v3 = vmul.f32 %v2135_v2, %v2135_v2 }
 0x582   : > { %v2137_v4 = vsel %vm605_vm1, %v2136_v3, 0.0 }
 0x583   : > { %2138 = vadd.xlane.f32.xlu1 %v2137_v4 }
 0x610   : > { %v2139_v15 = vpop.xlane.xlu1 %2138 }
 0x611   : > { %v2140_v16 = vmul.f32 0.015625, %v2139_v15 }
 0x613   : > { %v2141_v17 = vadd.f32 1e-05, %v2140_v16 }
 0x615   : > { %3065 = vrsqrt.f32 %v2141_v17 }
 0x61f   : > { %v3066_v18 = vpop.eup %3065 }
 0x620   : > { %v2143_v20 = vmul.f32 %v3066_v18, %v2135_v2 }
 0x622   : > { %v2150_v22 = vmul.f32 %v2608_v19, %v2143_v20 }
 0x624   : > { %v2157_v23 = vadd.f32 %v2609_v21, %v2150_v22 }
 0x626   : > { %v2158_v24 = vpack.c.bf16 %v2157_v23, %v2157_v23 }
 0x628   : > { %2952 = vmatmul.mubr.msk.bf16.vlgmr.msra.gmra.mrb[52].mxu0 %vm605_vm1, %v2158_v24 }
 0x6fb   : > { %v2235_v28 = vpop.f32.mrb[52].mxu0 }
 0x6fc   : > { %v2236_v29 = vadd.f32 %v2610_v27, %v2235_v28  ;;  %v2953_v30 = vpop.f32.mrb[53].mxu0 }
 0x6fd   : > { %v2238_v31 = vpop.f32.mrb[54].mxu0 }
 0x6fe   : > { %v2241_v32 = vmax.f32 %v2236_v29, 0.0  ;;  %v2954_v33 = vpop.f32.mrb[55].mxu0 }
 0x700   : > { %v2242_v34 = vpack.c.bf16 %v2241_v32, %v2241_v32 }
 0x702   : > { %2972 = vmatmul.mubr.bf16.vlgmr.msra.gmra.mrb[44].mxu1 %v2242_v34 }
 0x7d5   : > { %v2348_v35 = vpop.f32.mrb[44].mxu1 }
 0x7d6   : > { %v2349_v36 = vadd.f32 %v2616_v1, %v2348_v35  ;;  %v2973_v37 = vpop.f32.mrb[45].mxu1 }
 0x7d7   : > { %v2351_v38 = vpop.f32.mrb[46].mxu1 }
 0x7d8   : > { %v2974_v39 = vpop.f32.mrb[47].mxu1  ;;  %v2354_v40 = vadd.f32 %v2349_v36, %v2157_v23 }
 0x7da   : > { %v2357_v41 = vsel %vm605_vm1, %v2354_v40, 0.0 }
 0x7db   : > { %2358 = vadd.xlane.f32.xlu0 %v2357_v41 }
 0x868   : > { %v2359_v42 = vpop.xlane.xlu0 %2358 }
 0x869   : > { %v2360_v43 = vmul.f32 0.015625, %v2359_v42 }
 0x86b   : > { %v2361_v44 = vsub.f32 %v2354_v40, %v2360_v43 }
 0x86d   : > { %v2362_v45 = vmul.f32 %v2361_v44, %v2361_v44 }
 0x86f   : > { %v2363_v46 = vsel %vm605_vm1, %v2362_v45, 0.0 }
 0x870   : > { %2364 = vadd.xlane.f32.xlu1 %v2363_v46 }
 0x8fd   : > { %v2365_v47 = vpop.xlane.xlu1 %2364 }
 0x8fe   : > { %v2366_v48 = vmul.f32 0.015625, %v2365_v47 }
 0x900   : > { %v2367_v49 = vadd.f32 1e-05, %v2366_v48 }
 0x902   : > { %3067 = vrsqrt.f32 %v2367_v49 }
 0x90c   : > { %v3068_v50 = vpop.eup %3067 }
 0x90d   : > { %v2369_v52 = vmul.f32 %v3068_v50, %v2361_v44 }
 0x90f   : > { %v2376_v54 = vmul.f32 %v2625_v51, %v2369_v52 }
 0x911   : > { %v2383_v55 = vadd.f32 %v2626_v53, %v2376_v54 }
 0x913   : > { %v2384_v56 = vpack.c.bf16 %v2383_v55, %v2383_v55 }
 0x915   : > { %2386 = vst.msk [vmem:[%s516_s14] sm:$0xf] %vm2385_vm5, %v2384_v56 }
 0x916 PF: > { %s26_s21 = sadd.s32 1, %s3076_s21  }
 0x917   : > { %p23_p4 = scmp.ge.s32.totalorder %s26_s21, 4  }
 0x919   :  { %25 = sbr.rel (!%p23_p4) target bundleno = 2 (0x2), region = 118 }

// kernel: transformer_model_forward.7
= control target key start
LH: loop header
LB: loop body
LE: loop exit
PB: predicated region body
PF: predicated region fallthrough
CT: control target
= control target key end

     0   :  { %s6467_s0 = inlined_call_operand.vmem [shape: bf16[2,8,64], index: 0, kind: input, shape index: {}]   ;;  %s6468_s1 = inlined_call_operand.vmem [shape: bf16[2,8,64], index: 1, kind: input, shape index: {}]   ;;  %s6469_s2 = inlined_call_operand.vmem [shape: f32[8,8], index: 2, kind: input, shape index: {}]   ;;  %s6470_s3 = inlined_call_operand.vmem [shape: f32[8,8], index: 3, kind: input, shape index: {}]   ;;  %s6471_s4 = inlined_call_operand.vmem [shape: bf16[3,4,64,16], index: 4, kind: input, shape index: {}]   ;;  %s6472_s5 = inlined_call_operand.vmem [shape: f32[3,4,1,16], index: 5, kind: input, shape index: {}]   ;;  %s6473_s6 = inlined_call_operand.vmem [shape: bf16[4,16,64], index: 6, kind: input, shape index: {}]   ;;  %s6474_s7 = inlined_call_operand.vmem [shape: f32[1,64], index: 7, kind: input, shape index: {}]   ;;  %s6475_s8 = inlined_call_operand.vmem [shape: f32[1,64], index: 8, kind: input, shape index: {}]   ;;  %s6476_s9 = inlined_call_operand.vmem [shape: f32[1,64], index: 9, kind: input, shape index: {}]   ;;  %s6477_s10 = inlined_call_operand.vmem [shape: bf16[3,4,64,16], index: 10, kind: input, shape index: {}]   ;;  %s6478_s11 = inlined_call_operand.vmem [shape: f32[3,4,1,16], index: 11, kind: input, shape index: {}]   ;;  %s6479_s12 = inlined_call_operand.vmem [shape: bf16[4,16,64], index: 12, kind: input, shape index: {}]   ;;  %s6480_s13 = inlined_call_operand.vmem [shape: f32[1,64], index: 13, kind: input, shape index: {}]   ;;  %s6481_s14 = inlined_call_operand.vmem [shape: f32[1,64], index: 14, kind: input, shape index: {}]   ;;  %s6482_s15 = inlined_call_operand.vmem [shape: f32[1,64], index: 15, kind: input, shape index: {}]   ;;  %s6483_s16 = inlined_call_operand.vmem [shape: bf16[64,128], index: 16, kind: input, shape index: {}]   ;;  %s6484_s17 = inlined_call_operand.vmem [shape: f32[1,128], index: 17, kind: input, shape index: {}]   ;;  %s6485_s18 = inlined_call_operand.vmem [shape: bf16[128,64], index: 18, kind: input, shape index: {}]   ;;  %s6486_s19 = inlined_call_operand.vmem [shape: f32[1,64], index: 19, kind: input, shape index: {}]   ;;  %s6487_s20 = inlined_call_operand.vmem [shape: f32[1,64], index: 20, kind: input, shape index: {}]   ;;  %s6488_s21 = inlined_call_operand.vmem [shape: f32[1,64], index: 21, kind: input, shape index: {}]   ;;  %s6489_s22 = inlined_call_operand.vmem [shape: f32[1,64], index: 22, kind: input, shape index: {}]   ;;  %s6490_s23 = inlined_call_operand.vmem [shape: f32[1,64], index: 23, kind: input, shape index: {}]   ;;  %s6491_s24 = inlined_call_operand.vmem [shape: bf16[2,8,64], index: 24, kind: output, shape index: {}]  }
   0x1   :  { %6495 = sst [smem:[#allocation2_spill]] %s6467_s0 }
   0x2   :  { %6496 = sst [smem:[#allocation3_spill]] %s6468_s1 }
   0x3   :  { %6497 = sst [smem:[#allocation4_spill]] %s6469_s2 }
   0x4   :  { %6498 = sst [smem:[#allocation5_spill]] %s6470_s3 }
   0x5   :  { %6499 = sst [smem:[#allocation6_spill]] %s6471_s4 }
   0x6   :  { %6500 = sst [smem:[#allocation7_spill]] %s6472_s5  ;;  %s5622_s5 = smov 0  }
   0x7   :  { %6501 = sst [smem:[#allocation8_spill]] %s6473_s6 }
   0x8   :  { %6502 = sst [smem:[#allocation9_spill]] %s6474_s7 }
   0x9   :  { %6503 = sst [smem:[#allocation10_spill]] %s6475_s8 }
   0xa LB: > { %s4323_s26 = sadd.s32 4294967295, %s5493_s5   ;;  %p4327_p0 = scmp.ge.s32.totalorder %s5493_s5, 1  ;;  %s5493_s5 = sphi %s5622_s5, %s34_s5  }
   0xb   : > { %p670_p1 = scmp.lt.s32.totalorder %s5493_s5, 3 }
   0xd   : > { %p671_p2 = pnand %p4327_p0, %p670_p1 }
   0xe   : > { %s6504_s27 = sld [smem:[#allocation6_spill]] (!%p671_p2)  ;;  %v5495_v1 = vmov (!%p671_p2), 0.0   ;;  %vm5496_vm0 = vmmov (!%p671_p2), 0   ;;  %p738_p3 = scmp.lt.s32.totalorder (!%p671_p2), %s4323_s26, 1  ;;  %vm838_vm1 = vcmask (!%p671_p2), 523264   ;;  %vm1718_vm2 = vcmask (!%p671_p2), 130048  }
   0xf   : > { %674 = sbr.rel (%p671_p2) target bundleno = 3891 (0xf33), region = 116  ;;  %4858 = vmatprep.subr.bf16.mxu0 (!%p671_p2), %v5495_v1  ;;  %4870 = vmatprep.subr.bf16.mxu1 (!%p671_p2), %v5495_v1  ;;  %s6505_s6 = sld [smem:[#allocation2_spill]] (!%p671_p2)  ;;  %vm1959_vm3 = vcmask (!%p671_p2), 1043456   ;;  %vm1903_vm4 = vcmask (!%p671_p2), 64512   ;;  %vm4256_vm5 = vcmask (!%p671_p2), 519168  }
  0x10   : > { %4866 = vmatprep.mubr.msk.bf16.mxu0 (!%p671_p2), %vm5496_vm0, %v5495_v1  ;;  %4878 = vmatprep.mubr.msk.bf16.mxu1 (!%p671_p2), %vm5496_vm0, %v5495_v1  ;;  %s6506_s25 = sld [smem:[#allocation7_spill]] (!%p671_p2)  ;;  %s6507_s0 = sld [smem:[#allocation4_spill]] (!%p671_p2) }
  0x11   : > { %s6508_s23 = sld [smem:[#allocation8_spill]] (!%p671_p2)  ;;  %s6509_s8 = sld [smem:[#allocation9_spill]] (!%p671_p2) }
  0x14   : > { %v5332_v0 = vld [vmem:[%s6504_s27] sm:$0xff] (!%p671_p2)   ;;  %v5334_v3 = vld [vmem:[%s6504_s27 + $0x8] sm:$0xff] (!%p671_p2)   ;;  %v5336_v5 = vld [vmem:[%s6504_s27 + $0x10] sm:$0xff] (!%p671_p2)  }
  0x15   : > { %v5333_v2 = vld [vmem:[%s6504_s27 + $0x20] sm:$0xff] (!%p671_p2)   ;;  %4859 = vmatpush3.bf16.msra.mxu0 (!%p671_p2), %v5332_v0  ;;  %v5335_v4 = vld [vmem:[%s6504_s27 + $0x28] sm:$0xff] (!%p671_p2)   ;;  %v5337_v6 = vld [vmem:[%s6504_s27 + $0x30] sm:$0xff] (!%p671_p2)  }
  0x16   : > { %4871 = vmatpush3.bf16.msra.mxu1 %v5333_v2  ;;  %4860 = vmatprep.subr.bf16.mxu0 %v5495_v1  ;;  %s6514_s26 = smov (!%p738_p3, %s4323_s26), 1  ;;  %v5338_v7 = vld [vmem:[%s6504_s27 + $0x18] sm:$0xff]   ;;  %v5340_v10 = vld [vmem:[%s6504_s27 + $0x40] sm:$0xff]   ;;  %v5342_v12 = vld [vmem:[%s6504_s27 + $0x48] sm:$0xff]  }
  0x17   : > { %4872 = vmatprep.subr.bf16.mxu1 %v5495_v1  ;;  %s5657_s4 = sshll.u32 %s6514_s26, 2  ;;  %v5339_v8 = vld [vmem:[%s6504_s27 + $0x38] sm:$0xff]   ;;  %v5341_v11 = vld [vmem:[%s6504_s27 + $0x60] sm:$0xff]   ;;  %v5343_v13 = vld [vmem:[%s6504_s27 + $0x68] sm:$0xff]   ;;  %s6510_s26 = sld [smem:[#allocation10_spill]] }
  0x18   : > { %s5667_s2 = scalar_lea.vmem %s6505_s6, %s5657_s4  ;;  %v5344_v14 = vld [vmem:[%s6504_s27 + $0x50] sm:$0xff]   ;;  %v5346_v16 = vld [vmem:[%s6504_s27 + $0x58] sm:$0xff]   ;;  %v5348_v18 = vld [vmem:[%s6504_s27 + $0x80] sm:$0xff]   ;;  %s749_s1 = scalar_lea.vmem %s6491_s24, %s5657_s4 }
  0x19   : > { %4861 = vmatpush3.bf16.msra.mxu0 %v5334_v3  ;;  %v5675_v9 = vld [vmem:[%s5667_s2] sm:$0xf]  ;;  %v5345_v15 = vld [vmem:[%s6504_s27 + $0x70] sm:$0xff]   ;;  %v5347_v17 = vld [vmem:[%s6504_s27 + $0x78] sm:$0xff]  }
  0x1a   : > { %4873 = vmatpush3.bf16.msra.mxu1 %v5335_v4  ;;  %4862 = vmatprep.subr.bf16.mxu0 %v5495_v1  ;;  %v5349_v19 = vld [vmem:[%s6504_s27 + $0xa0] sm:$0xff]   ;;  %v5350_v20 = vld [vmem:[%s6504_s27 + $0x88] sm:$0xff]   ;;  %v5352_v22 = vld [vmem:[%s6504_s27 + $0x90] sm:$0xff]  }
  0x1b   : > { %4874 = vmatprep.subr.bf16.mxu1 %v5495_v1  ;;  %v5351_v21 = vld [vmem:[%s6504_s27 + $0xa8] sm:$0xff]   ;;  %v5353_v23 = vld [vmem:[%s6504_s27 + $0xb0] sm:$0xff]   ;;  %v5354_v24 = vld [vmem:[%s6504_s27 + $0x98] sm:$0xff]  }
  0x1c   : > { %v5355_v25 = vld [vmem:[%s6504_s27 + $0xb8] sm:$0xff]   ;;  %v5356_v26 = vld [vmem:[%s6504_s27 + $0xc0] sm:$0xff]   ;;  %v5358_v28 = vld [vmem:[%s6504_s27 + $0xc8] sm:$0xff]  }
  0x1d   : > { %4863 = vmatpush3.bf16.msra.mxu0 %v5336_v5  ;;  %v5357_v27 = vld [vmem:[%s6504_s27 + $0xe0] sm:$0xff]   ;;  %v5359_v29 = vld [vmem:[%s6504_s27 + $0xe8] sm:$0xff]   ;;  %v5360_v30 = vld [vmem:[%s6504_s27 + $0xd0] sm:$0xff]  }
  0x1e   : > { %4875 = vmatpush3.bf16.msra.mxu1 %v5337_v6  ;;  %4864 = vmatprep.subr.bf16.mxu0 %v5495_v1  ;;  %v5361_v31 = vld [vmem:[%s6504_s27 + $0xf0] sm:$0xff]   ;;  %v5362_v32 = vld [vmem:[%s6504_s27 + $0xd8] sm:$0xff]   ;;  %v5364_v34 = vld [vmem:[%s6504_s27 + $0x100] sm:$0xff]  }
  0x1f   : > { %4876 = vmatprep.subr.bf16.mxu1 %v5495_v1  ;;  %v5363_v33 = vld [vmem:[%s6504_s27 + $0xf8] sm:$0xff]   ;;  %v5365_v35 = vld [vmem:[%s6504_s27 + $0x108] sm:$0xff]   ;;  %v5366_v36 = vld [vmem:[%s6504_s27 + $0x110] sm:$0xff]  }
  0x20   : > { %v5367_v37 = vld [vmem:[%s6504_s27 + $0x118] sm:$0xff]   ;;  %v5368_v38 = vld [vmem:[%s6504_s27 + $0x120] sm:$0xff]   ;;  %v5370_v40 = vld [vmem:[%s6504_s27 + $0x128] sm:$0xff]  }
  0x21   : > { %4865 = vmatpush3.bf16.msra.mxu0 %v5338_v7  ;;  %v5369_v39 = vld [vmem:[%s6504_s27 + $0x140] sm:$0xff]   ;;  %v5371_v41 = vld [vmem:[%s6504_s27 + $0x148] sm:$0xff]   ;;  %v5372_v42 = vld [vmem:[%s6504_s27 + $0x130] sm:$0xff]  }
  0x22   : > { %4877 = vmatpush3.bf16.msra.mxu1 %v5339_v8  ;;  %4882 = vmatprep.subr.bf16.mxu0 %v5495_v1  ;;  %v5373_v43 = vld [vmem:[%s6504_s27 + $0x150] sm:$0xff]   ;;  %v5374_v44 = vld [vmem:[%s6504_s27 + $0x138] sm:$0xff]   ;;  %v5376_v46 = vld [vmem:[%s6504_s27 + $0x160] sm:$0xff]  }
  0x23   : > { %4894 = vmatprep.subr.bf16.mxu1 %v5495_v1  ;;  %v5375_v45 = vld [vmem:[%s6504_s27 + $0x158] sm:$0xff]   ;;  %v5377_v47 = vld [vmem:[%s6504_s27 + $0x168] sm:$0xff]   ;;  %v5378_v48 = vld [vmem:[%s6504_s27 + $0x170] sm:$0xff]  }
  0x24   : > { %4867 = vmatmul.mubr.msk.bf16.vlgmr.msra.gmra.mrb[0].mxu0 %vm838_vm1, %v5675_v9  ;;  %v5379_v49 = vld [vmem:[%s6504_s27 + $0x178] sm:$0xff]   ;;  %v4391_v3 = vld [vmem:[%s6506_s25 + $0x4] ss:$0 sm:$0xff] }
  0x25   : > { %4879 = vmatmul.mubr.msk.bf16.vlgmr.msra.gmra.mrb[0].mxu1 %vm838_vm1, %v5675_v9  ;;  %4883 = vmatpush3.bf16.msra.mxu0 %v5340_v10 }
  0x26   : > { %4895 = vmatpush3.bf16.msra.mxu1 %v5341_v11  ;;  %4884 = vmatprep.subr.bf16.mxu0 %v5495_v1 }
  0x27   : > { %4896 = vmatprep.subr.bf16.mxu1 %v5495_v1  ;;  %4890 = vmatprep.mubr.msk.bf16.mxu0 %vm5496_vm0, %v5495_v1 }
  0x28   : > { %4902 = vmatprep.mubr.msk.bf16.mxu1 %vm5496_vm0, %v5495_v1 }
  0x29   : > { %4885 = vmatpush3.bf16.msra.mxu0 %v5342_v12 }
  0x2a   : > { %4897 = vmatpush3.bf16.msra.mxu1 %v5343_v13  ;;  %4886 = vmatprep.subr.bf16.mxu0 %v5495_v1 }
  0x2b   : > { %4898 = vmatprep.subr.bf16.mxu1 %v5495_v1 }
  0x2d   : > { %4887 = vmatpush3.bf16.msra.mxu0 %v5344_v14  ;;  %v4331_v14 = vld [vmem:[%s6506_s25] ss:$0 sm:$0xff] }
  0x2e   : > { %4899 = vmatpush3.bf16.msra.mxu1 %v5345_v15  ;;  %4888 = vmatprep.subr.bf16.mxu0 %v5495_v1 }
  0x2f   : > { %4900 = vmatprep.subr.bf16.mxu1 %v5495_v1 }
  0x31   : > { %4889 = vmatpush3.bf16.msra.mxu0 %v5346_v16 }
  0x32   : > { %4901 = vmatpush3.bf16.msra.mxu1 %v5347_v17  ;;  %4906 = vmatprep.subr.bf16.mxu0 %v5495_v1 }
  0x33   : > { %4918 = vmatprep.subr.bf16.mxu1 %v5495_v1 }
  0x34   : > { %4891 = vmatmul.mubr.msk.bf16.vlgmr.msra.gmra.mrb[4].mxu0 %vm838_vm1, %v5675_v9 }
  0x35   : > { %4903 = vmatmul.mubr.msk.bf16.vlgmr.msra.gmra.mrb[4].mxu1 %vm838_vm1, %v5675_v9  ;;  %4907 = vmatpush3.bf16.msra.mxu0 %v5348_v18 }
  0x36   : > { %4919 = vmatpush3.bf16.msra.mxu1 %v5349_v19  ;;  %4908 = vmatprep.subr.bf16.mxu0 %v5495_v1 }
  0x37   : > { %4920 = vmatprep.subr.bf16.mxu1 %v5495_v1  ;;  %4914 = vmatprep.mubr.msk.bf16.mxu0 %vm5496_vm0, %v5495_v1 }
  0x38   : > { %4926 = vmatprep.mubr.msk.bf16.mxu1 %vm5496_vm0, %v5495_v1 }
  0x39   : > { %4909 = vmatpush3.bf16.msra.mxu0 %v5350_v20 }
  0x3a   : > { %4921 = vmatpush3.bf16.msra.mxu1 %v5351_v21  ;;  %4910 = vmatprep.subr.bf16.mxu0 %v5495_v1  ;;  %v4332_v21 = vld [vmem:[%s6506_s25 + $0x1] ss:$0 sm:$0xff] }
  0x3b   : > { %4922 = vmatprep.subr.bf16.mxu1 %v5495_v1 }
  0x3d   : > { %4911 = vmatpush3.bf16.msra.mxu0 %v5352_v22 }
  0x3e   : > { %4923 = vmatpush3.bf16.msra.mxu1 %v5353_v23  ;;  %4912 = vmatprep.subr.bf16.mxu0 %v5495_v1  ;;  %v4393_v23 = vld [vmem:[%s6506_s25 + $0x6] ss:$0 sm:$0xff] }
  0x3f   : > { %4924 = vmatprep.subr.bf16.mxu1 %v5495_v1 }
  0x41   : > { %4913 = vmatpush3.bf16.msra.mxu0 %v5354_v24 }
  0x42   : > { %4925 = vmatpush3.bf16.msra.mxu1 %v5355_v25  ;;  %4930 = vmatprep.subr.bf16.mxu0 %v5495_v1  ;;  %v4394_v25 = vld [vmem:[%s6506_s25 + $0x7] ss:$0 sm:$0xff] }
  0x43   : > { %4942 = vmatprep.subr.bf16.mxu1 %v5495_v1 }
  0x44   : > { %4915 = vmatmul.mubr.msk.bf16.vlgmr.msra.gmra.mrb[8].mxu0 %vm838_vm1, %v5675_v9 }
  0x45   : > { %4927 = vmatmul.mubr.msk.bf16.vlgmr.msra.gmra.mrb[8].mxu1 %vm838_vm1, %v5675_v9  ;;  %4931 = vmatpush3.bf16.msra.mxu0 %v5356_v26 }
  0x46   : > { %4943 = vmatpush3.bf16.msra.mxu1 %v5357_v27  ;;  %4932 = vmatprep.subr.bf16.mxu0 %v5495_v1 }
  0x47   : > { %4944 = vmatprep.subr.bf16.mxu1 %v5495_v1  ;;  %4938 = vmatprep.mubr.msk.bf16.mxu0 %vm5496_vm0, %v5495_v1 }
  0x48   : > { %4950 = vmatprep.mubr.msk.bf16.mxu1 %vm5496_vm0, %v5495_v1 }
  0x49   : > { %4933 = vmatpush3.bf16.msra.mxu0 %v5358_v28 }
  0x4a   : > { %4945 = vmatpush3.bf16.msra.mxu1 %v5359_v29  ;;  %4934 = vmatprep.subr.bf16.mxu0 %v5495_v1 }
  0x4b   : > { %4946 = vmatprep.subr.bf16.mxu1 %v5495_v1 }
  0x4d   : > { %4935 = vmatpush3.bf16.msra.mxu0 %v5360_v30 }
  0x4e   : > { %4947 = vmatpush3.bf16.msra.mxu1 %v5361_v31  ;;  %4936 = vmatprep.subr.bf16.mxu0 %v5495_v1 }
  0x4f   : > { %4948 = vmatprep.subr.bf16.mxu1 %v5495_v1 }
  0x51   : > { %4937 = vmatpush3.bf16.msra.mxu0 %v5362_v32 }
  0x52   : > { %4949 = vmatpush3.bf16.msra.mxu1 %v5363_v33  ;;  %4954 = vmatprep.subr.bf16.mxu0 %v5495_v1 }
  0x53   : > { %4966 = vmatprep.subr.bf16.mxu1 %v5495_v1 }
  0x54   : > { %4939 = vmatmul.mubr.msk.bf16.vlgmr.msra.gmra.mrb[12].mxu0 %vm838_vm1, %v5675_v9 }
  0x55   : > { %4951 = vmatmul.mubr.msk.bf16.vlgmr.msra.gmra.mrb[12].mxu1 %vm838_vm1, %v5675_v9  ;;  %4955 = vmatpush3.bf16.msra.mxu0 %v5364_v34 }
  0x56   : > { %4956 = vmatprep.subr.bf16.mxu0 %v5495_v1  ;;  %4962 = vmatprep.mubr.msk.bf16.mxu0 %vm5496_vm0, %v5495_v1 }
  0x57   : > { %4974 = vmatprep.mubr.msk.bf16.mxu1 %vm5496_vm0, %v5495_v1  ;;  %4967 = vmatpush3.bf16.msra.mxu1 %v5368_v38 }
  0x58   : > { %4968 = vmatprep.subr.bf16.mxu1 %v5495_v1 }
  0x59   : > { %4957 = vmatpush3.bf16.msra.mxu0 %v5365_v35 }
  0x5a   : > { %4958 = vmatprep.subr.bf16.mxu0 %v5495_v1 }
  0x5b   : > { %4969 = vmatpush3.bf16.msra.mxu1 %v5370_v40  ;;  %v4334_v40 = vld [vmem:[%s6506_s25 + $0x3] ss:$0 sm:$0xff] }
  0x5c   : > { %4970 = vmatprep.subr.bf16.mxu1 %v5495_v1 }
  0x5d   : > { %4959 = vmatpush3.bf16.msra.mxu0 %v5366_v36 }
  0x5e   : > { %4960 = vmatprep.subr.bf16.mxu0 %v5495_v1 }
  0x5f   : > { %4971 = vmatpush3.bf16.msra.mxu1 %v5372_v42 }
  0x60   : > { %4972 = vmatprep.subr.bf16.mxu1 %v5495_v1 }
  0x61   : > { %4961 = vmatpush3.bf16.msra.mxu0 %v5367_v37  ;;  %v4333_v37 = vld [vmem:[%s6506_s25 + $0x2] ss:$0 sm:$0xff] }
  0x62   : > { %4978 = vmatprep.subr.bf16.mxu0 %v5495_v1 }
  0x63   : > { %4973 = vmatpush3.bf16.msra.mxu1 %v5374_v44 }
  0x64   : > { %4963 = vmatmul.mubr.msk.bf16.vlgmr.msra.gmra.mrb[16].mxu0 %vm838_vm1, %v5675_v9  ;;  %4990 = vmatprep.subr.bf16.mxu1 %v5495_v1 }
  0x65   : > { %4986 = vmatprep.mubr.msk.bf16.mxu0 %vm5496_vm0, %v5495_v1  ;;  %4979 = vmatpush3.bf16.msra.mxu0 %v5369_v39 }
  0x66   : > { %4980 = vmatprep.subr.bf16.mxu0 %v5495_v1  ;;  %4975 = vmatmul.mubr.msk.bf16.vlgmr.msra.gmra.mrb[16].mxu1 %vm838_vm1, %v5675_v9 }
  0x67   : > { %4991 = vmatpush3.bf16.msra.mxu1 %v5376_v46  ;;  %4998 = vmatprep.mubr.msk.bf16.mxu1 %vm5496_vm0, %v5495_v1 }
  0x68   : > { %4992 = vmatprep.subr.bf16.mxu1 %v5495_v1 }
  0x69   : > { %4981 = vmatpush3.bf16.msra.mxu0 %v5371_v41 }
  0x6a   : > { %4982 = vmatprep.subr.bf16.mxu0 %v5495_v1 }
  0x6b   : > { %4993 = vmatpush3.bf16.msra.mxu1 %v5377_v47  ;;  %v4451_v47 = vld [vmem:[%s6506_s25 + $0x8] ss:$0 sm:$0xff] }
  0x6c   : > { %4994 = vmatprep.subr.bf16.mxu1 %v5495_v1 }
  0x6d   : > { %4983 = vmatpush3.bf16.msra.mxu0 %v5373_v43 }
  0x6e   : > { %4984 = vmatprep.subr.bf16.mxu0 %v5495_v1 }
  0x6f   : > { %4995 = vmatpush3.bf16.msra.mxu1 %v5378_v48 }
  0x70   : > { %4996 = vmatprep.subr.bf16.mxu1 %v5495_v1 }
  0x71   : > { %4985 = vmatpush3.bf16.msra.mxu0 %v5375_v45 }
  0x72   : > { %5002 = vmatprep.subr.bf16.mxu0 %v5495_v1 }
  0x73   : > { %4997 = vmatpush3.bf16.msra.mxu1 %v5379_v49 }
  0x74   : > { %4987 = vmatmul.mubr.msk.bf16.vlgmr.msra.gmra.mrb[20].mxu0 %vm838_vm1, %v5675_v9  ;;  %5020 = vmatprep.subr.bf16.mxu1 %v5495_v1 }
  0x75   : > { %5004 = vmatprep.mubr.msk.bf16.mxu0 %vm5496_vm0, %v5495_v1 }
  0x76   : > { %4999 = vmatmul.mubr.msk.bf16.vlgmr.msra.gmra.mrb[20].mxu1 %vm838_vm1, %v5675_v9  ;;  %v4392_v9 = vld [vmem:[%s6506_s25 + $0x5] ss:$0 sm:$0xff] }
  0x77   : > { %5022 = vmatprep.mubr.msk.bf16.mxu1 %vm5496_vm0, %v5495_v1 }
  0xf7   : > { %v876_v50 = vpop.f32.mrb[0].mxu0 }
  0xf8   : > { %v4868_v51 = vpop.f32.mrb[1].mxu0  ;;  %v940_v52 = vpop.f32.mrb[0].mxu1  ;;  %v877_v18 = vadd.f32 %v4331_v14, %v876_v50 }
  0xf9   : > { %v879_v53 = vpop.f32.mrb[2].mxu0  ;;  %v4880_v54 = vpop.f32.mrb[1].mxu1  ;;  %v941_v24 = vadd.f32 %v4332_v21, %v940_v52 }
  0xfa   : > { %v4869_v55 = vpop.f32.mrb[3].mxu0  ;;  %v943_v56 = vpop.f32.mrb[2].mxu1  ;;  %v1710_v20 = vpack.c.bf16 %v877_v18, %v877_v18 }
  0xfb   : > { %v4881_v57 = vpop.f32.mrb[3].mxu1  ;;  %v1711_v33 = vpack.c.bf16 %v941_v24, %v941_v24  ;;  %v4452_v55 = vld [vmem:[%s6506_s25 + $0x9] ss:$0 sm:$0xff] }
 0x107   : > { %v1004_v58 = vpop.f32.mrb[4].mxu0 }
 0x108   : > { %v4892_v59 = vpop.f32.mrb[5].mxu0  ;;  %v1068_v60 = vpop.f32.mrb[4].mxu1  ;;  %v1005_v43 = vadd.f32 %v4333_v37, %v1004_v58 }
 0x109   : > { %v1007_v61 = vpop.f32.mrb[6].mxu0  ;;  %v4904_v62 = vpop.f32.mrb[5].mxu1  ;;  %v1069_v44 = vadd.f32 %v4334_v40, %v1068_v60 }
 0x10a   : > { %v4893_v63 = vpop.f32.mrb[7].mxu0  ;;  %v1071_v0 = vpop.f32.mrb[6].mxu1  ;;  %v1712_v45 = vpack.c.bf16 %v1005_v43, %v1005_v43 }
 0x10b   : > { %v4905_v2 = vpop.f32.mrb[7].mxu1  ;;  %v1713_v46 = vpack.c.bf16 %v1069_v44, %v1069_v44 }
 0x117   : > { %v1194_v4 = vpop.f32.mrb[8].mxu0 }
 0x118   : > { %v1195_v5 = vadd.f32 %v4391_v3, %v1194_v4  ;;  %v4916_v6 = vpop.f32.mrb[9].mxu0  ;;  %v1258_v7 = vpop.f32.mrb[8].mxu1 }
 0x119   : > { %v1197_v8 = vpop.f32.mrb[10].mxu0  ;;  %v4928_v10 = vpop.f32.mrb[9].mxu1  ;;  %v1259_v17 = vadd.f32 %v4392_v9, %v1258_v7 }
 0x11a   : > { %v1714_v11 = vpack.c.bf16 %v1195_v5, %v1195_v5  ;;  %v4917_v12 = vpop.f32.mrb[11].mxu0  ;;  %v1261_v13 = vpop.f32.mrb[10].mxu1  ;;  %v753_v8 = vld [vmem:[%s6507_s0] sm:$0xff]  ;;  %s6511_s0 = sld [smem:[#allocation3_spill]] }
 0x11b   : > { %v4929_v15 = vpop.f32.mrb[11].mxu1  ;;  %v1715_v19 = vpack.c.bf16 %v1259_v17, %v1259_v17 }
 0x11c   : > { %v1723_v16 = vsel %vm1718_vm2, %v1714_v11, 0 }
 0x11d   : > { %5003 = vmatpush3.bf16.xpose.msra.mxu0 %v1723_v16  ;;  %v1769_v22 = vsel %vm1718_vm2, %v1715_v19, 0 }
 0x11e   : > { %5008 = vmatprep.subr.bf16.mxu0 %v5495_v1 }
 0x120   : > { %s745_s7 = scalar_lea.vmem %s6511_s0, %s5657_s4  ;;  %s6512_s0 = sld [smem:[#allocation5_spill]] }
 0x124   : > { %5005 = vmatmul.mubr.msk.bf16.vlgmr.msra.gmra.mrb[24].mxu0 %vm1718_vm2, %v1710_v20 }
 0x125   : > { %5009 = vmatpush3.bf16.xpose.msra.mxu0 %v1769_v22  ;;  %5010 = vmatprep.mubr.msk.bf16.mxu0 %vm5496_vm0, %v5495_v1 }
 0x126   : > { %5014 = vmatprep.subr.bf16.mxu0 %v5495_v1 }
 0x127   : > { %v1322_v26 = vpop.f32.mrb[12].mxu0 }
 0x128   : > { %v1323_v27 = vadd.f32 %v4393_v23, %v1322_v26  ;;  %v1386_v28 = vpop.f32.mrb[12].mxu1  ;;  %v4940_v29 = vpop.f32.mrb[13].mxu0 }
 0x129   : > { %v1387_v30 = vadd.f32 %v4394_v25, %v1386_v28  ;;  %v1325_v31 = vpop.f32.mrb[14].mxu0  ;;  %v4952_v32 = vpop.f32.mrb[13].mxu1 }
 0x12a   : > { %v1716_v34 = vpack.c.bf16 %v1323_v27, %v1323_v27  ;;  %v4941_v35 = vpop.f32.mrb[15].mxu0  ;;  %v1389_v36 = vpop.f32.mrb[14].mxu1 }
 0x12b   : > { %v1717_v38 = vpack.c.bf16 %v1387_v30, %v1387_v30  ;;  %v4953_v39 = vpop.f32.mrb[15].mxu1 }
 0x12c   : > { %v1815_v41 = vsel %vm1718_vm2, %v1716_v34, 0  ;;  %5011 = vmatmul.mubr.msk.bf16.vlgmr.msra.gmra.mrb[28].mxu0 %vm1718_vm2, %v1711_v33 }
 0x12d   : > { %v1861_v42 = vsel %vm1718_vm2, %v1717_v38, 0  ;;  %5015 = vmatpush3.bf16.xpose.msra.mxu0 %v1815_v41  ;;  %5016 = vmatprep.mubr.msk.bf16.mxu0 %vm5496_vm0, %v5495_v1 }
 0x12e   : > { %5021 = vmatpush3.bf16.xpose.msra.mxu1 %v1861_v42  ;;  %5026 = vmatprep.subr.bf16.mxu0 %v5495_v1 }
 0x12f   : > { %5032 = vmatprep.subr.bf16.mxu1 %v5495_v1 }
 0x134   : > { %5017 = vmatmul.mubr.msk.bf16.vlgmr.msra.gmra.mrb[32].mxu0 %vm1718_vm2, %v1712_v45 }
 0x135   : > { %5023 = vmatmul.mubr.msk.bf16.vlgmr.msra.gmra.mrb[24].mxu1 %vm1718_vm2, %v1713_v46  ;;  %5028 = vmatprep.mubr.msk.bf16.mxu0 %vm5496_vm0, %v5495_v1 }
 0x136   : > { %5034 = vmatprep.mubr.msk.bf16.mxu1 %vm5496_vm0, %v5495_v1 }
 0x137   : > { %v1512_v48 = vpop.f32.mrb[16].mxu0 }
 0x138   : > { %v1513_v49 = vadd.f32 %v4451_v47, %v1512_v48  ;;  %v4964_v50 = vpop.f32.mrb[17].mxu0 }
 0x139   : > { %v1515_v51 = vpop.f32.mrb[18].mxu0  ;;  %v1576_v56 = vpop.f32.mrb[16].mxu1 }
 0x13a   : > { %v1952_v52 = vpack.c.bf16 %v1513_v49, %v1513_v49  ;;  %v4965_v53 = vpop.f32.mrb[19].mxu0  ;;  %v1577_v58 = vadd.f32 %v4452_v55, %v1576_v56  ;;  %v4976_v59 = vpop.f32.mrb[17].mxu1 }
 0x13b   : > { %v1579_v61 = vpop.f32.mrb[18].mxu1 }
 0x13c   : > { %v1961_v54 = vsel %vm1959_vm3, %v1952_v52, 0  ;;  %v1953_v63 = vpack.c.bf16 %v1577_v58, %v1577_v58  ;;  %v4977_v0 = vpop.f32.mrb[19].mxu1  ;;  %v4454_v61 = vld [vmem:[%s6506_s25 + $0xb] ss:$0 sm:$0xff] }
 0x13d   : > { %5027 = vmatpush3.bf16.msra.mxu0 %v1961_v54  ;;  %v4453_v54 = vld [vmem:[%s6506_s25 + $0xa] ss:$0 sm:$0xff] }
 0x13e   : > { %5038 = vmatprep.subr.bf16.mxu0 %v5495_v1  ;;  %v2007_v3 = vsel %vm1959_vm3, %v1953_v63, 0 }
 0x13f   : > { %5033 = vmatpush3.bf16.msra.mxu1 %v2007_v3 }
 0x140   : > { %5044 = vmatprep.subr.bf16.mxu1 %v5495_v1 }
 0x147   : > { %v5939_v57 = vpop.f32.mrb[20].mxu0 }
 0x148   : > { %v4988_v60 = vpop.f32.mrb[21].mxu0  ;;  %v1641_v55 = vadd.f32 %v4453_v54, %v5939_v57 }
 0x149   : > { %v1643_v62 = vpop.f32.mrb[22].mxu0  ;;  %v5943_v4 = vpop.f32.mrb[20].mxu1 }
 0x14a   : > { %v4989_v2 = vpop.f32.mrb[23].mxu0  ;;  %v5000_v5 = vpop.f32.mrb[21].mxu1  ;;  %v1954_v59 = vpack.c.bf16 %v1641_v55, %v1641_v55  ;;  %v1705_v0 = vadd.f32 %v4454_v61, %v5943_v4 }
 0x14b   : > { %v1707_v6 = vpop.f32.mrb[22].mxu1 }
 0x14c   : > { %v5001_v7 = vpop.f32.mrb[23].mxu1  ;;  %v2053_v63 = vsel %vm1959_vm3, %v1954_v59, 0  ;;  %v1955_v3 = vpack.c.bf16 %v1705_v0, %v1705_v0 }
 0x1f7   : > { %v1759_v9 = vpop.f32.mrb[24].mxu0 }
 0x1f8   : > { %v1760_v10 = vadd.f32 %v1759_v9, %v753_v8  ;;  %v5006_v11 = vpop.f32.mrb[25].mxu0 }
 0x1f9   : > { %v1762_v12 = vpop.f32.mrb[26].mxu0 }
 0x1fa   : > { %v5007_v13 = vpop.f32.mrb[27].mxu0  ;;  %v1904_v14 = vsel %vm1903_vm4, %v1760_v10, -inf }
 0x1fb   : > { %1905 = vmax.xlane.f32.xlu0 %v1904_v14  ;;  %v5380_v14 = vld [vmem:[%s6508_s23] sm:$0xff]  }
 0x1ff   : > { %v1805_v15 = vpop.f32.mrb[28].mxu0 }
 0x200   : > { %v1806_v16 = vadd.f32 %v1805_v15, %v753_v8  ;;  %v5012_v17 = vpop.f32.mrb[29].mxu0  ;;  %v5381_v15 = vld [vmem:[%s6508_s23 + $0x8] sm:$0xff]  }
 0x201   : > { %v1808_v18 = vpop.f32.mrb[30].mxu0  ;;  %v5382_v17 = vld [vmem:[%s6508_s23 + $0x10] sm:$0xff]  }
 0x202   : > { %v5013_v19 = vpop.f32.mrb[31].mxu0  ;;  %v1907_v20 = vsel %vm1903_vm4, %v1806_v16, -inf }
 0x203   : > { %1908 = vmax.xlane.f32.xlu0 %v1907_v20 }
 0x207   : > { %v1851_v21 = vpop.f32.mrb[32].mxu0 }
 0x208   : > { %v1852_v22 = vadd.f32 %v1851_v21, %v753_v8  ;;  %v1897_v23 = vpop.f32.mrb[24].mxu1  ;;  %v5018_v24 = vpop.f32.mrb[33].mxu0 }
 0x209   : > { %v5024_v25 = vpop.f32.mrb[25].mxu1  ;;  %v1854_v26 = vpop.f32.mrb[34].mxu0  ;;  %v1898_v27 = vadd.f32 %v1897_v23, %v753_v8  ;;  %v2099_v8 = vsel %vm1959_vm3, %v1955_v3, 0  ;;  %v5383_v23 = vld [vmem:[%s6508_s23 + $0x18] sm:$0xff]  }
 0x20a   : > { %v1900_v28 = vpop.f32.mrb[26].mxu1  ;;  %v5019_v29 = vpop.f32.mrb[35].mxu0  ;;  %v1910_v30 = vsel %vm1903_vm4, %v1852_v22, -inf }
 0x20b   : > { %v5025_v31 = vpop.f32.mrb[27].mxu1  ;;  %1911 = vmax.xlane.f32.xlu1 %v1910_v30  ;;  %v1913_v32 = vsel %vm1903_vm4, %v1898_v27, -inf }
 0x20f   : > { %1914 = vmax.xlane.f32.xlu1 %v1913_v32 }
 0x288   : > { %v1906_v33 = vpop.xlane.xlu0 %1905 }
 0x289   : > { %v1916_v34 = vsub.f32 %v1760_v10, %v1906_v33 }
 0x28b   : > { %v1920_v35 = vmul.f32 1.442695, %v1916_v34 }
 0x28d   : > { %5448 = vpow2.f32 %v1920_v35 }
 0x290   : > { %v1909_v36 = vpop.xlane.xlu0 %1908 }
 0x291   : > { %v1917_v37 = vsub.f32 %v1806_v16, %v1909_v36 }
 0x293   : > { %v1922_v38 = vmul.f32 1.442695, %v1917_v37 }
 0x295   : > { %5450 = vpow2.f32 %v1922_v38 }
 0x297   : > { %v5449_v39 = vpop.eup %5448 }
 0x298   : > { %v1912_v40 = vpop.xlane.xlu1 %1911  ;;  %v1928_v41 = vsel %vm1903_vm4, %v5449_v39, 0.0 }
 0x299   : > { %v1918_v42 = vsub.f32 %v1852_v22, %v1912_v40  ;;  %1929 = vadd.xlane.f32.xlu0 %v1928_v41 }
 0x29b   : > { %v1924_v43 = vmul.f32 1.442695, %v1918_v42 }
 0x29c   : > { %v1915_v44 = vpop.xlane.xlu1 %1914 }
 0x29d   : > { %5452 = vpow2.f32 %v1924_v43  ;;  %v1919_v45 = vsub.f32 %v1898_v27, %v1915_v44 }
 0x29f   : > { %v5451_v46 = vpop.eup %5450  ;;  %v1926_v47 = vmul.f32 1.442695, %v1919_v45 }
 0x2a0   : > { %v1931_v48 = vsel %vm1903_vm4, %v5451_v46, 0.0 }
 0x2a1   : > { %5454 = vpow2.f32 %v1926_v47  ;;  %1932 = vadd.xlane.f32.xlu1 %v1931_v48 }
 0x2a7   : > { %v5453_v49 = vpop.eup %5452 }
 0x2a8   : > { %v1934_v50 = vsel %vm1903_vm4, %v5453_v49, 0.0 }
 0x2a9   : > { %1935 = vadd.xlane.f32.xlu0 %v1934_v50 }
 0x2ab   : > { %v5455_v51 = vpop.eup %5454 }
 0x2ac   : > { %v1937_v52 = vsel %vm1903_vm4, %v5455_v51, 0.0 }
 0x2ad   : > { %1938 = vadd.xlane.f32.xlu1 %v1937_v52 }
 0x326   : > { %v1930_v53 = vpop.xlane.xlu0 %1929 }
 0x327   : > { %5456 = vrcp.f32 %v1930_v53  ;;  %v4491_v53 = vld [vmem:[%s6509_s8] ss:$0 sm:$0xff] }
 0x32e   : > { %v1933_v56 = vpop.xlane.xlu1 %1932 }
 0x32f   : > { %5458 = vrcp.f32 %v1933_v56  ;;  %v5486_v56 = vld [vmem:[%s5667_s2] sm:$0xf] }
 0x331   : > { %v5457_v58 = vpop.eup %5456 }
 0x332   : > { %v1944_v60 = vmul.f32 %v5457_v58, %v5449_v39  ;;  %v752_v58 = vunpack.c.l.bf16 %v5486_v56  ;;  %v5424_v56 = vld [vmem:[%s6477_s10 + $0x140] sm:$0xff]  }
 0x334   : > { %v1948_v62 = vpack.c.bf16 %v1944_v60, %v1944_v60 }
 0x336   : > { %5029 = vmatmul.mubr.msk.bf16.vlgmr.msra.gmra.mrb[36].mxu0 %vm1903_vm4, %v1948_v62  ;;  %v1936_v2 = vpop.xlane.xlu0 %1935 }
 0x337   : > { %5039 = vmatpush3.bf16.msra.mxu0 %v2053_v63  ;;  %5460 = vrcp.f32 %v1936_v2  ;;  %5040 = vmatprep.mubr.msk.bf16.mxu0 %vm5496_vm0, %v5495_v1 }
 0x338   : > { %5050 = vmatprep.subr.bf16.mxu0 %v5495_v1 }
 0x339   : > { %v5459_v57 = vpop.eup %5458 }
 0x33a   : > { %v1945_v5 = vmul.f32 %v5459_v57, %v5451_v46  ;;  %v1939_v6 = vpop.xlane.xlu1 %1938 }
 0x33b   : > { %5462 = vrcp.f32 %v1939_v6  ;;  %v5384_v6 = vld [vmem:[%s6477_s10] sm:$0xff]  }
 0x33c   : > { %v1949_v7 = vpack.c.bf16 %v1945_v5, %v1945_v5 }
 0x33e   : > { %5035 = vmatmul.mubr.msk.bf16.vlgmr.msra.gmra.mrb[28].mxu1 %vm1903_vm4, %v1949_v7  ;;  %v5385_v7 = vld [vmem:[%s6477_s10 + $0x20] sm:$0xff]  }
 0x33f   : > { %5045 = vmatpush3.bf16.msra.mxu1 %v2099_v8  ;;  %5046 = vmatprep.mubr.msk.bf16.mxu1 %vm5496_vm0, %v5495_v1  ;;  %v5386_v8 = vld [vmem:[%s6477_s10 + $0x8] sm:$0xff]  }
 0x340   : > { %5056 = vmatprep.subr.bf16.mxu1 %v5495_v1 }
 0x341   : > { %v5461_v4 = vpop.eup %5460 }
 0x342   : > { %v1946_v9 = vmul.f32 %v5461_v4, %v5453_v49  ;;  %v5387_v4 = vld [vmem:[%s6477_s10 + $0x28] sm:$0xff]  }
 0x344   : > { %v1950_v10 = vpack.c.bf16 %v1946_v9, %v1946_v9  ;;  %v5388_v9 = vld [vmem:[%s6477_s10 + $0x10] sm:$0xff]  }
 0x345   : > { %v5463_v11 = vpop.eup %5462 }
 0x346   : > { %v1947_v12 = vmul.f32 %v5463_v11, %v5455_v51  ;;  %5041 = vmatmul.mubr.msk.bf16.vlgmr.msra.gmra.mrb[40].mxu0 %vm1903_vm4, %v1950_v10  ;;  %v5389_v10 = vld [vmem:[%s6477_s10 + $0x30] sm:$0xff]   ;;  %v5390_v11 = vld [vmem:[%s6477_s10 + $0x18] sm:$0xff]  }
 0x347   : > { %5052 = vmatprep.mubr.msk.bf16.mxu0 %vm5496_vm0, %v5495_v1  ;;  %5051 = vmatpush3.bf16.msra.mxu0 %v5380_v14 }
 0x348   : > { %v1951_v13 = vpack.c.bf16 %v1947_v12, %v1947_v12  ;;  %5062 = vmatprep.subr.bf16.mxu0 %v5495_v1  ;;  %v5391_v12 = vld [vmem:[%s6477_s10 + $0x38] sm:$0xff]  }
 0x34a   : > { %5047 = vmatmul.mubr.msk.bf16.vlgmr.msra.gmra.mrb[32].mxu1 %vm1903_vm4, %v1951_v13 }
 0x34b   : > { %5058 = vmatprep.mubr.msk.bf16.mxu1 %vm5496_vm0, %v5495_v1  ;;  %5057 = vmatpush3.bf16.msra.mxu1 %v5381_v15 }
 0x34c   : > { %5068 = vmatprep.subr.bf16.mxu1 %v5495_v1 }
 0x409   : > { %v1997_v16 = vpop.f32.mrb[36].mxu0 }
 0x40a   : > { %v2141_v18 = vpack.c.bf16 %v1997_v16, %v1997_v16  ;;  %v5030_v19 = vpop.f32.mrb[37].mxu0 }
 0x40b   : > { %v2000_v20 = vpop.f32.mrb[38].mxu0  ;;  %v4493_v19 = vld [vmem:[%s6476_s9] ss:$0 sm:$0xff] }
 0x40c   : > { %v5031_v21 = vpop.f32.mrb[39].mxu0  ;;  %5053 = vmatmul.mubr.msk.bf16.vlgmr.msra.gmra.mrb[44].mxu0 %vm1718_vm2, %v2141_v18 }
 0x40d   : > { %5063 = vmatpush3.bf16.msra.mxu0 %v5382_v17  ;;  %5064 = vmatprep.mubr.msk.bf16.mxu0 %vm5496_vm0, %v5495_v1  ;;  %v4492_v17 = vld [vmem:[%s6510_s26] ss:$0 sm:$0xff] }
 0x40e   : > { %5074 = vmatprep.subr.bf16.mxu0 %v5495_v1 }
 0x411   : > { %v2043_v22 = vpop.f32.mrb[28].mxu1 }
 0x412   : > { %v2142_v24 = vpack.c.bf16 %v2043_v22, %v2043_v22  ;;  %v5036_v25 = vpop.f32.mrb[29].mxu1  ;;  %v5392_v22 = vld [vmem:[%s6477_s10 + $0x40] sm:$0xff]  }
 0x413   : > { %v2046_v26 = vpop.f32.mrb[30].mxu1  ;;  %v5394_v25 = vld [vmem:[%s6477_s10 + $0x48] sm:$0xff]  }
 0x414   : > { %v5037_v27 = vpop.f32.mrb[31].mxu1  ;;  %5059 = vmatmul.mubr.msk.bf16.vlgmr.msra.gmra.mrb[36].mxu1 %vm1718_vm2, %v2142_v24  ;;  %v5395_v26 = vld [vmem:[%s6477_s10 + $0x68] sm:$0xff]  }
 0x415   : > { %5069 = vmatpush3.bf16.msra.mxu1 %v5383_v23  ;;  %5070 = vmatprep.mubr.msk.bf16.mxu1 %vm5496_vm0, %v5495_v1  ;;  %v5393_v23 = vld [vmem:[%s6477_s10 + $0x60] sm:$0xff]   ;;  %v5396_v27 = vld [vmem:[%s6477_s10 + $0x50] sm:$0xff]  }
 0x416   : > { %5086 = vmatprep.subr.bf16.mxu1 %v5495_v1 }
 0x419   : > { %v2089_v28 = vpop.f32.mrb[40].mxu0 }
 0x41a   : > { %v2143_v29 = vpack.c.bf16 %v2089_v28, %v2089_v28  ;;  %v5042_v30 = vpop.f32.mrb[41].mxu0  ;;  %v5397_v28 = vld [vmem:[%s6477_s10 + $0x70] sm:$0xff]  }
 0x41b   : > { %v2092_v31 = vpop.f32.mrb[42].mxu0  ;;  %v5399_v30 = vld [vmem:[%s6477_s10 + $0x78] sm:$0xff]  }
 0x41c   : > { %v5043_v32 = vpop.f32.mrb[43].mxu0  ;;  %5065 = vmatmul.mubr.msk.bf16.vlgmr.msra.gmra.mrb[48].mxu0 %vm1718_vm2, %v2143_v29  ;;  %v5398_v29 = vld [vmem:[%s6477_s10 + $0x58] sm:$0xff]   ;;  %v5400_v31 = vld [vmem:[%s6477_s10 + $0x80] sm:$0xff]  }
 0x41d   : > { %v2135_v33 = vpop.f32.mrb[32].mxu1  ;;  %5082 = vmatprep.mubr.msk.bf16.mxu0 %vm5496_vm0, %v5495_v1  ;;  %5075 = vmatpush3.bf16.msra.mxu0 %v5384_v6  ;;  %v5401_v32 = vld [vmem:[%s6477_s10 + $0xa0] sm:$0xff]  }
 0x41e   : > { %v2144_v34 = vpack.c.bf16 %v2135_v33, %v2135_v33  ;;  %v5048_v35 = vpop.f32.mrb[33].mxu1  ;;  %5076 = vmatprep.subr.bf16.mxu0 %v5495_v1  ;;  %v5402_v33 = vld [vmem:[%s6477_s10 + $0x88] sm:$0xff]  }
 0x41f   : > { %v2138_v36 = vpop.f32.mrb[34].mxu1  ;;  %v5404_v35 = vld [vmem:[%s6477_s10 + $0x90] sm:$0xff]  }
 0x420   : > { %v5049_v37 = vpop.f32.mrb[35].mxu1  ;;  %5071 = vmatmul.mubr.msk.bf16.vlgmr.msra.gmra.mrb[40].mxu1 %vm1718_vm2, %v2144_v34  ;;  %v5403_v34 = vld [vmem:[%s6477_s10 + $0xa8] sm:$0xff]   ;;  %v5405_v36 = vld [vmem:[%s6477_s10 + $0xb0] sm:$0xff]  }
 0x421   : > { %5094 = vmatprep.mubr.msk.bf16.mxu1 %vm5496_vm0, %v5495_v1  ;;  %5087 = vmatpush3.bf16.msra.mxu1 %v5385_v7  ;;  %v5406_v37 = vld [vmem:[%s6477_s10 + $0x98] sm:$0xff]  }
 0x422   : > { %5088 = vmatprep.subr.bf16.mxu1 %v5495_v1  ;;  %5077 = vmatpush3.bf16.msra.mxu0 %v5386_v8 }
 0x423   : > { %5078 = vmatprep.subr.bf16.mxu0 %v5495_v1 }
 0x425   : > { %5089 = vmatpush3.bf16.msra.mxu1 %v5387_v4 }
 0x426   : > { %5090 = vmatprep.subr.bf16.mxu1 %v5495_v1  ;;  %5079 = vmatpush3.bf16.msra.mxu0 %v5388_v9 }
 0x427   : > { %5080 = vmatprep.subr.bf16.mxu0 %v5495_v1 }
 0x429   : > { %5091 = vmatpush3.bf16.msra.mxu1 %v5389_v10 }
 0x42a   : > { %5092 = vmatprep.subr.bf16.mxu1 %v5495_v1  ;;  %5081 = vmatpush3.bf16.msra.mxu0 %v5390_v11 }
 0x42b   : > { %5098 = vmatprep.subr.bf16.mxu0 %v5495_v1 }
 0x42d   : > { %5093 = vmatpush3.bf16.msra.mxu1 %v5391_v12 }
 0x42e   : > { %5110 = vmatprep.subr.bf16.mxu1 %v5495_v1 }
 0x4df   : > { %v2196_v38 = vpop.f32.mrb[44].mxu0 }
 0x4e0   : > { %v5054_v39 = vpop.f32.mrb[45].mxu0 }
 0x4e1   : > { %v2199_v40 = vpop.f32.mrb[46].mxu0  ;;  %v6134_v39 = vld [vmem:[%s745_s7] sm:$0xf] }
 0x4e2   : > { %v5055_v41 = vpop.f32.mrb[47].mxu0  ;;  %v5408_v40 = vld [vmem:[%s6477_s10 + $0xc0] sm:$0xff]  }
 0x4e3   : > { %v5409_v41 = vld [vmem:[%s6477_s10 + $0xe0] sm:$0xff]  }
 0x4e7   : > { %v2245_v42 = vpop.f32.mrb[36].mxu1 }
 0x4e8   : > { %v2349_v43 = vadd.f32 %v2245_v42, %v2196_v38  ;;  %v5060_v44 = vpop.f32.mrb[37].mxu1  ;;  %v5407_v38 = vld [vmem:[%s6477_s10 + $0xb8] sm:$0xff]   ;;  %v5410_v42 = vld [vmem:[%s6477_s10 + $0xc8] sm:$0xff]  }
 0x4e9   : > { %v2248_v45 = vpop.f32.mrb[38].mxu1  ;;  %v5412_v44 = vld [vmem:[%s6477_s10 + $0xd0] sm:$0xff]  }
 0x4ea   : > { %v5061_v46 = vpop.f32.mrb[39].mxu1  ;;  %v5413_v45 = vld [vmem:[%s6477_s10 + $0xf0] sm:$0xff]  }
 0x4eb   : > { %v5414_v46 = vld [vmem:[%s6477_s10 + $0xd8] sm:$0xff]  }
 0x4ef   : > { %v2294_v47 = vpop.f32.mrb[48].mxu0 }
 0x4f0   : > { %v2350_v48 = vadd.f32 %v2349_v43, %v2294_v47  ;;  %v5066_v49 = vpop.f32.mrb[49].mxu0  ;;  %v5411_v43 = vld [vmem:[%s6477_s10 + $0xe8] sm:$0xff]   ;;  %v5415_v47 = vld [vmem:[%s6477_s10 + $0xf8] sm:$0xff]  }
 0x4f1   : > { %v2297_v50 = vpop.f32.mrb[50].mxu0  ;;  %v5417_v49 = vld [vmem:[%s6477_s10 + $0x120] sm:$0xff]  }
 0x4f2   : > { %v5067_v51 = vpop.f32.mrb[51].mxu0  ;;  %v5418_v50 = vld [vmem:[%s6477_s10 + $0x108] sm:$0xff]  }
 0x4f3   : > { %v2343_v52 = vpop.f32.mrb[40].mxu1  ;;  %v5419_v51 = vld [vmem:[%s6477_s10 + $0x128] sm:$0xff]  }
 0x4f4   : > { %v2351_v54 = vadd.f32 %v2350_v48, %v2343_v52  ;;  %v5072_v55 = vpop.f32.mrb[41].mxu1  ;;  %v5416_v48 = vld [vmem:[%s6477_s10 + $0x100] sm:$0xff]   ;;  %v5420_v52 = vld [vmem:[%s6477_s10 + $0x110] sm:$0xff]  }
 0x4f5   : > { %v2346_v59 = vpop.f32.mrb[42].mxu1  ;;  %v5423_v55 = vld [vmem:[%s6477_s10 + $0x138] sm:$0xff]  }
 0x4f6   : > { %v2359_v60 = vadd.f32 %v4491_v53, %v2351_v54  ;;  %v5073_v61 = vpop.f32.mrb[43].mxu1  ;;  %v5421_v53 = vld [vmem:[%s6477_s10 + $0x130] sm:$0xff]   ;;  %v5422_v54 = vld [vmem:[%s6477_s10 + $0x118] sm:$0xff]   ;;  %v5426_v59 = vld [vmem:[%s6477_s10 + $0x148] sm:$0xff]  }
 0x4f7   : > { %v5428_v61 = vld [vmem:[%s6477_s10 + $0x150] sm:$0xff]  }
 0x4f8   : > { %v2360_v62 = vadd.f32 %v2359_v60, %v752_v58  ;;  %v5425_v58 = vld [vmem:[%s6477_s10 + $0x160] sm:$0xff]   ;;  %v5427_v60 = vld [vmem:[%s6477_s10 + $0x168] sm:$0xff]  }
 0x4fa   : > { %v2363_v63 = vsel %vm838_vm1, %v2360_v62, 0.0 }
 0x4fb   : > { %2364 = vadd.xlane.f32.xlu0 %v2363_v63  ;;  %v5430_v63 = vld [vmem:[%s6477_s10 + $0x158] sm:$0xff]  }
 0x588   : > { %v2365_v0 = vpop.xlane.xlu0 %2364 }
 0x589   : > { %v2367_v2 = vmul.f32 0.015625, %v2365_v0  ;;  %v5431_v0 = vld [vmem:[%s6477_s10 + $0x178] sm:$0xff]  }
 0x58b   : > { %v2368_v57 = vsub.f32 %v2360_v62, %v2367_v2  ;;  %v5429_v62 = vld [vmem:[%s6477_s10 + $0x170] sm:$0xff]  }
 0x58d   : > { %v2369_v3 = vmul.f32 %v2368_v57, %v2368_v57 }
 0x58f   : > { %v2370_v5 = vsel %vm838_vm1, %v2369_v3, 0.0 }
 0x590   : > { %2371 = vadd.xlane.f32.xlu1 %v2370_v5 }
 0x61d   : > { %v2372_v13 = vpop.xlane.xlu1 %2371 }
 0x61e   : > { %v2373_v14 = vmul.f32 0.015625, %v2372_v13 }
 0x620   : > { %v2374_v15 = vadd.f32 1e-05, %v2373_v14 }
 0x622   : > { %5464 = vrsqrt.f32 %v2374_v15 }
 0x62c   : > { %v5465_v16 = vpop.eup %5464 }
 0x62d   : > { %v2376_v18 = vmul.f32 %v5465_v16, %v2368_v57 }
 0x62f   : > { %v2383_v20 = vmul.f32 %v4492_v17, %v2376_v18  ;;  %v4554_v17 = vld [vmem:[%s6478_s11 + $0x4] ss:$0 sm:$0xff]  ;;  %v4555_v18 = vld [vmem:[%s6478_s11 + $0x5] ss:$0 sm:$0xff] }
 0x631   : > { %v6052_v21 = vadd.f32 %v4493_v19, %v2383_v20 }
 0x633   : > { %v2391_v24 = vpack.c.bf16 %v6052_v21, %v6052_v21 }
 0x635   : > { %5083 = vmatmul.mubr.msk.bf16.vlgmr.msra.gmra.mrb[52].mxu0 %vm838_vm1, %v2391_v24  ;;  %5095 = vmatmul.mubr.msk.bf16.vlgmr.msra.gmra.mrb[44].mxu1 %vm838_vm1, %v2391_v24 }
 0x636   : > { %5099 = vmatpush3.bf16.msra.mxu0 %v5392_v22  ;;  %5111 = vmatpush3.bf16.msra.mxu1 %v5393_v23 }
 0x637   : > { %5100 = vmatprep.subr.bf16.mxu0 %v5495_v1  ;;  %5112 = vmatprep.subr.bf16.mxu1 %v5495_v1 }
 0x638   : > { %5106 = vmatprep.mubr.msk.bf16.mxu0 %vm5496_vm0, %v5495_v1  ;;  %5118 = vmatprep.mubr.msk.bf16.mxu1 %vm5496_vm0, %v5495_v1 }
 0x63a   : > { %5101 = vmatpush3.bf16.msra.mxu0 %v5394_v25  ;;  %5113 = vmatpush3.bf16.msra.mxu1 %v5395_v26 }
 0x63b   : > { %5102 = vmatprep.subr.bf16.mxu0 %v5495_v1  ;;  %5114 = vmatprep.subr.bf16.mxu1 %v5495_v1 }
 0x63e   : > { %5103 = vmatpush3.bf16.msra.mxu0 %v5396_v27  ;;  %5115 = vmatpush3.bf16.msra.mxu1 %v5397_v28 }
 0x63f   : > { %5104 = vmatprep.subr.bf16.mxu0 %v5495_v1  ;;  %5116 = vmatprep.subr.bf16.mxu1 %v5495_v1 }
 0x642   : > { %5105 = vmatpush3.bf16.msra.mxu0 %v5398_v29  ;;  %5117 = vmatpush3.bf16.msra.mxu1 %v5399_v30 }
 0x643   : > { %5122 = vmatprep.subr.bf16.mxu0 %v5495_v1  ;;  %5134 = vmatprep.subr.bf16.mxu1 %v5495_v1 }
 0x645   : > { %5107 = vmatmul.mubr.msk.bf16.vlgmr.msra.gmra.mrb[56].mxu0 %vm838_vm1, %v2391_v24  ;;  %5119 = vmatmul.mubr.msk.bf16.vlgmr.msra.gmra.mrb[48].mxu1 %vm838_vm1, %v2391_v24 }
 0x646   : > { %5123 = vmatpush3.bf16.msra.mxu0 %v5400_v31  ;;  %5135 = vmatpush3.bf16.msra.mxu1 %v5401_v32  ;;  %v4494_v32 = vld [vmem:[%s6478_s11] ss:$0 sm:$0xff] }
 0x647   : > { %5124 = vmatprep.subr.bf16.mxu0 %v5495_v1  ;;  %5136 = vmatprep.subr.bf16.mxu1 %v5495_v1 }
 0x648   : > { %5130 = vmatprep.mubr.msk.bf16.mxu0 %vm5496_vm0, %v5495_v1  ;;  %5142 = vmatprep.mubr.msk.bf16.mxu1 %vm5496_vm0, %v5495_v1 }
 0x64a   : > { %5125 = vmatpush3.bf16.msra.mxu0 %v5402_v33  ;;  %5137 = vmatpush3.bf16.msra.mxu1 %v5403_v34  ;;  %v4495_v33 = vld [vmem:[%s6478_s11 + $0x1] ss:$0 sm:$0xff] }
 0x64b   : > { %5126 = vmatprep.subr.bf16.mxu0 %v5495_v1  ;;  %5138 = vmatprep.subr.bf16.mxu1 %v5495_v1 }
 0x64e   : > { %5127 = vmatpush3.bf16.msra.mxu0 %v5404_v35  ;;  %5139 = vmatpush3.bf16.msra.mxu1 %v5405_v36 }
 0x64f   : > { %5128 = vmatprep.subr.bf16.mxu0 %v5495_v1  ;;  %5140 = vmatprep.subr.bf16.mxu1 %v5495_v1 }
 0x652   : > { %5129 = vmatpush3.bf16.msra.mxu0 %v5406_v37  ;;  %5141 = vmatpush3.bf16.msra.mxu1 %v5407_v38 }
 0x653   : > { %5146 = vmatprep.subr.bf16.mxu0 %v5495_v1  ;;  %5158 = vmatprep.subr.bf16.mxu1 %v5495_v1 }
 0x655   : > { %5131 = vmatmul.mubr.msk.bf16.vlgmr.msra.gmra.mrb[60].mxu0 %vm838_vm1, %v6134_v39  ;;  %5143 = vmatmul.mubr.msk.bf16.vlgmr.msra.gmra.mrb[52].mxu1 %vm838_vm1, %v6134_v39 }
 0x656   : > { %5147 = vmatpush3.bf16.msra.mxu0 %v5408_v40  ;;  %5159 = vmatpush3.bf16.msra.mxu1 %v5409_v41  ;;  %v4556_v40 = vld [vmem:[%s6478_s11 + $0x6] ss:$0 sm:$0xff]  ;;  %v4557_v41 = vld [vmem:[%s6478_s11 + $0x7] ss:$0 sm:$0xff] }
 0x657   : > { %5148 = vmatprep.subr.bf16.mxu0 %v5495_v1  ;;  %5160 = vmatprep.subr.bf16.mxu1 %v5495_v1 }
 0x658   : > { %5154 = vmatprep.mubr.msk.bf16.mxu0 %vm5496_vm0, %v5495_v1  ;;  %5166 = vmatprep.mubr.msk.bf16.mxu1 %vm5496_vm0, %v5495_v1 }
 0x65a   : > { %5149 = vmatpush3.bf16.msra.mxu0 %v5410_v42  ;;  %5161 = vmatpush3.bf16.msra.mxu1 %v5411_v43 }
 0x65b   : > { %5150 = vmatprep.subr.bf16.mxu0 %v5495_v1  ;;  %5162 = vmatprep.subr.bf16.mxu1 %v5495_v1 }
 0x65e   : > { %5151 = vmatpush3.bf16.msra.mxu0 %v5412_v44  ;;  %5163 = vmatpush3.bf16.msra.mxu1 %v5413_v45 }
 0x65f   : > { %5152 = vmatprep.subr.bf16.mxu0 %v5495_v1  ;;  %5164 = vmatprep.subr.bf16.mxu1 %v5495_v1 }
 0x662   : > { %5153 = vmatpush3.bf16.msra.mxu0 %v5414_v46  ;;  %5165 = vmatpush3.bf16.msra.mxu1 %v5415_v47 }
 0x663   : > { %5170 = vmatprep.subr.bf16.mxu0 %v5495_v1  ;;  %5182 = vmatprep.subr.bf16.mxu1 %v5495_v1 }
 0x665   : > { %5155 = vmatmul.mubr.msk.bf16.vlgmr.msra.gmra.mrb[64].mxu0 %vm838_vm1, %v6134_v39  ;;  %5167 = vmatmul.mubr.msk.bf16.vlgmr.msra.gmra.mrb[56].mxu1 %vm838_vm1, %v6134_v39 }
 0x666   : > { %5178 = vmatprep.mubr.msk.bf16.mxu0 %vm5496_vm0, %v5495_v1  ;;  %5190 = vmatprep.mubr.msk.bf16.mxu1 %vm5496_vm0, %v5495_v1 }
 0x667   : > { %5171 = vmatpush3.bf16.msra.mxu0 %v5416_v48  ;;  %5183 = vmatpush3.bf16.msra.mxu1 %v5417_v49 }
 0x668   : > { %5172 = vmatprep.subr.bf16.mxu0 %v5495_v1  ;;  %5184 = vmatprep.subr.bf16.mxu1 %v5495_v1 }
 0x66b   : > { %5173 = vmatpush3.bf16.msra.mxu0 %v5418_v50  ;;  %5185 = vmatpush3.bf16.msra.mxu1 %v5419_v51 }
 0x66c   : > { %5174 = vmatprep.subr.bf16.mxu0 %v5495_v1  ;;  %5186 = vmatprep.subr.bf16.mxu1 %v5495_v1 }
 0x66f   : > { %5175 = vmatpush3.bf16.msra.mxu0 %v5420_v52  ;;  %5187 = vmatpush3.bf16.msra.mxu1 %v5421_v53 }
 0x670   : > { %5176 = vmatprep.subr.bf16.mxu0 %v5495_v1  ;;  %5188 = vmatprep.subr.bf16.mxu1 %v5495_v1 }
 0x673   : > { %5177 = vmatpush3.bf16.msra.mxu0 %v5422_v54  ;;  %5189 = vmatpush3.bf16.msra.mxu1 %v5423_v55  ;;  %v4496_v54 = vld [vmem:[%s6478_s11 + $0x2] ss:$0 sm:$0xff]  ;;  %v4497_v55 = vld [vmem:[%s6478_s11 + $0x3] ss:$0 sm:$0xff] }
 0x674   : > { %5194 = vmatprep.subr.bf16.mxu0 %v5495_v1  ;;  %5206 = vmatprep.subr.bf16.mxu1 %v5495_v1 }
 0x676   : > { %5179 = vmatmul.mubr.msk.bf16.vlgmr.msra.gmra.mrb[68].mxu0 %vm838_vm1, %v6134_v39  ;;  %5191 = vmatmul.mubr.msk.bf16.vlgmr.msra.gmra.mrb[60].mxu1 %vm838_vm1, %v6134_v39 }
 0x677   : > { %5195 = vmatpush3.bf16.msra.mxu0 %v5424_v56  ;;  %5207 = vmatpush3.bf16.msra.mxu1 %v5425_v58 }
 0x678   : > { %5196 = vmatprep.subr.bf16.mxu0 %v5495_v1  ;;  %5208 = vmatprep.subr.bf16.mxu1 %v5495_v1 }
 0x679   : > { %5202 = vmatprep.mubr.msk.bf16.mxu0 %vm5496_vm0, %v5495_v1  ;;  %5214 = vmatprep.mubr.msk.bf16.mxu1 %vm5496_vm0, %v5495_v1 }
 0x67b   : > { %5197 = vmatpush3.bf16.msra.mxu0 %v5426_v59  ;;  %5209 = vmatpush3.bf16.msra.mxu1 %v5427_v60 }
 0x67c   : > { %5198 = vmatprep.subr.bf16.mxu0 %v5495_v1  ;;  %5210 = vmatprep.subr.bf16.mxu1 %v5495_v1 }
 0x67f   : > { %5199 = vmatpush3.bf16.msra.mxu0 %v5428_v61  ;;  %5211 = vmatpush3.bf16.msra.mxu1 %v5429_v62 }
 0x680   : > { %5200 = vmatprep.subr.bf16.mxu0 %v5495_v1  ;;  %5212 = vmatprep.subr.bf16.mxu1 %v5495_v1 }
 0x683   : > { %5201 = vmatpush3.bf16.msra.mxu0 %v5430_v63  ;;  %5213 = vmatpush3.bf16.msra.mxu1 %v5431_v0  ;;  %v4614_v63 = vld [vmem:[%s6478_s11 + $0x8] ss:$0 sm:$0xff]  ;;  %v4615_v0 = vld [vmem:[%s6478_s11 + $0x9] ss:$0 sm:$0xff] }
 0x684   : > { %5218 = vmatprep.subr.bf16.mxu0 %v5495_v1  ;;  %5224 = vmatprep.subr.bf16.mxu1 %v5495_v1 }
 0x686   : > { %5203 = vmatmul.mubr.msk.bf16.vlgmr.msra.gmra.mrb[72].mxu0 %vm838_vm1, %v6134_v39  ;;  %5215 = vmatmul.mubr.msk.bf16.vlgmr.msra.gmra.mrb[64].mxu1 %vm838_vm1, %v6134_v39 }
 0x687   : > { %5220 = vmatprep.mubr.msk.bf16.mxu0 %vm5496_vm0, %v5495_v1  ;;  %5226 = vmatprep.mubr.msk.bf16.mxu1 %vm5496_vm0, %v5495_v1 }
 0x708   : > { %v2515_v2 = vpop.f32.mrb[52].mxu0  ;;  %v2579_v57 = vpop.f32.mrb[44].mxu1 }
 0x709   : > { %v5084_v3 = vpop.f32.mrb[53].mxu0  ;;  %v5096_v5 = vpop.f32.mrb[45].mxu1  ;;  %v2516_v36 = vadd.f32 %v4494_v32, %v2515_v2  ;;  %v2580_v37 = vadd.f32 %v4495_v33, %v2579_v57 }
 0x70a   : > { %v2518_v6 = vpop.f32.mrb[54].mxu0  ;;  %v2582_v7 = vpop.f32.mrb[46].mxu1 }
 0x70b   : > { %v5085_v8 = vpop.f32.mrb[55].mxu0  ;;  %v5097_v4 = vpop.f32.mrb[47].mxu1  ;;  %v3352_v38 = vpack.c.bf16 %v2516_v36, %v2516_v36  ;;  %v3353_v39 = vpack.c.bf16 %v2580_v37, %v2580_v37 }
 0x718   : > { %v2643_v9 = vpop.f32.mrb[56].mxu0  ;;  %v2707_v10 = vpop.f32.mrb[48].mxu1 }
 0x719   : > { %v5108_v11 = vpop.f32.mrb[57].mxu0  ;;  %v5120_v12 = vpop.f32.mrb[49].mxu1  ;;  %v2644_v59 = vadd.f32 %v4496_v54, %v2643_v9  ;;  %v2708_v60 = vadd.f32 %v4497_v55, %v2707_v10 }
 0x71a   : > { %v2646_v13 = vpop.f32.mrb[58].mxu0  ;;  %v2710_v14 = vpop.f32.mrb[50].mxu1 }
 0x71b   : > { %v5109_v15 = vpop.f32.mrb[59].mxu0  ;;  %v5121_v16 = vpop.f32.mrb[51].mxu1  ;;  %v3354_v61 = vpack.c.bf16 %v2644_v59, %v2644_v59  ;;  %v3355_v62 = vpack.c.bf16 %v2708_v60, %v2708_v60 }
 0x728   : > { %v2836_v19 = vpop.f32.mrb[60].mxu0  ;;  %v2900_v20 = vpop.f32.mrb[52].mxu1 }
 0x729   : > { %v2837_v22 = vadd.f32 %v4554_v17, %v2836_v19  ;;  %v2901_v23 = vadd.f32 %v4555_v18, %v2900_v20  ;;  %v5132_v24 = vpop.f32.mrb[61].mxu0  ;;  %v5144_v25 = vpop.f32.mrb[53].mxu1 }
 0x72a   : > { %v2839_v26 = vpop.f32.mrb[62].mxu0  ;;  %v2903_v27 = vpop.f32.mrb[54].mxu1  ;;  %v2393_v24 = vld [vmem:[%s6512_s0] sm:$0xff] }
 0x72b   : > { %v3356_v28 = vpack.c.bf16 %v2837_v22, %v2837_v22  ;;  %v3357_v29 = vpack.c.bf16 %v2901_v23, %v2901_v23  ;;  %v5133_v30 = vpop.f32.mrb[63].mxu0  ;;  %v5145_v31 = vpop.f32.mrb[55].mxu1 }
 0x72d   : > { %v3364_v34 = vsel %vm1718_vm2, %v3356_v28, 0  ;;  %v3410_v35 = vsel %vm1718_vm2, %v3357_v29, 0 }
 0x72e   : > { %5219 = vmatpush3.bf16.xpose.msra.mxu0 %v3364_v34  ;;  %5225 = vmatpush3.bf16.xpose.msra.mxu1 %v3410_v35 }
 0x72f   : > { %5230 = vmatprep.subr.bf16.mxu0 %v5495_v1  ;;  %5236 = vmatprep.subr.bf16.mxu1 %v5495_v1 }
 0x735   : > { %5221 = vmatmul.mubr.msk.bf16.vlgmr.msra.gmra.mrb[76].mxu0 %vm1718_vm2, %v3352_v38  ;;  %5227 = vmatmul.mubr.msk.bf16.vlgmr.msra.gmra.mrb[68].mxu1 %vm1718_vm2, %v3353_v39 }
 0x736   : > { %5232 = vmatprep.mubr.msk.bf16.mxu0 %vm5496_vm0, %v5495_v1  ;;  %5238 = vmatprep.mubr.msk.bf16.mxu1 %vm5496_vm0, %v5495_v1 }
 0x738   : > { %v2964_v42 = vpop.f32.mrb[64].mxu0  ;;  %v3028_v43 = vpop.f32.mrb[56].mxu1 }
 0x739   : > { %v2965_v44 = vadd.f32 %v4556_v40, %v2964_v42  ;;  %v3029_v45 = vadd.f32 %v4557_v41, %v3028_v43  ;;  %v5156_v46 = vpop.f32.mrb[65].mxu0  ;;  %v5168_v47 = vpop.f32.mrb[57].mxu1 }
 0x73a   : > { %v2967_v48 = vpop.f32.mrb[66].mxu0  ;;  %v3031_v49 = vpop.f32.mrb[58].mxu1 }
 0x73b   : > { %v3358_v50 = vpack.c.bf16 %v2965_v44, %v2965_v44  ;;  %v3359_v51 = vpack.c.bf16 %v3029_v45, %v3029_v45  ;;  %v5157_v52 = vpop.f32.mrb[67].mxu0  ;;  %v5169_v53 = vpop.f32.mrb[59].mxu1 }
 0x73d   : > { %v3456_v56 = vsel %vm1718_vm2, %v3358_v50, 0  ;;  %v3502_v58 = vsel %vm1718_vm2, %v3359_v51, 0 }
 0x73e   : > { %5231 = vmatpush3.bf16.xpose.msra.mxu0 %v3456_v56  ;;  %5237 = vmatpush3.bf16.xpose.msra.mxu1 %v3502_v58 }
 0x73f   : > { %5242 = vmatprep.subr.bf16.mxu0 %v5495_v1  ;;  %5248 = vmatprep.subr.bf16.mxu1 %v5495_v1 }
 0x745   : > { %5233 = vmatmul.mubr.msk.bf16.vlgmr.msra.gmra.mrb[80].mxu0 %vm1718_vm2, %v3354_v61  ;;  %5239 = vmatmul.mubr.msk.bf16.vlgmr.msra.gmra.mrb[72].mxu1 %vm1718_vm2, %v3355_v62 }
 0x746   : > { %5244 = vmatprep.mubr.msk.bf16.mxu0 %vm5496_vm0, %v5495_v1  ;;  %5250 = vmatprep.mubr.msk.bf16.mxu1 %vm5496_vm0, %v5495_v1 }
 0x749   : > { %v3154_v2 = vpop.f32.mrb[68].mxu0  ;;  %v3218_v57 = vpop.f32.mrb[60].mxu1 }
 0x74a   : > { %v3155_v3 = vadd.f32 %v4614_v63, %v3154_v2  ;;  %v5180_v5 = vpop.f32.mrb[69].mxu0  ;;  %v3219_v6 = vadd.f32 %v4615_v0, %v3218_v57  ;;  %v5192_v7 = vpop.f32.mrb[61].mxu1 }
 0x74b   : > { %v3157_v8 = vpop.f32.mrb[70].mxu0  ;;  %v3221_v4 = vpop.f32.mrb[62].mxu1 }
 0x74c   : > { %v3592_v9 = vpack.c.bf16 %v3155_v3, %v3155_v3  ;;  %v3593_v10 = vpack.c.bf16 %v3219_v6, %v3219_v6  ;;  %v5181_v11 = vpop.f32.mrb[71].mxu0  ;;  %v5193_v12 = vpop.f32.mrb[63].mxu1  ;;  %v4617_v4 = vld [vmem:[%s6478_s11 + $0xb] ss:$0 sm:$0xff] }
 0x74e   : > { %v3600_v13 = vsel %vm1959_vm3, %v3592_v9, 0  ;;  %v3646_v14 = vsel %vm1959_vm3, %v3593_v10, 0  ;;  %v4616_v9 = vld [vmem:[%s6478_s11 + $0xa] ss:$0 sm:$0xff] }
 0x74f   : > { %5243 = vmatpush3.bf16.msra.mxu0 %v3600_v13  ;;  %5249 = vmatpush3.bf16.msra.mxu1 %v3646_v14 }
 0x750   : > { %5254 = vmatprep.subr.bf16.mxu0 %v5495_v1  ;;  %5260 = vmatprep.subr.bf16.mxu1 %v5495_v1 }
 0x759   : > { %v6320_v15 = vpop.f32.mrb[72].mxu0  ;;  %v6322_v16 = vpop.f32.mrb[64].mxu1 }
 0x75a   : > { %v5204_v17 = vpop.f32.mrb[73].mxu0  ;;  %v5216_v18 = vpop.f32.mrb[65].mxu1  ;;  %v3347_v10 = vadd.f32 %v4617_v4, %v6322_v16  ;;  %v3283_v11 = vadd.f32 %v4616_v9, %v6320_v15 }
 0x75b   : > { %v3285_v19 = vpop.f32.mrb[74].mxu0  ;;  %v3349_v20 = vpop.f32.mrb[66].mxu1 }
 0x75c   : > { %v5205_v22 = vpop.f32.mrb[75].mxu0  ;;  %v5217_v23 = vpop.f32.mrb[67].mxu1  ;;  %v3595_v14 = vpack.c.bf16 %v3347_v10, %v3347_v10  ;;  %v3594_v18 = vpack.c.bf16 %v3283_v11, %v3283_v11 }
 0x75e   : > { %v3738_v23 = vsel %vm1959_vm3, %v3595_v14, 0 }
 0x808   : > { %v3400_v25 = vpop.f32.mrb[76].mxu0  ;;  %v3446_v26 = vpop.f32.mrb[68].mxu1 }
 0x809   : > { %v3401_v27 = vadd.f32 %v3400_v25, %v2393_v24  ;;  %v3447_v28 = vadd.f32 %v3446_v26, %v2393_v24  ;;  %v5222_v29 = vpop.f32.mrb[77].mxu0  ;;  %v5228_v30 = vpop.f32.mrb[69].mxu1  ;;  %v3692_v25 = vsel %vm1959_vm3, %v3594_v18, 0 }
 0x80a   : > { %v3403_v31 = vpop.f32.mrb[78].mxu0  ;;  %v3449_v32 = vpop.f32.mrb[70].mxu1 }
 0x80b   : > { %v5223_v33 = vpop.f32.mrb[79].mxu0  ;;  %v5229_v34 = vpop.f32.mrb[71].mxu1  ;;  %v3547_v35 = vsel %vm1903_vm4, %v3447_v28, -inf  ;;  %v3544_v36 = vsel %vm1903_vm4, %v3401_v27, -inf  ;;  %v5432_v31 = vld [vmem:[%s6479_s12] sm:$0xff]   ;;  %v5433_v32 = vld [vmem:[%s6479_s12 + $0x8] sm:$0xff]  }
 0x80c   : > { %3548 = vmax.xlane.f32.xlu1 %v3547_v35  ;;  %3545 = vmax.xlane.f32.xlu0 %v3544_v36  ;;  %v5435_v34 = vld [vmem:[%s6479_s12 + $0x18] sm:$0xff]  }
 0x818   : > { %v3492_v37 = vpop.f32.mrb[80].mxu0  ;;  %v3538_v38 = vpop.f32.mrb[72].mxu1 }
 0x819   : > { %v3493_v39 = vadd.f32 %v3492_v37, %v2393_v24  ;;  %v3539_v40 = vadd.f32 %v3538_v38, %v2393_v24  ;;  %v5234_v41 = vpop.f32.mrb[81].mxu0  ;;  %v5240_v42 = vpop.f32.mrb[73].mxu1  ;;  %v5434_v38 = vld [vmem:[%s6479_s12 + $0x10] sm:$0xff]  }
 0x81a   : > { %v3495_v43 = vpop.f32.mrb[82].mxu0  ;;  %v3541_v44 = vpop.f32.mrb[74].mxu1 }
 0x81b   : > { %v5235_v45 = vpop.f32.mrb[83].mxu0  ;;  %v5241_v46 = vpop.f32.mrb[75].mxu1  ;;  %v3553_v47 = vsel %vm1903_vm4, %v3539_v40, -inf  ;;  %v3550_v48 = vsel %vm1903_vm4, %v3493_v39, -inf }
 0x81c   : > { %3554 = vmax.xlane.f32.xlu1 %v3553_v47  ;;  %3551 = vmax.xlane.f32.xlu0 %v3550_v48 }
 0x899   : > { %v3549_v49 = vpop.xlane.xlu1 %3548  ;;  %v3546_v50 = vpop.xlane.xlu0 %3545 }
 0x89a   : > { %v3557_v51 = vsub.f32 %v3447_v28, %v3549_v49  ;;  %v3556_v52 = vsub.f32 %v3401_v27, %v3546_v50 }
 0x89c   : > { %v3562_v53 = vmul.f32 1.442695, %v3557_v51  ;;  %v3560_v54 = vmul.f32 1.442695, %v3556_v52 }
 0x89e   : > { %5466 = vpow2.f32 %v3562_v53 }
 0x89f   : > { %5468 = vpow2.f32 %v3560_v54 }
 0x8a8   : > { %v5467_v55 = vpop.eup %5466 }
 0x8a9   : > { %v5469_v56 = vpop.eup %5468  ;;  %v3555_v58 = vpop.xlane.xlu1 %3554  ;;  %v3571_v60 = vsel %vm1903_vm4, %v5467_v55, 0.0 }
 0x8aa   : > { %v3552_v59 = vpop.xlane.xlu0 %3551  ;;  %v3559_v61 = vsub.f32 %v3539_v40, %v3555_v58  ;;  %3572 = vadd.xlane.f32.xlu1 %v3571_v60  ;;  %v3568_v63 = vsel %vm1903_vm4, %v5469_v56, 0.0 }
 0x8ab   : > { %v3558_v62 = vsub.f32 %v3493_v39, %v3552_v59  ;;  %3569 = vadd.xlane.f32.xlu0 %v3568_v63 }
 0x8ac   : > { %v3566_v0 = vmul.f32 1.442695, %v3559_v61 }
 0x8ad   : > { %v3564_v2 = vmul.f32 1.442695, %v3558_v62 }
 0x8ae   : > { %5470 = vpow2.f32 %v3566_v0 }
 0x8af   : > { %5472 = vpow2.f32 %v3564_v2 }
 0x8b8   : > { %v5471_v57 = vpop.eup %5470 }
 0x8b9   : > { %v5473_v3 = vpop.eup %5472  ;;  %v3577_v5 = vsel %vm1903_vm4, %v5471_v57, 0.0 }
 0x8ba   : > { %3578 = vadd.xlane.f32.xlu1 %v3577_v5  ;;  %v3574_v6 = vsel %vm1903_vm4, %v5473_v3, 0.0 }
 0x8bb   : > { %3575 = vadd.xlane.f32.xlu0 %v3574_v6 }
 0x937   : > { %v3573_v7 = vpop.xlane.xlu1 %3572 }
 0x938   : > { %5474 = vrcp.f32 %v3573_v7  ;;  %v3570_v8 = vpop.xlane.xlu0 %3569 }
 0x939   : > { %5476 = vrcp.f32 %v3570_v8  ;;  %v4654_v8 = vld [vmem:[%s6480_s13] ss:$0 sm:$0xff] }
 0x942   : > { %v5475_v12 = vpop.eup %5474 }
 0x943   : > { %v5477_v13 = vpop.eup %5476  ;;  %v3585_v17 = vmul.f32 %v5475_v12, %v5467_v55 }
 0x944   : > { %v3584_v19 = vmul.f32 %v5477_v13, %v5469_v56 }
 0x945   : > { %v3589_v20 = vpack.c.bf16 %v3585_v17, %v3585_v17 }
 0x946   : > { %v3588_v22 = vpack.c.bf16 %v3584_v19, %v3584_v19 }
 0x947   : > { %5251 = vmatmul.mubr.msk.bf16.vlgmr.msra.gmra.mrb[76].mxu1 %vm1903_vm4, %v3589_v20  ;;  %v3579_v24 = vpop.xlane.xlu1 %3578 }
 0x948   : > { %5261 = vmatpush3.bf16.msra.mxu1 %v3738_v23  ;;  %5478 = vrcp.f32 %v3579_v24  ;;  %5245 = vmatmul.mubr.msk.bf16.vlgmr.msra.gmra.mrb[84].mxu0 %vm1903_vm4, %v3588_v22  ;;  %v3576_v15 = vpop.xlane.xlu0 %3575  ;;  %v5436_v23 = vld [vmem:[%s6483_s16] sm:$0xff]   ;;  %v5438_v24 = vld [vmem:[%s6483_s16 + $0x10] sm:$0xff]  }
 0x949   : > { %5255 = vmatpush3.bf16.msra.mxu0 %v3692_v25  ;;  %5480 = vrcp.f32 %v3576_v15  ;;  %5256 = vmatprep.mubr.msk.bf16.mxu0 %vm5496_vm0, %v5495_v1  ;;  %v5439_v25 = vld [vmem:[%s6483_s16 + $0x18] sm:$0xff]   ;;  %v5440_v15 = vld [vmem:[%s6485_s18] sm:$0xff]  }
 0x94a   : > { %5262 = vmatprep.mubr.msk.bf16.mxu1 %vm5496_vm0, %v5495_v1  ;;  %5266 = vmatprep.subr.bf16.mxu0 %v5495_v1 }
 0x94b   : > { %5272 = vmatprep.subr.bf16.mxu1 %v5495_v1 }
 0x952   : > { %v5479_v16 = vpop.eup %5478 }
 0x953   : > { %v5481_v26 = vpop.eup %5480  ;;  %v3587_v27 = vmul.f32 %v5479_v16, %v5471_v57  ;;  %v5441_v16 = vld [vmem:[%s6485_s18 + $0x8] sm:$0xff]  }
 0x954   : > { %v3586_v28 = vmul.f32 %v5481_v26, %v5473_v3  ;;  %v5442_v26 = vld [vmem:[%s6485_s18 + $0x10] sm:$0xff]  }
 0x955   : > { %v3591_v29 = vpack.c.bf16 %v3587_v27, %v3587_v27  ;;  %v5443_v27 = vld [vmem:[%s6485_s18 + $0x18] sm:$0xff]  }
 0x956   : > { %v3590_v30 = vpack.c.bf16 %v3586_v28, %v3586_v28  ;;  %v5444_v28 = vld [vmem:[%s6485_s18 + $0x20] sm:$0xff]  }
 0x957   : > { %5263 = vmatmul.mubr.msk.bf16.vlgmr.msra.gmra.mrb[80].mxu1 %vm1903_vm4, %v3591_v29  ;;  %v5445_v29 = vld [vmem:[%s6485_s18 + $0x28] sm:$0xff]  }
 0x958   : > { %5257 = vmatmul.mubr.msk.bf16.vlgmr.msra.gmra.mrb[88].mxu0 %vm1903_vm4, %v3590_v30  ;;  %5274 = vmatprep.mubr.msk.bf16.mxu1 %vm5496_vm0, %v5495_v1 }
 0x959   : > { %5268 = vmatprep.mubr.msk.bf16.mxu0 %vm5496_vm0, %v5495_v1  ;;  %5267 = vmatpush3.bf16.msra.mxu0 %v5432_v31 }
 0x95a   : > { %5273 = vmatpush3.bf16.msra.mxu1 %v5433_v32  ;;  %5278 = vmatprep.subr.bf16.mxu0 %v5495_v1 }
 0x95b   : > { %5284 = vmatprep.subr.bf16.mxu1 %v5495_v1 }
 0xa1a   : > { %v3682_v33 = vpop.f32.mrb[76].mxu1 }
 0xa1b   : > { %v3636_v35 = vpop.f32.mrb[84].mxu0  ;;  %v3781_v36 = vpack.c.bf16 %v3682_v33, %v3682_v33  ;;  %v5252_v37 = vpop.f32.mrb[77].mxu1 }
 0xa1c   : > { %v3780_v39 = vpack.c.bf16 %v3636_v35, %v3636_v35  ;;  %v5246_v40 = vpop.f32.mrb[85].mxu0  ;;  %v3685_v41 = vpop.f32.mrb[78].mxu1 }
 0xa1d   : > { %v3639_v42 = vpop.f32.mrb[86].mxu0  ;;  %v5253_v43 = vpop.f32.mrb[79].mxu1  ;;  %5275 = vmatmul.mubr.msk.bf16.vlgmr.msra.gmra.mrb[84].mxu1 %vm1718_vm2, %v3781_v36  ;;  %v4656_v36 = vld [vmem:[%s6482_s15] ss:$0 sm:$0xff]  ;;  %v5446_v40 = vld [vmem:[%s6485_s18 + $0x30] sm:$0xff]   ;;  %v5447_v41 = vld [vmem:[%s6485_s18 + $0x38] sm:$0xff]  }
 0xa1e   : > { %v5247_v44 = vpop.f32.mrb[87].mxu0  ;;  %5269 = vmatmul.mubr.msk.bf16.vlgmr.msra.gmra.mrb[92].mxu0 %vm1718_vm2, %v3780_v39  ;;  %5285 = vmatpush3.bf16.msra.mxu1 %v5435_v34  ;;  %v4655_v34 = vld [vmem:[%s6481_s14] ss:$0 sm:$0xff] }
 0xa1f   : > { %5279 = vmatpush3.bf16.msra.mxu0 %v5434_v38  ;;  %5280 = vmatprep.mubr.msk.bf16.mxu0 %vm5496_vm0, %v5495_v1  ;;  %v4657_v42 = vld [vmem:[%s6484_s17] ss:$0 sm:$0xff] }
 0xa20   : > { %5286 = vmatprep.mubr.msk.bf16.mxu1 %vm5496_vm0, %v5495_v1  ;;  %5290 = vmatprep.subr.bf16.mxu0 %v5495_v1 }
 0xa21   : > { %5302 = vmatprep.subr.bf16.mxu1 %v5495_v1 }
 0xa2a   : > { %v3774_v45 = vpop.f32.mrb[80].mxu1 }
 0xa2b   : > { %v3728_v46 = vpop.f32.mrb[88].mxu0  ;;  %v3783_v47 = vpack.c.bf16 %v3774_v45, %v3774_v45  ;;  %v5264_v48 = vpop.f32.mrb[81].mxu1 }
 0xa2c   : > { %v3782_v49 = vpack.c.bf16 %v3728_v46, %v3728_v46  ;;  %v5258_v50 = vpop.f32.mrb[89].mxu0  ;;  %v3777_v51 = vpop.f32.mrb[82].mxu1 }
 0xa2d   : > { %v3731_v52 = vpop.f32.mrb[90].mxu0  ;;  %v5265_v53 = vpop.f32.mrb[83].mxu1  ;;  %5287 = vmatmul.mubr.msk.bf16.vlgmr.msra.gmra.mrb[88].mxu1 %vm1718_vm2, %v3783_v47 }
 0xa2e   : > { %v5259_v54 = vpop.f32.mrb[91].mxu0  ;;  %5281 = vmatmul.mubr.msk.bf16.vlgmr.msra.gmra.mrb[96].mxu0 %vm1718_vm2, %v3782_v49  ;;  %5318 = vmatprep.mubr.msk.bf16.mxu1 %vm5496_vm0, %v5495_v1 }
 0xa2f   : > { %5298 = vmatprep.mubr.msk.bf16.mxu0 %vm5496_vm0, %v5495_v1  ;;  %5291 = vmatpush3.bf16.msra.mxu0 %v5436_v23 }
 0xa30   : > { %5292 = vmatprep.subr.bf16.mxu0 %v5495_v1  ;;  %5303 = vmatpush3.bf16.msra.mxu1 %v5440_v15 }
 0xa31   : > { %5304 = vmatprep.subr.bf16.mxu1 %v5495_v1 }
 0xa34   : > { %5305 = vmatpush3.bf16.msra.mxu1 %v5441_v16 }
 0xa35   : > { %5306 = vmatprep.subr.bf16.mxu1 %v5495_v1 }
 0xa38   : > { %5307 = vmatpush3.bf16.msra.mxu1 %v5442_v26 }
 0xa39   : > { %5308 = vmatprep.subr.bf16.mxu1 %v5495_v1 }
 0xa3c   : > { %5309 = vmatpush3.bf16.msra.mxu1 %v5443_v27 }
 0xa3d   : > { %5310 = vmatprep.subr.bf16.mxu1 %v5495_v1 }
 0xa40   : > { %5311 = vmatpush3.bf16.msra.mxu1 %v5444_v28 }
 0xa41   : > { %5312 = vmatprep.subr.bf16.mxu1 %v5495_v1 }
 0xa44   : > { %5313 = vmatpush3.bf16.msra.mxu1 %v5445_v29 }
 0xa45   : > { %5314 = vmatprep.subr.bf16.mxu1 %v5495_v1 }
 0xa48   : > { %5315 = vmatpush3.bf16.msra.mxu1 %v5446_v40 }
 0xa49   : > { %5316 = vmatprep.subr.bf16.mxu1 %v5495_v1 }
 0xa4c   : > { %5317 = vmatpush3.bf16.msra.mxu1 %v5447_v41 }
 0xaf0   : > { %v3884_v55 = vpop.f32.mrb[84].mxu1 }
 0xaf1   : > { %v3835_v56 = vpop.f32.mrb[92].mxu0  ;;  %v5276_v58 = vpop.f32.mrb[85].mxu1 }
 0xaf2   : > { %v3988_v59 = vadd.f32 %v3884_v55, %v3835_v56  ;;  %v5270_v60 = vpop.f32.mrb[93].mxu0  ;;  %v3887_v61 = vpop.f32.mrb[86].mxu1 }
 0xaf3   : > { %v3838_v62 = vpop.f32.mrb[94].mxu0  ;;  %v5277_v63 = vpop.f32.mrb[87].mxu1 }
 0xaf4   : > { %v5271_v0 = vpop.f32.mrb[95].mxu0 }
 0xb00   : > { %v3982_v2 = vpop.f32.mrb[88].mxu1 }
 0xb01   : > { %v3933_v57 = vpop.f32.mrb[96].mxu0  ;;  %v5288_v3 = vpop.f32.mrb[89].mxu1 }
 0xb02   : > { %v3989_v5 = vadd.f32 %v3988_v59, %v3933_v57  ;;  %v5282_v6 = vpop.f32.mrb[97].mxu0  ;;  %v3985_v7 = vpop.f32.mrb[90].mxu1  ;;  %v4672_v3 = vld [vmem:[%s6487_s20] ss:$0 sm:$0xff] }
 0xb03   : > { %v3936_v4 = vpop.f32.mrb[98].mxu0  ;;  %v5289_v9 = vpop.f32.mrb[91].mxu1  ;;  %v4673_v6 = vld [vmem:[%s6488_s21] ss:$0 sm:$0xff] }
 0xb04   : > { %v3990_v10 = vadd.f32 %v3989_v5, %v3982_v2  ;;  %v5283_v11 = vpop.f32.mrb[99].mxu0 }
 0xb06   : > { %v3998_v12 = vadd.f32 %v4654_v8, %v3990_v10 }
 0xb08   : > { %v3999_v13 = vadd.f32 %v3998_v12, %v6052_v21  ;;  %v5437_v21 = vld [vmem:[%s6483_s16 + $0x8] sm:$0xff]  }
 0xb09   : > { %5293 = vmatpush3.bf16.msra.mxu0 %v5437_v21 }
 0xb0a   : > { %v4002_v14 = vsel %vm838_vm1, %v3999_v13, 0.0  ;;  %5294 = vmatprep.subr.bf16.mxu0 %v5495_v1 }
 0xb0b   : > { %4003 = vadd.xlane.f32.xlu0 %v4002_v14 }
 0xb0d   : > { %5295 = vmatpush3.bf16.msra.mxu0 %v5438_v24 }
 0xb0e   : > { %5296 = vmatprep.subr.bf16.mxu0 %v5495_v1  ;;  %v4663_v1 = vld [vmem:[%s6486_s19] ss:$0 sm:$0xff] }
 0xb11   : > { %5297 = vmatpush3.bf16.msra.mxu0 %v5439_v25 }
 0xb98   : > { %v4004_v17 = vpop.xlane.xlu0 %4003 }
 0xb99   : > { %v4005_v18 = vmul.f32 0.015625, %v4004_v17 }
 0xb9b   : > { %v4006_v19 = vsub.f32 %v3999_v13, %v4005_v18 }
 0xb9d   : > { %v4007_v20 = vmul.f32 %v4006_v19, %v4006_v19 }
 0xb9f   : > { %v4008_v22 = vsel %vm838_vm1, %v4007_v20, 0.0 }
 0xba0   : > { %4009 = vadd.xlane.f32.xlu1 %v4008_v22 }
 0xc2d   : > { %v4010_v30 = vpop.xlane.xlu1 %4009 }
 0xc2e   : > { %v4011_v31 = vmul.f32 0.015625, %v4010_v30 }
 0xc30   : > { %v4012_v32 = vadd.f32 1e-05, %v4011_v31 }
 0xc32   : > { %5482 = vrsqrt.f32 %v4012_v32 }
 0xc3c   : > { %v5483_v33 = vpop.eup %5482 }
 0xc3d   : > { %v4014_v35 = vmul.f32 %v5483_v33, %v4006_v19 }
 0xc3f   : > { %v4021_v37 = vmul.f32 %v4655_v34, %v4014_v35 }
 0xc41   : > { %v4028_v38 = vadd.f32 %v4656_v36, %v4021_v37 }
 0xc43   : > { %v4029_v39 = vpack.c.bf16 %v4028_v38, %v4028_v38 }
 0xc45   : > { %5299 = vmatmul.mubr.msk.bf16.vlgmr.msra.gmra.mrb[100].mxu0 %vm838_vm1, %v4029_v39 }
 0xd18   : > { %v4106_v43 = vpop.f32.mrb[100].mxu0 }
 0xd19   : > { %v4107_v44 = vadd.f32 %v4657_v42, %v4106_v43  ;;  %v5300_v45 = vpop.f32.mrb[101].mxu0 }
 0xd1a   : > { %v4109_v46 = vpop.f32.mrb[102].mxu0 }
 0xd1b   : > { %v4112_v47 = vmax.f32 %v4107_v44, 0.0  ;;  %v5301_v48 = vpop.f32.mrb[103].mxu0 }
 0xd1d   : > { %v4113_v49 = vpack.c.bf16 %v4112_v47, %v4112_v47 }
 0xd1f   : > { %5319 = vmatmul.mubr.bf16.vlgmr.msra.gmra.mrb[92].mxu1 %v4113_v49 }
 0xdf2   : > { %v4219_v50 = vpop.f32.mrb[92].mxu1 }
 0xdf3   : > { %v4220_v51 = vadd.f32 %v4663_v1, %v4219_v50  ;;  %v5320_v52 = vpop.f32.mrb[93].mxu1 }
 0xdf4   : > { %v4222_v53 = vpop.f32.mrb[94].mxu1 }
 0xdf5   : > { %v5321_v54 = vpop.f32.mrb[95].mxu1  ;;  %v4225_v55 = vadd.f32 %v4220_v51, %v4028_v38 }
 0xdf7   : > { %v4228_v56 = vsel %vm838_vm1, %v4225_v55, 0.0 }
 0xdf8   : > { %4229 = vadd.xlane.f32.xlu0 %v4228_v56 }
 0xe85   : > { %v4230_v58 = vpop.xlane.xlu0 %4229 }
 0xe86   : > { %v4231_v59 = vmul.f32 0.015625, %v4230_v58 }
 0xe88   : > { %v4232_v60 = vsub.f32 %v4225_v55, %v4231_v59 }
 0xe8a   : > { %v4233_v61 = vmul.f32 %v4232_v60, %v4232_v60 }
 0xe8c   : > { %v4234_v62 = vsel %vm838_vm1, %v4233_v61, 0.0 }
 0xe8d   : > { %4235 = vadd.xlane.f32.xlu1 %v4234_v62 }
 0xf1a   : > { %v4236_v63 = vpop.xlane.xlu1 %4235 }
 0xf1b   : > { %v4237_v0 = vmul.f32 0.015625, %v4236_v63 }
 0xf1d   : > { %v4238_v2 = vadd.f32 1e-05, %v4237_v0 }
 0xf1f   : > { %5484 = vrsqrt.f32 %v4238_v2 }
 0xf29   : > { %v5485_v57 = vpop.eup %5484 }
 0xf2a   : > { %v4240_v5 = vmul.f32 %v5485_v57, %v4232_v60 }
 0xf2c   : > { %v4247_v7 = vmul.f32 %v4672_v3, %v4240_v5 }
 0xf2e   : > { %v4254_v8 = vadd.f32 %v4673_v6, %v4247_v7 }
 0xf30   : > { %v4255_v4 = vpack.c.bf16 %v4254_v8, %v4254_v8 }
 0xf32   : > { %4257 = vst.msk [vmem:[%s749_s1] sm:$0xf] %vm4256_vm5, %v4255_v4 }
 0xf33 PF: > { %s34_s5 = sadd.s32 1, %s5493_s5  }
 0xf34   : > { %p31_p4 = scmp.ge.s32.totalorder %s34_s5, 4  }
 0xf36   :  { %33 = sbr.rel (!%p31_p4) target bundleno = 10 (0xa), region = 157 }

// kernel: transformer_model_forward.8
= control target key start
LH: loop header
LB: loop body
LE: loop exit
PB: predicated region body
PF: predicated region fallthrough
CT: control target
= control target key end

     0   :  { %s6508_s0 = inlined_call_operand.vmem [shape: bf16[2,8,64], index: 0, kind: input, shape index: {}]   ;;  %s6509_s1 = inlined_call_operand.vmem [shape: bf16[2,8,64], index: 1, kind: input, shape index: {}]   ;;  %s6510_s2 = inlined_call_operand.vmem [shape: f32[8,8], index: 2, kind: input, shape index: {}]   ;;  %s6511_s3 = inlined_call_operand.vmem [shape: f32[8,8], index: 3, kind: input, shape index: {}]   ;;  %s6512_s4 = inlined_call_operand.vmem [shape: bf16[3,4,64,16], index: 4, kind: input, shape index: {}]   ;;  %s6513_s5 = inlined_call_operand.vmem [shape: f32[3,4,1,16], index: 5, kind: input, shape index: {}]   ;;  %s6514_s6 = inlined_call_operand.vmem [shape: bf16[4,16,64], index: 6, kind: input, shape index: {}]   ;;  %s6515_s7 = inlined_call_operand.vmem [shape: f32[1,64], index: 7, kind: input, shape index: {}]   ;;  %s6516_s8 = inlined_call_operand.vmem [shape: f32[1,64], index: 8, kind: input, shape index: {}]   ;;  %s6517_s9 = inlined_call_operand.vmem [shape: f32[1,64], index: 9, kind: input, shape index: {}]   ;;  %s6518_s10 = inlined_call_operand.vmem [shape: bf16[3,4,64,16], index: 10, kind: input, shape index: {}]   ;;  %s6519_s11 = inlined_call_operand.vmem [shape: f32[3,4,1,16], index: 11, kind: input, shape index: {}]   ;;  %s6520_s12 = inlined_call_operand.vmem [shape: bf16[4,16,64], index: 12, kind: input, shape index: {}]   ;;  %s6521_s13 = inlined_call_operand.vmem [shape: f32[1,64], index: 13, kind: input, shape index: {}]   ;;  %s6522_s14 = inlined_call_operand.vmem [shape: f32[1,64], index: 14, kind: input, shape index: {}]   ;;  %s6523_s15 = inlined_call_operand.vmem [shape: f32[1,64], index: 15, kind: input, shape index: {}]   ;;  %s6524_s16 = inlined_call_operand.vmem [shape: bf16[64,128], index: 16, kind: input, shape index: {}]   ;;  %s6525_s17 = inlined_call_operand.vmem [shape: f32[1,128], index: 17, kind: input, shape index: {}]   ;;  %s6526_s18 = inlined_call_operand.vmem [shape: bf16[128,64], index: 18, kind: input, shape index: {}]   ;;  %s6527_s19 = inlined_call_operand.vmem [shape: f32[1,64], index: 19, kind: input, shape index: {}]   ;;  %s6528_s20 = inlined_call_operand.vmem [shape: f32[1,64], index: 20, kind: input, shape index: {}]   ;;  %s6529_s21 = inlined_call_operand.vmem [shape: f32[1,64], index: 21, kind: input, shape index: {}]   ;;  %s6530_s22 = inlined_call_operand.vmem [shape: f32[1,64], index: 22, kind: input, shape index: {}]   ;;  %s6531_s23 = inlined_call_operand.vmem [shape: f32[1,64], index: 23, kind: input, shape index: {}]   ;;  %s6532_s24 = inlined_call_operand.vmem [shape: bf16[2,8,64], index: 24, kind: output, shape index: {}]  }
   0x1   :  { %6536 = sst [smem:[#allocation2_spill]] %s6508_s0 }
   0x2   :  { %6537 = sst [smem:[#allocation3_spill]] %s6509_s1 }
   0x3   :  { %6538 = sst [smem:[#allocation4_spill]] %s6510_s2 }
   0x4   :  { %6539 = sst [smem:[#allocation5_spill]] %s6511_s3 }
   0x5   :  { %6540 = sst [smem:[#allocation6_spill]] %s6512_s4 }
   0x6   :  { %6541 = sst [smem:[#allocation7_spill]] %s6513_s5  ;;  %s5655_s5 = smov 0  }
   0x7   :  { %6542 = sst [smem:[#allocation8_spill]] %s6514_s6 }
   0x8   :  { %6543 = sst [smem:[#allocation9_spill]] %s6515_s7 }
   0x9   :  { %6544 = sst [smem:[#allocation10_spill]] %s6516_s8 }
   0xa LB: > { %s4352_s26 = sadd.s32 4294967295, %s5526_s5   ;;  %p4356_p0 = scmp.ge.s32.totalorder %s5526_s5, 1  ;;  %s5526_s5 = sphi %s5655_s5, %s34_s5  }
   0xb   : > { %p670_p1 = scmp.lt.s32.totalorder %s5526_s5, 3 }
   0xd   : > { %p671_p2 = pnand %p4356_p0, %p670_p1 }
   0xe   : > { %s6545_s6 = sld [smem:[#allocation6_spill]] (!%p671_p2)  ;;  %v5528_v1 = vmov (!%p671_p2), 0.0   ;;  %vm5529_vm0 = vmmov (!%p671_p2), 0   ;;  %p738_p3 = scmp.lt.s32.totalorder (!%p671_p2), %s4352_s26, 1  ;;  %vm838_vm1 = vcmask (!%p671_p2), 523264   ;;  %vm1718_vm2 = vcmask (!%p671_p2), 130048  }
   0xf   : > { %674 = sbr.rel (%p671_p2) target bundleno = 4204 (0x106c), region = 116  ;;  %4889 = vmatprep.subr.bf16.mxu0 (!%p671_p2), %v5528_v1  ;;  %4901 = vmatprep.subr.bf16.mxu1 (!%p671_p2), %v5528_v1  ;;  %s6546_s7 = sld [smem:[#allocation2_spill]] (!%p671_p2)  ;;  %vm1959_vm3 = vcmask (!%p671_p2), 1043456   ;;  %vm1903_vm4 = vcmask (!%p671_p2), 64512   ;;  %vm4285_vm5 = vcmask (!%p671_p2), 519168  }
  0x10   : > { %4897 = vmatprep.mubr.msk.bf16.mxu0 (!%p671_p2), %vm5529_vm0, %v5528_v1  ;;  %4909 = vmatprep.mubr.msk.bf16.mxu1 (!%p671_p2), %vm5529_vm0, %v5528_v1  ;;  %s6547_s2 = sld [smem:[#allocation7_spill]] (!%p671_p2)  ;;  %s6548_s29 = sld [smem:[#allocation4_spill]] (!%p671_p2) }
  0x11   : > { %s6549_s4 = sld [smem:[#allocation8_spill]] (!%p671_p2)  ;;  %s6550_s8 = sld [smem:[#allocation9_spill]] (!%p671_p2) }
  0x12   : > { %s6551_s25 = sld [smem:[#allocation10_spill]] (!%p671_p2) }
  0x14   : > { %v5363_v0 = vld [vmem:[%s6545_s6] sm:$0xff] (!%p671_p2)   ;;  %v5365_v3 = vld [vmem:[%s6545_s6 + $0x8] sm:$0xff] (!%p671_p2)   ;;  %v5367_v5 = vld [vmem:[%s6545_s6 + $0x10] sm:$0xff] (!%p671_p2)  }
  0x15   : > { %v5364_v2 = vld [vmem:[%s6545_s6 + $0x20] sm:$0xff] (!%p671_p2)   ;;  %4890 = vmatpush3.bf16.msra.mxu0 (!%p671_p2), %v5363_v0  ;;  %v5366_v4 = vld [vmem:[%s6545_s6 + $0x28] sm:$0xff] (!%p671_p2)   ;;  %v5368_v6 = vld [vmem:[%s6545_s6 + $0x30] sm:$0xff] (!%p671_p2)  }
  0x16   : > { %4902 = vmatpush3.bf16.msra.mxu1 %v5364_v2  ;;  %4891 = vmatprep.subr.bf16.mxu0 %v5528_v1  ;;  %s6555_s26 = smov (!%p738_p3, %s4352_s26), 1  ;;  %v5369_v7 = vld [vmem:[%s6545_s6 + $0x18] sm:$0xff]   ;;  %v5371_v10 = vld [vmem:[%s6545_s6 + $0x40] sm:$0xff]   ;;  %v5373_v12 = vld [vmem:[%s6545_s6 + $0x48] sm:$0xff]  }
  0x17   : > { %4903 = vmatprep.subr.bf16.mxu1 %v5528_v1  ;;  %s5690_s27 = sshll.u32 %s6555_s26, 2  ;;  %v5370_v8 = vld [vmem:[%s6545_s6 + $0x38] sm:$0xff]   ;;  %v5372_v11 = vld [vmem:[%s6545_s6 + $0x60] sm:$0xff]   ;;  %v5374_v13 = vld [vmem:[%s6545_s6 + $0x68] sm:$0xff]   ;;  %s6553_s26 = sld [smem:[#allocation5_spill]] }
  0x18   : > { %s5700_s30 = scalar_lea.vmem %s6546_s7, %s5690_s27  ;;  %v5375_v14 = vld [vmem:[%s6545_s6 + $0x50] sm:$0xff]   ;;  %v5377_v16 = vld [vmem:[%s6545_s6 + $0x58] sm:$0xff]   ;;  %v5379_v18 = vld [vmem:[%s6545_s6 + $0x80] sm:$0xff]   ;;  %s6552_s7 = sld [smem:[#allocation3_spill]] }
  0x19   : > { %4892 = vmatpush3.bf16.msra.mxu0 %v5365_v3  ;;  %v5708_v9 = vld [vmem:[%s5700_s30] sm:$0xf]  ;;  %v5376_v15 = vld [vmem:[%s6545_s6 + $0x70] sm:$0xff]   ;;  %v5378_v17 = vld [vmem:[%s6545_s6 + $0x78] sm:$0xff]   ;;  %s749_s0 = scalar_lea.vmem %s6532_s24, %s5690_s27 }
  0x1a   : > { %4904 = vmatpush3.bf16.msra.mxu1 %v5366_v4  ;;  %4893 = vmatprep.subr.bf16.mxu0 %v5528_v1  ;;  %v5380_v19 = vld [vmem:[%s6545_s6 + $0xa0] sm:$0xff]   ;;  %v5381_v20 = vld [vmem:[%s6545_s6 + $0x88] sm:$0xff]   ;;  %v5383_v22 = vld [vmem:[%s6545_s6 + $0x90] sm:$0xff]  }
  0x1b   : > { %4905 = vmatprep.subr.bf16.mxu1 %v5528_v1  ;;  %v5382_v21 = vld [vmem:[%s6545_s6 + $0xa8] sm:$0xff]   ;;  %v5384_v23 = vld [vmem:[%s6545_s6 + $0xb0] sm:$0xff]   ;;  %v5385_v24 = vld [vmem:[%s6545_s6 + $0x98] sm:$0xff]  }
  0x1c   : > { %v5386_v25 = vld [vmem:[%s6545_s6 + $0xb8] sm:$0xff]   ;;  %v5387_v26 = vld [vmem:[%s6545_s6 + $0xc0] sm:$0xff]   ;;  %v5389_v28 = vld [vmem:[%s6545_s6 + $0xc8] sm:$0xff]  }
  0x1d   : > { %4894 = vmatpush3.bf16.msra.mxu0 %v5367_v5  ;;  %v5388_v27 = vld [vmem:[%s6545_s6 + $0xe0] sm:$0xff]   ;;  %v5390_v29 = vld [vmem:[%s6545_s6 + $0xe8] sm:$0xff]   ;;  %v5391_v30 = vld [vmem:[%s6545_s6 + $0xd0] sm:$0xff]  }
  0x1e   : > { %4906 = vmatpush3.bf16.msra.mxu1 %v5368_v6  ;;  %4895 = vmatprep.subr.bf16.mxu0 %v5528_v1  ;;  %v5392_v31 = vld [vmem:[%s6545_s6 + $0xf0] sm:$0xff]   ;;  %v5393_v32 = vld [vmem:[%s6545_s6 + $0xd8] sm:$0xff]   ;;  %v5395_v34 = vld [vmem:[%s6545_s6 + $0x100] sm:$0xff]   ;;  %s745_s3 = scalar_lea.vmem %s6552_s7, %s5690_s27 }
  0x1f   : > { %4907 = vmatprep.subr.bf16.mxu1 %v5528_v1  ;;  %v5394_v33 = vld [vmem:[%s6545_s6 + $0xf8] sm:$0xff]   ;;  %v5396_v35 = vld [vmem:[%s6545_s6 + $0x108] sm:$0xff]   ;;  %v5397_v36 = vld [vmem:[%s6545_s6 + $0x110] sm:$0xff]  }
  0x20   : > { %v5398_v37 = vld [vmem:[%s6545_s6 + $0x118] sm:$0xff]   ;;  %v5399_v38 = vld [vmem:[%s6545_s6 + $0x120] sm:$0xff]   ;;  %v5401_v40 = vld [vmem:[%s6545_s6 + $0x128] sm:$0xff]  }
  0x21   : > { %4896 = vmatpush3.bf16.msra.mxu0 %v5369_v7  ;;  %v5400_v39 = vld [vmem:[%s6545_s6 + $0x140] sm:$0xff]   ;;  %v5402_v41 = vld [vmem:[%s6545_s6 + $0x148] sm:$0xff]   ;;  %v5403_v42 = vld [vmem:[%s6545_s6 + $0x130] sm:$0xff]  }
  0x22   : > { %4908 = vmatpush3.bf16.msra.mxu1 %v5370_v8  ;;  %4913 = vmatprep.subr.bf16.mxu0 %v5528_v1  ;;  %v5404_v43 = vld [vmem:[%s6545_s6 + $0x150] sm:$0xff]   ;;  %v5405_v44 = vld [vmem:[%s6545_s6 + $0x138] sm:$0xff]   ;;  %v5407_v46 = vld [vmem:[%s6545_s6 + $0x160] sm:$0xff]  }
  0x23   : > { %4925 = vmatprep.subr.bf16.mxu1 %v5528_v1  ;;  %v5406_v45 = vld [vmem:[%s6545_s6 + $0x158] sm:$0xff]   ;;  %v5408_v47 = vld [vmem:[%s6545_s6 + $0x168] sm:$0xff]   ;;  %v5409_v48 = vld [vmem:[%s6545_s6 + $0x170] sm:$0xff]  }
  0x24   : > { %4898 = vmatmul.mubr.msk.bf16.vlgmr.msra.gmra.mrb[0].mxu0 %vm838_vm1, %v5708_v9  ;;  %v5410_v49 = vld [vmem:[%s6545_s6 + $0x178] sm:$0xff]   ;;  %v4420_v3 = vld [vmem:[%s6547_s2 + $0x4] ss:$0 sm:$0xff] }
  0x25   : > { %4910 = vmatmul.mubr.msk.bf16.vlgmr.msra.gmra.mrb[0].mxu1 %vm838_vm1, %v5708_v9  ;;  %4914 = vmatpush3.bf16.msra.mxu0 %v5371_v10 }
  0x26   : > { %4926 = vmatpush3.bf16.msra.mxu1 %v5372_v11  ;;  %4915 = vmatprep.subr.bf16.mxu0 %v5528_v1 }
  0x27   : > { %4927 = vmatprep.subr.bf16.mxu1 %v5528_v1  ;;  %4921 = vmatprep.mubr.msk.bf16.mxu0 %vm5529_vm0, %v5528_v1 }
  0x28   : > { %4933 = vmatprep.mubr.msk.bf16.mxu1 %vm5529_vm0, %v5528_v1 }
  0x29   : > { %4916 = vmatpush3.bf16.msra.mxu0 %v5373_v12 }
  0x2a   : > { %4928 = vmatpush3.bf16.msra.mxu1 %v5374_v13  ;;  %4917 = vmatprep.subr.bf16.mxu0 %v5528_v1 }
  0x2b   : > { %4929 = vmatprep.subr.bf16.mxu1 %v5528_v1 }
  0x2d   : > { %4918 = vmatpush3.bf16.msra.mxu0 %v5375_v14  ;;  %v4360_v14 = vld [vmem:[%s6547_s2] ss:$0 sm:$0xff] }
  0x2e   : > { %4930 = vmatpush3.bf16.msra.mxu1 %v5376_v15  ;;  %4919 = vmatprep.subr.bf16.mxu0 %v5528_v1 }
  0x2f   : > { %4931 = vmatprep.subr.bf16.mxu1 %v5528_v1 }
  0x31   : > { %4920 = vmatpush3.bf16.msra.mxu0 %v5377_v16 }
  0x32   : > { %4932 = vmatpush3.bf16.msra.mxu1 %v5378_v17  ;;  %4937 = vmatprep.subr.bf16.mxu0 %v5528_v1 }
  0x33   : > { %4949 = vmatprep.subr.bf16.mxu1 %v5528_v1 }
  0x34   : > { %4922 = vmatmul.mubr.msk.bf16.vlgmr.msra.gmra.mrb[4].mxu0 %vm838_vm1, %v5708_v9 }
  0x35   : > { %4934 = vmatmul.mubr.msk.bf16.vlgmr.msra.gmra.mrb[4].mxu1 %vm838_vm1, %v5708_v9  ;;  %4938 = vmatpush3.bf16.msra.mxu0 %v5379_v18 }
  0x36   : > { %4950 = vmatpush3.bf16.msra.mxu1 %v5380_v19  ;;  %4939 = vmatprep.subr.bf16.mxu0 %v5528_v1 }
  0x37   : > { %4951 = vmatprep.subr.bf16.mxu1 %v5528_v1  ;;  %4945 = vmatprep.mubr.msk.bf16.mxu0 %vm5529_vm0, %v5528_v1 }
  0x38   : > { %4957 = vmatprep.mubr.msk.bf16.mxu1 %vm5529_vm0, %v5528_v1 }
  0x39   : > { %4940 = vmatpush3.bf16.msra.mxu0 %v5381_v20 }
  0x3a   : > { %4952 = vmatpush3.bf16.msra.mxu1 %v5382_v21  ;;  %4941 = vmatprep.subr.bf16.mxu0 %v5528_v1  ;;  %v4361_v21 = vld [vmem:[%s6547_s2 + $0x1] ss:$0 sm:$0xff] }
  0x3b   : > { %4953 = vmatprep.subr.bf16.mxu1 %v5528_v1 }
  0x3d   : > { %4942 = vmatpush3.bf16.msra.mxu0 %v5383_v22 }
  0x3e   : > { %4954 = vmatpush3.bf16.msra.mxu1 %v5384_v23  ;;  %4943 = vmatprep.subr.bf16.mxu0 %v5528_v1  ;;  %v4422_v23 = vld [vmem:[%s6547_s2 + $0x6] ss:$0 sm:$0xff] }
  0x3f   : > { %4955 = vmatprep.subr.bf16.mxu1 %v5528_v1 }
  0x41   : > { %4944 = vmatpush3.bf16.msra.mxu0 %v5385_v24 }
  0x42   : > { %4956 = vmatpush3.bf16.msra.mxu1 %v5386_v25  ;;  %4961 = vmatprep.subr.bf16.mxu0 %v5528_v1  ;;  %v4423_v25 = vld [vmem:[%s6547_s2 + $0x7] ss:$0 sm:$0xff] }
  0x43   : > { %4973 = vmatprep.subr.bf16.mxu1 %v5528_v1 }
  0x44   : > { %4946 = vmatmul.mubr.msk.bf16.vlgmr.msra.gmra.mrb[8].mxu0 %vm838_vm1, %v5708_v9 }
  0x45   : > { %4958 = vmatmul.mubr.msk.bf16.vlgmr.msra.gmra.mrb[8].mxu1 %vm838_vm1, %v5708_v9  ;;  %4962 = vmatpush3.bf16.msra.mxu0 %v5387_v26 }
  0x46   : > { %4974 = vmatpush3.bf16.msra.mxu1 %v5388_v27  ;;  %4963 = vmatprep.subr.bf16.mxu0 %v5528_v1 }
  0x47   : > { %4975 = vmatprep.subr.bf16.mxu1 %v5528_v1  ;;  %4969 = vmatprep.mubr.msk.bf16.mxu0 %vm5529_vm0, %v5528_v1 }
  0x48   : > { %4981 = vmatprep.mubr.msk.bf16.mxu1 %vm5529_vm0, %v5528_v1 }
  0x49   : > { %4964 = vmatpush3.bf16.msra.mxu0 %v5389_v28 }
  0x4a   : > { %4976 = vmatpush3.bf16.msra.mxu1 %v5390_v29  ;;  %4965 = vmatprep.subr.bf16.mxu0 %v5528_v1 }
  0x4b   : > { %4977 = vmatprep.subr.bf16.mxu1 %v5528_v1 }
  0x4d   : > { %4966 = vmatpush3.bf16.msra.mxu0 %v5391_v30 }
  0x4e   : > { %4978 = vmatpush3.bf16.msra.mxu1 %v5392_v31  ;;  %4967 = vmatprep.subr.bf16.mxu0 %v5528_v1 }
  0x4f   : > { %4979 = vmatprep.subr.bf16.mxu1 %v5528_v1 }
  0x51   : > { %4968 = vmatpush3.bf16.msra.mxu0 %v5393_v32 }
  0x52   : > { %4980 = vmatpush3.bf16.msra.mxu1 %v5394_v33  ;;  %4985 = vmatprep.subr.bf16.mxu0 %v5528_v1 }
  0x53   : > { %4997 = vmatprep.subr.bf16.mxu1 %v5528_v1 }
  0x54   : > { %4970 = vmatmul.mubr.msk.bf16.vlgmr.msra.gmra.mrb[12].mxu0 %vm838_vm1, %v5708_v9 }
  0x55   : > { %4982 = vmatmul.mubr.msk.bf16.vlgmr.msra.gmra.mrb[12].mxu1 %vm838_vm1, %v5708_v9  ;;  %4986 = vmatpush3.bf16.msra.mxu0 %v5395_v34 }
  0x56   : > { %4987 = vmatprep.subr.bf16.mxu0 %v5528_v1  ;;  %4993 = vmatprep.mubr.msk.bf16.mxu0 %vm5529_vm0, %v5528_v1 }
  0x57   : > { %5005 = vmatprep.mubr.msk.bf16.mxu1 %vm5529_vm0, %v5528_v1  ;;  %4998 = vmatpush3.bf16.msra.mxu1 %v5399_v38 }
  0x58   : > { %4999 = vmatprep.subr.bf16.mxu1 %v5528_v1 }
  0x59   : > { %4988 = vmatpush3.bf16.msra.mxu0 %v5396_v35 }
  0x5a   : > { %4989 = vmatprep.subr.bf16.mxu0 %v5528_v1 }
  0x5b   : > { %5000 = vmatpush3.bf16.msra.mxu1 %v5401_v40  ;;  %v4363_v40 = vld [vmem:[%s6547_s2 + $0x3] ss:$0 sm:$0xff] }
  0x5c   : > { %5001 = vmatprep.subr.bf16.mxu1 %v5528_v1 }
  0x5d   : > { %4990 = vmatpush3.bf16.msra.mxu0 %v5397_v36 }
  0x5e   : > { %4991 = vmatprep.subr.bf16.mxu0 %v5528_v1 }
  0x5f   : > { %5002 = vmatpush3.bf16.msra.mxu1 %v5403_v42 }
  0x60   : > { %5003 = vmatprep.subr.bf16.mxu1 %v5528_v1 }
  0x61   : > { %4992 = vmatpush3.bf16.msra.mxu0 %v5398_v37  ;;  %v4362_v37 = vld [vmem:[%s6547_s2 + $0x2] ss:$0 sm:$0xff] }
  0x62   : > { %5009 = vmatprep.subr.bf16.mxu0 %v5528_v1 }
  0x63   : > { %5004 = vmatpush3.bf16.msra.mxu1 %v5405_v44 }
  0x64   : > { %4994 = vmatmul.mubr.msk.bf16.vlgmr.msra.gmra.mrb[16].mxu0 %vm838_vm1, %v5708_v9  ;;  %5021 = vmatprep.subr.bf16.mxu1 %v5528_v1 }
  0x65   : > { %5017 = vmatprep.mubr.msk.bf16.mxu0 %vm5529_vm0, %v5528_v1  ;;  %5010 = vmatpush3.bf16.msra.mxu0 %v5400_v39 }
  0x66   : > { %5011 = vmatprep.subr.bf16.mxu0 %v5528_v1  ;;  %5006 = vmatmul.mubr.msk.bf16.vlgmr.msra.gmra.mrb[16].mxu1 %vm838_vm1, %v5708_v9 }
  0x67   : > { %5022 = vmatpush3.bf16.msra.mxu1 %v5407_v46  ;;  %5029 = vmatprep.mubr.msk.bf16.mxu1 %vm5529_vm0, %v5528_v1 }
  0x68   : > { %5023 = vmatprep.subr.bf16.mxu1 %v5528_v1 }
  0x69   : > { %5012 = vmatpush3.bf16.msra.mxu0 %v5402_v41 }
  0x6a   : > { %5013 = vmatprep.subr.bf16.mxu0 %v5528_v1 }
  0x6b   : > { %5024 = vmatpush3.bf16.msra.mxu1 %v5408_v47  ;;  %v4480_v47 = vld [vmem:[%s6547_s2 + $0x8] ss:$0 sm:$0xff] }
  0x6c   : > { %5025 = vmatprep.subr.bf16.mxu1 %v5528_v1 }
  0x6d   : > { %5014 = vmatpush3.bf16.msra.mxu0 %v5404_v43 }
  0x6e   : > { %5015 = vmatprep.subr.bf16.mxu0 %v5528_v1 }
  0x6f   : > { %5026 = vmatpush3.bf16.msra.mxu1 %v5409_v48 }
  0x70   : > { %5027 = vmatprep.subr.bf16.mxu1 %v5528_v1 }
  0x71   : > { %5016 = vmatpush3.bf16.msra.mxu0 %v5406_v45 }
  0x72   : > { %5033 = vmatprep.subr.bf16.mxu0 %v5528_v1 }
  0x73   : > { %5028 = vmatpush3.bf16.msra.mxu1 %v5410_v49 }
  0x74   : > { %5018 = vmatmul.mubr.msk.bf16.vlgmr.msra.gmra.mrb[20].mxu0 %vm838_vm1, %v5708_v9  ;;  %5051 = vmatprep.subr.bf16.mxu1 %v5528_v1 }
  0x75   : > { %5035 = vmatprep.mubr.msk.bf16.mxu0 %vm5529_vm0, %v5528_v1 }
  0x76   : > { %5030 = vmatmul.mubr.msk.bf16.vlgmr.msra.gmra.mrb[20].mxu1 %vm838_vm1, %v5708_v9  ;;  %v4421_v9 = vld [vmem:[%s6547_s2 + $0x5] ss:$0 sm:$0xff] }
  0x77   : > { %5053 = vmatprep.mubr.msk.bf16.mxu1 %vm5529_vm0, %v5528_v1 }
  0xf7   : > { %v876_v50 = vpop.f32.mrb[0].mxu0 }
  0xf8   : > { %v4899_v51 = vpop.f32.mrb[1].mxu0  ;;  %v940_v52 = vpop.f32.mrb[0].mxu1  ;;  %v877_v18 = vadd.f32 %v4360_v14, %v876_v50 }
  0xf9   : > { %v879_v53 = vpop.f32.mrb[2].mxu0  ;;  %v4911_v54 = vpop.f32.mrb[1].mxu1  ;;  %v941_v24 = vadd.f32 %v4361_v21, %v940_v52 }
  0xfa   : > { %v4900_v55 = vpop.f32.mrb[3].mxu0  ;;  %v943_v56 = vpop.f32.mrb[2].mxu1  ;;  %v1710_v20 = vpack.c.bf16 %v877_v18, %v877_v18 }
  0xfb   : > { %v4912_v57 = vpop.f32.mrb[3].mxu1  ;;  %v1711_v33 = vpack.c.bf16 %v941_v24, %v941_v24  ;;  %v4481_v55 = vld [vmem:[%s6547_s2 + $0x9] ss:$0 sm:$0xff] }
 0x107   : > { %v1004_v58 = vpop.f32.mrb[4].mxu0 }
 0x108   : > { %v4923_v59 = vpop.f32.mrb[5].mxu0  ;;  %v1068_v60 = vpop.f32.mrb[4].mxu1  ;;  %v1005_v43 = vadd.f32 %v4362_v37, %v1004_v58 }
 0x109   : > { %v1007_v61 = vpop.f32.mrb[6].mxu0  ;;  %v4935_v62 = vpop.f32.mrb[5].mxu1  ;;  %v1069_v44 = vadd.f32 %v4363_v40, %v1068_v60 }
 0x10a   : > { %v4924_v63 = vpop.f32.mrb[7].mxu0  ;;  %v1071_v0 = vpop.f32.mrb[6].mxu1  ;;  %v1712_v45 = vpack.c.bf16 %v1005_v43, %v1005_v43 }
 0x10b   : > { %v4936_v2 = vpop.f32.mrb[7].mxu1  ;;  %v1713_v46 = vpack.c.bf16 %v1069_v44, %v1069_v44 }
 0x117   : > { %v1194_v4 = vpop.f32.mrb[8].mxu0 }
 0x118   : > { %v1195_v5 = vadd.f32 %v4420_v3, %v1194_v4  ;;  %v4947_v6 = vpop.f32.mrb[9].mxu0  ;;  %v1258_v7 = vpop.f32.mrb[8].mxu1 }
 0x119   : > { %v1197_v8 = vpop.f32.mrb[10].mxu0  ;;  %v4959_v10 = vpop.f32.mrb[9].mxu1  ;;  %v1259_v17 = vadd.f32 %v4421_v9, %v1258_v7 }
 0x11a   : > { %v1714_v11 = vpack.c.bf16 %v1195_v5, %v1195_v5  ;;  %v4948_v12 = vpop.f32.mrb[11].mxu0  ;;  %v1261_v13 = vpop.f32.mrb[10].mxu1  ;;  %v753_v8 = vld [vmem:[%s6548_s29] sm:$0xff] }
 0x11b   : > { %v4960_v15 = vpop.f32.mrb[11].mxu1  ;;  %v1715_v19 = vpack.c.bf16 %v1259_v17, %v1259_v17 }
 0x11c   : > { %v1723_v16 = vsel %vm1718_vm2, %v1714_v11, 0 }
 0x11d   : > { %5034 = vmatpush3.bf16.xpose.msra.mxu0 %v1723_v16  ;;  %v1769_v22 = vsel %vm1718_vm2, %v1715_v19, 0 }
 0x11e   : > { %5039 = vmatprep.subr.bf16.mxu0 %v5528_v1 }
 0x124   : > { %5036 = vmatmul.mubr.msk.bf16.vlgmr.msra.gmra.mrb[24].mxu0 %vm1718_vm2, %v1710_v20 }
 0x125   : > { %5040 = vmatpush3.bf16.xpose.msra.mxu0 %v1769_v22  ;;  %5041 = vmatprep.mubr.msk.bf16.mxu0 %vm5529_vm0, %v5528_v1 }
 0x126   : > { %5045 = vmatprep.subr.bf16.mxu0 %v5528_v1 }
 0x127   : > { %v1322_v26 = vpop.f32.mrb[12].mxu0 }
 0x128   : > { %v1323_v27 = vadd.f32 %v4422_v23, %v1322_v26  ;;  %v1386_v28 = vpop.f32.mrb[12].mxu1  ;;  %v4971_v29 = vpop.f32.mrb[13].mxu0 }
 0x129   : > { %v1387_v30 = vadd.f32 %v4423_v25, %v1386_v28  ;;  %v1325_v31 = vpop.f32.mrb[14].mxu0  ;;  %v4983_v32 = vpop.f32.mrb[13].mxu1 }
 0x12a   : > { %v1716_v34 = vpack.c.bf16 %v1323_v27, %v1323_v27  ;;  %v4972_v35 = vpop.f32.mrb[15].mxu0  ;;  %v1389_v36 = vpop.f32.mrb[14].mxu1 }
 0x12b   : > { %v1717_v38 = vpack.c.bf16 %v1387_v30, %v1387_v30  ;;  %v4984_v39 = vpop.f32.mrb[15].mxu1 }
 0x12c   : > { %v1815_v41 = vsel %vm1718_vm2, %v1716_v34, 0  ;;  %5042 = vmatmul.mubr.msk.bf16.vlgmr.msra.gmra.mrb[28].mxu0 %vm1718_vm2, %v1711_v33 }
 0x12d   : > { %v1861_v42 = vsel %vm1718_vm2, %v1717_v38, 0  ;;  %5046 = vmatpush3.bf16.xpose.msra.mxu0 %v1815_v41  ;;  %5047 = vmatprep.mubr.msk.bf16.mxu0 %vm5529_vm0, %v5528_v1 }
 0x12e   : > { %5052 = vmatpush3.bf16.xpose.msra.mxu1 %v1861_v42  ;;  %5057 = vmatprep.subr.bf16.mxu0 %v5528_v1 }
 0x12f   : > { %5063 = vmatprep.subr.bf16.mxu1 %v5528_v1 }
 0x134   : > { %5048 = vmatmul.mubr.msk.bf16.vlgmr.msra.gmra.mrb[32].mxu0 %vm1718_vm2, %v1712_v45 }
 0x135   : > { %5054 = vmatmul.mubr.msk.bf16.vlgmr.msra.gmra.mrb[24].mxu1 %vm1718_vm2, %v1713_v46  ;;  %5059 = vmatprep.mubr.msk.bf16.mxu0 %vm5529_vm0, %v5528_v1 }
 0x136   : > { %5065 = vmatprep.mubr.msk.bf16.mxu1 %vm5529_vm0, %v5528_v1 }
 0x137   : > { %v1512_v48 = vpop.f32.mrb[16].mxu0 }
 0x138   : > { %v1513_v49 = vadd.f32 %v4480_v47, %v1512_v48  ;;  %v4995_v50 = vpop.f32.mrb[17].mxu0 }
 0x139   : > { %v1515_v51 = vpop.f32.mrb[18].mxu0  ;;  %v1576_v56 = vpop.f32.mrb[16].mxu1 }
 0x13a   : > { %v1952_v52 = vpack.c.bf16 %v1513_v49, %v1513_v49  ;;  %v4996_v53 = vpop.f32.mrb[19].mxu0  ;;  %v1577_v58 = vadd.f32 %v4481_v55, %v1576_v56  ;;  %v5007_v59 = vpop.f32.mrb[17].mxu1 }
 0x13b   : > { %v1579_v61 = vpop.f32.mrb[18].mxu1 }
 0x13c   : > { %v1961_v54 = vsel %vm1959_vm3, %v1952_v52, 0  ;;  %v1953_v63 = vpack.c.bf16 %v1577_v58, %v1577_v58  ;;  %v5008_v0 = vpop.f32.mrb[19].mxu1  ;;  %v4483_v61 = vld [vmem:[%s6547_s2 + $0xb] ss:$0 sm:$0xff] }
 0x13d   : > { %5058 = vmatpush3.bf16.msra.mxu0 %v1961_v54  ;;  %v4482_v54 = vld [vmem:[%s6547_s2 + $0xa] ss:$0 sm:$0xff] }
 0x13e   : > { %5069 = vmatprep.subr.bf16.mxu0 %v5528_v1  ;;  %v2007_v3 = vsel %vm1959_vm3, %v1953_v63, 0 }
 0x13f   : > { %5064 = vmatpush3.bf16.msra.mxu1 %v2007_v3 }
 0x140   : > { %5075 = vmatprep.subr.bf16.mxu1 %v5528_v1 }
 0x147   : > { %v5972_v57 = vpop.f32.mrb[20].mxu0 }
 0x148   : > { %v5019_v60 = vpop.f32.mrb[21].mxu0  ;;  %v1641_v55 = vadd.f32 %v4482_v54, %v5972_v57 }
 0x149   : > { %v1643_v62 = vpop.f32.mrb[22].mxu0  ;;  %v5976_v4 = vpop.f32.mrb[20].mxu1 }
 0x14a   : > { %v5020_v2 = vpop.f32.mrb[23].mxu0  ;;  %v5031_v5 = vpop.f32.mrb[21].mxu1  ;;  %v1954_v59 = vpack.c.bf16 %v1641_v55, %v1641_v55  ;;  %v1705_v0 = vadd.f32 %v4483_v61, %v5976_v4 }
 0x14b   : > { %v1707_v6 = vpop.f32.mrb[22].mxu1 }
 0x14c   : > { %v5032_v7 = vpop.f32.mrb[23].mxu1  ;;  %v2053_v63 = vsel %vm1959_vm3, %v1954_v59, 0  ;;  %v1955_v3 = vpack.c.bf16 %v1705_v0, %v1705_v0 }
 0x1f7   : > { %v1759_v9 = vpop.f32.mrb[24].mxu0 }
 0x1f8   : > { %v1760_v10 = vadd.f32 %v1759_v9, %v753_v8  ;;  %v5037_v11 = vpop.f32.mrb[25].mxu0 }
 0x1f9   : > { %v1762_v12 = vpop.f32.mrb[26].mxu0 }
 0x1fa   : > { %v5038_v13 = vpop.f32.mrb[27].mxu0  ;;  %v1904_v14 = vsel %vm1903_vm4, %v1760_v10, -inf }
 0x1fb   : > { %1905 = vmax.xlane.f32.xlu0 %v1904_v14  ;;  %v5411_v14 = vld [vmem:[%s6549_s4] sm:$0xff]  }
 0x1ff   : > { %v1805_v15 = vpop.f32.mrb[28].mxu0 }
 0x200   : > { %v1806_v16 = vadd.f32 %v1805_v15, %v753_v8  ;;  %v5043_v17 = vpop.f32.mrb[29].mxu0  ;;  %v5412_v15 = vld [vmem:[%s6549_s4 + $0x8] sm:$0xff]  }
 0x201   : > { %v1808_v18 = vpop.f32.mrb[30].mxu0  ;;  %v5413_v17 = vld [vmem:[%s6549_s4 + $0x10] sm:$0xff]  }
 0x202   : > { %v5044_v19 = vpop.f32.mrb[31].mxu0  ;;  %v1907_v20 = vsel %vm1903_vm4, %v1806_v16, -inf }
 0x203   : > { %1908 = vmax.xlane.f32.xlu0 %v1907_v20 }
 0x207   : > { %v1851_v21 = vpop.f32.mrb[32].mxu0 }
 0x208   : > { %v1852_v22 = vadd.f32 %v1851_v21, %v753_v8  ;;  %v1897_v23 = vpop.f32.mrb[24].mxu1  ;;  %v5049_v24 = vpop.f32.mrb[33].mxu0 }
 0x209   : > { %v5055_v25 = vpop.f32.mrb[25].mxu1  ;;  %v1854_v26 = vpop.f32.mrb[34].mxu0  ;;  %v1898_v27 = vadd.f32 %v1897_v23, %v753_v8  ;;  %v2099_v8 = vsel %vm1959_vm3, %v1955_v3, 0  ;;  %v5414_v23 = vld [vmem:[%s6549_s4 + $0x18] sm:$0xff]  }
 0x20a   : > { %v1900_v28 = vpop.f32.mrb[26].mxu1  ;;  %v5050_v29 = vpop.f32.mrb[35].mxu0  ;;  %v1910_v30 = vsel %vm1903_vm4, %v1852_v22, -inf }
 0x20b   : > { %v5056_v31 = vpop.f32.mrb[27].mxu1  ;;  %1911 = vmax.xlane.f32.xlu1 %v1910_v30  ;;  %v1913_v32 = vsel %vm1903_vm4, %v1898_v27, -inf }
 0x20f   : > { %1914 = vmax.xlane.f32.xlu1 %v1913_v32 }
 0x288   : > { %v1906_v33 = vpop.xlane.xlu0 %1905 }
 0x289   : > { %v1916_v34 = vsub.f32 %v1760_v10, %v1906_v33 }
 0x28b   : > { %v1920_v35 = vmul.f32 1.442695, %v1916_v34 }
 0x28d   : > { %5479 = vpow2.f32 %v1920_v35 }
 0x290   : > { %v1909_v36 = vpop.xlane.xlu0 %1908 }
 0x291   : > { %v1917_v37 = vsub.f32 %v1806_v16, %v1909_v36 }
 0x293   : > { %v1922_v38 = vmul.f32 1.442695, %v1917_v37 }
 0x295   : > { %5481 = vpow2.f32 %v1922_v38 }
 0x297   : > { %v5480_v39 = vpop.eup %5479 }
 0x298   : > { %v1912_v40 = vpop.xlane.xlu1 %1911  ;;  %v1928_v41 = vsel %vm1903_vm4, %v5480_v39, 0.0 }
 0x299   : > { %v1918_v42 = vsub.f32 %v1852_v22, %v1912_v40  ;;  %1929 = vadd.xlane.f32.xlu0 %v1928_v41 }
 0x29b   : > { %v1924_v43 = vmul.f32 1.442695, %v1918_v42 }
 0x29c   : > { %v1915_v44 = vpop.xlane.xlu1 %1914 }
 0x29d   : > { %5483 = vpow2.f32 %v1924_v43  ;;  %v1919_v45 = vsub.f32 %v1898_v27, %v1915_v44 }
 0x29f   : > { %v5482_v46 = vpop.eup %5481  ;;  %v1926_v47 = vmul.f32 1.442695, %v1919_v45 }
 0x2a0   : > { %v1931_v48 = vsel %vm1903_vm4, %v5482_v46, 0.0 }
 0x2a1   : > { %5485 = vpow2.f32 %v1926_v47  ;;  %1932 = vadd.xlane.f32.xlu1 %v1931_v48 }
 0x2a7   : > { %v5484_v49 = vpop.eup %5483 }
 0x2a8   : > { %v1934_v50 = vsel %vm1903_vm4, %v5484_v49, 0.0 }
 0x2a9   : > { %1935 = vadd.xlane.f32.xlu0 %v1934_v50 }
 0x2ab   : > { %v5486_v51 = vpop.eup %5485 }
 0x2ac   : > { %v1937_v52 = vsel %vm1903_vm4, %v5486_v51, 0.0 }
 0x2ad   : > { %1938 = vadd.xlane.f32.xlu1 %v1937_v52 }
 0x326   : > { %v1930_v53 = vpop.xlane.xlu0 %1929 }
 0x327   : > { %5487 = vrcp.f32 %v1930_v53  ;;  %v4520_v53 = vld [vmem:[%s6550_s8] ss:$0 sm:$0xff] }
 0x32e   : > { %v1933_v56 = vpop.xlane.xlu1 %1932 }
 0x32f   : > { %5489 = vrcp.f32 %v1933_v56  ;;  %v5519_v56 = vld [vmem:[%s5700_s30] sm:$0xf] }
 0x331   : > { %v5488_v58 = vpop.eup %5487 }
 0x332   : > { %v1944_v60 = vmul.f32 %v5488_v58, %v5480_v39  ;;  %v752_v58 = vunpack.c.l.bf16 %v5519_v56  ;;  %v5455_v56 = vld [vmem:[%s6518_s10 + $0x140] sm:$0xff]  }
 0x334   : > { %v1948_v62 = vpack.c.bf16 %v1944_v60, %v1944_v60 }
 0x336   : > { %5060 = vmatmul.mubr.msk.bf16.vlgmr.msra.gmra.mrb[36].mxu0 %vm1903_vm4, %v1948_v62  ;;  %v1936_v2 = vpop.xlane.xlu0 %1935 }
 0x337   : > { %5070 = vmatpush3.bf16.msra.mxu0 %v2053_v63  ;;  %5491 = vrcp.f32 %v1936_v2  ;;  %5071 = vmatprep.mubr.msk.bf16.mxu0 %vm5529_vm0, %v5528_v1 }
 0x338   : > { %5081 = vmatprep.subr.bf16.mxu0 %v5528_v1 }
 0x339   : > { %v5490_v57 = vpop.eup %5489 }
 0x33a   : > { %v1945_v5 = vmul.f32 %v5490_v57, %v5482_v46  ;;  %v1939_v6 = vpop.xlane.xlu1 %1938 }
 0x33b   : > { %5493 = vrcp.f32 %v1939_v6  ;;  %v5415_v6 = vld [vmem:[%s6518_s10] sm:$0xff]  }
 0x33c   : > { %v1949_v7 = vpack.c.bf16 %v1945_v5, %v1945_v5 }
 0x33e   : > { %5066 = vmatmul.mubr.msk.bf16.vlgmr.msra.gmra.mrb[28].mxu1 %vm1903_vm4, %v1949_v7  ;;  %v5416_v7 = vld [vmem:[%s6518_s10 + $0x20] sm:$0xff]  }
 0x33f   : > { %5076 = vmatpush3.bf16.msra.mxu1 %v2099_v8  ;;  %5077 = vmatprep.mubr.msk.bf16.mxu1 %vm5529_vm0, %v5528_v1  ;;  %v5417_v8 = vld [vmem:[%s6518_s10 + $0x8] sm:$0xff]  }
 0x340   : > { %5087 = vmatprep.subr.bf16.mxu1 %v5528_v1 }
 0x341   : > { %v5492_v4 = vpop.eup %5491 }
 0x342   : > { %v1946_v9 = vmul.f32 %v5492_v4, %v5484_v49  ;;  %v5418_v4 = vld [vmem:[%s6518_s10 + $0x28] sm:$0xff]  }
 0x344   : > { %v1950_v10 = vpack.c.bf16 %v1946_v9, %v1946_v9  ;;  %v5419_v9 = vld [vmem:[%s6518_s10 + $0x10] sm:$0xff]  }
 0x345   : > { %v5494_v11 = vpop.eup %5493 }
 0x346   : > { %v1947_v12 = vmul.f32 %v5494_v11, %v5486_v51  ;;  %5072 = vmatmul.mubr.msk.bf16.vlgmr.msra.gmra.mrb[40].mxu0 %vm1903_vm4, %v1950_v10  ;;  %v5420_v10 = vld [vmem:[%s6518_s10 + $0x30] sm:$0xff]   ;;  %v5421_v11 = vld [vmem:[%s6518_s10 + $0x18] sm:$0xff]  }
 0x347   : > { %5083 = vmatprep.mubr.msk.bf16.mxu0 %vm5529_vm0, %v5528_v1  ;;  %5082 = vmatpush3.bf16.msra.mxu0 %v5411_v14 }
 0x348   : > { %v1951_v13 = vpack.c.bf16 %v1947_v12, %v1947_v12  ;;  %5093 = vmatprep.subr.bf16.mxu0 %v5528_v1  ;;  %v5422_v12 = vld [vmem:[%s6518_s10 + $0x38] sm:$0xff]  }
 0x34a   : > { %5078 = vmatmul.mubr.msk.bf16.vlgmr.msra.gmra.mrb[32].mxu1 %vm1903_vm4, %v1951_v13 }
 0x34b   : > { %5089 = vmatprep.mubr.msk.bf16.mxu1 %vm5529_vm0, %v5528_v1  ;;  %5088 = vmatpush3.bf16.msra.mxu1 %v5412_v15 }
 0x34c   : > { %5099 = vmatprep.subr.bf16.mxu1 %v5528_v1 }
 0x409   : > { %v1997_v16 = vpop.f32.mrb[36].mxu0 }
 0x40a   : > { %v2141_v18 = vpack.c.bf16 %v1997_v16, %v1997_v16  ;;  %v5061_v19 = vpop.f32.mrb[37].mxu0 }
 0x40b   : > { %v2000_v20 = vpop.f32.mrb[38].mxu0  ;;  %v4522_v19 = vld [vmem:[%s6517_s9] ss:$0 sm:$0xff] }
 0x40c   : > { %v5062_v21 = vpop.f32.mrb[39].mxu0  ;;  %5084 = vmatmul.mubr.msk.bf16.vlgmr.msra.gmra.mrb[44].mxu0 %vm1718_vm2, %v2141_v18 }
 0x40d   : > { %5094 = vmatpush3.bf16.msra.mxu0 %v5413_v17  ;;  %5095 = vmatprep.mubr.msk.bf16.mxu0 %vm5529_vm0, %v5528_v1  ;;  %v4521_v17 = vld [vmem:[%s6551_s25] ss:$0 sm:$0xff] }
 0x40e   : > { %5105 = vmatprep.subr.bf16.mxu0 %v5528_v1 }
 0x411   : > { %v2043_v22 = vpop.f32.mrb[28].mxu1 }
 0x412   : > { %v2142_v24 = vpack.c.bf16 %v2043_v22, %v2043_v22  ;;  %v5067_v25 = vpop.f32.mrb[29].mxu1  ;;  %v5423_v22 = vld [vmem:[%s6518_s10 + $0x40] sm:$0xff]  }
 0x413   : > { %v2046_v26 = vpop.f32.mrb[30].mxu1  ;;  %v5425_v25 = vld [vmem:[%s6518_s10 + $0x48] sm:$0xff]  }
 0x414   : > { %v5068_v27 = vpop.f32.mrb[31].mxu1  ;;  %5090 = vmatmul.mubr.msk.bf16.vlgmr.msra.gmra.mrb[36].mxu1 %vm1718_vm2, %v2142_v24  ;;  %v5426_v26 = vld [vmem:[%s6518_s10 + $0x68] sm:$0xff]  }
 0x415   : > { %5100 = vmatpush3.bf16.msra.mxu1 %v5414_v23  ;;  %5101 = vmatprep.mubr.msk.bf16.mxu1 %vm5529_vm0, %v5528_v1  ;;  %v5424_v23 = vld [vmem:[%s6518_s10 + $0x60] sm:$0xff]   ;;  %v5427_v27 = vld [vmem:[%s6518_s10 + $0x50] sm:$0xff]  }
 0x416   : > { %5117 = vmatprep.subr.bf16.mxu1 %v5528_v1 }
 0x419   : > { %v2089_v28 = vpop.f32.mrb[40].mxu0 }
 0x41a   : > { %v2143_v29 = vpack.c.bf16 %v2089_v28, %v2089_v28  ;;  %v5073_v30 = vpop.f32.mrb[41].mxu0  ;;  %v5428_v28 = vld [vmem:[%s6518_s10 + $0x70] sm:$0xff]  }
 0x41b   : > { %v2092_v31 = vpop.f32.mrb[42].mxu0  ;;  %v5430_v30 = vld [vmem:[%s6518_s10 + $0x78] sm:$0xff]  }
 0x41c   : > { %v5074_v32 = vpop.f32.mrb[43].mxu0  ;;  %5096 = vmatmul.mubr.msk.bf16.vlgmr.msra.gmra.mrb[48].mxu0 %vm1718_vm2, %v2143_v29  ;;  %v5429_v29 = vld [vmem:[%s6518_s10 + $0x58] sm:$0xff]   ;;  %v5431_v31 = vld [vmem:[%s6518_s10 + $0x80] sm:$0xff]  }
 0x41d   : > { %v2135_v33 = vpop.f32.mrb[32].mxu1  ;;  %5113 = vmatprep.mubr.msk.bf16.mxu0 %vm5529_vm0, %v5528_v1  ;;  %5106 = vmatpush3.bf16.msra.mxu0 %v5415_v6  ;;  %v5432_v32 = vld [vmem:[%s6518_s10 + $0xa0] sm:$0xff]  }
 0x41e   : > { %v2144_v34 = vpack.c.bf16 %v2135_v33, %v2135_v33  ;;  %v5079_v35 = vpop.f32.mrb[33].mxu1  ;;  %5107 = vmatprep.subr.bf16.mxu0 %v5528_v1  ;;  %v5433_v33 = vld [vmem:[%s6518_s10 + $0x88] sm:$0xff]  }
 0x41f   : > { %v2138_v36 = vpop.f32.mrb[34].mxu1  ;;  %v5435_v35 = vld [vmem:[%s6518_s10 + $0x90] sm:$0xff]  }
 0x420   : > { %v5080_v37 = vpop.f32.mrb[35].mxu1  ;;  %5102 = vmatmul.mubr.msk.bf16.vlgmr.msra.gmra.mrb[40].mxu1 %vm1718_vm2, %v2144_v34  ;;  %v5434_v34 = vld [vmem:[%s6518_s10 + $0xa8] sm:$0xff]   ;;  %v5436_v36 = vld [vmem:[%s6518_s10 + $0xb0] sm:$0xff]  }
 0x421   : > { %5125 = vmatprep.mubr.msk.bf16.mxu1 %vm5529_vm0, %v5528_v1  ;;  %5118 = vmatpush3.bf16.msra.mxu1 %v5416_v7  ;;  %v5437_v37 = vld [vmem:[%s6518_s10 + $0x98] sm:$0xff]  }
 0x422   : > { %5119 = vmatprep.subr.bf16.mxu1 %v5528_v1  ;;  %5108 = vmatpush3.bf16.msra.mxu0 %v5417_v8 }
 0x423   : > { %5109 = vmatprep.subr.bf16.mxu0 %v5528_v1 }
 0x425   : > { %5120 = vmatpush3.bf16.msra.mxu1 %v5418_v4 }
 0x426   : > { %5121 = vmatprep.subr.bf16.mxu1 %v5528_v1  ;;  %5110 = vmatpush3.bf16.msra.mxu0 %v5419_v9 }
 0x427   : > { %5111 = vmatprep.subr.bf16.mxu0 %v5528_v1 }
 0x429   : > { %5122 = vmatpush3.bf16.msra.mxu1 %v5420_v10 }
 0x42a   : > { %5123 = vmatprep.subr.bf16.mxu1 %v5528_v1  ;;  %5112 = vmatpush3.bf16.msra.mxu0 %v5421_v11 }
 0x42b   : > { %5129 = vmatprep.subr.bf16.mxu0 %v5528_v1 }
 0x42d   : > { %5124 = vmatpush3.bf16.msra.mxu1 %v5422_v12 }
 0x42e   : > { %5141 = vmatprep.subr.bf16.mxu1 %v5528_v1 }
 0x4df   : > { %v2196_v38 = vpop.f32.mrb[44].mxu0 }
 0x4e0   : > { %v5085_v39 = vpop.f32.mrb[45].mxu0 }
 0x4e1   : > { %v2199_v40 = vpop.f32.mrb[46].mxu0  ;;  %v6167_v39 = vld [vmem:[%s745_s3] sm:$0xf] }
 0x4e2   : > { %v5086_v41 = vpop.f32.mrb[47].mxu0  ;;  %v5439_v40 = vld [vmem:[%s6518_s10 + $0xc0] sm:$0xff]  }
 0x4e3   : > { %v5440_v41 = vld [vmem:[%s6518_s10 + $0xe0] sm:$0xff]  }
 0x4e7   : > { %v2245_v42 = vpop.f32.mrb[36].mxu1 }
 0x4e8   : > { %v2349_v43 = vadd.f32 %v2245_v42, %v2196_v38  ;;  %v5091_v44 = vpop.f32.mrb[37].mxu1  ;;  %v5438_v38 = vld [vmem:[%s6518_s10 + $0xb8] sm:$0xff]   ;;  %v5441_v42 = vld [vmem:[%s6518_s10 + $0xc8] sm:$0xff]  }
 0x4e9   : > { %v2248_v45 = vpop.f32.mrb[38].mxu1  ;;  %v5443_v44 = vld [vmem:[%s6518_s10 + $0xd0] sm:$0xff]  }
 0x4ea   : > { %v5092_v46 = vpop.f32.mrb[39].mxu1  ;;  %v5444_v45 = vld [vmem:[%s6518_s10 + $0xf0] sm:$0xff]  }
 0x4eb   : > { %v5445_v46 = vld [vmem:[%s6518_s10 + $0xd8] sm:$0xff]  }
 0x4ef   : > { %v2294_v47 = vpop.f32.mrb[48].mxu0 }
 0x4f0   : > { %v2350_v48 = vadd.f32 %v2349_v43, %v2294_v47  ;;  %v5097_v49 = vpop.f32.mrb[49].mxu0  ;;  %v5442_v43 = vld [vmem:[%s6518_s10 + $0xe8] sm:$0xff]   ;;  %v5446_v47 = vld [vmem:[%s6518_s10 + $0xf8] sm:$0xff]  }
 0x4f1   : > { %v2297_v50 = vpop.f32.mrb[50].mxu0  ;;  %v5448_v49 = vld [vmem:[%s6518_s10 + $0x120] sm:$0xff]  }
 0x4f2   : > { %v5098_v51 = vpop.f32.mrb[51].mxu0  ;;  %v5449_v50 = vld [vmem:[%s6518_s10 + $0x108] sm:$0xff]  }
 0x4f3   : > { %v2343_v52 = vpop.f32.mrb[40].mxu1  ;;  %v5450_v51 = vld [vmem:[%s6518_s10 + $0x128] sm:$0xff]  }
 0x4f4   : > { %v2351_v54 = vadd.f32 %v2350_v48, %v2343_v52  ;;  %v5103_v55 = vpop.f32.mrb[41].mxu1  ;;  %v5447_v48 = vld [vmem:[%s6518_s10 + $0x100] sm:$0xff]   ;;  %v5451_v52 = vld [vmem:[%s6518_s10 + $0x110] sm:$0xff]  }
 0x4f5   : > { %v2346_v59 = vpop.f32.mrb[42].mxu1  ;;  %v5454_v55 = vld [vmem:[%s6518_s10 + $0x138] sm:$0xff]  }
 0x4f6   : > { %v2359_v60 = vadd.f32 %v4520_v53, %v2351_v54  ;;  %v5104_v61 = vpop.f32.mrb[43].mxu1  ;;  %v5452_v53 = vld [vmem:[%s6518_s10 + $0x130] sm:$0xff]   ;;  %v5453_v54 = vld [vmem:[%s6518_s10 + $0x118] sm:$0xff]   ;;  %v5457_v59 = vld [vmem:[%s6518_s10 + $0x148] sm:$0xff]  }
 0x4f7   : > { %v5459_v61 = vld [vmem:[%s6518_s10 + $0x150] sm:$0xff]  }
 0x4f8   : > { %v2360_v62 = vadd.f32 %v2359_v60, %v752_v58  ;;  %v5456_v58 = vld [vmem:[%s6518_s10 + $0x160] sm:$0xff]   ;;  %v5458_v60 = vld [vmem:[%s6518_s10 + $0x168] sm:$0xff]  }
 0x4fa   : > { %v2363_v63 = vsel %vm838_vm1, %v2360_v62, 0.0 }
 0x4fb   : > { %2364 = vadd.xlane.f32.xlu0 %v2363_v63  ;;  %v5461_v63 = vld [vmem:[%s6518_s10 + $0x158] sm:$0xff]  }
 0x588   : > { %v2365_v0 = vpop.xlane.xlu0 %2364 }
 0x589   : > { %v2367_v2 = vmul.f32 0.015625, %v2365_v0  ;;  %v5462_v0 = vld [vmem:[%s6518_s10 + $0x178] sm:$0xff]  }
 0x58b   : > { %v2368_v57 = vsub.f32 %v2360_v62, %v2367_v2  ;;  %v5460_v62 = vld [vmem:[%s6518_s10 + $0x170] sm:$0xff]  }
 0x58d   : > { %v2369_v3 = vmul.f32 %v2368_v57, %v2368_v57 }
 0x58f   : > { %v2370_v5 = vsel %vm838_vm1, %v2369_v3, 0.0 }
 0x590   : > { %2371 = vadd.xlane.f32.xlu1 %v2370_v5 }
 0x61d   : > { %v2372_v13 = vpop.xlane.xlu1 %2371 }
 0x61e   : > { %v2373_v14 = vmul.f32 0.015625, %v2372_v13 }
 0x620   : > { %v2374_v15 = vadd.f32 1e-05, %v2373_v14 }
 0x622   : > { %5495 = vrsqrt.f32 %v2374_v15 }
 0x62c   : > { %v5496_v16 = vpop.eup %5495 }
 0x62d   : > { %v2376_v18 = vmul.f32 %v5496_v16, %v2368_v57 }
 0x62f   : > { %v2383_v20 = vmul.f32 %v4521_v17, %v2376_v18  ;;  %v4583_v17 = vld [vmem:[%s6519_s11 + $0x4] ss:$0 sm:$0xff]  ;;  %v4584_v18 = vld [vmem:[%s6519_s11 + $0x5] ss:$0 sm:$0xff] }
 0x631   : > { %v6085_v21 = vadd.f32 %v4522_v19, %v2383_v20 }
 0x633   : > { %v2391_v24 = vpack.c.bf16 %v6085_v21, %v6085_v21 }
 0x635   : > { %5114 = vmatmul.mubr.msk.bf16.vlgmr.msra.gmra.mrb[52].mxu0 %vm838_vm1, %v2391_v24  ;;  %5126 = vmatmul.mubr.msk.bf16.vlgmr.msra.gmra.mrb[44].mxu1 %vm838_vm1, %v2391_v24 }
 0x636   : > { %5130 = vmatpush3.bf16.msra.mxu0 %v5423_v22  ;;  %5142 = vmatpush3.bf16.msra.mxu1 %v5424_v23 }
 0x637   : > { %5131 = vmatprep.subr.bf16.mxu0 %v5528_v1  ;;  %5143 = vmatprep.subr.bf16.mxu1 %v5528_v1 }
 0x638   : > { %5137 = vmatprep.mubr.msk.bf16.mxu0 %vm5529_vm0, %v5528_v1  ;;  %5149 = vmatprep.mubr.msk.bf16.mxu1 %vm5529_vm0, %v5528_v1 }
 0x63a   : > { %5132 = vmatpush3.bf16.msra.mxu0 %v5425_v25  ;;  %5144 = vmatpush3.bf16.msra.mxu1 %v5426_v26 }
 0x63b   : > { %5133 = vmatprep.subr.bf16.mxu0 %v5528_v1  ;;  %5145 = vmatprep.subr.bf16.mxu1 %v5528_v1 }
 0x63e   : > { %5134 = vmatpush3.bf16.msra.mxu0 %v5427_v27  ;;  %5146 = vmatpush3.bf16.msra.mxu1 %v5428_v28 }
 0x63f   : > { %5135 = vmatprep.subr.bf16.mxu0 %v5528_v1  ;;  %5147 = vmatprep.subr.bf16.mxu1 %v5528_v1 }
 0x642   : > { %5136 = vmatpush3.bf16.msra.mxu0 %v5429_v29  ;;  %5148 = vmatpush3.bf16.msra.mxu1 %v5430_v30 }
 0x643   : > { %5153 = vmatprep.subr.bf16.mxu0 %v5528_v1  ;;  %5165 = vmatprep.subr.bf16.mxu1 %v5528_v1 }
 0x645   : > { %5138 = vmatmul.mubr.msk.bf16.vlgmr.msra.gmra.mrb[56].mxu0 %vm838_vm1, %v2391_v24  ;;  %5150 = vmatmul.mubr.msk.bf16.vlgmr.msra.gmra.mrb[48].mxu1 %vm838_vm1, %v2391_v24 }
 0x646   : > { %5154 = vmatpush3.bf16.msra.mxu0 %v5431_v31  ;;  %5166 = vmatpush3.bf16.msra.mxu1 %v5432_v32  ;;  %v4523_v32 = vld [vmem:[%s6519_s11] ss:$0 sm:$0xff] }
 0x647   : > { %5155 = vmatprep.subr.bf16.mxu0 %v5528_v1  ;;  %5167 = vmatprep.subr.bf16.mxu1 %v5528_v1 }
 0x648   : > { %5161 = vmatprep.mubr.msk.bf16.mxu0 %vm5529_vm0, %v5528_v1  ;;  %5173 = vmatprep.mubr.msk.bf16.mxu1 %vm5529_vm0, %v5528_v1 }
 0x64a   : > { %5156 = vmatpush3.bf16.msra.mxu0 %v5433_v33  ;;  %5168 = vmatpush3.bf16.msra.mxu1 %v5434_v34  ;;  %v4524_v33 = vld [vmem:[%s6519_s11 + $0x1] ss:$0 sm:$0xff] }
 0x64b   : > { %5157 = vmatprep.subr.bf16.mxu0 %v5528_v1  ;;  %5169 = vmatprep.subr.bf16.mxu1 %v5528_v1 }
 0x64e   : > { %5158 = vmatpush3.bf16.msra.mxu0 %v5435_v35  ;;  %5170 = vmatpush3.bf16.msra.mxu1 %v5436_v36 }
 0x64f   : > { %5159 = vmatprep.subr.bf16.mxu0 %v5528_v1  ;;  %5171 = vmatprep.subr.bf16.mxu1 %v5528_v1 }
 0x652   : > { %5160 = vmatpush3.bf16.msra.mxu0 %v5437_v37  ;;  %5172 = vmatpush3.bf16.msra.mxu1 %v5438_v38 }
 0x653   : > { %5177 = vmatprep.subr.bf16.mxu0 %v5528_v1  ;;  %5189 = vmatprep.subr.bf16.mxu1 %v5528_v1 }
 0x655   : > { %5162 = vmatmul.mubr.msk.bf16.vlgmr.msra.gmra.mrb[60].mxu0 %vm838_vm1, %v6167_v39  ;;  %5174 = vmatmul.mubr.msk.bf16.vlgmr.msra.gmra.mrb[52].mxu1 %vm838_vm1, %v6167_v39 }
 0x656   : > { %5178 = vmatpush3.bf16.msra.mxu0 %v5439_v40  ;;  %5190 = vmatpush3.bf16.msra.mxu1 %v5440_v41  ;;  %v4585_v40 = vld [vmem:[%s6519_s11 + $0x6] ss:$0 sm:$0xff]  ;;  %v4586_v41 = vld [vmem:[%s6519_s11 + $0x7] ss:$0 sm:$0xff] }
 0x657   : > { %5179 = vmatprep.subr.bf16.mxu0 %v5528_v1  ;;  %5191 = vmatprep.subr.bf16.mxu1 %v5528_v1 }
 0x658   : > { %5185 = vmatprep.mubr.msk.bf16.mxu0 %vm5529_vm0, %v5528_v1  ;;  %5197 = vmatprep.mubr.msk.bf16.mxu1 %vm5529_vm0, %v5528_v1 }
 0x65a   : > { %5180 = vmatpush3.bf16.msra.mxu0 %v5441_v42  ;;  %5192 = vmatpush3.bf16.msra.mxu1 %v5442_v43 }
 0x65b   : > { %5181 = vmatprep.subr.bf16.mxu0 %v5528_v1  ;;  %5193 = vmatprep.subr.bf16.mxu1 %v5528_v1 }
 0x65e   : > { %5182 = vmatpush3.bf16.msra.mxu0 %v5443_v44  ;;  %5194 = vmatpush3.bf16.msra.mxu1 %v5444_v45 }
 0x65f   : > { %5183 = vmatprep.subr.bf16.mxu0 %v5528_v1  ;;  %5195 = vmatprep.subr.bf16.mxu1 %v5528_v1 }
 0x662   : > { %5184 = vmatpush3.bf16.msra.mxu0 %v5445_v46  ;;  %5196 = vmatpush3.bf16.msra.mxu1 %v5446_v47 }
 0x663   : > { %5201 = vmatprep.subr.bf16.mxu0 %v5528_v1  ;;  %5213 = vmatprep.subr.bf16.mxu1 %v5528_v1 }
 0x665   : > { %5186 = vmatmul.mubr.msk.bf16.vlgmr.msra.gmra.mrb[64].mxu0 %vm838_vm1, %v6167_v39  ;;  %5198 = vmatmul.mubr.msk.bf16.vlgmr.msra.gmra.mrb[56].mxu1 %vm838_vm1, %v6167_v39 }
 0x666   : > { %5209 = vmatprep.mubr.msk.bf16.mxu0 %vm5529_vm0, %v5528_v1  ;;  %5221 = vmatprep.mubr.msk.bf16.mxu1 %vm5529_vm0, %v5528_v1 }
 0x667   : > { %5202 = vmatpush3.bf16.msra.mxu0 %v5447_v48  ;;  %5214 = vmatpush3.bf16.msra.mxu1 %v5448_v49 }
 0x668   : > { %5203 = vmatprep.subr.bf16.mxu0 %v5528_v1  ;;  %5215 = vmatprep.subr.bf16.mxu1 %v5528_v1 }
 0x66b   : > { %5204 = vmatpush3.bf16.msra.mxu0 %v5449_v50  ;;  %5216 = vmatpush3.bf16.msra.mxu1 %v5450_v51 }
 0x66c   : > { %5205 = vmatprep.subr.bf16.mxu0 %v5528_v1  ;;  %5217 = vmatprep.subr.bf16.mxu1 %v5528_v1 }
 0x66f   : > { %5206 = vmatpush3.bf16.msra.mxu0 %v5451_v52  ;;  %5218 = vmatpush3.bf16.msra.mxu1 %v5452_v53 }
 0x670   : > { %5207 = vmatprep.subr.bf16.mxu0 %v5528_v1  ;;  %5219 = vmatprep.subr.bf16.mxu1 %v5528_v1 }
 0x673   : > { %5208 = vmatpush3.bf16.msra.mxu0 %v5453_v54  ;;  %5220 = vmatpush3.bf16.msra.mxu1 %v5454_v55  ;;  %v4525_v54 = vld [vmem:[%s6519_s11 + $0x2] ss:$0 sm:$0xff]  ;;  %v4526_v55 = vld [vmem:[%s6519_s11 + $0x3] ss:$0 sm:$0xff] }
 0x674   : > { %5225 = vmatprep.subr.bf16.mxu0 %v5528_v1  ;;  %5237 = vmatprep.subr.bf16.mxu1 %v5528_v1 }
 0x676   : > { %5210 = vmatmul.mubr.msk.bf16.vlgmr.msra.gmra.mrb[68].mxu0 %vm838_vm1, %v6167_v39  ;;  %5222 = vmatmul.mubr.msk.bf16.vlgmr.msra.gmra.mrb[60].mxu1 %vm838_vm1, %v6167_v39 }
 0x677   : > { %5226 = vmatpush3.bf16.msra.mxu0 %v5455_v56  ;;  %5238 = vmatpush3.bf16.msra.mxu1 %v5456_v58 }
 0x678   : > { %5227 = vmatprep.subr.bf16.mxu0 %v5528_v1  ;;  %5239 = vmatprep.subr.bf16.mxu1 %v5528_v1 }
 0x679   : > { %5233 = vmatprep.mubr.msk.bf16.mxu0 %vm5529_vm0, %v5528_v1  ;;  %5245 = vmatprep.mubr.msk.bf16.mxu1 %vm5529_vm0, %v5528_v1 }
 0x67b   : > { %5228 = vmatpush3.bf16.msra.mxu0 %v5457_v59  ;;  %5240 = vmatpush3.bf16.msra.mxu1 %v5458_v60 }
 0x67c   : > { %5229 = vmatprep.subr.bf16.mxu0 %v5528_v1  ;;  %5241 = vmatprep.subr.bf16.mxu1 %v5528_v1 }
 0x67f   : > { %5230 = vmatpush3.bf16.msra.mxu0 %v5459_v61  ;;  %5242 = vmatpush3.bf16.msra.mxu1 %v5460_v62 }
 0x680   : > { %5231 = vmatprep.subr.bf16.mxu0 %v5528_v1  ;;  %5243 = vmatprep.subr.bf16.mxu1 %v5528_v1 }
 0x683   : > { %5232 = vmatpush3.bf16.msra.mxu0 %v5461_v63  ;;  %5244 = vmatpush3.bf16.msra.mxu1 %v5462_v0  ;;  %v4643_v63 = vld [vmem:[%s6519_s11 + $0x8] ss:$0 sm:$0xff]  ;;  %v4644_v0 = vld [vmem:[%s6519_s11 + $0x9] ss:$0 sm:$0xff] }
 0x684   : > { %5249 = vmatprep.subr.bf16.mxu0 %v5528_v1  ;;  %5255 = vmatprep.subr.bf16.mxu1 %v5528_v1 }
 0x686   : > { %5234 = vmatmul.mubr.msk.bf16.vlgmr.msra.gmra.mrb[72].mxu0 %vm838_vm1, %v6167_v39  ;;  %5246 = vmatmul.mubr.msk.bf16.vlgmr.msra.gmra.mrb[64].mxu1 %vm838_vm1, %v6167_v39 }
 0x687   : > { %5251 = vmatprep.mubr.msk.bf16.mxu0 %vm5529_vm0, %v5528_v1  ;;  %5257 = vmatprep.mubr.msk.bf16.mxu1 %vm5529_vm0, %v5528_v1 }
 0x708   : > { %v2515_v2 = vpop.f32.mrb[52].mxu0  ;;  %v2579_v57 = vpop.f32.mrb[44].mxu1 }
 0x709   : > { %v5115_v3 = vpop.f32.mrb[53].mxu0  ;;  %v5127_v5 = vpop.f32.mrb[45].mxu1  ;;  %v2516_v36 = vadd.f32 %v4523_v32, %v2515_v2  ;;  %v2580_v37 = vadd.f32 %v4524_v33, %v2579_v57 }
 0x70a   : > { %v2518_v6 = vpop.f32.mrb[54].mxu0  ;;  %v2582_v7 = vpop.f32.mrb[46].mxu1 }
 0x70b   : > { %v5116_v8 = vpop.f32.mrb[55].mxu0  ;;  %v5128_v4 = vpop.f32.mrb[47].mxu1  ;;  %v3352_v38 = vpack.c.bf16 %v2516_v36, %v2516_v36  ;;  %v3353_v39 = vpack.c.bf16 %v2580_v37, %v2580_v37 }
 0x718   : > { %v2643_v9 = vpop.f32.mrb[56].mxu0  ;;  %v2707_v10 = vpop.f32.mrb[48].mxu1 }
 0x719   : > { %v5139_v11 = vpop.f32.mrb[57].mxu0  ;;  %v5151_v12 = vpop.f32.mrb[49].mxu1  ;;  %v2644_v59 = vadd.f32 %v4525_v54, %v2643_v9  ;;  %v2708_v60 = vadd.f32 %v4526_v55, %v2707_v10 }
 0x71a   : > { %v2646_v13 = vpop.f32.mrb[58].mxu0  ;;  %v2710_v14 = vpop.f32.mrb[50].mxu1 }
 0x71b   : > { %v5140_v15 = vpop.f32.mrb[59].mxu0  ;;  %v5152_v16 = vpop.f32.mrb[51].mxu1  ;;  %v3354_v61 = vpack.c.bf16 %v2644_v59, %v2644_v59  ;;  %v3355_v62 = vpack.c.bf16 %v2708_v60, %v2708_v60 }
 0x728   : > { %v2836_v19 = vpop.f32.mrb[60].mxu0  ;;  %v2900_v20 = vpop.f32.mrb[52].mxu1 }
 0x729   : > { %v2837_v22 = vadd.f32 %v4583_v17, %v2836_v19  ;;  %v2901_v23 = vadd.f32 %v4584_v18, %v2900_v20  ;;  %v5163_v24 = vpop.f32.mrb[61].mxu0  ;;  %v5175_v25 = vpop.f32.mrb[53].mxu1 }
 0x72a   : > { %v2839_v26 = vpop.f32.mrb[62].mxu0  ;;  %v2903_v27 = vpop.f32.mrb[54].mxu1  ;;  %v2393_v24 = vld [vmem:[%s6553_s26] sm:$0xff] }
 0x72b   : > { %v3356_v28 = vpack.c.bf16 %v2837_v22, %v2837_v22  ;;  %v3357_v29 = vpack.c.bf16 %v2901_v23, %v2901_v23  ;;  %v5164_v30 = vpop.f32.mrb[63].mxu0  ;;  %v5176_v31 = vpop.f32.mrb[55].mxu1 }
 0x72d   : > { %v3364_v34 = vsel %vm1718_vm2, %v3356_v28, 0  ;;  %v3410_v35 = vsel %vm1718_vm2, %v3357_v29, 0 }
 0x72e   : > { %5250 = vmatpush3.bf16.xpose.msra.mxu0 %v3364_v34  ;;  %5256 = vmatpush3.bf16.xpose.msra.mxu1 %v3410_v35 }
 0x72f   : > { %5261 = vmatprep.subr.bf16.mxu0 %v5528_v1  ;;  %5267 = vmatprep.subr.bf16.mxu1 %v5528_v1 }
 0x735   : > { %5252 = vmatmul.mubr.msk.bf16.vlgmr.msra.gmra.mrb[76].mxu0 %vm1718_vm2, %v3352_v38  ;;  %5258 = vmatmul.mubr.msk.bf16.vlgmr.msra.gmra.mrb[68].mxu1 %vm1718_vm2, %v3353_v39 }
 0x736   : > { %5263 = vmatprep.mubr.msk.bf16.mxu0 %vm5529_vm0, %v5528_v1  ;;  %5269 = vmatprep.mubr.msk.bf16.mxu1 %vm5529_vm0, %v5528_v1 }
 0x738   : > { %v2964_v42 = vpop.f32.mrb[64].mxu0  ;;  %v3028_v43 = vpop.f32.mrb[56].mxu1 }
 0x739   : > { %v2965_v44 = vadd.f32 %v4585_v40, %v2964_v42  ;;  %v3029_v45 = vadd.f32 %v4586_v41, %v3028_v43  ;;  %v5187_v46 = vpop.f32.mrb[65].mxu0  ;;  %v5199_v47 = vpop.f32.mrb[57].mxu1 }
 0x73a   : > { %v2967_v48 = vpop.f32.mrb[66].mxu0  ;;  %v3031_v49 = vpop.f32.mrb[58].mxu1 }
 0x73b   : > { %v3358_v50 = vpack.c.bf16 %v2965_v44, %v2965_v44  ;;  %v3359_v51 = vpack.c.bf16 %v3029_v45, %v3029_v45  ;;  %v5188_v52 = vpop.f32.mrb[67].mxu0  ;;  %v5200_v53 = vpop.f32.mrb[59].mxu1 }
 0x73d   : > { %v3456_v56 = vsel %vm1718_vm2, %v3358_v50, 0  ;;  %v3502_v58 = vsel %vm1718_vm2, %v3359_v51, 0 }
 0x73e   : > { %5262 = vmatpush3.bf16.xpose.msra.mxu0 %v3456_v56  ;;  %5268 = vmatpush3.bf16.xpose.msra.mxu1 %v3502_v58 }
 0x73f   : > { %5273 = vmatprep.subr.bf16.mxu0 %v5528_v1  ;;  %5279 = vmatprep.subr.bf16.mxu1 %v5528_v1 }
 0x745   : > { %5264 = vmatmul.mubr.msk.bf16.vlgmr.msra.gmra.mrb[80].mxu0 %vm1718_vm2, %v3354_v61  ;;  %5270 = vmatmul.mubr.msk.bf16.vlgmr.msra.gmra.mrb[72].mxu1 %vm1718_vm2, %v3355_v62 }
 0x746   : > { %5275 = vmatprep.mubr.msk.bf16.mxu0 %vm5529_vm0, %v5528_v1  ;;  %5281 = vmatprep.mubr.msk.bf16.mxu1 %vm5529_vm0, %v5528_v1 }
 0x749   : > { %v3154_v2 = vpop.f32.mrb[68].mxu0  ;;  %v3218_v57 = vpop.f32.mrb[60].mxu1 }
 0x74a   : > { %v3155_v3 = vadd.f32 %v4643_v63, %v3154_v2  ;;  %v5211_v5 = vpop.f32.mrb[69].mxu0  ;;  %v3219_v6 = vadd.f32 %v4644_v0, %v3218_v57  ;;  %v5223_v7 = vpop.f32.mrb[61].mxu1 }
 0x74b   : > { %v3157_v8 = vpop.f32.mrb[70].mxu0  ;;  %v3221_v4 = vpop.f32.mrb[62].mxu1 }
 0x74c   : > { %v3592_v9 = vpack.c.bf16 %v3155_v3, %v3155_v3  ;;  %v3593_v10 = vpack.c.bf16 %v3219_v6, %v3219_v6  ;;  %v5212_v11 = vpop.f32.mrb[71].mxu0  ;;  %v5224_v12 = vpop.f32.mrb[63].mxu1  ;;  %v4646_v4 = vld [vmem:[%s6519_s11 + $0xb] ss:$0 sm:$0xff] }
 0x74e   : > { %v3600_v13 = vsel %vm1959_vm3, %v3592_v9, 0  ;;  %v3646_v14 = vsel %vm1959_vm3, %v3593_v10, 0  ;;  %v4645_v9 = vld [vmem:[%s6519_s11 + $0xa] ss:$0 sm:$0xff] }
 0x74f   : > { %5274 = vmatpush3.bf16.msra.mxu0 %v3600_v13  ;;  %5280 = vmatpush3.bf16.msra.mxu1 %v3646_v14 }
 0x750   : > { %5285 = vmatprep.subr.bf16.mxu0 %v5528_v1  ;;  %5291 = vmatprep.subr.bf16.mxu1 %v5528_v1 }
 0x759   : > { %v6353_v15 = vpop.f32.mrb[72].mxu0  ;;  %v6355_v16 = vpop.f32.mrb[64].mxu1 }
 0x75a   : > { %v5235_v17 = vpop.f32.mrb[73].mxu0  ;;  %v5247_v18 = vpop.f32.mrb[65].mxu1  ;;  %v3347_v10 = vadd.f32 %v4646_v4, %v6355_v16  ;;  %v3283_v11 = vadd.f32 %v4645_v9, %v6353_v15 }
 0x75b   : > { %v3285_v19 = vpop.f32.mrb[74].mxu0  ;;  %v3349_v20 = vpop.f32.mrb[66].mxu1 }
 0x75c   : > { %v5236_v22 = vpop.f32.mrb[75].mxu0  ;;  %v5248_v23 = vpop.f32.mrb[67].mxu1  ;;  %v3595_v14 = vpack.c.bf16 %v3347_v10, %v3347_v10  ;;  %v3594_v18 = vpack.c.bf16 %v3283_v11, %v3283_v11 }
 0x75e   : > { %v3738_v23 = vsel %vm1959_vm3, %v3595_v14, 0 }
 0x808   : > { %v3400_v25 = vpop.f32.mrb[76].mxu0  ;;  %v3446_v26 = vpop.f32.mrb[68].mxu1 }
 0x809   : > { %v3401_v27 = vadd.f32 %v3400_v25, %v2393_v24  ;;  %v3447_v28 = vadd.f32 %v3446_v26, %v2393_v24  ;;  %v5253_v29 = vpop.f32.mrb[77].mxu0  ;;  %v5259_v30 = vpop.f32.mrb[69].mxu1  ;;  %v3692_v25 = vsel %vm1959_vm3, %v3594_v18, 0 }
 0x80a   : > { %v3403_v31 = vpop.f32.mrb[78].mxu0  ;;  %v3449_v32 = vpop.f32.mrb[70].mxu1 }
 0x80b   : > { %v5254_v33 = vpop.f32.mrb[79].mxu0  ;;  %v5260_v34 = vpop.f32.mrb[71].mxu1  ;;  %v3547_v35 = vsel %vm1903_vm4, %v3447_v28, -inf  ;;  %v3544_v36 = vsel %vm1903_vm4, %v3401_v27, -inf  ;;  %v5463_v31 = vld [vmem:[%s6520_s12] sm:$0xff]   ;;  %v5464_v32 = vld [vmem:[%s6520_s12 + $0x8] sm:$0xff]  }
 0x80c   : > { %3548 = vmax.xlane.f32.xlu1 %v3547_v35  ;;  %3545 = vmax.xlane.f32.xlu0 %v3544_v36  ;;  %v5466_v34 = vld [vmem:[%s6520_s12 + $0x18] sm:$0xff]  }
 0x818   : > { %v3492_v37 = vpop.f32.mrb[80].mxu0  ;;  %v3538_v38 = vpop.f32.mrb[72].mxu1 }
 0x819   : > { %v3493_v39 = vadd.f32 %v3492_v37, %v2393_v24  ;;  %v3539_v40 = vadd.f32 %v3538_v38, %v2393_v24  ;;  %v5265_v41 = vpop.f32.mrb[81].mxu0  ;;  %v5271_v42 = vpop.f32.mrb[73].mxu1  ;;  %v5465_v38 = vld [vmem:[%s6520_s12 + $0x10] sm:$0xff]  }
 0x81a   : > { %v3495_v43 = vpop.f32.mrb[82].mxu0  ;;  %v3541_v44 = vpop.f32.mrb[74].mxu1 }
 0x81b   : > { %v5266_v45 = vpop.f32.mrb[83].mxu0  ;;  %v5272_v46 = vpop.f32.mrb[75].mxu1  ;;  %v3553_v47 = vsel %vm1903_vm4, %v3539_v40, -inf  ;;  %v3550_v48 = vsel %vm1903_vm4, %v3493_v39, -inf }
 0x81c   : > { %3554 = vmax.xlane.f32.xlu1 %v3553_v47  ;;  %3551 = vmax.xlane.f32.xlu0 %v3550_v48 }
 0x899   : > { %v3549_v49 = vpop.xlane.xlu1 %3548  ;;  %v3546_v50 = vpop.xlane.xlu0 %3545 }
 0x89a   : > { %v3557_v51 = vsub.f32 %v3447_v28, %v3549_v49  ;;  %v3556_v52 = vsub.f32 %v3401_v27, %v3546_v50 }
 0x89c   : > { %v3562_v53 = vmul.f32 1.442695, %v3557_v51  ;;  %v3560_v54 = vmul.f32 1.442695, %v3556_v52 }
 0x89e   : > { %5497 = vpow2.f32 %v3562_v53 }
 0x89f   : > { %5499 = vpow2.f32 %v3560_v54 }
 0x8a8   : > { %v5498_v55 = vpop.eup %5497 }
 0x8a9   : > { %v5500_v56 = vpop.eup %5499  ;;  %v3555_v58 = vpop.xlane.xlu1 %3554  ;;  %v3571_v60 = vsel %vm1903_vm4, %v5498_v55, 0.0 }
 0x8aa   : > { %v3552_v59 = vpop.xlane.xlu0 %3551  ;;  %v3559_v61 = vsub.f32 %v3539_v40, %v3555_v58  ;;  %3572 = vadd.xlane.f32.xlu1 %v3571_v60  ;;  %v3568_v63 = vsel %vm1903_vm4, %v5500_v56, 0.0 }
 0x8ab   : > { %v3558_v62 = vsub.f32 %v3493_v39, %v3552_v59  ;;  %3569 = vadd.xlane.f32.xlu0 %v3568_v63 }
 0x8ac   : > { %v3566_v0 = vmul.f32 1.442695, %v3559_v61 }
 0x8ad   : > { %v3564_v2 = vmul.f32 1.442695, %v3558_v62 }
 0x8ae   : > { %5501 = vpow2.f32 %v3566_v0 }
 0x8af   : > { %5503 = vpow2.f32 %v3564_v2 }
 0x8b8   : > { %v5502_v57 = vpop.eup %5501 }
 0x8b9   : > { %v5504_v3 = vpop.eup %5503  ;;  %v3577_v5 = vsel %vm1903_vm4, %v5502_v57, 0.0 }
 0x8ba   : > { %3578 = vadd.xlane.f32.xlu1 %v3577_v5  ;;  %v3574_v6 = vsel %vm1903_vm4, %v5504_v3, 0.0 }
 0x8bb   : > { %3575 = vadd.xlane.f32.xlu0 %v3574_v6 }
 0x937   : > { %v3573_v7 = vpop.xlane.xlu1 %3572 }
 0x938   : > { %5505 = vrcp.f32 %v3573_v7  ;;  %v3570_v8 = vpop.xlane.xlu0 %3569 }
 0x939   : > { %5507 = vrcp.f32 %v3570_v8  ;;  %v4683_v8 = vld [vmem:[%s6521_s13] ss:$0 sm:$0xff] }
 0x942   : > { %v5506_v12 = vpop.eup %5505 }
 0x943   : > { %v5508_v13 = vpop.eup %5507  ;;  %v3585_v17 = vmul.f32 %v5506_v12, %v5498_v55 }
 0x944   : > { %v3584_v19 = vmul.f32 %v5508_v13, %v5500_v56 }
 0x945   : > { %v3589_v20 = vpack.c.bf16 %v3585_v17, %v3585_v17 }
 0x946   : > { %v3588_v22 = vpack.c.bf16 %v3584_v19, %v3584_v19 }
 0x947   : > { %5282 = vmatmul.mubr.msk.bf16.vlgmr.msra.gmra.mrb[76].mxu1 %vm1903_vm4, %v3589_v20  ;;  %v3579_v24 = vpop.xlane.xlu1 %3578 }
 0x948   : > { %5292 = vmatpush3.bf16.msra.mxu1 %v3738_v23  ;;  %5509 = vrcp.f32 %v3579_v24  ;;  %5276 = vmatmul.mubr.msk.bf16.vlgmr.msra.gmra.mrb[84].mxu0 %vm1903_vm4, %v3588_v22  ;;  %v3576_v15 = vpop.xlane.xlu0 %3575  ;;  %v5467_v23 = vld [vmem:[%s6524_s16] sm:$0xff]   ;;  %v5469_v24 = vld [vmem:[%s6524_s16 + $0x10] sm:$0xff]  }
 0x949   : > { %5286 = vmatpush3.bf16.msra.mxu0 %v3692_v25  ;;  %5511 = vrcp.f32 %v3576_v15  ;;  %5287 = vmatprep.mubr.msk.bf16.mxu0 %vm5529_vm0, %v5528_v1  ;;  %v5470_v25 = vld [vmem:[%s6524_s16 + $0x18] sm:$0xff]   ;;  %v5471_v15 = vld [vmem:[%s6526_s18] sm:$0xff]  }
 0x94a   : > { %5293 = vmatprep.mubr.msk.bf16.mxu1 %vm5529_vm0, %v5528_v1  ;;  %5297 = vmatprep.subr.bf16.mxu0 %v5528_v1 }
 0x94b   : > { %5303 = vmatprep.subr.bf16.mxu1 %v5528_v1 }
 0x952   : > { %v5510_v16 = vpop.eup %5509 }
 0x953   : > { %v5512_v26 = vpop.eup %5511  ;;  %v3587_v27 = vmul.f32 %v5510_v16, %v5502_v57  ;;  %v5472_v16 = vld [vmem:[%s6526_s18 + $0x8] sm:$0xff]  }
 0x954   : > { %v3586_v28 = vmul.f32 %v5512_v26, %v5504_v3  ;;  %v5473_v26 = vld [vmem:[%s6526_s18 + $0x10] sm:$0xff]  }
 0x955   : > { %v3591_v29 = vpack.c.bf16 %v3587_v27, %v3587_v27  ;;  %v5474_v27 = vld [vmem:[%s6526_s18 + $0x18] sm:$0xff]  }
 0x956   : > { %v3590_v30 = vpack.c.bf16 %v3586_v28, %v3586_v28  ;;  %v5475_v28 = vld [vmem:[%s6526_s18 + $0x20] sm:$0xff]  }
 0x957   : > { %5294 = vmatmul.mubr.msk.bf16.vlgmr.msra.gmra.mrb[80].mxu1 %vm1903_vm4, %v3591_v29  ;;  %v5476_v29 = vld [vmem:[%s6526_s18 + $0x28] sm:$0xff]  }
 0x958   : > { %5288 = vmatmul.mubr.msk.bf16.vlgmr.msra.gmra.mrb[88].mxu0 %vm1903_vm4, %v3590_v30  ;;  %5305 = vmatprep.mubr.msk.bf16.mxu1 %vm5529_vm0, %v5528_v1 }
 0x959   : > { %5299 = vmatprep.mubr.msk.bf16.mxu0 %vm5529_vm0, %v5528_v1  ;;  %5298 = vmatpush3.bf16.msra.mxu0 %v5463_v31 }
 0x95a   : > { %5304 = vmatpush3.bf16.msra.mxu1 %v5464_v32  ;;  %5309 = vmatprep.subr.bf16.mxu0 %v5528_v1 }
 0x95b   : > { %5315 = vmatprep.subr.bf16.mxu1 %v5528_v1 }
 0xa1a   : > { %v3682_v33 = vpop.f32.mrb[76].mxu1 }
 0xa1b   : > { %v3636_v35 = vpop.f32.mrb[84].mxu0  ;;  %v3781_v36 = vpack.c.bf16 %v3682_v33, %v3682_v33  ;;  %v5283_v37 = vpop.f32.mrb[77].mxu1 }
 0xa1c   : > { %v3780_v39 = vpack.c.bf16 %v3636_v35, %v3636_v35  ;;  %v5277_v40 = vpop.f32.mrb[85].mxu0  ;;  %v3685_v41 = vpop.f32.mrb[78].mxu1 }
 0xa1d   : > { %v3639_v42 = vpop.f32.mrb[86].mxu0  ;;  %v5284_v43 = vpop.f32.mrb[79].mxu1  ;;  %5306 = vmatmul.mubr.msk.bf16.vlgmr.msra.gmra.mrb[84].mxu1 %vm1718_vm2, %v3781_v36  ;;  %v4685_v36 = vld [vmem:[%s6523_s15] ss:$0 sm:$0xff]  ;;  %v5477_v40 = vld [vmem:[%s6526_s18 + $0x30] sm:$0xff]   ;;  %v5478_v41 = vld [vmem:[%s6526_s18 + $0x38] sm:$0xff]  }
 0xa1e   : > { %v5278_v44 = vpop.f32.mrb[87].mxu0  ;;  %5300 = vmatmul.mubr.msk.bf16.vlgmr.msra.gmra.mrb[92].mxu0 %vm1718_vm2, %v3780_v39  ;;  %5316 = vmatpush3.bf16.msra.mxu1 %v5466_v34  ;;  %v4684_v34 = vld [vmem:[%s6522_s14] ss:$0 sm:$0xff] }
 0xa1f   : > { %5310 = vmatpush3.bf16.msra.mxu0 %v5465_v38  ;;  %5311 = vmatprep.mubr.msk.bf16.mxu0 %vm5529_vm0, %v5528_v1  ;;  %v4686_v42 = vld [vmem:[%s6525_s17] ss:$0 sm:$0xff] }
 0xa20   : > { %5317 = vmatprep.mubr.msk.bf16.mxu1 %vm5529_vm0, %v5528_v1  ;;  %5321 = vmatprep.subr.bf16.mxu0 %v5528_v1 }
 0xa21   : > { %5333 = vmatprep.subr.bf16.mxu1 %v5528_v1 }
 0xa2a   : > { %v3774_v45 = vpop.f32.mrb[80].mxu1 }
 0xa2b   : > { %v3728_v46 = vpop.f32.mrb[88].mxu0  ;;  %v3783_v47 = vpack.c.bf16 %v3774_v45, %v3774_v45  ;;  %v5295_v48 = vpop.f32.mrb[81].mxu1 }
 0xa2c   : > { %v3782_v49 = vpack.c.bf16 %v3728_v46, %v3728_v46  ;;  %v5289_v50 = vpop.f32.mrb[89].mxu0  ;;  %v3777_v51 = vpop.f32.mrb[82].mxu1 }
 0xa2d   : > { %v3731_v52 = vpop.f32.mrb[90].mxu0  ;;  %v5296_v53 = vpop.f32.mrb[83].mxu1  ;;  %5318 = vmatmul.mubr.msk.bf16.vlgmr.msra.gmra.mrb[88].mxu1 %vm1718_vm2, %v3783_v47 }
 0xa2e   : > { %v5290_v54 = vpop.f32.mrb[91].mxu0  ;;  %5312 = vmatmul.mubr.msk.bf16.vlgmr.msra.gmra.mrb[96].mxu0 %vm1718_vm2, %v3782_v49  ;;  %5349 = vmatprep.mubr.msk.bf16.mxu1 %vm5529_vm0, %v5528_v1 }
 0xa2f   : > { %5329 = vmatprep.mubr.msk.bf16.mxu0 %vm5529_vm0, %v5528_v1  ;;  %5322 = vmatpush3.bf16.msra.mxu0 %v5467_v23  ;;  %v4704_v23 = vld [vmem:[%s6531_s23] ss:$0 sm:$0xff] }
 0xa30   : > { %5323 = vmatprep.subr.bf16.mxu0 %v5528_v1  ;;  %5334 = vmatpush3.bf16.msra.mxu1 %v5471_v15 }
 0xa31   : > { %5335 = vmatprep.subr.bf16.mxu1 %v5528_v1 }
 0xa34   : > { %5336 = vmatpush3.bf16.msra.mxu1 %v5472_v16 }
 0xa35   : > { %5337 = vmatprep.subr.bf16.mxu1 %v5528_v1 }
 0xa38   : > { %5338 = vmatpush3.bf16.msra.mxu1 %v5473_v26 }
 0xa39   : > { %5339 = vmatprep.subr.bf16.mxu1 %v5528_v1 }
 0xa3c   : > { %5340 = vmatpush3.bf16.msra.mxu1 %v5474_v27 }
 0xa3d   : > { %5341 = vmatprep.subr.bf16.mxu1 %v5528_v1 }
 0xa40   : > { %5342 = vmatpush3.bf16.msra.mxu1 %v5475_v28 }
 0xa41   : > { %5343 = vmatprep.subr.bf16.mxu1 %v5528_v1 }
 0xa44   : > { %5344 = vmatpush3.bf16.msra.mxu1 %v5476_v29 }
 0xa45   : > { %5345 = vmatprep.subr.bf16.mxu1 %v5528_v1 }
 0xa48   : > { %5346 = vmatpush3.bf16.msra.mxu1 %v5477_v40 }
 0xa49   : > { %5347 = vmatprep.subr.bf16.mxu1 %v5528_v1 }
 0xa4c   : > { %5348 = vmatpush3.bf16.msra.mxu1 %v5478_v41 }
 0xaf0   : > { %v3884_v55 = vpop.f32.mrb[84].mxu1 }
 0xaf1   : > { %v3835_v56 = vpop.f32.mrb[92].mxu0  ;;  %v5307_v58 = vpop.f32.mrb[85].mxu1 }
 0xaf2   : > { %v3988_v59 = vadd.f32 %v3884_v55, %v3835_v56  ;;  %v5301_v60 = vpop.f32.mrb[93].mxu0  ;;  %v3887_v61 = vpop.f32.mrb[86].mxu1 }
 0xaf3   : > { %v3838_v62 = vpop.f32.mrb[94].mxu0  ;;  %v5308_v63 = vpop.f32.mrb[87].mxu1 }
 0xaf4   : > { %v5302_v0 = vpop.f32.mrb[95].mxu0 }
 0xb00   : > { %v3982_v2 = vpop.f32.mrb[88].mxu1 }
 0xb01   : > { %v3933_v57 = vpop.f32.mrb[96].mxu0  ;;  %v5319_v3 = vpop.f32.mrb[89].mxu1 }
 0xb02   : > { %v3989_v5 = vadd.f32 %v3988_v59, %v3933_v57  ;;  %v5313_v6 = vpop.f32.mrb[97].mxu0  ;;  %v3985_v7 = vpop.f32.mrb[90].mxu1  ;;  %v4701_v3 = vld [vmem:[%s6528_s20] ss:$0 sm:$0xff] }
 0xb03   : > { %v3936_v4 = vpop.f32.mrb[98].mxu0  ;;  %v5320_v9 = vpop.f32.mrb[91].mxu1  ;;  %v4702_v6 = vld [vmem:[%s6529_s21] ss:$0 sm:$0xff] }
 0xb04   : > { %v3990_v10 = vadd.f32 %v3989_v5, %v3982_v2  ;;  %v5314_v11 = vpop.f32.mrb[99].mxu0 }
 0xb06   : > { %v3998_v12 = vadd.f32 %v4683_v8, %v3990_v10 }
 0xb08   : > { %v3999_v13 = vadd.f32 %v3998_v12, %v6085_v21  ;;  %v5468_v21 = vld [vmem:[%s6524_s16 + $0x8] sm:$0xff]  }
 0xb09   : > { %5324 = vmatpush3.bf16.msra.mxu0 %v5468_v21 }
 0xb0a   : > { %v4002_v14 = vsel %vm838_vm1, %v3999_v13, 0.0  ;;  %5325 = vmatprep.subr.bf16.mxu0 %v5528_v1 }
 0xb0b   : > { %4003 = vadd.xlane.f32.xlu0 %v4002_v14 }
 0xb0d   : > { %5326 = vmatpush3.bf16.msra.mxu0 %v5469_v24 }
 0xb0e   : > { %5327 = vmatprep.subr.bf16.mxu0 %v5528_v1  ;;  %v4692_v1 = vld [vmem:[%s6527_s19] ss:$0 sm:$0xff] }
 0xb11   : > { %5328 = vmatpush3.bf16.msra.mxu0 %v5470_v25 }
 0xb98   : > { %v4004_v17 = vpop.xlane.xlu0 %4003 }
 0xb99   : > { %v4005_v18 = vmul.f32 0.015625, %v4004_v17 }
 0xb9b   : > { %v4006_v19 = vsub.f32 %v3999_v13, %v4005_v18 }
 0xb9d   : > { %v4007_v20 = vmul.f32 %v4006_v19, %v4006_v19 }
 0xb9f   : > { %v4008_v22 = vsel %vm838_vm1, %v4007_v20, 0.0  ;;  %v4703_v20 = vld [vmem:[%s6530_s22] ss:$0 sm:$0xff] }
 0xba0   : > { %4009 = vadd.xlane.f32.xlu1 %v4008_v22 }
 0xc2d   : > { %v4010_v30 = vpop.xlane.xlu1 %4009 }
 0xc2e   : > { %v4011_v31 = vmul.f32 0.015625, %v4010_v30 }
 0xc30   : > { %v4012_v32 = vadd.f32 1e-05, %v4011_v31 }
 0xc32   : > { %5513 = vrsqrt.f32 %v4012_v32 }
 0xc3c   : > { %v5514_v33 = vpop.eup %5513 }
 0xc3d   : > { %v4014_v35 = vmul.f32 %v5514_v33, %v4006_v19 }
 0xc3f   : > { %v4021_v37 = vmul.f32 %v4684_v34, %v4014_v35 }
 0xc41   : > { %v4028_v38 = vadd.f32 %v4685_v36, %v4021_v37 }
 0xc43   : > { %v4029_v39 = vpack.c.bf16 %v4028_v38, %v4028_v38 }
 0xc45   : > { %5330 = vmatmul.mubr.msk.bf16.vlgmr.msra.gmra.mrb[100].mxu0 %vm838_vm1, %v4029_v39 }
 0xd18   : > { %v4106_v43 = vpop.f32.mrb[100].mxu0 }
 0xd19   : > { %v4107_v44 = vadd.f32 %v4686_v42, %v4106_v43  ;;  %v5331_v45 = vpop.f32.mrb[101].mxu0 }
 0xd1a   : > { %v4109_v46 = vpop.f32.mrb[102].mxu0 }
 0xd1b   : > { %v4112_v47 = vmax.f32 %v4107_v44, 0.0  ;;  %v5332_v48 = vpop.f32.mrb[103].mxu0 }
 0xd1d   : > { %v4113_v49 = vpack.c.bf16 %v4112_v47, %v4112_v47 }
 0xd1f   : > { %5350 = vmatmul.mubr.bf16.vlgmr.msra.gmra.mrb[92].mxu1 %v4113_v49 }
 0xdf2   : > { %v4219_v50 = vpop.f32.mrb[92].mxu1 }
 0xdf3   : > { %v4220_v51 = vadd.f32 %v4692_v1, %v4219_v50  ;;  %v5351_v52 = vpop.f32.mrb[93].mxu1 }
 0xdf4   : > { %v4222_v53 = vpop.f32.mrb[94].mxu1 }
 0xdf5   : > { %v5352_v54 = vpop.f32.mrb[95].mxu1  ;;  %v4225_v55 = vadd.f32 %v4220_v51, %v4028_v38 }
 0xdf7   : > { %v4228_v56 = vsel %vm838_vm1, %v4225_v55, 0.0 }
 0xdf8   : > { %4229 = vadd.xlane.f32.xlu0 %v4228_v56 }
 0xe85   : > { %v4230_v58 = vpop.xlane.xlu0 %4229 }
 0xe86   : > { %v4231_v59 = vmul.f32 0.015625, %v4230_v58 }
 0xe88   : > { %v4232_v60 = vsub.f32 %v4225_v55, %v4231_v59 }
 0xe8a   : > { %v4233_v61 = vmul.f32 %v4232_v60, %v4232_v60 }
 0xe8c   : > { %v4234_v62 = vsel %vm838_vm1, %v4233_v61, 0.0 }
 0xe8d   : > { %4235 = vadd.xlane.f32.xlu1 %v4234_v62 }
 0xf1a   : > { %v4236_v63 = vpop.xlane.xlu1 %4235 }
 0xf1b   : > { %v4237_v0 = vmul.f32 0.015625, %v4236_v63 }
 0xf1d   : > { %v4238_v2 = vadd.f32 1e-05, %v4237_v0 }
 0xf1f   : > { %5515 = vrsqrt.f32 %v4238_v2 }
 0xf29   : > { %v5516_v57 = vpop.eup %5515 }
 0xf2a   : > { %v4240_v5 = vmul.f32 %v5516_v57, %v4232_v60 }
 0xf2c   : > { %v4247_v7 = vmul.f32 %v4701_v3, %v4240_v5 }
 0xf2e   : > { %v4254_v8 = vadd.f32 %v4702_v6, %v4247_v7 }
 0xf30   : > { %v4257_v4 = vsel %vm838_vm1, %v4254_v8, 0.0 }
 0xf31   : > { %4258 = vadd.xlane.f32.xlu0 %v4257_v4 }
 0xfbe   : > { %v4259_v9 = vpop.xlane.xlu0 %4258 }
 0xfbf   : > { %v4260_v10 = vmul.f32 0.015625, %v4259_v9 }
 0xfc1   : > { %v4261_v11 = vsub.f32 %v4254_v8, %v4260_v10 }
 0xfc3   : > { %v4262_v12 = vmul.f32 %v4261_v11, %v4261_v11 }
 0xfc5   : > { %v4263_v13 = vsel %vm838_vm1, %v4262_v12, 0.0 }
 0xfc6   : > { %4264 = vadd.xlane.f32.xlu1 %v4263_v13 }
0x1053   : > { %v4265_v14 = vpop.xlane.xlu1 %4264 }
0x1054   : > { %v4266_v17 = vmul.f32 0.015625, %v4265_v14 }
0x1056   : > { %v4267_v18 = vadd.f32 1e-05, %v4266_v17 }
0x1058   : > { %5517 = vrsqrt.f32 %v4267_v18 }
0x1062   : > { %v5518_v19 = vpop.eup %5517 }
0x1063   : > { %v4269_v22 = vmul.f32 %v5518_v19, %v4261_v11 }
0x1065   : > { %v4276_v21 = vmul.f32 %v4703_v20, %v4269_v22 }
0x1067   : > { %v4283_v24 = vadd.f32 %v4704_v23, %v4276_v21 }
0x1069   : > { %v4284_v25 = vpack.c.bf16 %v4283_v24, %v4283_v24 }
0x106b   : > { %4286 = vst.msk [vmem:[%s749_s0] sm:$0xf] %vm4285_vm5, %v4284_v25 }
0x106c PF: > { %s34_s5 = sadd.s32 1, %s5526_s5  }
0x106d   : > { %p31_p4 = scmp.ge.s32.totalorder %s34_s5, 4  }
0x106f   :  { %33 = sbr.rel (!%p31_p4) target bundleno = 10 (0xa), region = 157 }

// kernel: transformer_model_forward.9
= control target key start
LH: loop header
LB: loop body
LE: loop exit
PB: predicated region body
PF: predicated region fallthrough
CT: control target
= control target key end

     0   :  { %s512_s12 = smov 0   ;;  %s514_s13 = smov 0   ;;  %s560_s0 = inlined_call_operand.vmem [shape: bf16[16,64], index: 0, kind: input, shape index: {}]   ;;  %s561_s1 = inlined_call_operand.vmem [shape: bf16[64,128], index: 1, kind: input, shape index: {}]   ;;  %s562_s2 = inlined_call_operand.vmem [shape: f32[1,128], index: 2, kind: input, shape index: {}]   ;;  %s563_s3 = inlined_call_operand.vmem [shape: f32[16,128], index: 3, kind: output, shape index: {}]  }
   0x1   :  { %s516_s14 = smov 0  }
   0x2 LB: > { %s25_s15 = sadd.s32 1, %s484_s13  ;;  %p408_p0 = scmp.ge.s32.totalorder %s488_s14, 1  ;;  %s488_s14 = sphi %s516_s14, %s13_s14   ;;  %s484_s13 = sphi %s514_s13, %s565_s13   ;;  %s480_s12 = sphi %s512_s12, %s564_s12  }
   0x3   : > { %p27_p1 = scmp.ge.s32.totalorder %s25_s15, 2  ;;  %p167_p2 = scmp.lt.s32.totalorder %s488_s14, 3 }
   0x5   : > { %s567_s15 = smov (%p27_p1, %s25_s15), 0  ;;  %p168_p3 = pnand %p408_p0, %p167_p2 }
   0x6   : > { %v462_v0 = vld [vmem:[%s561_s1] sm:$0xff] (!%p168_p3)   ;;  %v490_v1 = vmov (!%p168_p3), 0.0   ;;  %v463_v2 = vld [vmem:[%s561_s1 + $0x8] sm:$0xff] (!%p168_p3)   ;;  %vm491_vm0 = vmmov (!%p168_p3), 0   ;;  %p199_p4 = scmp.lt.s32.totalorder (!%p168_p3), %s480_s12, 1  ;;  %v464_v3 = vld [vmem:[%s561_s1 + $0x10] sm:$0xff] (!%p168_p3)  }
   0x7   : > { %171 = sbr.rel (%p168_p3) target bundleno = 238 (0xee), region = 32  ;;  %424 = vmatprep.subr.bf16.mxu0 (!%p168_p3), %v490_v1  ;;  %432 = vmatprep.mubr.msk.bf16.mxu0 (!%p168_p3), %vm491_vm0, %v490_v1  ;;  %v465_v4 = vld [vmem:[%s561_s1 + $0x18] sm:$0xff] (!%p168_p3)   ;;  %vm258_vm1 = vcmask (!%p168_p3), 523264   ;;  %v411_v6 = vld [vmem:[%s562_s2] ss:$0 sm:$0xff] (!%p168_p3) }
   0x8   : > { %425 = vmatpush3.bf16.msra.mxu0 (!%p168_p3), %v462_v0 }
   0x9   : > { %426 = vmatprep.subr.bf16.mxu0 (!%p168_p3), %v490_v1 }
   0xc   : > { %427 = vmatpush3.bf16.msra.mxu0 (!%p168_p3), %v463_v2 }
   0xd   : > { %428 = vmatprep.subr.bf16.mxu0 (!%p168_p3), %v490_v1 }
   0xe   : > { %s569_s12 = smov (!%p199_p4, %s480_s12), 1 }
   0xf   : > { %s409_s22 = sshll.u32 %s569_s12, 2  ;;  %s410_s28 = sshll.u32 %s569_s12, 3 }
  0x10   : > { %429 = vmatpush3.bf16.msra.mxu0 %v464_v3  ;;  %s202_s27 = scalar_lea.vmem %s560_s0, %s409_s22  ;;  %s216_s6 = scalar_lea.vmem %s563_s3, %s410_s28 }
  0x11   : > { %430 = vmatprep.subr.bf16.mxu0 %v490_v1  ;;  %v218_v5 = vld [vmem:[%s202_s27] sm:$0xf] }
  0x14   : > { %431 = vmatpush3.bf16.msra.mxu0 %v465_v4 }
  0x17   : > { %433 = vmatmul.mubr.msk.bf16.vlgmr.msra.gmra.mrb[0].mxu0 %vm258_vm1, %v218_v5 }
  0xea   : > { %v296_v7 = vpop.f32.mrb[0].mxu0 }
  0xeb   : > { %v297_v8 = vadd.f32 %v411_v6, %v296_v7  ;;  %v434_v9 = vpop.f32.mrb[1].mxu0 }
  0xec   : > { %v299_v10 = vpop.f32.mrb[2].mxu0 }
  0xed   : > { %302 = vst [vmem:[%s216_s6] sm:$0xff] %v297_v8  ;;  %v435_v11 = vpop.f32.mrb[3].mxu0 }
  0xee PF: > { %s13_s14 = sadd.s32 1, %s488_s14   ;;  %s564_s12 = smov %s484_s13 }
  0xef   : > { %p10_p5 = scmp.ge.s32.totalorder %s13_s14, 4   ;;  %s565_s13 = smov %s567_s15 }
  0xf1   :  { %12 = sbr.rel (!%p10_p5) target bundleno = 2 (0x2), region = 68 }

</bundles_post_ra>
